<compile_context>
chip_gen: v6e
topology: v6e:2x2x1
jax: 0.10.0
libtpu: 0.0.40
codegen_flags: <defaults>
</compile_context>

<pallas_src>
import jax
import jax.numpy as jnp
from jax.experimental import pallas as pl
from jax.experimental.pallas import tpu as pltpu

IMG_SIZE = 64
IN_DIM = IMG_SIZE * IMG_SIZE * 3      # 12288
HID = 4096
LATENT = 20
HEAD_PAD = 128                        # lane-padded width per head (mu / logvar)


# ---------------------------------------------------------------------------
# Kernel 1: h1 = relu(x @ W1_T + b1)
# grid = (N // tn, K // tk); K (reduction) is the last, 'arbitrary' axis.
# Accumulates directly into the resident f32 output block.
# ---------------------------------------------------------------------------
def fc1_relu_kernel(x_ref, w_ref, b_ref, o_ref):
    k = pl.program_id(1)

    @pl.when(k == 0)
    def _():
        o_ref[...] = jnp.zeros_like(o_ref)

    o_ref[...] += jnp.dot(x_ref[...], w_ref[...],
                          preferred_element_type=jnp.float32)

    @pl.when(k == pl.num_programs(1) - 1)
    def _():
        o_ref[...] = jnp.maximum(o_ref[...] + b_ref[...], 0.0)


def fc1_relu(x, w_t, b, *, tk=3072, tn=1024):
    B, K = x.shape
    _, N = w_t.shape
    assert K % tk == 0 and N % tn == 0, "fc1 tile sizes must divide (K, N)"
    return pl.pallas_call(
        fc1_relu_kernel,
        out_shape=jax.ShapeDtypeStruct((B, N), jnp.float32),
        grid_spec=pltpu.PrefetchScalarGridSpec(
            num_scalar_prefetch=0,
            grid=(N // tn, K // tk),
            in_specs=[
                pl.BlockSpec((B, tk), lambda n, k: (0, k)),   # x (bf16)
                pl.BlockSpec((tk, tn), lambda n, k: (k, n)),  # W1_T (bf16)
                pl.BlockSpec((1, tn), lambda n, k: (0, n)),   # b1 (f32)
            ],
            out_specs=pl.BlockSpec((B, tn), lambda n, k: (0, n)),
        ),
        compiler_params=pltpu.CompilerParams(
            dimension_semantics=("parallel", "arbitrary"),
            vmem_limit_bytes=32 * 1024 * 1024),
    )(x, w_t, b)


# ---------------------------------------------------------------------------
# Kernel 2 (head): one fused, lane-padded matmul producing [mu | logvar],
# then z = mu + eps * exp(0.5 * logvar).  Everything fits VMEM -> single step.
# ---------------------------------------------------------------------------
def head_kernel(h_ref, w_ref, b_ref, eps_ref, z_ref):
    h = h_ref[...].astype(jnp.bfloat16)
    y = jnp.dot(h, w_ref[...], preferred_element_type=jnp.float32) + b_ref[...]
    mu = y[:, :HEAD_PAD]
    logvar = y[:, HEAD_PAD:]
    z_ref[...] = mu + eps_ref[...] * jnp.exp(0.5 * logvar)


def reparam_head(h1, w_head, b_head, eps_pad):
    B, H = h1.shape
    W2 = w_head.shape[1]                       # 2 * HEAD_PAD
    full = lambda shape: pl.BlockSpec(shape, lambda i: (0, 0))
    return pl.pallas_call(
        head_kernel,
        out_shape=jax.ShapeDtypeStruct((B, HEAD_PAD), jnp.float32),
        grid_spec=pltpu.PrefetchScalarGridSpec(
            num_scalar_prefetch=0,
            grid=(1,),
            in_specs=[
                full((B, H)),          # h1 (f32)
                full((H, W2)),         # [W21_T | pad | W22_T | pad] (bf16)
                full((1, W2)),         # [b21 | 0 | b22 | 0] (f32)
                full((B, HEAD_PAD)),   # eps, zero-padded to 128 lanes
            ],
            out_specs=full((B, HEAD_PAD)),
        ),
        compiler_params=pltpu.CompilerParams(
            dimension_semantics=("arbitrary",)),
    )(h1, w_head, b_head, eps_pad)


# ---------------------------------------------------------------------------
# Parameter init (deterministic, PyTorch-style uniform(-1/sqrt(fan_in), ...))
# ---------------------------------------------------------------------------
def init_params(key):
    def linear(k, fan_in, fan_out):
        kw, kb = jax.random.split(k)
        bound = 1.0 / jnp.sqrt(fan_in)
        w_t = jax.random.uniform(kw, (fan_in, fan_out), jnp.float32,
                                 -bound, bound)
        b = jax.random.uniform(kb, (fan_out,), jnp.float32, -bound, bound)
        return w_t, b

    k1, k21, k22 = jax.random.split(key, 3)
    w1, b1 = linear(k1, IN_DIM, HID)
    w21, b21 = linear(k21, HID, LATENT)
    w22, b22 = linear(k22, HID, LATENT)

    # Fused, lane-padded head weights: cols [0:20]=W21_T, [128:148]=W22_T.
    head_w = jnp.zeros((HID, 2 * HEAD_PAD), jnp.float32)
    head_w = head_w.at[:, :LATENT].set(w21)
    head_w = head_w.at[:, HEAD_PAD:HEAD_PAD + LATENT].set(w22)
    head_b = jnp.zeros((1, 2 * HEAD_PAD), jnp.float32)
    head_b = head_b.at[0, :LATENT].set(b21)
    head_b = head_b.at[0, HEAD_PAD:HEAD_PAD + LATENT].set(b22)

    # TODO(synk): fc3/fc31/fc4 (decode path) exist in __init__ but are never
    # used by forward(), so they are not materialized here.
    return {
        "fc1_w": w1.astype(jnp.bfloat16),     # streamed in bf16 (HBM-bound)
        "fc1_b": b1.reshape(1, HID),          # f32 bias
        "head_w": head_w.astype(jnp.bfloat16),
        "head_b": head_b,                     # f32 bias
    }


# ---------------------------------------------------------------------------
# VAE.forward: x -> z
# ---------------------------------------------------------------------------
@jax.jit
def vae_forward(params, x_nchw, eps):
    B = x_nchw.shape[0]
    x = x_nchw.reshape(B, IN_DIM).astype(jnp.bfloat16)   # == x.view(-1, 12288)
    h1 = fc1_relu(x, params["fc1_w"], params["fc1_b"])
    eps_pad = jnp.zeros((B, HEAD_PAD), jnp.float32).at[:, :LATENT].set(eps)
    z_pad = reparam_head(h1, params["head_w"], params["head_b"], eps_pad)
    return z_pad[:, :LATENT]


if __name__ == "__main__":
    key = jax.random.PRNGKey(0)
    k_params, k_x, k_eps = jax.random.split(key, 3)

    params = init_params(k_params)

    B = 2
    x = jax.random.uniform(k_x, (B, 3, IMG_SIZE, IMG_SIZE), jnp.float32)
    # eps ~ N(0, 1), same role as torch.randn_like(std) in reparameterize
    eps = jax.random.normal(k_eps, (B, LATENT), jnp.float32)

    z = vae_forward(params, x, eps)
    jax.block_until_ready(z)
    assert z.shape == (B, LATENT)

    # Reference in plain JAX, mirroring the kernel's bf16-input / f32-accum math.
    x_bf = x.reshape(B, IN_DIM).astype(jnp.bfloat16)
    h1_ref = jnp.maximum(
        jnp.dot(x_bf, params["fc1_w"], preferred_element_type=jnp.float32)
        + params["fc1_b"], 0.0)
    h1_bf = h1_ref.astype(jnp.bfloat16)
    w21_bf = params["head_w"][:, :LATENT]
    w22_bf = params["head_w"][:, HEAD_PAD:HEAD_PAD + LATENT]
    b21 = params["head_b"][0, :LATENT]
    b22 = params["head_b"][0, HEAD_PAD:HEAD_PAD + LATENT]
    mu_ref = jnp.dot(h1_bf, w21_bf, preferred_element_type=jnp.float32) + b21
    logvar_ref = jnp.dot(h1_bf, w22_bf, preferred_element_type=jnp.float32) + b22
    z_ref = mu_ref + eps * jnp.exp(0.5 * logvar_ref)

    assert jnp.allclose(z, z_ref, atol=5e-3, rtol=5e-3), (
        float(jnp.max(jnp.abs(z - z_ref))))

    print("KERNEL_OK")
</pallas_src>

<mosaic_0001>
module attributes {stable_mosaic.version = 11 : i64} {
  func.func @fc1_relu_kernel(%arg0: i32, %arg1: i32, %arg2: memref<2x3072xbf16, #tpu.memory_space<vmem>>, %arg3: memref<3072x1024xbf16, #tpu.memory_space<vmem>>, %arg4: memref<1x1024xf32, #tpu.memory_space<vmem>>, %arg5: memref<2x1024xf32, #tpu.memory_space<vmem>>) attributes {dimension_semantics = [#tpu.dimension_semantics<parallel>, #tpu.dimension_semantics<arbitrary>], iteration_bounds = array<i64: 4, 4>, scalar_prefetch = 0 : i64, scratch_operands = 0 : i64, tpu.core_type = #tpu.core_type<tc>, window_params = [{transform_indices = @transform_0, window_bounds = array<i64: 2, 3072>}, {transform_indices = @transform_1, window_bounds = array<i64: 3072, 1024>}, {transform_indices = @transform_2, window_bounds = array<i64: 1, 1024>}, {transform_indices = @transform_3, window_bounds = array<i64: 2, 1024>}]} {
    %c0_i32 = arith.constant 0 : i32
    %0 = arith.cmpi eq, %arg1, %c0_i32 : i32
    %1 = arith.extui %0 : i1 to i32
    %c0_i32_0 = arith.constant 0 : i32
    %2 = arith.cmpi ne, %1, %c0_i32_0 : i32
    scf.if %2 {
      %cst_9 = arith.constant 0.000000e+00 : f32
      %12 = vector.broadcast %cst_9 : f32 to vector<2x1024xf32>
      %c0_10 = arith.constant 0 : index
      %c0_11 = arith.constant 0 : index
      %13 = vector.load %arg5[%c0_10, %c0_11] : memref<2x1024xf32, #tpu.memory_space<vmem>>, vector<2x1024xf32>
      tpu.vector_store %arg5[%c0_10, %c0_11], %12 {strides = array<i32>} : memref<2x1024xf32, #tpu.memory_space<vmem>>, vector<2x1024xf32>,
    } else {
    }
    %c0 = arith.constant 0 : index
    %c0_1 = arith.constant 0 : index
    %3 = vector.load %arg5[%c0, %c0_1] : memref<2x1024xf32, #tpu.memory_space<vmem>>, vector<2x1024xf32>
    %c0_2 = arith.constant 0 : index
    %c0_3 = arith.constant 0 : index
    %4 = vector.load %arg2[%c0_2, %c0_3] : memref<2x3072xbf16, #tpu.memory_space<vmem>>, vector<2x3072xbf16>
    %c0_4 = arith.constant 0 : index
    %c0_5 = arith.constant 0 : index
    %5 = vector.load %arg3[%c0_4, %c0_5] : memref<3072x1024xbf16, #tpu.memory_space<vmem>>, vector<3072x1024xbf16>
    %cst = arith.constant dense<0.000000e+00> : vector<2x1024xf32>
    %6 = tpu.matmul %4, %5, %cst {dimension_numbers = #tpu.dot_dimension_numbers<[1], [0], [0], [1], [0, 0, 1, 1], [], []>} : vector<2x3072xbf16>, vector<3072x1024xbf16>, vector<2x1024xf32> -> vector<2x1024xf32>
    %7 = arith.addf %3, %6 : vector<2x1024xf32>
    %c0_6 = arith.constant 0 : index
    %c0_7 = arith.constant 0 : index
    %8 = vector.load %arg5[%c0_6, %c0_7] : memref<2x1024xf32, #tpu.memory_space<vmem>>, vector<2x1024xf32>
    tpu.vector_store %arg5[%c0_6, %c0_7], %7 {strides = array<i32>} : memref<2x1024xf32, #tpu.memory_space<vmem>>, vector<2x1024xf32>,
    %c3_i32 = arith.constant 3 : i32
    %9 = arith.cmpi eq, %arg1, %c3_i32 : i32
    %10 = arith.extui %9 : i1 to i32
    %c0_i32_8 = arith.constant 0 : i32
    %11 = arith.cmpi ne, %10, %c0_i32_8 : i32
    scf.if %11 {
      %c0_9 = arith.constant 0 : index
      %c0_10 = arith.constant 0 : index
      %12 = vector.load %arg5[%c0_9, %c0_10] : memref<2x1024xf32, #tpu.memory_space<vmem>>, vector<2x1024xf32>
      %c0_11 = arith.constant 0 : index
      %c0_12 = arith.constant 0 : index
      %13 = vector.load %arg4[%c0_11, %c0_12] : memref<1x1024xf32, #tpu.memory_space<vmem>>, vector<1x1024xf32>
      %14 = vector.broadcast %13 : vector<1x1024xf32> to vector<2x1024xf32>
      %15 = arith.addf %12, %14 : vector<2x1024xf32>
      %cst_13 = arith.constant 0.000000e+00 : f32
      %16 = vector.broadcast %cst_13 : f32 to vector<2x1024xf32>
      %17 = arith.maximumf %15, %16 : vector<2x1024xf32>
      %c0_14 = arith.constant 0 : index
      %c0_15 = arith.constant 0 : index
      %18 = vector.load %arg5[%c0_14, %c0_15] : memref<2x1024xf32, #tpu.memory_space<vmem>>, vector<2x1024xf32>
      tpu.vector_store %arg5[%c0_14, %c0_15], %17 {strides = array<i32>} : memref<2x1024xf32, #tpu.memory_space<vmem>>, vector<2x1024xf32>,
    } else {
    }
    return
  }
  func.func @transform_0(%arg0: i32, %arg1: i32) -> (i32, i32) {
    %c0_i32 = arith.constant 0 : i32
    %c0_i32_0 = arith.constant 0 : i32
    return %c0_i32, %arg1 : i32, i32
  }
  func.func @transform_1(%arg0: i32, %arg1: i32) -> (i32, i32) {
    %c0_i32 = arith.constant 0 : i32
    return %arg1, %arg0 : i32, i32
  }
  func.func @transform_2(%arg0: i32, %arg1: i32) -> (i32, i32) {
    %c0_i32 = arith.constant 0 : i32
    %c0_i32_0 = arith.constant 0 : i32
    return %c0_i32, %arg0 : i32, i32
  }
  func.func @transform_3(%arg0: i32, %arg1: i32) -> (i32, i32) {
    %c0_i32 = arith.constant 0 : i32
    %c0_i32_0 = arith.constant 0 : i32
    return %c0_i32, %arg0 : i32, i32
  }
}

module attributes {stable_mosaic.version = 11 : i64} {
  func.func @head_kernel(%arg0: i32, %arg1: memref<2x4096xf32, #tpu.memory_space<vmem>>, %arg2: memref<4096x256xbf16, #tpu.memory_space<vmem>>, %arg3: memref<1x256xf32, #tpu.memory_space<vmem>>, %arg4: memref<2x128xf32, #tpu.memory_space<vmem>>, %arg5: memref<2x128xf32, #tpu.memory_space<vmem>>) attributes {dimension_semantics = [#tpu.dimension_semantics<arbitrary>], iteration_bounds = array<i64: 1>, scalar_prefetch = 0 : i64, scratch_operands = 0 : i64, tpu.core_type = #tpu.core_type<tc>, window_params = [{pipeline_mode = #tpu.pipeline_mode<synchronous>, transform_indices = @transform_0, window_bounds = array<i64: 2, 4096>}, {pipeline_mode = #tpu.pipeline_mode<synchronous>, transform_indices = @transform_1, window_bounds = array<i64: 4096, 256>}, {pipeline_mode = #tpu.pipeline_mode<synchronous>, transform_indices = @transform_2, window_bounds = array<i64: 1, 256>}, {pipeline_mode = #tpu.pipeline_mode<synchronous>, transform_indices = @transform_3, window_bounds = array<i64: 2, 128>}, {pipeline_mode = #tpu.pipeline_mode<synchronous>, transform_indices = @transform_4, window_bounds = array<i64: 2, 128>}]} {
    %c0 = arith.constant 0 : index
    %c0_0 = arith.constant 0 : index
    %0 = vector.load %arg1[%c0, %c0_0] : memref<2x4096xf32, #tpu.memory_space<vmem>>, vector<2x4096xf32>
    %1 = arith.truncf %0 : vector<2x4096xf32> to vector<2x4096xbf16>
    %c0_1 = arith.constant 0 : index
    %c0_2 = arith.constant 0 : index
    %2 = vector.load %arg2[%c0_1, %c0_2] : memref<4096x256xbf16, #tpu.memory_space<vmem>>, vector<4096x256xbf16>
    %cst = arith.constant dense<0.000000e+00> : vector<2x256xf32>
    %3 = tpu.matmul %1, %2, %cst {dimension_numbers = #tpu.dot_dimension_numbers<[1], [0], [0], [1], [0, 0, 1, 1], [], []>} : vector<2x4096xbf16>, vector<4096x256xbf16>, vector<2x256xf32> -> vector<2x256xf32>
    %c0_3 = arith.constant 0 : index
    %c0_4 = arith.constant 0 : index
    %4 = vector.load %arg3[%c0_3, %c0_4] : memref<1x256xf32, #tpu.memory_space<vmem>>, vector<1x256xf32>
    %5 = vector.broadcast %4 : vector<1x256xf32> to vector<2x256xf32>
    %6 = arith.addf %3, %5 : vector<2x256xf32>
    %7 = vector.extract_strided_slice %6 {offsets = [0, 0], sizes = [2, 128], strides = [1, 1]} : vector<2x256xf32> to vector<2x128xf32>
    %8 = vector.extract_strided_slice %6 {offsets = [0, 128], sizes = [2, 128], strides = [1, 1]} : vector<2x256xf32> to vector<2x128xf32>
    %c0_5 = arith.constant 0 : index
    %c0_6 = arith.constant 0 : index
    %9 = vector.load %arg4[%c0_5, %c0_6] : memref<2x128xf32, #tpu.memory_space<vmem>>, vector<2x128xf32>
    %cst_7 = arith.constant 5.000000e-01 : f32
    %10 = vector.broadcast %cst_7 : f32 to vector<2x128xf32>
    %11 = arith.mulf %10, %8 : vector<2x128xf32>
    %12 = math.exp %11 : vector<2x128xf32>
    %13 = arith.mulf %9, %12 : vector<2x128xf32>
    %14 = arith.addf %7, %13 : vector<2x128xf32>
    %c0_8 = arith.constant 0 : index
    %c0_9 = arith.constant 0 : index
    %15 = vector.load %arg5[%c0_8, %c0_9] : memref<2x128xf32, #tpu.memory_space<vmem>>, vector<2x128xf32>
    tpu.vector_store %arg5[%c0_8, %c0_9], %14 {strides = array<i32>} : memref<2x128xf32, #tpu.memory_space<vmem>>, vector<2x128xf32>,
    return
  }
  func.func @transform_0(%arg0: i32) -> (i32, i32) {
    %c0_i32 = arith.constant 0 : i32
    %c0_i32_0 = arith.constant 0 : i32
    %c0_i32_1 = arith.constant 0 : i32
    return %c0_i32, %c0_i32_0 : i32, i32
  }
  func.func @transform_1(%arg0: i32) -> (i32, i32) {
    %c0_i32 = arith.constant 0 : i32
    %c0_i32_0 = arith.constant 0 : i32
    %c0_i32_1 = arith.constant 0 : i32
    return %c0_i32, %c0_i32_0 : i32, i32
  }
  func.func @transform_2(%arg0: i32) -> (i32, i32) {
    %c0_i32 = arith.constant 0 : i32
    %c0_i32_0 = arith.constant 0 : i32
    %c0_i32_1 = arith.constant 0 : i32
    return %c0_i32, %c0_i32_0 : i32, i32
  }
  func.func @transform_3(%arg0: i32) -> (i32, i32) {
    %c0_i32 = arith.constant 0 : i32
    %c0_i32_0 = arith.constant 0 : i32
    %c0_i32_1 = arith.constant 0 : i32
    return %c0_i32, %c0_i32_0 : i32, i32
  }
  func.func @transform_4(%arg0: i32) -> (i32, i32) {
    %c0_i32 = arith.constant 0 : i32
    %c0_i32_0 = arith.constant 0 : i32
    %c0_i32_1 = arith.constant 0 : i32
    return %c0_i32, %c0_i32_0 : i32, i32
  }
}

</mosaic_0001>

<bundles_post_ra>
// kernel: vae_forward.3
= control target key start
LH: loop header
LB: loop body
LE: loop exit
PB: predicated region body
PF: predicated region fallthrough
CT: control target
= control target key end

     0   :  { %v5309_v36 = vmov 1983009808   ;;  %v38_v38 = vlaneseq  ;;  %s7036_s0 = inlined_call_operand.vmem [shape: f32[2,4096], index: 0, kind: input, shape index: {}]   ;;  %s7037_s1 = inlined_call_operand.vmem [shape: bf16[4096,256], index: 1, kind: input, shape index: {}]   ;;  %s7038_s2 = inlined_call_operand.vmem [shape: f32[1,256], index: 2, kind: input, shape index: {}]   ;;  %s7039_s3 = inlined_call_operand.vmem [shape: f32[2,128], index: 3, kind: input, shape index: {}]   ;;  %s7040_s4 = inlined_call_operand.hbm [shape: f32[2,128], index: 4, kind: output, shape index: {}]  }
   0x1   :  { %v4509_v0 = vld [vmem:[%s7037_s1 + $0x74] ss:$8 sps:$4 sm:$0xff]   ;;  %v4513_v2 = vld [vmem:[%s7037_s1 + $0x70] ss:$8 sps:$4 sm:$0xff]   ;;  %v4515_v4 = vld [vmem:[%s7037_s1 + $0x64] ss:$8 sps:$4 sm:$0xff]   ;;  %v36_v37 = vunpack.c.l.s4 %v5309_v36 }
   0x2   :  { %v4511_v1 = vld [vmem:[%s7037_s1 + $0x174] ss:$8 sps:$4 sm:$0xff]   ;;  %3318 = vmatprep.subr.bf16.mxu0 %v4509_v0  ;;  %v4514_v3 = vld [vmem:[%s7037_s1 + $0x170] ss:$8 sps:$4 sm:$0xff]   ;;  %v4517_v5 = vld [vmem:[%s7037_s1 + $0x164] ss:$8 sps:$4 sm:$0xff]  }
   0x3   :  { %3359 = vmatprep.subr.bf16.mxu1 %v4511_v1  ;;  %3319 = vmatpush1.bf16.msra.mxu0 %v4513_v2  ;;  %v4519_v6 = vld [vmem:[%s7037_s1 + $0x60] ss:$8 sps:$4 sm:$0xff]   ;;  %v4521_v8 = vld [vmem:[%s7037_s1 + $0x54] ss:$8 sps:$4 sm:$0xff]   ;;  %v4525_v10 = vld [vmem:[%s7037_s1 + $0x50] ss:$8 sps:$4 sm:$0xff]   ;;  %v37_v42 = vunpack.c.0.s8 %v36_v37 }
   0x4   :  { %3360 = vmatpush1.bf16.msra.mxu1 %v4514_v3  ;;  %3320 = vmatprep.subr.bf16.mxu0 %v4515_v4  ;;  %v4520_v7 = vld [vmem:[%s7037_s1 + $0x160] ss:$8 sps:$4 sm:$0xff]   ;;  %v4523_v9 = vld [vmem:[%s7037_s1 + $0x154] ss:$8 sps:$4 sm:$0xff]   ;;  %v4526_v11 = vld [vmem:[%s7037_s1 + $0x150] ss:$8 sps:$4 sm:$0xff]  }
   0x5   :  { %3361 = vmatprep.subr.bf16.mxu1 %v4517_v5  ;;  %v4527_v12 = vld [vmem:[%s7037_s1 + $0x44] ss:$8 sps:$4 sm:$0xff]   ;;  %v4531_v14 = vld [vmem:[%s7037_s1 + $0x40] ss:$8 sps:$4 sm:$0xff]   ;;  %v4533_v16 = vld [vmem:[%s7037_s1 + $0x34] ss:$8 sps:$4 sm:$0xff]  }
   0x6   :  { %v4529_v13 = vld [vmem:[%s7037_s1 + $0x144] ss:$8 sps:$4 sm:$0xff]   ;;  %v4532_v15 = vld [vmem:[%s7037_s1 + $0x140] ss:$8 sps:$4 sm:$0xff]   ;;  %v4535_v17 = vld [vmem:[%s7037_s1 + $0x134] ss:$8 sps:$4 sm:$0xff]  }
   0x7   :  { %3321 = vmatpush1.bf16.msra.mxu0 %v4519_v6  ;;  %v4537_v18 = vld [vmem:[%s7037_s1 + $0x30] ss:$8 sps:$4 sm:$0xff]   ;;  %v4539_v20 = vld [vmem:[%s7037_s1 + $0x24] ss:$8 sps:$4 sm:$0xff]   ;;  %v4543_v22 = vld [vmem:[%s7037_s1 + $0x20] ss:$8 sps:$4 sm:$0xff]  }
   0x8   :  { %3362 = vmatpush1.bf16.msra.mxu1 %v4520_v7  ;;  %3322 = vmatprep.subr.bf16.mxu0 %v4521_v8  ;;  %v4538_v19 = vld [vmem:[%s7037_s1 + $0x130] ss:$8 sps:$4 sm:$0xff]   ;;  %v4541_v21 = vld [vmem:[%s7037_s1 + $0x124] ss:$8 sps:$4 sm:$0xff]   ;;  %v4544_v23 = vld [vmem:[%s7037_s1 + $0x120] ss:$8 sps:$4 sm:$0xff]  }
   0x9   :  { %3363 = vmatprep.subr.bf16.mxu1 %v4523_v9  ;;  %v4545_v24 = vld [vmem:[%s7037_s1 + $0x14] ss:$8 sps:$4 sm:$0xff]   ;;  %v4549_v26 = vld [vmem:[%s7037_s1 + $0x10] ss:$8 sps:$4 sm:$0xff]   ;;  %v4551_v28 = vld [vmem:[%s7037_s1 + $0x4] ss:$8 sps:$4 sm:$0xff]  }
   0xa   :  { %v4547_v25 = vld [vmem:[%s7037_s1 + $0x114] ss:$8 sps:$4 sm:$0xff]   ;;  %v4550_v27 = vld [vmem:[%s7037_s1 + $0x110] ss:$8 sps:$4 sm:$0xff]   ;;  %v4553_v29 = vld [vmem:[%s7037_s1 + $0x104] ss:$8 sps:$4 sm:$0xff]  }
   0xb   :  { %3323 = vmatpush1.bf16.msra.mxu0 %v4525_v10  ;;  %v4555_v30 = vld [vmem:[%s7037_s1] ss:$8 sps:$4 sm:$0xff]   ;;  %v4557_v32 = vld [vmem:[%s7037_s1 + $0xf4] ss:$8 sps:$4 sm:$0xff]   ;;  %v4561_v34 = vld [vmem:[%s7037_s1 + $0xf0] ss:$8 sps:$4 sm:$0xff]  }
   0xc   :  { %3364 = vmatpush1.bf16.msra.mxu1 %v4526_v11  ;;  %3324 = vmatprep.subr.bf16.mxu0 %v4527_v12  ;;  %v4556_v31 = vld [vmem:[%s7037_s1 + $0x100] ss:$8 sps:$4 sm:$0xff]   ;;  %v4559_v33 = vld [vmem:[%s7037_s1 + $0x1f4] ss:$8 sps:$4 sm:$0xff]   ;;  %v4562_v35 = vld [vmem:[%s7037_s1 + $0x1f0] ss:$8 sps:$4 sm:$0xff]  }
   0xd   :  { %3365 = vmatprep.subr.bf16.mxu1 %v4529_v13  ;;  %v4563_v39 = vld [vmem:[%s7037_s1 + $0xe4] ss:$8 sps:$4 sm:$0xff]   ;;  %v4567_v41 = vld [vmem:[%s7037_s1 + $0xe0] ss:$8 sps:$4 sm:$0xff]   ;;  %v5453_v43 = vshrl.u32 %v38_v38, 7 }
   0xe   :  { %v4565_v40 = vld [vmem:[%s7037_s1 + $0x1e4] ss:$8 sps:$4 sm:$0xff]   ;;  %v4568_v44 = vld [vmem:[%s7037_s1 + $0x1e0] ss:$8 sps:$4 sm:$0xff]   ;;  %v4569_v45 = vld [vmem:[%s7037_s1 + $0xd4] ss:$8 sps:$4 sm:$0xff]  }
   0xf   :  { %3325 = vmatpush1.bf16.msra.mxu0 %v4531_v14  ;;  %v4571_v46 = vld [vmem:[%s7037_s1 + $0x1d4] ss:$8 sps:$4 sm:$0xff]   ;;  %v4573_v47 = vld [vmem:[%s7037_s1 + $0xd0] ss:$8 sps:$4 sm:$0xff]   ;;  %v5471_v49 = vsub.s32 %v37_v42, %v5453_v43  ;;  %v4575_v50 = vld [vmem:[%s7037_s1 + $0xc4] ss:$8 sps:$4 sm:$0xff]  }
  0x10   :  { %3366 = vmatpush1.bf16.msra.mxu1 %v4532_v15  ;;  %3326 = vmatprep.subr.bf16.mxu0 %v4533_v16  ;;  %v4574_v48 = vld [vmem:[%s7037_s1 + $0x1d0] ss:$8 sps:$4 sm:$0xff]   ;;  %v4577_v51 = vld [vmem:[%s7037_s1 + $0x1c4] ss:$8 sps:$4 sm:$0xff]   ;;  %v4579_v53 = vld [vmem:[%s7037_s1 + $0xc0] ss:$8 sps:$4 sm:$0xff]  }
  0x11   :  { %3367 = vmatprep.subr.bf16.mxu1 %v4535_v17  ;;  %v18_v52 = vld [vmem:[%s7036_s0] sm:$0xff]  ;;  %v4581_v57 = vld [vmem:[%s7037_s1 + $0xb4] ss:$8 sps:$4 sm:$0xff]   ;;  %v4585_v61 = vld [vmem:[%s7037_s1 + $0xb0] ss:$8 sps:$4 sm:$0xff]  }
  0x12   :  { %v41_v54 = vrot.slane %v18_v52, %v5471_v49  ;;  %v34_v55 = vcombine.high %v18_v52, %v18_v52  ;;  %v4580_v56 = vld [vmem:[%s7037_s1 + $0x1c0] ss:$8 sps:$4 sm:$0xff]   ;;  %v4583_v58 = vld [vmem:[%s7037_s1 + $0x1b4] ss:$8 sps:$4 sm:$0xff]   ;;  %v4586_v0 = vld [vmem:[%s7037_s1 + $0x1b0] ss:$8 sps:$4 sm:$0xff]  }
  0x13   :  { %3327 = vmatpush1.bf16.msra.mxu0 %v4537_v18  ;;  %v4587_v1 = vld [vmem:[%s7037_s1 + $0xa4] ss:$8 sps:$4 sm:$0xff]   ;;  %v4591_v4 = vld [vmem:[%s7037_s1 + $0xa0] ss:$8 sps:$4 sm:$0xff]   ;;  %v4593_v6 = vld [vmem:[%s7037_s1 + $0x94] ss:$8 sps:$4 sm:$0xff]  }
  0x14   :  { %3368 = vmatpush1.bf16.msra.mxu1 %v4538_v19  ;;  %3328 = vmatprep.subr.bf16.mxu0 %v4539_v20  ;;  %v49_v59 = vcombine.high %v41_v54, %v41_v54  ;;  %v48_v60 = vrot.slane %v34_v55, %v5471_v49  ;;  %v4589_v2 = vld [vmem:[%s7037_s1 + $0x1a4] ss:$8 sps:$4 sm:$0xff]   ;;  %v4592_v5 = vld [vmem:[%s7037_s1 + $0x1a0] ss:$8 sps:$4 sm:$0xff]   ;;  %v4595_v7 = vld [vmem:[%s7037_s1 + $0x194] ss:$8 sps:$4 sm:$0xff]   ;;  %v202_v16 = vpack.c.bf16 %v41_v54, %v41_v54 }
  0x15   :  { %3369 = vmatprep.subr.bf16.mxu1 %v4541_v21  ;;  %v4597_v8 = vld [vmem:[%s7037_s1 + $0x90] ss:$8 sps:$4 sm:$0xff]   ;;  %v4599_v10 = vld [vmem:[%s7037_s1 + $0x84] ss:$8 sps:$4 sm:$0xff]   ;;  %v4603_v12 = vld [vmem:[%s7037_s1 + $0x80] ss:$8 sps:$4 sm:$0xff]  }
  0x16   :  { %v203_v62 = vpack.c.bf16 %v49_v59, %v49_v59  ;;  %v50_v63 = vcombine.high %v48_v60, %v48_v60  ;;  %v4598_v9 = vld [vmem:[%s7037_s1 + $0x190] ss:$8 sps:$4 sm:$0xff]   ;;  %v4601_v11 = vld [vmem:[%s7037_s1 + $0x184] ss:$8 sps:$4 sm:$0xff]   ;;  %v4604_v13 = vld [vmem:[%s7037_s1 + $0x180] ss:$8 sps:$4 sm:$0xff]   ;;  %v204_v17 = vpack.c.bf16 %v48_v60, %v48_v60 }
  0x17   :  { %3329 = vmatpush1.bf16.msra.mxu0 %v4543_v22  ;;  %v4608_v14 = vld [vmem:[%s7037_s1 + $0x274] ss:$8 sps:$4 sm:$0xff]   ;;  %v4606_v18 = vld [vmem:[%s7037_s1 + $0x270] ss:$8 sps:$4 sm:$0xff]   ;;  %v4614_v20 = vld [vmem:[%s7037_s1 + $0x264] ss:$8 sps:$4 sm:$0xff]  }
  0x18   :  { %3370 = vmatpush1.bf16.msra.mxu1 %v4544_v23  ;;  %3330 = vmatprep.subr.bf16.mxu0 %v4545_v24  ;;  %v205_v3 = vpack.c.bf16 %v50_v63, %v50_v63  ;;  %v4611_v15 = vld [vmem:[%s7037_s1 + $0x374] ss:$8 sps:$4 sm:$0xff]   ;;  %v4609_v19 = vld [vmem:[%s7037_s1 + $0x370] ss:$8 sps:$4 sm:$0xff]   ;;  %v4617_v21 = vld [vmem:[%s7037_s1 + $0x364] ss:$8 sps:$4 sm:$0xff]  }
  0x19   :  { %3371 = vmatprep.subr.bf16.mxu1 %v4547_v25  ;;  %3350 = vmatprep.mubr.bf16.mxu0 %v203_v62  ;;  %v4612_v22 = vld [vmem:[%s7037_s1 + $0x260] ss:$8 sps:$4 sm:$0xff]   ;;  %v4620_v24 = vld [vmem:[%s7037_s1 + $0x254] ss:$8 sps:$4 sm:$0xff]   ;;  %v4638_v36 = vld [vmem:[%s7037_s1 + $0x224] ss:$8 sps:$4 sm:$0xff]  }
  0x1a   :  { %3391 = vmatprep.mubr.bf16.mxu1 %v205_v3  ;;  %v4615_v23 = vld [vmem:[%s7037_s1 + $0x360] ss:$8 sps:$4 sm:$0xff]   ;;  %v4623_v25 = vld [vmem:[%s7037_s1 + $0x354] ss:$8 sps:$4 sm:$0xff]   ;;  %v4641_v37 = vld [vmem:[%s7037_s1 + $0x324] ss:$8 sps:$4 sm:$0xff]  }
  0x1b   :  { %3331 = vmatpush1.bf16.msra.mxu0 %v4549_v26  ;;  %v4618_v26 = vld [vmem:[%s7037_s1 + $0x250] ss:$8 sps:$4 sm:$0xff]   ;;  %v4636_v38 = vld [vmem:[%s7037_s1 + $0x220] ss:$8 sps:$4 sm:$0xff]   ;;  %v4653_v52 = vld [vmem:[%s7037_s1 + $0x304] ss:$8 sps:$4 sm:$0xff]  }
  0x1c   :  { %3372 = vmatpush1.bf16.msra.mxu1 %v4550_v27  ;;  %3332 = vmatprep.subr.bf16.mxu0 %v4551_v28  ;;  %v4621_v27 = vld [vmem:[%s7037_s1 + $0x350] ss:$8 sps:$4 sm:$0xff]   ;;  %v4626_v28 = vld [vmem:[%s7037_s1 + $0x244] ss:$8 sps:$4 sm:$0xff]   ;;  %v4648_v55 = vld [vmem:[%s7037_s1 + $0x200] ss:$8 sps:$4 sm:$0xff]  }
  0x1d   :  { %3373 = vmatprep.subr.bf16.mxu1 %v4553_v29  ;;  %v4629_v29 = vld [vmem:[%s7037_s1 + $0x344] ss:$8 sps:$4 sm:$0xff]   ;;  %v4659_v59 = vld [vmem:[%s7037_s1 + $0x3f4] ss:$8 sps:$4 sm:$0xff]   ;;  %v4654_v60 = vld [vmem:[%s7037_s1 + $0x2f0] ss:$8 sps:$4 sm:$0xff]  }
  0x1e   :  { %v19_v42 = vld [vmem:[%s7036_s0 + $0x8] sm:$0xff]  ;;  %v4671_v3 = vld [vmem:[%s7037_s1 + $0x3d4] ss:$8 sps:$4 sm:$0xff]  }
  0x1f   :  { %3333 = vmatpush1.bf16.msra.mxu0 %v4555_v30  ;;  %v4624_v30 = vld [vmem:[%s7037_s1 + $0x240] ss:$8 sps:$4 sm:$0xff]   ;;  %v4662_v62 = vld [vmem:[%s7037_s1 + $0x2e4] ss:$8 sps:$4 sm:$0xff]  }
  0x20   :  { %3374 = vmatpush1.bf16.msra.mxu1 %v4556_v31  ;;  %3334 = vmatprep.subr.bf16.mxu0 %v4557_v32  ;;  %v4627_v31 = vld [vmem:[%s7037_s1 + $0x340] ss:$8 sps:$4 sm:$0xff]   ;;  %v4632_v32 = vld [vmem:[%s7037_s1 + $0x234] ss:$8 sps:$4 sm:$0xff]   ;;  %v4665_v63 = vld [vmem:[%s7037_s1 + $0x3e4] ss:$8 sps:$4 sm:$0xff]  }
  0x21   :  { %3375 = vmatprep.subr.bf16.mxu1 %v4559_v33  ;;  %v4635_v33 = vld [vmem:[%s7037_s1 + $0x334] ss:$8 sps:$4 sm:$0xff]  }
  0x23   :  { %3335 = vmatpush2.bf16.msra.mxu0 %v4561_v34  ;;  %v4630_v34 = vld [vmem:[%s7037_s1 + $0x230] ss:$8 sps:$4 sm:$0xff]  }
  0x24   :  { %3376 = vmatpush2.bf16.msra.mxu1 %v4562_v35  ;;  %3336 = vmatprep.subr.bf16.mxu0 %v4563_v39  ;;  %v4633_v35 = vld [vmem:[%s7037_s1 + $0x330] ss:$8 sps:$4 sm:$0xff]   ;;  %v4639_v39 = vld [vmem:[%s7037_s1 + $0x320] ss:$8 sps:$4 sm:$0xff]  }
  0x25   :  { %3377 = vmatprep.subr.bf16.mxu1 %v4565_v40  ;;  %v4644_v40 = vld [vmem:[%s7037_s1 + $0x214] ss:$8 sps:$4 sm:$0xff]  }
  0x27   :  { %3337 = vmatpush2.bf16.msra.mxu0 %v4567_v41  ;;  %v4647_v41 = vld [vmem:[%s7037_s1 + $0x314] ss:$8 sps:$4 sm:$0xff]  }
  0x28   :  { %3378 = vmatpush2.bf16.msra.mxu1 %v4568_v44  ;;  %3338 = vmatprep.subr.bf16.mxu0 %v4569_v45  ;;  %v5620_v44 = vrot.slane %v19_v42, %v5471_v49  ;;  %v51_v45 = vcombine.high %v19_v42, %v19_v42  ;;  %v4720_v42 = vld [vmem:[%s7037_s1 + $0x554] ss:$8 sps:$4 sm:$0xff]  }
  0x29   :  { %3379 = vmatprep.subr.bf16.mxu1 %v4571_v46  ;;  %v4642_v46 = vld [vmem:[%s7037_s1 + $0x210] ss:$8 sps:$4 sm:$0xff]  }
  0x2b   :  { %3339 = vmatpush2.bf16.msra.mxu0 %v4573_v47  ;;  %v4645_v47 = vld [vmem:[%s7037_s1 + $0x310] ss:$8 sps:$4 sm:$0xff]  }
  0x2c   :  { %3380 = vmatpush2.bf16.msra.mxu1 %v4574_v48  ;;  %3340 = vmatprep.subr.bf16.mxu0 %v4575_v50  ;;  %v66_v48 = vcombine.high %v5620_v44, %v5620_v44  ;;  %v5631_v50 = vrot.slane %v51_v45, %v5471_v49 }
  0x2d   :  { %3381 = vmatprep.subr.bf16.mxu1 %v4577_v51  ;;  %v4650_v51 = vld [vmem:[%s7037_s1 + $0x204] ss:$8 sps:$4 sm:$0xff]  }
  0x2e   :  { %v67_v54 = vcombine.high %v5631_v50, %v5631_v50 }
  0x2f   :  { %3341 = vmatpush2.bf16.msra.mxu0 %v4579_v53  ;;  %v207_v53 = vpack.c.bf16 %v66_v48, %v66_v48  ;;  %v4718_v48 = vld [vmem:[%s7037_s1 + $0x550] ss:$8 sps:$4 sm:$0xff]  }
  0x30   :  { %3382 = vmatpush2.bf16.msra.mxu1 %v4580_v56  ;;  %3342 = vmatprep.subr.bf16.mxu0 %v4581_v57  ;;  %v4651_v56 = vld [vmem:[%s7037_s1 + $0x300] ss:$8 sps:$4 sm:$0xff]   ;;  %v209_v57 = vpack.c.bf16 %v67_v54, %v67_v54  ;;  %v4729_v54 = vld [vmem:[%s7037_s1 + $0x434] ss:$8 sps:$4 sm:$0xff]  }
  0x31   :  { %3383 = vmatprep.subr.bf16.mxu1 %v4583_v58  ;;  %v4656_v58 = vld [vmem:[%s7037_s1 + $0x2f4] ss:$8 sps:$4 sm:$0xff]  }
  0x33   :  { %3343 = vmatpush2.bf16.msra.mxu0 %v4585_v61  ;;  %v4657_v61 = vld [vmem:[%s7037_s1 + $0x3f0] ss:$8 sps:$4 sm:$0xff]  }
  0x34   :  { %3384 = vmatpush2.bf16.msra.mxu1 %v4586_v0  ;;  %3344 = vmatprep.subr.bf16.mxu0 %v4587_v1  ;;  %v4660_v0 = vld [vmem:[%s7037_s1 + $0x2e0] ss:$8 sps:$4 sm:$0xff]  }
  0x35   :  { %3385 = vmatprep.subr.bf16.mxu1 %v4589_v2  ;;  %v4663_v1 = vld [vmem:[%s7037_s1 + $0x3e0] ss:$8 sps:$4 sm:$0xff]   ;;  %v4668_v2 = vld [vmem:[%s7037_s1 + $0x2d4] ss:$8 sps:$4 sm:$0xff]  }
  0x37   :  { %3345 = vmatpush2.bf16.msra.mxu0 %v4591_v4  ;;  %v4666_v4 = vld [vmem:[%s7037_s1 + $0x2d0] ss:$8 sps:$4 sm:$0xff]  }
  0x38   :  { %3386 = vmatpush2.bf16.msra.mxu1 %v4592_v5  ;;  %3346 = vmatprep.subr.bf16.mxu0 %v4593_v6  ;;  %v4669_v5 = vld [vmem:[%s7037_s1 + $0x3d0] ss:$8 sps:$4 sm:$0xff]   ;;  %v4674_v6 = vld [vmem:[%s7037_s1 + $0x2c4] ss:$8 sps:$4 sm:$0xff]  }
  0x39   :  { %3387 = vmatprep.subr.bf16.mxu1 %v4595_v7  ;;  %v4677_v7 = vld [vmem:[%s7037_s1 + $0x3c4] ss:$8 sps:$4 sm:$0xff]  }
  0x3b   :  { %3347 = vmatpush2.bf16.msra.mxu0 %v4597_v8  ;;  %v4672_v8 = vld [vmem:[%s7037_s1 + $0x2c0] ss:$8 sps:$4 sm:$0xff]  }
  0x3c   :  { %3388 = vmatpush2.bf16.msra.mxu1 %v4598_v9  ;;  %3348 = vmatprep.subr.bf16.mxu0 %v4599_v10  ;;  %v4675_v9 = vld [vmem:[%s7037_s1 + $0x3c0] ss:$8 sps:$4 sm:$0xff]   ;;  %v4680_v10 = vld [vmem:[%s7037_s1 + $0x2b4] ss:$8 sps:$4 sm:$0xff]  }
  0x3d   :  { %3389 = vmatprep.subr.bf16.mxu1 %v4601_v11  ;;  %v4683_v11 = vld [vmem:[%s7037_s1 + $0x3b4] ss:$8 sps:$4 sm:$0xff]  }
  0x3f   :  { %3349 = vmatpush2.bf16.msra.mxu0 %v4603_v12  ;;  %v4678_v12 = vld [vmem:[%s7037_s1 + $0x2b0] ss:$8 sps:$4 sm:$0xff]  }
  0x40   :  { %3390 = vmatpush2.bf16.msra.mxu1 %v4604_v13  ;;  %3400 = vmatprep.subr.bf16.mxu0 %v4608_v14  ;;  %v4681_v13 = vld [vmem:[%s7037_s1 + $0x3b0] ss:$8 sps:$4 sm:$0xff]   ;;  %v4686_v14 = vld [vmem:[%s7037_s1 + $0x2a4] ss:$8 sps:$4 sm:$0xff]  }
  0x41   :  { %3441 = vmatprep.subr.bf16.mxu1 %v4611_v15  ;;  %v4689_v15 = vld [vmem:[%s7037_s1 + $0x3a4] ss:$8 sps:$4 sm:$0xff]  }
  0x42   :  { %3351 = vmatmul.mubr.bf16.vlgmr.msra.gmra.mxu0 %v202_v16  ;;  %v4684_v16 = vld [vmem:[%s7037_s1 + $0x2a0] ss:$8 sps:$4 sm:$0xff]  }
  0x43   :  { %3392 = vmatmul.mubr.bf16.vlgmr.msra.gmra.mxu1 %v204_v17  ;;  %3401 = vmatpush1.bf16.msra.mxu0 %v4606_v18  ;;  %v4687_v17 = vld [vmem:[%s7037_s1 + $0x3a0] ss:$8 sps:$4 sm:$0xff]   ;;  %v4692_v18 = vld [vmem:[%s7037_s1 + $0x294] ss:$8 sps:$4 sm:$0xff]  }
  0x44   :  { %3442 = vmatpush1.bf16.msra.mxu1 %v4609_v19  ;;  %3402 = vmatprep.subr.bf16.mxu0 %v4614_v20  ;;  %v4695_v19 = vld [vmem:[%s7037_s1 + $0x394] ss:$8 sps:$4 sm:$0xff]   ;;  %v4690_v20 = vld [vmem:[%s7037_s1 + $0x290] ss:$8 sps:$4 sm:$0xff]  }
  0x45   :  { %3443 = vmatprep.subr.bf16.mxu1 %v4617_v21  ;;  %3432 = vmatprep.mubr.bf16.mxu0 %v207_v53  ;;  %v4693_v21 = vld [vmem:[%s7037_s1 + $0x390] ss:$8 sps:$4 sm:$0xff]   ;;  %v4724_v53 = vld [vmem:[%s7037_s1 + $0x540] ss:$8 sps:$4 sm:$0xff]  }
  0x46   :  { %3473 = vmatprep.mubr.bf16.mxu1 %v209_v57  ;;  %v4730_v57 = vld [vmem:[%s7037_s1 + $0x530] ss:$8 sps:$4 sm:$0xff]  }
  0x47   :  { %3403 = vmatpush1.bf16.msra.mxu0 %v4612_v22  ;;  %v4698_v22 = vld [vmem:[%s7037_s1 + $0x284] ss:$8 sps:$4 sm:$0xff]  }
  0x48   :  { %3444 = vmatpush1.bf16.msra.mxu1 %v4615_v23  ;;  %3404 = vmatprep.subr.bf16.mxu0 %v4620_v24  ;;  %v4701_v23 = vld [vmem:[%s7037_s1 + $0x384] ss:$8 sps:$4 sm:$0xff]   ;;  %v4696_v24 = vld [vmem:[%s7037_s1 + $0x280] ss:$8 sps:$4 sm:$0xff]  }
  0x49   :  { %3445 = vmatprep.subr.bf16.mxu1 %v4623_v25  ;;  %v4699_v25 = vld [vmem:[%s7037_s1 + $0x380] ss:$8 sps:$4 sm:$0xff]  }
  0x4b   :  { %3405 = vmatpush1.bf16.msra.mxu0 %v4618_v26  ;;  %v4705_v26 = vld [vmem:[%s7037_s1 + $0x474] ss:$8 sps:$4 sm:$0xff]  }
  0x4c   :  { %3446 = vmatpush1.bf16.msra.mxu1 %v4621_v27  ;;  %3406 = vmatprep.subr.bf16.mxu0 %v4626_v28  ;;  %v4708_v27 = vld [vmem:[%s7037_s1 + $0x574] ss:$8 sps:$4 sm:$0xff]   ;;  %v206_v28 = vpack.c.bf16 %v5620_v44, %v5620_v44 }
  0x4d   :  { %3447 = vmatprep.subr.bf16.mxu1 %v4629_v29  ;;  %v208_v29 = vpack.c.bf16 %v5631_v50, %v5631_v50  ;;  %v4723_v50 = vld [vmem:[%s7037_s1 + $0x444] ss:$8 sps:$4 sm:$0xff]  }
  0x4f   :  { %3407 = vmatpush1.bf16.msra.mxu0 %v4624_v30  ;;  %v4703_v30 = vld [vmem:[%s7037_s1 + $0x470] ss:$8 sps:$4 sm:$0xff]  }
  0x50   :  { %3448 = vmatpush1.bf16.msra.mxu1 %v4627_v31  ;;  %3408 = vmatprep.subr.bf16.mxu0 %v4632_v32  ;;  %v4706_v31 = vld [vmem:[%s7037_s1 + $0x570] ss:$8 sps:$4 sm:$0xff]   ;;  %v4711_v32 = vld [vmem:[%s7037_s1 + $0x464] ss:$8 sps:$4 sm:$0xff]  }
  0x51   :  { %3449 = vmatprep.subr.bf16.mxu1 %v4635_v33  ;;  %v20_v33 = vld [vmem:[%s7036_s0 + $0x10] sm:$0xff] }
  0x53   :  { %3409 = vmatpush1.bf16.msra.mxu0 %v4630_v34  ;;  %v4714_v34 = vld [vmem:[%s7037_s1 + $0x564] ss:$8 sps:$4 sm:$0xff]  }
  0x54   :  { %3450 = vmatpush1.bf16.msra.mxu1 %v4633_v35  ;;  %3410 = vmatprep.subr.bf16.mxu0 %v4638_v36  ;;  %v5769_v35 = vrot.slane %v20_v33, %v5471_v49  ;;  %v68_v36 = vcombine.high %v20_v33, %v20_v33 }
  0x55   :  { %3451 = vmatprep.subr.bf16.mxu1 %v4641_v37  ;;  %v4709_v37 = vld [vmem:[%s7037_s1 + $0x460] ss:$8 sps:$4 sm:$0xff]  }
  0x57   :  { %3411 = vmatpush1.bf16.msra.mxu0 %v4636_v38  ;;  %v83_v38 = vcombine.high %v5769_v35, %v5769_v35 }
  0x58   :  { %3452 = vmatpush1.bf16.msra.mxu1 %v4639_v39  ;;  %3412 = vmatprep.subr.bf16.mxu0 %v4644_v40  ;;  %v5777_v39 = vrot.slane %v68_v36, %v5471_v49  ;;  %v4712_v40 = vld [vmem:[%s7037_s1 + $0x560] ss:$8 sps:$4 sm:$0xff]   ;;  %v4790_v36 = vld [vmem:[%s7037_s1 + $0x590] ss:$8 sps:$4 sm:$0xff]  }
  0x59   :  { %3453 = vmatprep.subr.bf16.mxu1 %v4647_v41  ;;  %v4717_v41 = vld [vmem:[%s7037_s1 + $0x454] ss:$8 sps:$4 sm:$0xff]   ;;  %v211_v44 = vpack.c.bf16 %v83_v38, %v83_v38  ;;  %v4798_v38 = vld [vmem:[%s7037_s1 + $0x584] ss:$8 sps:$4 sm:$0xff]  }
  0x5a   :  { %v84_v45 = vcombine.high %v5777_v39, %v5777_v39 }
  0x5b   :  { %3413 = vmatpush1.bf16.msra.mxu0 %v4642_v46  ;;  %v4715_v46 = vld [vmem:[%s7037_s1 + $0x450] ss:$8 sps:$4 sm:$0xff]  }
  0x5c   :  { %3454 = vmatpush1.bf16.msra.mxu1 %v4645_v47  ;;  %3414 = vmatprep.subr.bf16.mxu0 %v4650_v51  ;;  %v213_v47 = vpack.c.bf16 %v84_v45, %v84_v45  ;;  %v4726_v51 = vld [vmem:[%s7037_s1 + $0x544] ss:$8 sps:$4 sm:$0xff]   ;;  %v4802_v45 = vld [vmem:[%s7037_s1 + $0x674] ss:$8 sps:$4 sm:$0xff]  }
  0x5d   :  { %3455 = vmatprep.subr.bf16.mxu1 %v4653_v52  ;;  %v4721_v52 = vld [vmem:[%s7037_s1 + $0x440] ss:$8 sps:$4 sm:$0xff]  }
  0x5f   :  { %3415 = vmatpush1.bf16.msra.mxu0 %v4648_v55  ;;  %v4732_v55 = vld [vmem:[%s7037_s1 + $0x534] ss:$8 sps:$4 sm:$0xff]  }
  0x60   :  { %3456 = vmatpush1.bf16.msra.mxu1 %v4651_v56  ;;  %3416 = vmatprep.subr.bf16.mxu0 %v4656_v58  ;;  %v4727_v56 = vld [vmem:[%s7037_s1 + $0x430] ss:$8 sps:$4 sm:$0xff]   ;;  %v4735_v58 = vld [vmem:[%s7037_s1 + $0x424] ss:$8 sps:$4 sm:$0xff]  }
  0x61   :  { %3457 = vmatprep.subr.bf16.mxu1 %v4659_v59  ;;  %v4738_v59 = vld [vmem:[%s7037_s1 + $0x524] ss:$8 sps:$4 sm:$0xff]  }
  0x63   :  { %3417 = vmatpush2.bf16.msra.mxu0 %v4654_v60  ;;  %v4733_v60 = vld [vmem:[%s7037_s1 + $0x420] ss:$8 sps:$4 sm:$0xff]  }
  0x64   :  { %3458 = vmatpush2.bf16.msra.mxu1 %v4657_v61  ;;  %3418 = vmatprep.subr.bf16.mxu0 %v4662_v62  ;;  %v4736_v61 = vld [vmem:[%s7037_s1 + $0x520] ss:$8 sps:$4 sm:$0xff]   ;;  %v4741_v62 = vld [vmem:[%s7037_s1 + $0x414] ss:$8 sps:$4 sm:$0xff]  }
  0x65   :  { %3459 = vmatprep.subr.bf16.mxu1 %v4665_v63  ;;  %v4744_v63 = vld [vmem:[%s7037_s1 + $0x514] ss:$8 sps:$4 sm:$0xff]  }
  0x67   :  { %3419 = vmatpush2.bf16.msra.mxu0 %v4660_v0  ;;  %v4739_v0 = vld [vmem:[%s7037_s1 + $0x410] ss:$8 sps:$4 sm:$0xff]  }
  0x68   :  { %3460 = vmatpush2.bf16.msra.mxu1 %v4663_v1  ;;  %3420 = vmatprep.subr.bf16.mxu0 %v4668_v2  ;;  %v4742_v1 = vld [vmem:[%s7037_s1 + $0x510] ss:$8 sps:$4 sm:$0xff]   ;;  %v4747_v2 = vld [vmem:[%s7037_s1 + $0x404] ss:$8 sps:$4 sm:$0xff]  }
  0x69   :  { %3461 = vmatprep.subr.bf16.mxu1 %v4671_v3  ;;  %v4750_v3 = vld [vmem:[%s7037_s1 + $0x504] ss:$8 sps:$4 sm:$0xff]  }
  0x6b   :  { %3421 = vmatpush2.bf16.msra.mxu0 %v4666_v4  ;;  %v4745_v4 = vld [vmem:[%s7037_s1 + $0x400] ss:$8 sps:$4 sm:$0xff]  }
  0x6c   :  { %3462 = vmatpush2.bf16.msra.mxu1 %v4669_v5  ;;  %3422 = vmatprep.subr.bf16.mxu0 %v4674_v6  ;;  %v4748_v5 = vld [vmem:[%s7037_s1 + $0x500] ss:$8 sps:$4 sm:$0xff]   ;;  %v4753_v6 = vld [vmem:[%s7037_s1 + $0x4f4] ss:$8 sps:$4 sm:$0xff]  }
  0x6d   :  { %3463 = vmatprep.subr.bf16.mxu1 %v4677_v7  ;;  %v4756_v7 = vld [vmem:[%s7037_s1 + $0x5f4] ss:$8 sps:$4 sm:$0xff]  }
  0x6f   :  { %3423 = vmatpush2.bf16.msra.mxu0 %v4672_v8  ;;  %v4751_v8 = vld [vmem:[%s7037_s1 + $0x4f0] ss:$8 sps:$4 sm:$0xff]  }
  0x70   :  { %3464 = vmatpush2.bf16.msra.mxu1 %v4675_v9  ;;  %3424 = vmatprep.subr.bf16.mxu0 %v4680_v10  ;;  %v4754_v9 = vld [vmem:[%s7037_s1 + $0x5f0] ss:$8 sps:$4 sm:$0xff]   ;;  %v4759_v10 = vld [vmem:[%s7037_s1 + $0x4e4] ss:$8 sps:$4 sm:$0xff]  }
  0x71   :  { %3465 = vmatprep.subr.bf16.mxu1 %v4683_v11  ;;  %v4762_v11 = vld [vmem:[%s7037_s1 + $0x5e4] ss:$8 sps:$4 sm:$0xff]  }
  0x73   :  { %3425 = vmatpush2.bf16.msra.mxu0 %v4678_v12  ;;  %v4757_v12 = vld [vmem:[%s7037_s1 + $0x4e0] ss:$8 sps:$4 sm:$0xff]  }
  0x74   :  { %3466 = vmatpush2.bf16.msra.mxu1 %v4681_v13  ;;  %3426 = vmatprep.subr.bf16.mxu0 %v4686_v14  ;;  %v4760_v13 = vld [vmem:[%s7037_s1 + $0x5e0] ss:$8 sps:$4 sm:$0xff]   ;;  %v4765_v14 = vld [vmem:[%s7037_s1 + $0x4d4] ss:$8 sps:$4 sm:$0xff]  }
  0x75   :  { %3467 = vmatprep.subr.bf16.mxu1 %v4689_v15  ;;  %v4768_v15 = vld [vmem:[%s7037_s1 + $0x5d4] ss:$8 sps:$4 sm:$0xff]  }
  0x77   :  { %3427 = vmatpush2.bf16.msra.mxu0 %v4684_v16  ;;  %v4763_v16 = vld [vmem:[%s7037_s1 + $0x4d0] ss:$8 sps:$4 sm:$0xff]  }
  0x78   :  { %3468 = vmatpush2.bf16.msra.mxu1 %v4687_v17  ;;  %3428 = vmatprep.subr.bf16.mxu0 %v4692_v18  ;;  %v4766_v17 = vld [vmem:[%s7037_s1 + $0x5d0] ss:$8 sps:$4 sm:$0xff]   ;;  %v4771_v18 = vld [vmem:[%s7037_s1 + $0x4c4] ss:$8 sps:$4 sm:$0xff]  }
  0x79   :  { %3469 = vmatprep.subr.bf16.mxu1 %v4695_v19  ;;  %v4774_v19 = vld [vmem:[%s7037_s1 + $0x5c4] ss:$8 sps:$4 sm:$0xff]  }
  0x7b   :  { %3429 = vmatpush2.bf16.msra.mxu0 %v4690_v20  ;;  %v4769_v20 = vld [vmem:[%s7037_s1 + $0x4c0] ss:$8 sps:$4 sm:$0xff]  }
  0x7c   :  { %3470 = vmatpush2.bf16.msra.mxu1 %v4693_v21  ;;  %3430 = vmatprep.subr.bf16.mxu0 %v4698_v22  ;;  %v4772_v21 = vld [vmem:[%s7037_s1 + $0x5c0] ss:$8 sps:$4 sm:$0xff]   ;;  %v4777_v22 = vld [vmem:[%s7037_s1 + $0x4b4] ss:$8 sps:$4 sm:$0xff]  }
  0x7d   :  { %3471 = vmatprep.subr.bf16.mxu1 %v4701_v23  ;;  %v4780_v23 = vld [vmem:[%s7037_s1 + $0x5b4] ss:$8 sps:$4 sm:$0xff]  }
  0x7f   :  { %3431 = vmatpush2.bf16.msra.mxu0 %v4696_v24  ;;  %v4775_v24 = vld [vmem:[%s7037_s1 + $0x4b0] ss:$8 sps:$4 sm:$0xff]  }
  0x80   :  { %3472 = vmatpush2.bf16.msra.mxu1 %v4699_v25  ;;  %3482 = vmatprep.subr.bf16.mxu0 %v4705_v26  ;;  %v4778_v25 = vld [vmem:[%s7037_s1 + $0x5b0] ss:$8 sps:$4 sm:$0xff]   ;;  %v4783_v26 = vld [vmem:[%s7037_s1 + $0x4a4] ss:$8 sps:$4 sm:$0xff]  }
  0x81   :  { %3523 = vmatprep.subr.bf16.mxu1 %v4708_v27  ;;  %v4786_v27 = vld [vmem:[%s7037_s1 + $0x5a4] ss:$8 sps:$4 sm:$0xff]  }
  0x82   :  { %3433 = vmatmul.mubr.bf16.vlgmr.msra.gmra.mxu0 %v206_v28  ;;  %v4781_v28 = vld [vmem:[%s7037_s1 + $0x4a0] ss:$8 sps:$4 sm:$0xff]  }
  0x83   :  { %3474 = vmatmul.mubr.bf16.vlgmr.msra.gmra.mxu1 %v208_v29  ;;  %3483 = vmatpush1.bf16.msra.mxu0 %v4703_v30  ;;  %v21_v29 = vld [vmem:[%s7036_s0 + $0x18] sm:$0xff]  ;;  %v4784_v30 = vld [vmem:[%s7037_s1 + $0x5a0] ss:$8 sps:$4 sm:$0xff]  }
  0x84   :  { %3524 = vmatpush1.bf16.msra.mxu1 %v4706_v31  ;;  %3484 = vmatprep.subr.bf16.mxu0 %v4711_v32  ;;  %v4789_v31 = vld [vmem:[%s7037_s1 + $0x494] ss:$8 sps:$4 sm:$0xff]   ;;  %v85_v33 = vcombine.high %v21_v29, %v21_v29 }
  0x85   :  { %3525 = vmatprep.subr.bf16.mxu1 %v4714_v34  ;;  %3514 = vmatprep.mubr.bf16.mxu0 %v211_v44  ;;  %v4792_v32 = vld [vmem:[%s7037_s1 + $0x594] ss:$8 sps:$4 sm:$0xff]   ;;  %v4787_v34 = vld [vmem:[%s7037_s1 + $0x490] ss:$8 sps:$4 sm:$0xff]   ;;  %v4796_v44 = vld [vmem:[%s7037_s1 + $0x580] ss:$8 sps:$4 sm:$0xff]  }
  0x86   :  { %3555 = vmatprep.mubr.bf16.mxu1 %v213_v47 }
  0x87   :  { %3485 = vmatpush1.bf16.msra.mxu0 %v4709_v37  ;;  %v4795_v37 = vld [vmem:[%s7037_s1 + $0x484] ss:$8 sps:$4 sm:$0xff]  }
  0x88   :  { %3526 = vmatpush1.bf16.msra.mxu1 %v4712_v40  ;;  %3486 = vmatprep.subr.bf16.mxu0 %v4717_v41  ;;  %v5950_v40 = vrot.slane %v21_v29, %v5471_v49  ;;  %v5953_v41 = vrot.slane %v85_v33, %v5471_v49  ;;  %v4863_v29 = vld [vmem:[%s7037_s1 + $0x7d0] ss:$8 sps:$4 sm:$0xff]   ;;  %v4869_v33 = vld [vmem:[%s7037_s1 + $0x7c0] ss:$8 sps:$4 sm:$0xff]  }
  0x89   :  { %3527 = vmatprep.subr.bf16.mxu1 %v4720_v42  ;;  %v4793_v42 = vld [vmem:[%s7037_s1 + $0x480] ss:$8 sps:$4 sm:$0xff]  }
  0x8a   :  { %v100_v47 = vcombine.high %v5950_v40, %v5950_v40 }
  0x8b   :  { %3487 = vmatpush1.bf16.msra.mxu0 %v4715_v46  ;;  %v4805_v46 = vld [vmem:[%s7037_s1 + $0x774] ss:$8 sps:$4 sm:$0xff]  }
  0x8c   :  { %3528 = vmatpush1.bf16.msra.mxu1 %v4718_v48  ;;  %3488 = vmatprep.subr.bf16.mxu0 %v4723_v50  ;;  %v101_v48 = vcombine.high %v5953_v41, %v5953_v41  ;;  %v210_v50 = vpack.c.bf16 %v5769_v35, %v5769_v35  ;;  %v4811_v35 = vld [vmem:[%s7037_s1 + $0x764] ss:$8 sps:$4 sm:$0xff]  }
  0x8d   :  { %3529 = vmatprep.subr.bf16.mxu1 %v4726_v51  ;;  %v212_v51 = vpack.c.bf16 %v5777_v39, %v5777_v39  ;;  %v215_v39 = vpack.c.bf16 %v100_v47, %v100_v47  ;;  %v4881_v47 = vld [vmem:[%s7037_s1 + $0x7a0] ss:$8 sps:$4 sm:$0xff]  }
  0x8f   :  { %3489 = vmatpush1.bf16.msra.mxu0 %v4721_v52  ;;  %v4800_v52 = vld [vmem:[%s7037_s1 + $0x670] ss:$8 sps:$4 sm:$0xff]  }
  0x90   :  { %3530 = vmatpush1.bf16.msra.mxu1 %v4724_v53  ;;  %3490 = vmatprep.subr.bf16.mxu0 %v4729_v54  ;;  %v4803_v53 = vld [vmem:[%s7037_s1 + $0x770] ss:$8 sps:$4 sm:$0xff]   ;;  %v4808_v54 = vld [vmem:[%s7037_s1 + $0x664] ss:$8 sps:$4 sm:$0xff]  }
  0x91   :  { %3531 = vmatprep.subr.bf16.mxu1 %v4732_v55  ;;  %v217_v55 = vpack.c.bf16 %v101_v48, %v101_v48  ;;  %v4886_v48 = vld [vmem:[%s7037_s1 + $0x694] ss:$8 sps:$4 sm:$0xff]  }
  0x93   :  { %3491 = vmatpush1.bf16.msra.mxu0 %v4727_v56  ;;  %v4806_v56 = vld [vmem:[%s7037_s1 + $0x660] ss:$8 sps:$4 sm:$0xff]  }
  0x94   :  { %3532 = vmatpush1.bf16.msra.mxu1 %v4730_v57  ;;  %3492 = vmatprep.subr.bf16.mxu0 %v4735_v58  ;;  %v4809_v57 = vld [vmem:[%s7037_s1 + $0x760] ss:$8 sps:$4 sm:$0xff]   ;;  %v4814_v58 = vld [vmem:[%s7037_s1 + $0x654] ss:$8 sps:$4 sm:$0xff]  }
  0x95   :  { %3533 = vmatprep.subr.bf16.mxu1 %v4738_v59  ;;  %v4817_v59 = vld [vmem:[%s7037_s1 + $0x754] ss:$8 sps:$4 sm:$0xff]  }
  0x97   :  { %3493 = vmatpush1.bf16.msra.mxu0 %v4733_v60  ;;  %v4812_v60 = vld [vmem:[%s7037_s1 + $0x650] ss:$8 sps:$4 sm:$0xff]  }
  0x98   :  { %3534 = vmatpush1.bf16.msra.mxu1 %v4736_v61  ;;  %3494 = vmatprep.subr.bf16.mxu0 %v4741_v62  ;;  %v4815_v61 = vld [vmem:[%s7037_s1 + $0x750] ss:$8 sps:$4 sm:$0xff]   ;;  %v4820_v62 = vld [vmem:[%s7037_s1 + $0x644] ss:$8 sps:$4 sm:$0xff]  }
  0x99   :  { %3535 = vmatprep.subr.bf16.mxu1 %v4744_v63  ;;  %v4823_v63 = vld [vmem:[%s7037_s1 + $0x744] ss:$8 sps:$4 sm:$0xff]  }
  0x9b   :  { %3495 = vmatpush1.bf16.msra.mxu0 %v4739_v0  ;;  %v4818_v0 = vld [vmem:[%s7037_s1 + $0x640] ss:$8 sps:$4 sm:$0xff]  }
  0x9c   :  { %3536 = vmatpush1.bf16.msra.mxu1 %v4742_v1  ;;  %3496 = vmatprep.subr.bf16.mxu0 %v4747_v2  ;;  %v4821_v1 = vld [vmem:[%s7037_s1 + $0x740] ss:$8 sps:$4 sm:$0xff]   ;;  %v4826_v2 = vld [vmem:[%s7037_s1 + $0x634] ss:$8 sps:$4 sm:$0xff]  }
  0x9d   :  { %3537 = vmatprep.subr.bf16.mxu1 %v4750_v3  ;;  %v4829_v3 = vld [vmem:[%s7037_s1 + $0x734] ss:$8 sps:$4 sm:$0xff]  }
  0x9f   :  { %3497 = vmatpush1.bf16.msra.mxu0 %v4745_v4  ;;  %v4824_v4 = vld [vmem:[%s7037_s1 + $0x630] ss:$8 sps:$4 sm:$0xff]  }
  0xa0   :  { %3538 = vmatpush1.bf16.msra.mxu1 %v4748_v5  ;;  %3498 = vmatprep.subr.bf16.mxu0 %v4753_v6  ;;  %v4827_v5 = vld [vmem:[%s7037_s1 + $0x730] ss:$8 sps:$4 sm:$0xff]   ;;  %v4832_v6 = vld [vmem:[%s7037_s1 + $0x624] ss:$8 sps:$4 sm:$0xff]  }
  0xa1   :  { %3539 = vmatprep.subr.bf16.mxu1 %v4756_v7  ;;  %v4835_v7 = vld [vmem:[%s7037_s1 + $0x724] ss:$8 sps:$4 sm:$0xff]  }
  0xa3   :  { %3499 = vmatpush2.bf16.msra.mxu0 %v4751_v8  ;;  %v4830_v8 = vld [vmem:[%s7037_s1 + $0x620] ss:$8 sps:$4 sm:$0xff]  }
  0xa4   :  { %3540 = vmatpush2.bf16.msra.mxu1 %v4754_v9  ;;  %3500 = vmatprep.subr.bf16.mxu0 %v4759_v10  ;;  %v4833_v9 = vld [vmem:[%s7037_s1 + $0x720] ss:$8 sps:$4 sm:$0xff]   ;;  %v4838_v10 = vld [vmem:[%s7037_s1 + $0x614] ss:$8 sps:$4 sm:$0xff]  }
  0xa5   :  { %3541 = vmatprep.subr.bf16.mxu1 %v4762_v11  ;;  %v4841_v11 = vld [vmem:[%s7037_s1 + $0x714] ss:$8 sps:$4 sm:$0xff]  }
  0xa7   :  { %3501 = vmatpush2.bf16.msra.mxu0 %v4757_v12  ;;  %v4836_v12 = vld [vmem:[%s7037_s1 + $0x610] ss:$8 sps:$4 sm:$0xff]  }
  0xa8   :  { %3542 = vmatpush2.bf16.msra.mxu1 %v4760_v13  ;;  %3502 = vmatprep.subr.bf16.mxu0 %v4765_v14  ;;  %v4839_v13 = vld [vmem:[%s7037_s1 + $0x710] ss:$8 sps:$4 sm:$0xff]   ;;  %v4844_v14 = vld [vmem:[%s7037_s1 + $0x604] ss:$8 sps:$4 sm:$0xff]  }
  0xa9   :  { %3543 = vmatprep.subr.bf16.mxu1 %v4768_v15  ;;  %v4847_v15 = vld [vmem:[%s7037_s1 + $0x704] ss:$8 sps:$4 sm:$0xff]  }
  0xab   :  { %3503 = vmatpush2.bf16.msra.mxu0 %v4763_v16  ;;  %v4842_v16 = vld [vmem:[%s7037_s1 + $0x600] ss:$8 sps:$4 sm:$0xff]  }
  0xac   :  { %3544 = vmatpush2.bf16.msra.mxu1 %v4766_v17  ;;  %3504 = vmatprep.subr.bf16.mxu0 %v4771_v18  ;;  %v4845_v17 = vld [vmem:[%s7037_s1 + $0x700] ss:$8 sps:$4 sm:$0xff]   ;;  %v4850_v18 = vld [vmem:[%s7037_s1 + $0x6f4] ss:$8 sps:$4 sm:$0xff]  }
  0xad   :  { %3545 = vmatprep.subr.bf16.mxu1 %v4774_v19  ;;  %v4853_v19 = vld [vmem:[%s7037_s1 + $0x7f4] ss:$8 sps:$4 sm:$0xff]  }
  0xaf   :  { %3505 = vmatpush2.bf16.msra.mxu0 %v4769_v20  ;;  %v4848_v20 = vld [vmem:[%s7037_s1 + $0x6f0] ss:$8 sps:$4 sm:$0xff]  }
  0xb0   :  { %3546 = vmatpush2.bf16.msra.mxu1 %v4772_v21  ;;  %3506 = vmatprep.subr.bf16.mxu0 %v4777_v22  ;;  %v4851_v21 = vld [vmem:[%s7037_s1 + $0x7f0] ss:$8 sps:$4 sm:$0xff]   ;;  %v4856_v22 = vld [vmem:[%s7037_s1 + $0x6e4] ss:$8 sps:$4 sm:$0xff]  }
  0xb1   :  { %3547 = vmatprep.subr.bf16.mxu1 %v4780_v23  ;;  %v4859_v23 = vld [vmem:[%s7037_s1 + $0x7e4] ss:$8 sps:$4 sm:$0xff]  }
  0xb3   :  { %3507 = vmatpush2.bf16.msra.mxu0 %v4775_v24  ;;  %v4854_v24 = vld [vmem:[%s7037_s1 + $0x6e0] ss:$8 sps:$4 sm:$0xff]  }
  0xb4   :  { %3548 = vmatpush2.bf16.msra.mxu1 %v4778_v25  ;;  %3508 = vmatprep.subr.bf16.mxu0 %v4783_v26  ;;  %v4857_v25 = vld [vmem:[%s7037_s1 + $0x7e0] ss:$8 sps:$4 sm:$0xff]   ;;  %v4862_v26 = vld [vmem:[%s7037_s1 + $0x6d4] ss:$8 sps:$4 sm:$0xff]  }
  0xb5   :  { %3549 = vmatprep.subr.bf16.mxu1 %v4786_v27  ;;  %v4865_v27 = vld [vmem:[%s7037_s1 + $0x7d4] ss:$8 sps:$4 sm:$0xff]  }
  0xb7   :  { %3509 = vmatpush2.bf16.msra.mxu0 %v4781_v28  ;;  %v4860_v28 = vld [vmem:[%s7037_s1 + $0x6d0] ss:$8 sps:$4 sm:$0xff]  }
  0xb8   :  { %3550 = vmatpush2.bf16.msra.mxu1 %v4784_v30  ;;  %3510 = vmatprep.subr.bf16.mxu0 %v4789_v31  ;;  %v4868_v30 = vld [vmem:[%s7037_s1 + $0x6c4] ss:$8 sps:$4 sm:$0xff]  }
  0xb9   :  { %3551 = vmatprep.subr.bf16.mxu1 %v4792_v32  ;;  %v4871_v31 = vld [vmem:[%s7037_s1 + $0x7c4] ss:$8 sps:$4 sm:$0xff]   ;;  %v4866_v32 = vld [vmem:[%s7037_s1 + $0x6c0] ss:$8 sps:$4 sm:$0xff]  }
  0xbb   :  { %3511 = vmatpush2.bf16.msra.mxu0 %v4787_v34  ;;  %v4874_v34 = vld [vmem:[%s7037_s1 + $0x6b4] ss:$8 sps:$4 sm:$0xff]  }
  0xbc   :  { %3552 = vmatpush2.bf16.msra.mxu1 %v4790_v36  ;;  %3512 = vmatprep.subr.bf16.mxu0 %v4795_v37  ;;  %v4877_v36 = vld [vmem:[%s7037_s1 + $0x7b4] ss:$8 sps:$4 sm:$0xff]   ;;  %v4872_v37 = vld [vmem:[%s7037_s1 + $0x6b0] ss:$8 sps:$4 sm:$0xff]  }
  0xbd   :  { %3553 = vmatprep.subr.bf16.mxu1 %v4798_v38  ;;  %v4875_v38 = vld [vmem:[%s7037_s1 + $0x7b0] ss:$8 sps:$4 sm:$0xff]  }
  0xbf   :  { %3513 = vmatpush2.bf16.msra.mxu0 %v4793_v42  ;;  %v4880_v42 = vld [vmem:[%s7037_s1 + $0x6a4] ss:$8 sps:$4 sm:$0xff]  }
  0xc0   :  { %3554 = vmatpush2.bf16.msra.mxu1 %v4796_v44  ;;  %3564 = vmatprep.subr.bf16.mxu0 %v4802_v45  ;;  %v4883_v44 = vld [vmem:[%s7037_s1 + $0x7a4] ss:$8 sps:$4 sm:$0xff]  }
  0xc1   :  { %3605 = vmatprep.subr.bf16.mxu1 %v4805_v46  ;;  %v22_v45 = vld [vmem:[%s7036_s0 + $0x20] sm:$0xff] }
  0xc2   :  { %3515 = vmatmul.mubr.bf16.vlgmr.msra.gmra.mxu0 %v210_v50  ;;  %v4878_v46 = vld [vmem:[%s7037_s1 + $0x6a0] ss:$8 sps:$4 sm:$0xff]   ;;  %v4889_v50 = vld [vmem:[%s7037_s1 + $0x794] ss:$8 sps:$4 sm:$0xff]  }
  0xc3   :  { %3556 = vmatmul.mubr.bf16.vlgmr.msra.gmra.mxu1 %v212_v51  ;;  %3565 = vmatpush1.bf16.msra.mxu0 %v4800_v52  ;;  %v102_v51 = vcombine.high %v22_v45, %v22_v45  ;;  %v4884_v52 = vld [vmem:[%s7037_s1 + $0x690] ss:$8 sps:$4 sm:$0xff]  }
  0xc4   :  { %3606 = vmatpush1.bf16.msra.mxu1 %v4803_v53  ;;  %3566 = vmatprep.subr.bf16.mxu0 %v4808_v54  ;;  %v4887_v53 = vld [vmem:[%s7037_s1 + $0x790] ss:$8 sps:$4 sm:$0xff]   ;;  %v4892_v54 = vld [vmem:[%s7037_s1 + $0x684] ss:$8 sps:$4 sm:$0xff]  }
  0xc5   :  { %3607 = vmatprep.subr.bf16.mxu1 %v4811_v35  ;;  %3596 = vmatprep.mubr.bf16.mxu0 %v215_v39  ;;  %v4895_v35 = vld [vmem:[%s7037_s1 + $0x784] ss:$8 sps:$4 sm:$0xff]   ;;  %v6159_v39 = vrot.slane %v22_v45, %v5471_v49  ;;  %v4933_v45 = vld [vmem:[%s7037_s1 + $0x810] ss:$8 sps:$4 sm:$0xff]  }
  0xc6   :  { %3637 = vmatprep.mubr.bf16.mxu1 %v217_v55  ;;  %v6162_v55 = vrot.slane %v102_v51, %v5471_v49  ;;  %v4942_v51 = vld [vmem:[%s7037_s1 + $0x900] ss:$8 sps:$4 sm:$0xff]  }
  0xc7   :  { %3567 = vmatpush1.bf16.msra.mxu0 %v4806_v56  ;;  %v4890_v56 = vld [vmem:[%s7037_s1 + $0x680] ss:$8 sps:$4 sm:$0xff]  }
  0xc8   :  { %3608 = vmatpush1.bf16.msra.mxu1 %v4809_v57  ;;  %3568 = vmatprep.subr.bf16.mxu0 %v4814_v58  ;;  %v4893_v57 = vld [vmem:[%s7037_s1 + $0x780] ss:$8 sps:$4 sm:$0xff]  }
  0xc9   :  { %3609 = vmatprep.subr.bf16.mxu1 %v4817_v59  ;;  %v746_v58 = vld [vmem:[%s7038_s2] sm:$0x3]  ;;  %v750_v59 = vsub.s32 0, %v5453_v43 }
  0xcb   :  { %3569 = vmatpush1.bf16.msra.mxu0 %v4812_v60  ;;  %v4899_v60 = vld [vmem:[%s7037_s1 + $0x874] ss:$8 sps:$4 sm:$0xff]  }
  0xcc   :  { %3610 = vmatpush1.bf16.msra.mxu1 %v4815_v61  ;;  %3570 = vmatprep.subr.bf16.mxu0 %v4820_v62  ;;  %v4902_v61 = vld [vmem:[%s7037_s1 + $0x974] ss:$8 sps:$4 sm:$0xff]   ;;  %v754_v62 = vsub.s32 1, %v5453_v43  ;;  %v4900_v43 = vld [vmem:[%s7037_s1 + $0x970] ss:$8 sps:$4 sm:$0xff]  }
  0xcd   :  { %3611 = vmatprep.subr.bf16.mxu1 %v4823_v63  ;;  %v117_v63 = vcombine.high %v6159_v39, %v6159_v39 }
  0xcf   :  { %3571 = vmatpush1.bf16.msra.mxu0 %v4818_v0  ;;  %v118_v0 = vcombine.high %v6162_v55, %v6162_v55 }
  0xd0   :  { %3612 = vmatpush1.bf16.msra.mxu1 %v4821_v1  ;;  %3572 = vmatprep.subr.bf16.mxu0 %v4826_v2  ;;  %v214_v1 = vpack.c.bf16 %v5950_v40, %v5950_v40  ;;  %v216_v2 = vpack.c.bf16 %v5953_v41, %v5953_v41  ;;  %v4905_v40 = vld [vmem:[%s7037_s1 + $0x864] ss:$8 sps:$4 sm:$0xff]  }
  0xd1   :  { %3613 = vmatprep.subr.bf16.mxu1 %v4829_v3  ;;  %v751_v3 = vrot.slane %v746_v58, %v750_v59  ;;  %v4908_v41 = vld [vmem:[%s7037_s1 + $0x964] ss:$8 sps:$4 sm:$0xff]   ;;  %v4954_v59 = vld [vmem:[%s7037_s1 + $0x9e0] ss:$8 sps:$4 sm:$0xff]  }
  0xd3   :  { %3573 = vmatpush1.bf16.msra.mxu0 %v4824_v4  ;;  %v4897_v4 = vld [vmem:[%s7037_s1 + $0x870] ss:$8 sps:$4 sm:$0xff]  }
  0xd4   :  { %3614 = vmatpush1.bf16.msra.mxu1 %v4827_v5  ;;  %3574 = vmatprep.subr.bf16.mxu0 %v4832_v6  ;;  %v755_v5 = vrot.slane %v746_v58, %v754_v62  ;;  %v219_v6 = vpack.c.bf16 %v117_v63, %v117_v63  ;;  %v4951_v58 = vld [vmem:[%s7037_s1 + $0x8e0] ss:$8 sps:$4 sm:$0xff]   ;;  %v4957_v62 = vld [vmem:[%s7037_s1 + $0x8d0] ss:$8 sps:$4 sm:$0xff]  }
  0xd5   :  { %3615 = vmatprep.subr.bf16.mxu1 %v4835_v7  ;;  %v221_v7 = vpack.c.bf16 %v118_v0, %v118_v0  ;;  %v4960_v63 = vld [vmem:[%s7037_s1 + $0x9d0] ss:$8 sps:$4 sm:$0xff]   ;;  %v4965_v0 = vld [vmem:[%s7037_s1 + $0x8c4] ss:$8 sps:$4 sm:$0xff]  }
  0xd7   :  { %3575 = vmatpush1.bf16.msra.mxu0 %v4830_v8 }
  0xd8   :  { %3616 = vmatpush1.bf16.msra.mxu1 %v4833_v9  ;;  %3576 = vmatprep.subr.bf16.mxu0 %v4838_v10  ;;  %v4903_v10 = vld [vmem:[%s7037_s1 + $0x860] ss:$8 sps:$4 sm:$0xff]  }
  0xd9   :  { %3617 = vmatprep.subr.bf16.mxu1 %v4841_v11 }
  0xdb   :  { %3577 = vmatpush1.bf16.msra.mxu0 %v4836_v12  ;;  %v4906_v12 = vld [vmem:[%s7037_s1 + $0x960] ss:$8 sps:$4 sm:$0xff]  }
  0xdc   :  { %3618 = vmatpush1.bf16.msra.mxu1 %v4839_v13  ;;  %3578 = vmatprep.subr.bf16.mxu0 %v4844_v14  ;;  %v4911_v13 = vld [vmem:[%s7037_s1 + $0x854] ss:$8 sps:$4 sm:$0xff]  }
  0xdd   :  { %3619 = vmatprep.subr.bf16.mxu1 %v4847_v15 }
  0xdf   :  { %3579 = vmatpush1.bf16.msra.mxu0 %v4842_v16  ;;  %v4914_v16 = vld [vmem:[%s7037_s1 + $0x954] ss:$8 sps:$4 sm:$0xff]  }
  0xe0   :  { %3620 = vmatpush1.bf16.msra.mxu1 %v4845_v17  ;;  %3580 = vmatprep.subr.bf16.mxu0 %v4850_v18 }
  0xe1   :  { %3621 = vmatprep.subr.bf16.mxu1 %v4853_v19 }
  0xe3   :  { %3581 = vmatpush2.bf16.msra.mxu0 %v4848_v20 }
  0xe4   :  { %3622 = vmatpush2.bf16.msra.mxu1 %v4851_v21  ;;  %3582 = vmatprep.subr.bf16.mxu0 %v4856_v22  ;;  %v4909_v21 = vld [vmem:[%s7037_s1 + $0x850] ss:$8 sps:$4 sm:$0xff]  }
  0xe5   :  { %3623 = vmatprep.subr.bf16.mxu1 %v4859_v23  ;;  %v4912_v22 = vld [vmem:[%s7037_s1 + $0x950] ss:$8 sps:$4 sm:$0xff]  }
  0xe7   :  { %3583 = vmatpush2.bf16.msra.mxu0 %v4854_v24 }
  0xe8   :  { %3624 = vmatpush2.bf16.msra.mxu1 %v4857_v25  ;;  %3584 = vmatprep.subr.bf16.mxu0 %v4862_v26  ;;  %v4917_v26 = vld [vmem:[%s7037_s1 + $0x844] ss:$8 sps:$4 sm:$0xff]  }
  0xe9   :  { %3625 = vmatprep.subr.bf16.mxu1 %v4865_v27  ;;  %v4920_v27 = vld [vmem:[%s7037_s1 + $0x944] ss:$8 sps:$4 sm:$0xff]  }
  0xeb   :  { %3585 = vmatpush2.bf16.msra.mxu0 %v4860_v28  ;;  %v4915_v28 = vld [vmem:[%s7037_s1 + $0x840] ss:$8 sps:$4 sm:$0xff]  }
  0xec   :  { %3626 = vmatpush2.bf16.msra.mxu1 %v4863_v29  ;;  %3586 = vmatprep.subr.bf16.mxu0 %v4868_v30  ;;  %v4918_v29 = vld [vmem:[%s7037_s1 + $0x940] ss:$8 sps:$4 sm:$0xff]   ;;  %v4923_v30 = vld [vmem:[%s7037_s1 + $0x834] ss:$8 sps:$4 sm:$0xff]  }
  0xed   :  { %3627 = vmatprep.subr.bf16.mxu1 %v4871_v31  ;;  %v4926_v31 = vld [vmem:[%s7037_s1 + $0x934] ss:$8 sps:$4 sm:$0xff]  }
  0xef   :  { %3587 = vmatpush2.bf16.msra.mxu0 %v4866_v32  ;;  %v4921_v32 = vld [vmem:[%s7037_s1 + $0x830] ss:$8 sps:$4 sm:$0xff]  }
  0xf0   :  { %3628 = vmatpush2.bf16.msra.mxu1 %v4869_v33  ;;  %3588 = vmatprep.subr.bf16.mxu0 %v4874_v34  ;;  %v4924_v33 = vld [vmem:[%s7037_s1 + $0x930] ss:$8 sps:$4 sm:$0xff]   ;;  %v4929_v34 = vld [vmem:[%s7037_s1 + $0x824] ss:$8 sps:$4 sm:$0xff]  }
  0xf1   :  { %3629 = vmatprep.subr.bf16.mxu1 %v4877_v36  ;;  %v4932_v36 = vld [vmem:[%s7037_s1 + $0x924] ss:$8 sps:$4 sm:$0xff]  }
  0xf3   :  { %3589 = vmatpush2.bf16.msra.mxu0 %v4872_v37  ;;  %v4927_v37 = vld [vmem:[%s7037_s1 + $0x820] ss:$8 sps:$4 sm:$0xff]  }
  0xf4   :  { %3630 = vmatpush2.bf16.msra.mxu1 %v4875_v38  ;;  %3590 = vmatprep.subr.bf16.mxu0 %v4880_v42  ;;  %v4930_v38 = vld [vmem:[%s7037_s1 + $0x920] ss:$8 sps:$4 sm:$0xff]   ;;  %v4935_v42 = vld [vmem:[%s7037_s1 + $0x814] ss:$8 sps:$4 sm:$0xff]  }
  0xf5   :  { %3631 = vmatprep.subr.bf16.mxu1 %v4883_v44  ;;  %v4938_v44 = vld [vmem:[%s7037_s1 + $0x914] ss:$8 sps:$4 sm:$0xff]  }
  0xf7   :  { %3591 = vmatpush2.bf16.msra.mxu0 %v4878_v46  ;;  %v4936_v46 = vld [vmem:[%s7037_s1 + $0x910] ss:$8 sps:$4 sm:$0xff]  }
  0xf8   :  { %3632 = vmatpush2.bf16.msra.mxu1 %v4881_v47  ;;  %3592 = vmatprep.subr.bf16.mxu0 %v4886_v48  ;;  %v4941_v47 = vld [vmem:[%s7037_s1 + $0x804] ss:$8 sps:$4 sm:$0xff]  }
  0xf9   :  { %3633 = vmatprep.subr.bf16.mxu1 %v4889_v50  ;;  %v4944_v48 = vld [vmem:[%s7037_s1 + $0x904] ss:$8 sps:$4 sm:$0xff]   ;;  %v4939_v50 = vld [vmem:[%s7037_s1 + $0x800] ss:$8 sps:$4 sm:$0xff]  }
  0xfb   :  { %3593 = vmatpush2.bf16.msra.mxu0 %v4884_v52  ;;  %v4947_v52 = vld [vmem:[%s7037_s1 + $0x8f4] ss:$8 sps:$4 sm:$0xff]  }
  0xfc   :  { %3634 = vmatpush2.bf16.msra.mxu1 %v4887_v53  ;;  %3594 = vmatprep.subr.bf16.mxu0 %v4892_v54  ;;  %v4950_v53 = vld [vmem:[%s7037_s1 + $0x9f4] ss:$8 sps:$4 sm:$0xff]   ;;  %v4945_v54 = vld [vmem:[%s7037_s1 + $0x8f0] ss:$8 sps:$4 sm:$0xff]  }
  0xfd   :  { %3635 = vmatprep.subr.bf16.mxu1 %v4895_v35  ;;  %v4948_v35 = vld [vmem:[%s7037_s1 + $0x9f0] ss:$8 sps:$4 sm:$0xff]  }
  0xff   :  { %3595 = vmatpush2.bf16.msra.mxu0 %v4890_v56  ;;  %v4953_v56 = vld [vmem:[%s7037_s1 + $0x8e4] ss:$8 sps:$4 sm:$0xff]  }
 0x100   :  { %3636 = vmatpush2.bf16.msra.mxu1 %v4893_v57  ;;  %3646 = vmatprep.subr.bf16.mxu0 %v4899_v60  ;;  %v4956_v57 = vld [vmem:[%s7037_s1 + $0x9e4] ss:$8 sps:$4 sm:$0xff]   ;;  %v4959_v60 = vld [vmem:[%s7037_s1 + $0x8d4] ss:$8 sps:$4 sm:$0xff]  }
 0x101   :  { %3687 = vmatprep.subr.bf16.mxu1 %v4902_v61  ;;  %v4962_v61 = vld [vmem:[%s7037_s1 + $0x9d4] ss:$8 sps:$4 sm:$0xff]  }
 0x102   :  { %v3352_v8 = vpop.f32.mrf.mxu0  ;;  %3597 = vmatmul.mubr.bf16.vlgmr.msra.gmra.mxu0 %v214_v1  ;;  %v4968_v1 = vld [vmem:[%s7037_s1 + $0x9c4] ss:$8 sps:$4 sm:$0xff]  }
 0x103   :  { %v3393_v9 = vpop.f32.mrf.mxu1  ;;  %3638 = vmatmul.mubr.bf16.vlgmr.msra.gmra.mxu1 %v216_v2  ;;  %v3353_v11 = vadd.f32 %v3352_v8, %v751_v3  ;;  %3647 = vmatpush1.bf16.msra.mxu0 %v4897_v4  ;;  %v4963_v2 = vld [vmem:[%s7037_s1 + $0x8c0] ss:$8 sps:$4 sm:$0xff]   ;;  %v4971_v4 = vld [vmem:[%s7037_s1 + $0x8b4] ss:$8 sps:$4 sm:$0xff]  }
 0x104   :  { %3688 = vmatpush1.bf16.msra.mxu1 %v4900_v43  ;;  %v3354_v14 = vpop.f32.mrf.mxu0  ;;  %3648 = vmatprep.subr.bf16.mxu0 %v4905_v40  ;;  %v4966_v3 = vld [vmem:[%s7037_s1 + $0x9c0] ss:$8 sps:$4 sm:$0xff]   ;;  %v4974_v43 = vld [vmem:[%s7037_s1 + $0x9b4] ss:$8 sps:$4 sm:$0xff]   ;;  %v4969_v40 = vld [vmem:[%s7037_s1 + $0x8b0] ss:$8 sps:$4 sm:$0xff]  }
 0x105   :  { %v3395_v15 = vpop.f32.mrf.mxu1  ;;  %3689 = vmatprep.subr.bf16.mxu1 %v4908_v41  ;;  %v6213_v17 = vadd.f32 %v3393_v9, %v3353_v11  ;;  %v3355_v18 = vadd.f32 %v3354_v14, %v755_v5  ;;  %3678 = vmatprep.mubr.bf16.mxu0 %v219_v6  ;;  %v4972_v41 = vld [vmem:[%s7037_s1 + $0x9b0] ss:$8 sps:$4 sm:$0xff]   ;;  %v4977_v5 = vld [vmem:[%s7037_s1 + $0x8a4] ss:$8 sps:$4 sm:$0xff]   ;;  %v4975_v8 = vld [vmem:[%s7037_s1 + $0x8a0] ss:$8 sps:$4 sm:$0xff]  }
 0x106   :  { %3719 = vmatprep.mubr.bf16.mxu1 %v221_v7  ;;  %v3356_v19 = vpop.f32.mrf.mxu0  ;;  %v4980_v6 = vld [vmem:[%s7037_s1 + $0x9a4] ss:$8 sps:$4 sm:$0xff]   ;;  %v4978_v9 = vld [vmem:[%s7037_s1 + $0x9a0] ss:$8 sps:$4 sm:$0xff]   ;;  %v4986_v11 = vld [vmem:[%s7037_s1 + $0x994] ss:$8 sps:$4 sm:$0xff]  }
 0x107   :  { %v3397_v20 = vpop.f32.mrf.mxu1  ;;  %v6221_v23 = vadd.f32 %v3395_v15, %v3355_v18  ;;  %3649 = vmatpush1.bf16.msra.mxu0 %v4903_v10  ;;  %v23_v7 = vld [vmem:[%s7036_s0 + $0x28] sm:$0xff]  ;;  %v4983_v10 = vld [vmem:[%s7037_s1 + $0x894] ss:$8 sps:$4 sm:$0xff]   ;;  %v4984_v14 = vld [vmem:[%s7037_s1 + $0x990] ss:$8 sps:$4 sm:$0xff]  }
 0x108   :  { %3690 = vmatpush1.bf16.msra.mxu1 %v4906_v12  ;;  %v3357_v24 = vpop.f32.mrf.mxu0  ;;  %3650 = vmatprep.subr.bf16.mxu0 %v4911_v13  ;;  %v119_v12 = vcombine.high %v23_v7, %v23_v7  ;;  %v4981_v13 = vld [vmem:[%s7037_s1 + $0x890] ss:$8 sps:$4 sm:$0xff]   ;;  %v4989_v15 = vld [vmem:[%s7037_s1 + $0x884] ss:$8 sps:$4 sm:$0xff]   ;;  %v6377_v18 = vrot.slane %v23_v7, %v5471_v49  ;;  %v4987_v20 = vld [vmem:[%s7037_s1 + $0x880] ss:$8 sps:$4 sm:$0xff]  }
 0x109   :  { %v3398_v25 = vpop.f32.mrf.mxu1  ;;  %3691 = vmatprep.subr.bf16.mxu1 %v4914_v16  ;;  %v4992_v16 = vld [vmem:[%s7037_s1 + $0x984] ss:$8 sps:$4 sm:$0xff]   ;;  %v4999_v24 = vld [vmem:[%s7037_s1 + $0xb74] ss:$8 sps:$4 sm:$0xff]  }
 0x10a   :  { %v6380_v19 = vrot.slane %v119_v12, %v5471_v49  ;;  %v4994_v25 = vld [vmem:[%s7037_s1 + $0xa70] ss:$8 sps:$4 sm:$0xff]  }
 0x10b   :  { %3651 = vmatpush1.bf16.msra.mxu0 %v4909_v21  ;;  %v4990_v21 = vld [vmem:[%s7037_s1 + $0x980] ss:$8 sps:$4 sm:$0xff]  }
 0x10c   :  { %3692 = vmatpush1.bf16.msra.mxu1 %v4912_v22  ;;  %3652 = vmatprep.subr.bf16.mxu0 %v4917_v26  ;;  %v4996_v22 = vld [vmem:[%s7037_s1 + $0xa74] ss:$8 sps:$4 sm:$0xff]   ;;  %v4997_v26 = vld [vmem:[%s7037_s1 + $0xb70] ss:$8 sps:$4 sm:$0xff]  }
 0x10d   :  { %3693 = vmatprep.subr.bf16.mxu1 %v4920_v27  ;;  %v134_v27 = vcombine.high %v6377_v18, %v6377_v18 }
 0x10f   :  { %3653 = vmatpush1.bf16.msra.mxu0 %v4915_v28  ;;  %v135_v28 = vcombine.high %v6380_v19, %v6380_v19 }
 0x110   :  { %3694 = vmatpush1.bf16.msra.mxu1 %v4918_v29  ;;  %3654 = vmatprep.subr.bf16.mxu0 %v4923_v30  ;;  %v218_v29 = vpack.c.bf16 %v6159_v39, %v6159_v39  ;;  %v220_v30 = vpack.c.bf16 %v6162_v55, %v6162_v55  ;;  %v5000_v55 = vld [vmem:[%s7037_s1 + $0xa60] ss:$8 sps:$4 sm:$0xff]  }
 0x111   :  { %3695 = vmatprep.subr.bf16.mxu1 %v4926_v31  ;;  %v5002_v31 = vld [vmem:[%s7037_s1 + $0xa64] ss:$8 sps:$4 sm:$0xff]  }
 0x113   :  { %3655 = vmatpush1.bf16.msra.mxu0 %v4921_v32  ;;  %v5005_v32 = vld [vmem:[%s7037_s1 + $0xb64] ss:$8 sps:$4 sm:$0xff]  }
 0x114   :  { %3696 = vmatpush1.bf16.msra.mxu1 %v4924_v33  ;;  %3656 = vmatprep.subr.bf16.mxu0 %v4929_v34  ;;  %v223_v33 = vpack.c.bf16 %v134_v27, %v134_v27  ;;  %v225_v34 = vpack.c.bf16 %v135_v28, %v135_v28 }
 0x115   :  { %3697 = vmatprep.subr.bf16.mxu1 %v4932_v36 }
 0x117   :  { %3657 = vmatpush1.bf16.msra.mxu0 %v4927_v37 }
 0x118   :  { %3698 = vmatpush1.bf16.msra.mxu1 %v4930_v38  ;;  %3658 = vmatprep.subr.bf16.mxu0 %v4935_v42  ;;  %v5003_v38 = vld [vmem:[%s7037_s1 + $0xb60] ss:$8 sps:$4 sm:$0xff]  }
 0x119   :  { %3699 = vmatprep.subr.bf16.mxu1 %v4938_v44 }
 0x11b   :  { %3659 = vmatpush1.bf16.msra.mxu0 %v4933_v45 }
 0x11c   :  { %3700 = vmatpush1.bf16.msra.mxu1 %v4936_v46  ;;  %3660 = vmatprep.subr.bf16.mxu0 %v4941_v47 }
 0x11d   :  { %3701 = vmatprep.subr.bf16.mxu1 %v4944_v48 }
 0x11f   :  { %3661 = vmatpush1.bf16.msra.mxu0 %v4939_v50 }
 0x120   :  { %3702 = vmatpush1.bf16.msra.mxu1 %v4942_v51  ;;  %3662 = vmatprep.subr.bf16.mxu0 %v4947_v52 }
 0x121   :  { %3703 = vmatprep.subr.bf16.mxu1 %v4950_v53 }
 0x123   :  { %3663 = vmatpush2.bf16.msra.mxu0 %v4945_v54 }
 0x124   :  { %3704 = vmatpush2.bf16.msra.mxu1 %v4948_v35  ;;  %3664 = vmatprep.subr.bf16.mxu0 %v4953_v56 }
 0x125   :  { %3705 = vmatprep.subr.bf16.mxu1 %v4956_v57 }
 0x127   :  { %3665 = vmatpush2.bf16.msra.mxu0 %v4951_v58 }
 0x128   :  { %3706 = vmatpush2.bf16.msra.mxu1 %v4954_v59  ;;  %3666 = vmatprep.subr.bf16.mxu0 %v4959_v60 }
 0x129   :  { %3707 = vmatprep.subr.bf16.mxu1 %v4962_v61 }
 0x12b   :  { %3667 = vmatpush2.bf16.msra.mxu0 %v4957_v62 }
 0x12c   :  { %3708 = vmatpush2.bf16.msra.mxu1 %v4960_v63  ;;  %3668 = vmatprep.subr.bf16.mxu0 %v4965_v0 }
 0x12d   :  { %3709 = vmatprep.subr.bf16.mxu1 %v4968_v1 }
 0x12f   :  { %3669 = vmatpush2.bf16.msra.mxu0 %v4963_v2 }
 0x130   :  { %3710 = vmatpush2.bf16.msra.mxu1 %v4966_v3  ;;  %3670 = vmatprep.subr.bf16.mxu0 %v4971_v4 }
 0x131   :  { %3711 = vmatprep.subr.bf16.mxu1 %v4974_v43 }
 0x133   :  { %3671 = vmatpush2.bf16.msra.mxu0 %v4969_v40 }
 0x134   :  { %3712 = vmatpush2.bf16.msra.mxu1 %v4972_v41  ;;  %3672 = vmatprep.subr.bf16.mxu0 %v4977_v5 }
 0x135   :  { %3713 = vmatprep.subr.bf16.mxu1 %v4980_v6 }
 0x137   :  { %3673 = vmatpush2.bf16.msra.mxu0 %v4975_v8 }
 0x138   :  { %3714 = vmatpush2.bf16.msra.mxu1 %v4978_v9  ;;  %3674 = vmatprep.subr.bf16.mxu0 %v4983_v10 }
 0x139   :  { %3715 = vmatprep.subr.bf16.mxu1 %v4986_v11 }
 0x13b   :  { %3675 = vmatpush2.bf16.msra.mxu0 %v4981_v13 }
 0x13c   :  { %3716 = vmatpush2.bf16.msra.mxu1 %v4984_v14  ;;  %3676 = vmatprep.subr.bf16.mxu0 %v4989_v15 }
 0x13d   :  { %3717 = vmatprep.subr.bf16.mxu1 %v4992_v16 }
 0x13f   :  { %3677 = vmatpush2.bf16.msra.mxu0 %v4987_v20 }
 0x140   :  { %3718 = vmatpush2.bf16.msra.mxu1 %v4990_v21  ;;  %3728 = vmatprep.subr.bf16.mxu0 %v4996_v22 }
 0x141   :  { %3769 = vmatprep.subr.bf16.mxu1 %v4999_v24 }
 0x142   :  { %v3434_v36 = vpop.f32.mrf.mxu0  ;;  %3679 = vmatmul.mubr.bf16.vlgmr.msra.gmra.mxu0 %v218_v29 }
 0x143   :  { %v3475_v37 = vpop.f32.mrf.mxu1  ;;  %3720 = vmatmul.mubr.bf16.vlgmr.msra.gmra.mxu1 %v220_v30  ;;  %v3435_v39 = vadd.f32 %v3434_v36, %v6213_v17  ;;  %3729 = vmatpush1.bf16.msra.mxu0 %v4994_v25 }
 0x144   :  { %3770 = vmatpush1.bf16.msra.mxu1 %v4997_v26 }
 0x145   :  { %9 = vsyncpa [#allocation3], 0  ;;  %v3436_v42 = vpop.f32.mrf.mxu0  ;;  %v3477_v44 = vpop.f32.mrf.mxu1  ;;  %3730 = vmatprep.subr.bf16.mxu0 %v5002_v31  ;;  %3771 = vmatprep.subr.bf16.mxu1 %v5005_v32  ;;  %v5008_v45 = vld [vmem:[%s7037_s1 + $0xa54] ss:$8 sps:$4 sm:$0xff]   ;;  %v6427_v46 = vadd.f32 %v3475_v37, %v3435_v39  ;;  %v5006_v52 = vld [vmem:[%s7037_s1 + $0xa50] ss:$8 sps:$4 sm:$0xff]  }
 0x146   :  { %v5011_v17 = vld [vmem:[%s7037_s1 + $0xb54] ss:$8 sps:$4 sm:$0xff]   ;;  %v3437_v47 = vadd.f32 %v3436_v42, %v6221_v23  ;;  %3760 = vmatprep.mubr.bf16.mxu0 %v223_v33  ;;  %3801 = vmatprep.mubr.bf16.mxu1 %v225_v34  ;;  %v5009_v53 = vld [vmem:[%s7037_s1 + $0xb50] ss:$8 sps:$4 sm:$0xff]   ;;  %v5014_v23 = vld [vmem:[%s7037_s1 + $0xa44] ss:$8 sps:$4 sm:$0xff]  }
 0x147   :  { %v3438_v48 = vpop.f32.mrf.mxu0  ;;  %v3479_v50 = vpop.f32.mrf.mxu1  ;;  %3731 = vmatpush1.bf16.msra.mxu0 %v5000_v55  ;;  %v5017_v56 = vld [vmem:[%s7037_s1 + $0xb44] ss:$8 sps:$4 sm:$0xff]   ;;  %v5012_v57 = vld [vmem:[%s7037_s1 + $0xa40] ss:$8 sps:$4 sm:$0xff]   ;;  %v5020_v59 = vld [vmem:[%s7037_s1 + $0xa34] ss:$8 sps:$4 sm:$0xff]  }
 0x148   :  { %v6430_v51 = vadd.f32 %v3477_v44, %v3437_v47  ;;  %3772 = vmatpush1.bf16.msra.mxu1 %v5003_v38  ;;  %3732 = vmatprep.subr.bf16.mxu0 %v5008_v45  ;;  %v5015_v58 = vld [vmem:[%s7037_s1 + $0xb40] ss:$8 sps:$4 sm:$0xff]   ;;  %v5023_v60 = vld [vmem:[%s7037_s1 + $0xb34] ss:$8 sps:$4 sm:$0xff]   ;;  %v5018_v61 = vld [vmem:[%s7037_s1 + $0xa30] ss:$8 sps:$4 sm:$0xff]  }
 0x149   :  { %v3439_v54 = vpop.f32.mrf.mxu0  ;;  %v3480_v35 = vpop.f32.mrf.mxu1  ;;  %3773 = vmatprep.subr.bf16.mxu1 %v5011_v17  ;;  %v5021_v62 = vld [vmem:[%s7037_s1 + $0xb30] ss:$8 sps:$4 sm:$0xff]   ;;  %v5026_v63 = vld [vmem:[%s7037_s1 + $0xa24] ss:$8 sps:$4 sm:$0xff]   ;;  %v5024_v1 = vld [vmem:[%s7037_s1 + $0xa20] ss:$8 sps:$4 sm:$0xff]  }
 0x14a   :  { %v5029_v0 = vld [vmem:[%s7037_s1 + $0xb24] ss:$8 sps:$4 sm:$0xff]   ;;  %v5027_v2 = vld [vmem:[%s7037_s1 + $0xb20] ss:$8 sps:$4 sm:$0xff]   ;;  %v5032_v3 = vld [vmem:[%s7037_s1 + $0xa14] ss:$8 sps:$4 sm:$0xff]  }
 0x14b   :  { %3733 = vmatpush1.bf16.msra.mxu0 %v5006_v52  ;;  %v5035_v4 = vld [vmem:[%s7037_s1 + $0xb14] ss:$8 sps:$4 sm:$0xff]   ;;  %v5030_v43 = vld [vmem:[%s7037_s1 + $0xa10] ss:$8 sps:$4 sm:$0xff]   ;;  %v5038_v41 = vld [vmem:[%s7037_s1 + $0xa04] ss:$8 sps:$4 sm:$0xff]  }
 0x14c   :  { %3774 = vmatpush1.bf16.msra.mxu1 %v5009_v53  ;;  %3734 = vmatprep.subr.bf16.mxu0 %v5014_v23  ;;  %v5033_v40 = vld [vmem:[%s7037_s1 + $0xb10] ss:$8 sps:$4 sm:$0xff]   ;;  %v5041_v5 = vld [vmem:[%s7037_s1 + $0xb04] ss:$8 sps:$4 sm:$0xff]   ;;  %v5036_v6 = vld [vmem:[%s7037_s1 + $0xa00] ss:$8 sps:$4 sm:$0xff]  }
 0x14d   :  { %3775 = vmatprep.subr.bf16.mxu1 %v5017_v56  ;;  %v5039_v7 = vld [vmem:[%s7037_s1 + $0xb00] ss:$8 sps:$4 sm:$0xff]   ;;  %v5044_v8 = vld [vmem:[%s7037_s1 + $0xaf4] ss:$8 sps:$4 sm:$0xff]   ;;  %v5042_v10 = vld [vmem:[%s7037_s1 + $0xaf0] ss:$8 sps:$4 sm:$0xff]   ;;  %v222_v56 = vpack.c.bf16 %v6377_v18, %v6377_v18 }
 0x14e   :  { %v5047_v9 = vld [vmem:[%s7037_s1 + $0xbf4] ss:$8 sps:$4 sm:$0xff]   ;;  %v5045_v11 = vld [vmem:[%s7037_s1 + $0xbf0] ss:$8 sps:$4 sm:$0xff]   ;;  %v5050_v12 = vld [vmem:[%s7037_s1 + $0xae4] ss:$8 sps:$4 sm:$0xff]  }
 0x14f   :  { %3735 = vmatpush1.bf16.msra.mxu0 %v5012_v57  ;;  %v5053_v13 = vld [vmem:[%s7037_s1 + $0xbe4] ss:$8 sps:$4 sm:$0xff]   ;;  %v5048_v14 = vld [vmem:[%s7037_s1 + $0xae0] ss:$8 sps:$4 sm:$0xff]   ;;  %v5056_v16 = vld [vmem:[%s7037_s1 + $0xad4] ss:$8 sps:$4 sm:$0xff]   ;;  %v224_v57 = vpack.c.bf16 %v6380_v19, %v6380_v19 }
 0x150   :  { %3776 = vmatpush1.bf16.msra.mxu1 %v5015_v58  ;;  %3736 = vmatprep.subr.bf16.mxu0 %v5020_v59  ;;  %v5051_v15 = vld [vmem:[%s7037_s1 + $0xbe0] ss:$8 sps:$4 sm:$0xff]   ;;  %v5059_v20 = vld [vmem:[%s7037_s1 + $0xbd4] ss:$8 sps:$4 sm:$0xff]   ;;  %v5054_v21 = vld [vmem:[%s7037_s1 + $0xad0] ss:$8 sps:$4 sm:$0xff]  }
 0x151   :  { %3777 = vmatprep.subr.bf16.mxu1 %v5023_v60  ;;  %v5057_v22 = vld [vmem:[%s7037_s1 + $0xbd0] ss:$8 sps:$4 sm:$0xff]   ;;  %v5062_v24 = vld [vmem:[%s7037_s1 + $0xac4] ss:$8 sps:$4 sm:$0xff]   ;;  %v5060_v26 = vld [vmem:[%s7037_s1 + $0xac0] ss:$8 sps:$4 sm:$0xff]  }
 0x152   :  { %v5065_v25 = vld [vmem:[%s7037_s1 + $0xbc4] ss:$8 sps:$4 sm:$0xff]   ;;  %v5063_v27 = vld [vmem:[%s7037_s1 + $0xbc0] ss:$8 sps:$4 sm:$0xff]   ;;  %v5068_v28 = vld [vmem:[%s7037_s1 + $0xab4] ss:$8 sps:$4 sm:$0xff]  }
 0x153   :  { %3737 = vmatpush1.bf16.msra.mxu0 %v5018_v61  ;;  %v5071_v29 = vld [vmem:[%s7037_s1 + $0xbb4] ss:$8 sps:$4 sm:$0xff]   ;;  %v5066_v30 = vld [vmem:[%s7037_s1 + $0xab0] ss:$8 sps:$4 sm:$0xff]   ;;  %v5074_v32 = vld [vmem:[%s7037_s1 + $0xaa4] ss:$8 sps:$4 sm:$0xff]  }
 0x154   :  { %3778 = vmatpush1.bf16.msra.mxu1 %v5021_v62  ;;  %3738 = vmatprep.subr.bf16.mxu0 %v5026_v63  ;;  %v5069_v31 = vld [vmem:[%s7037_s1 + $0xbb0] ss:$8 sps:$4 sm:$0xff]   ;;  %v5077_v33 = vld [vmem:[%s7037_s1 + $0xba4] ss:$8 sps:$4 sm:$0xff]   ;;  %v5072_v36 = vld [vmem:[%s7037_s1 + $0xaa0] ss:$8 sps:$4 sm:$0xff]  }
 0x155   :  { %3779 = vmatprep.subr.bf16.mxu1 %v5029_v0  ;;  %v24_v34 = vld [vmem:[%s7036_s0 + $0x30] sm:$0xff]  ;;  %v5075_v37 = vld [vmem:[%s7037_s1 + $0xba0] ss:$8 sps:$4 sm:$0xff]   ;;  %v5086_v45 = vld [vmem:[%s7037_s1 + $0xa84] ss:$8 sps:$4 sm:$0xff]   ;;  %s5310_s19 = smov [#allocation2]  }
 0x156   :  { %v5080_v39 = vld [vmem:[%s7037_s1 + $0xa94] ss:$8 sps:$4 sm:$0xff]   ;;  %v136_v38 = vcombine.high %v24_v34, %v24_v34  ;;  %v5078_v42 = vld [vmem:[%s7037_s1 + $0xa90] ss:$8 sps:$4 sm:$0xff]   ;;  %v5089_v17 = vld [vmem:[%s7037_s1 + $0xb84] ss:$8 sps:$4 sm:$0xff]   ;;  %v6592_v47 = vrot.slane %v24_v34, %v5471_v49 }
 0x157   :  { %3739 = vmatpush1.bf16.msra.mxu0 %v5024_v1  ;;  %v5083_v55 = vld [vmem:[%s7037_s1 + $0xb94] ss:$8 sps:$4 sm:$0xff]   ;;  %v5081_v44 = vld [vmem:[%s7037_s1 + $0xb90] ss:$8 sps:$4 sm:$0xff]   ;;  %v5084_v50 = vld [vmem:[%s7037_s1 + $0xa80] ss:$8 sps:$4 sm:$0xff]  }
 0x158   :  { %3780 = vmatpush1.bf16.msra.mxu1 %v5027_v2  ;;  %3740 = vmatprep.subr.bf16.mxu0 %v5032_v3  ;;  %v6595_v48 = vrot.slane %v136_v38, %v5471_v49  ;;  %v5087_v52 = vld [vmem:[%s7037_s1 + $0xb80] ss:$8 sps:$4 sm:$0xff]   ;;  %v5093_v53 = vld [vmem:[%s7037_s1 + $0xc74] ss:$8 sps:$4 sm:$0xff]   ;;  %v151_v35 = vcombine.high %v6592_v47, %v6592_v47  ;;  %v5091_v58 = vld [vmem:[%s7037_s1 + $0xc70] ss:$8 sps:$4 sm:$0xff]  }
 0x159   :  { %3781 = vmatprep.subr.bf16.mxu1 %v5035_v4  ;;  %v5096_v54 = vld [vmem:[%s7037_s1 + $0xd74] ss:$8 sps:$4 sm:$0xff]   ;;  %v5094_v59 = vld [vmem:[%s7037_s1 + $0xd70] ss:$8 sps:$4 sm:$0xff]   ;;  %v5099_v60 = vld [vmem:[%s7037_s1 + $0xc64] ss:$8 sps:$4 sm:$0xff]  }
 0x15a   :  { %v152_v23 = vcombine.high %v6595_v48, %v6595_v48  ;;  %v5102_v18 = vld [vmem:[%s7037_s1 + $0xd64] ss:$8 sps:$4 sm:$0xff]   ;;  %v227_v19 = vpack.c.bf16 %v151_v35, %v151_v35  ;;  %v5097_v1 = vld [vmem:[%s7037_s1 + $0xc60] ss:$8 sps:$4 sm:$0xff]   ;;  %s3987_s20 = sshll.u32 %s5310_s19, 4  ;;  %s3988_s20 = int_to_ptr.vmem [resolvable:$true] %s3987_s20 }
 0x15b   :  { %3741 = vmatpush1.bf16.msra.mxu0 %v5030_v43  ;;  %v5100_v2 = vld [vmem:[%s7037_s1 + $0xd60] ss:$8 sps:$4 sm:$0xff]   ;;  %v5105_v43 = vld [vmem:[%s7037_s1 + $0xc54] ss:$8 sps:$4 sm:$0xff]   ;;  %v5147_v38 = vld [vmem:[%s7037_s1 + $0xce4] ss:$8 sps:$4 sm:$0xff]   ;;  %p5292_p1 = scmp.lt.s32.totalorder %s3988_s20, %s3988_s20 }
 0x15c   :  { %3782 = vmatpush1.bf16.msra.mxu1 %v5033_v40  ;;  %3742 = vmatprep.subr.bf16.mxu0 %v5038_v41  ;;  %v229_v61 = vpack.c.bf16 %v152_v23, %v152_v23  ;;  %v5136_v34 = vld [vmem:[%s7037_s1 + $0xd00] ss:$8 sps:$4 sm:$0xff]   ;;  %v5162_v35 = vld [vmem:[%s7037_s1 + $0xdc4] ss:$8 sps:$4 sm:$0xff]   ;;  %s5287_s21 = scalar_lea.vmem %s3988_s20, 32 }
 0x15d   :  { %3783 = vmatprep.subr.bf16.mxu1 %v5041_v5  ;;  %v5157_v23 = vld [vmem:[%s7037_s1 + $0xcc0] ss:$8 sps:$4 sm:$0xff]   ;;  %p5288_p0 = scmp.ne.s32.totalorder %s3988_s20, %s5287_s21  ;;  %p5293_p2 = scmp.lt.s32.totalorder %s5287_s21, %s5287_s21 }
 0x15f   :  { %3743 = vmatpush1.bf16.msra.mxu0 %v5036_v6  ;;  %p5294_p3 = por %p5293_p2, %p5292_p1 }
 0x160   :  { %3784 = vmatpush1.bf16.msra.mxu1 %v5039_v7  ;;  %3744 = vmatprep.subr.bf16.mxu0 %v5044_v8  ;;  %v5103_v8 = vld [vmem:[%s7037_s1 + $0xc50] ss:$8 sps:$4 sm:$0xff]  }
 0x161   :  { %3785 = vmatprep.subr.bf16.mxu1 %v5047_v9  ;;  %v5106_v9 = vld [vmem:[%s7037_s1 + $0xd50] ss:$8 sps:$4 sm:$0xff]   ;;  %p5295_p4 = pnand %p5294_p3, %p5288_p0 }
 0x163   :  { %3745 = vmatpush2.bf16.msra.mxu0 %v5042_v10 }
 0x164   :  { %3786 = vmatpush2.bf16.msra.mxu1 %v5045_v11  ;;  %3746 = vmatprep.subr.bf16.mxu0 %v5050_v12  ;;  %v5114_v12 = vld [vmem:[%s7037_s1 + $0xd44] ss:$8 sps:$4 sm:$0xff]  }
 0x165   :  { %3787 = vmatprep.subr.bf16.mxu1 %v5053_v13  ;;  %v5109_v13 = vld [vmem:[%s7037_s1 + $0xc40] ss:$8 sps:$4 sm:$0xff]  }
 0x167   :  { %3747 = vmatpush2.bf16.msra.mxu0 %v5048_v14  ;;  %v5112_v14 = vld [vmem:[%s7037_s1 + $0xd40] ss:$8 sps:$4 sm:$0xff]  }
 0x168   :  { %3788 = vmatpush2.bf16.msra.mxu1 %v5051_v15  ;;  %3748 = vmatprep.subr.bf16.mxu0 %v5056_v16  ;;  %v5117_v15 = vld [vmem:[%s7037_s1 + $0xc34] ss:$8 sps:$4 sm:$0xff]  }
 0x169   :  { %3789 = vmatprep.subr.bf16.mxu1 %v5059_v20  ;;  %v5120_v16 = vld [vmem:[%s7037_s1 + $0xd34] ss:$8 sps:$4 sm:$0xff]   ;;  %v5115_v20 = vld [vmem:[%s7037_s1 + $0xc30] ss:$8 sps:$4 sm:$0xff]  }
 0x16b   :  { %3749 = vmatpush2.bf16.msra.mxu0 %v5054_v21  ;;  %v5118_v21 = vld [vmem:[%s7037_s1 + $0xd30] ss:$8 sps:$4 sm:$0xff]  }
 0x16c   :  { %3790 = vmatpush2.bf16.msra.mxu1 %v5057_v22  ;;  %3750 = vmatprep.subr.bf16.mxu0 %v5062_v24  ;;  %v5123_v22 = vld [vmem:[%s7037_s1 + $0xc24] ss:$8 sps:$4 sm:$0xff]  }
 0x16d   :  { %3791 = vmatprep.subr.bf16.mxu1 %v5065_v25  ;;  %v5126_v24 = vld [vmem:[%s7037_s1 + $0xd24] ss:$8 sps:$4 sm:$0xff]   ;;  %v5121_v25 = vld [vmem:[%s7037_s1 + $0xc20] ss:$8 sps:$4 sm:$0xff]  }
 0x16f   :  { %3751 = vmatpush2.bf16.msra.mxu0 %v5060_v26  ;;  %v5124_v26 = vld [vmem:[%s7037_s1 + $0xd20] ss:$8 sps:$4 sm:$0xff]  }
 0x170   :  { %3792 = vmatpush2.bf16.msra.mxu1 %v5063_v27  ;;  %3752 = vmatprep.subr.bf16.mxu0 %v5068_v28  ;;  %v5129_v27 = vld [vmem:[%s7037_s1 + $0xc14] ss:$8 sps:$4 sm:$0xff]  }
 0x171   :  { %3793 = vmatprep.subr.bf16.mxu1 %v5071_v29  ;;  %v5132_v28 = vld [vmem:[%s7037_s1 + $0xd14] ss:$8 sps:$4 sm:$0xff]   ;;  %v5127_v29 = vld [vmem:[%s7037_s1 + $0xc10] ss:$8 sps:$4 sm:$0xff]  }
 0x173   :  { %3753 = vmatpush2.bf16.msra.mxu0 %v5066_v30  ;;  %v5130_v30 = vld [vmem:[%s7037_s1 + $0xd10] ss:$8 sps:$4 sm:$0xff]  }
 0x174   :  { %3794 = vmatpush2.bf16.msra.mxu1 %v5069_v31  ;;  %3754 = vmatprep.subr.bf16.mxu0 %v5074_v32  ;;  %v5135_v31 = vld [vmem:[%s7037_s1 + $0xc04] ss:$8 sps:$4 sm:$0xff]  }
 0x175   :  { %3795 = vmatprep.subr.bf16.mxu1 %v5077_v33  ;;  %v5138_v32 = vld [vmem:[%s7037_s1 + $0xd04] ss:$8 sps:$4 sm:$0xff]   ;;  %v5133_v33 = vld [vmem:[%s7037_s1 + $0xc00] ss:$8 sps:$4 sm:$0xff]  }
 0x177   :  { %3755 = vmatpush2.bf16.msra.mxu0 %v5072_v36  ;;  %v5141_v36 = vld [vmem:[%s7037_s1 + $0xcf4] ss:$8 sps:$4 sm:$0xff]  }
 0x178   :  { %3796 = vmatpush2.bf16.msra.mxu1 %v5075_v37  ;;  %3756 = vmatprep.subr.bf16.mxu0 %v5080_v39  ;;  %v5144_v37 = vld [vmem:[%s7037_s1 + $0xdf4] ss:$8 sps:$4 sm:$0xff]   ;;  %v5139_v39 = vld [vmem:[%s7037_s1 + $0xcf0] ss:$8 sps:$4 sm:$0xff]  }
 0x179   :  { %3797 = vmatprep.subr.bf16.mxu1 %v5083_v55  ;;  %v5142_v55 = vld [vmem:[%s7037_s1 + $0xdf0] ss:$8 sps:$4 sm:$0xff]  }
 0x17b   :  { %3757 = vmatpush2.bf16.msra.mxu0 %v5078_v42  ;;  %v5150_v42 = vld [vmem:[%s7037_s1 + $0xde4] ss:$8 sps:$4 sm:$0xff]  }
 0x17c   :  { %3798 = vmatpush2.bf16.msra.mxu1 %v5081_v44  ;;  %3758 = vmatprep.subr.bf16.mxu0 %v5086_v45  ;;  %v5145_v44 = vld [vmem:[%s7037_s1 + $0xce0] ss:$8 sps:$4 sm:$0xff]  }
 0x17d   :  { %3799 = vmatprep.subr.bf16.mxu1 %v5089_v17  ;;  %v5148_v45 = vld [vmem:[%s7037_s1 + $0xde0] ss:$8 sps:$4 sm:$0xff]   ;;  %v5153_v17 = vld [vmem:[%s7037_s1 + $0xcd4] ss:$8 sps:$4 sm:$0xff]  }
 0x17f   :  { %3759 = vmatpush2.bf16.msra.mxu0 %v5084_v50  ;;  %v5156_v50 = vld [vmem:[%s7037_s1 + $0xdd4] ss:$8 sps:$4 sm:$0xff]  }
 0x180   :  { %3800 = vmatpush2.bf16.msra.mxu1 %v5087_v52  ;;  %3810 = vmatprep.subr.bf16.mxu0 %v5093_v53  ;;  %v5151_v52 = vld [vmem:[%s7037_s1 + $0xcd0] ss:$8 sps:$4 sm:$0xff]  }
 0x181   :  { %3851 = vmatprep.subr.bf16.mxu1 %v5096_v54  ;;  %v5154_v53 = vld [vmem:[%s7037_s1 + $0xdd0] ss:$8 sps:$4 sm:$0xff]   ;;  %v5159_v54 = vld [vmem:[%s7037_s1 + $0xcc4] ss:$8 sps:$4 sm:$0xff]  }
 0x182   :  { %v3516_v62 = vpop.f32.mrf.mxu0  ;;  %3761 = vmatmul.mubr.bf16.vlgmr.msra.gmra.mxu0 %v222_v56  ;;  %v5160_v56 = vld [vmem:[%s7037_s1 + $0xdc0] ss:$8 sps:$4 sm:$0xff]  }
 0x183   :  { %v3557_v63 = vpop.f32.mrf.mxu1  ;;  %3802 = vmatmul.mubr.bf16.vlgmr.msra.gmra.mxu1 %v224_v57  ;;  %v3517_v0 = vadd.f32 %v3516_v62, %v6427_v46  ;;  %3811 = vmatpush1.bf16.msra.mxu0 %v5091_v58  ;;  %v5108_v46 = vld [vmem:[%s7037_s1 + $0xd54] ss:$8 sps:$4 sm:$0xff]   ;;  %v5169_v62 = vld [vmem:[%s7037_s1 + $0xca0] ss:$8 sps:$4 sm:$0xff]  }
 0x184   :  { %3852 = vmatpush1.bf16.msra.mxu1 %v5094_v59  ;;  %v3518_v3 = vpop.f32.mrf.mxu0  ;;  %3812 = vmatprep.subr.bf16.mxu0 %v5099_v60  ;;  %v5165_v57 = vld [vmem:[%s7037_s1 + $0xcb4] ss:$8 sps:$4 sm:$0xff]   ;;  %v5163_v59 = vld [vmem:[%s7037_s1 + $0xcb0] ss:$8 sps:$4 sm:$0xff]  }
 0x185   :  { %v3559_v4 = vpop.f32.mrf.mxu1  ;;  %3853 = vmatprep.subr.bf16.mxu1 %v5102_v18  ;;  %v6642_v40 = vadd.f32 %v3557_v63, %v3517_v0  ;;  %v3519_v41 = vadd.f32 %v3518_v3, %v6430_v51  ;;  %3842 = vmatprep.mubr.bf16.mxu0 %v227_v19  ;;  %v5111_v51 = vld [vmem:[%s7037_s1 + $0xc44] ss:$8 sps:$4 sm:$0xff]   ;;  %v5168_v58 = vld [vmem:[%s7037_s1 + $0xdb4] ss:$8 sps:$4 sm:$0xff]   ;;  %v5166_v60 = vld [vmem:[%s7037_s1 + $0xdb0] ss:$8 sps:$4 sm:$0xff]  }
 0x186   :  { %3883 = vmatprep.mubr.bf16.mxu1 %v229_v61  ;;  %v3520_v5 = vpop.f32.mrf.mxu0  ;;  %v5171_v18 = vld [vmem:[%s7037_s1 + $0xca4] ss:$8 sps:$4 sm:$0xff]   ;;  %v25_v61 = vld [vmem:[%s7036_s0 + $0x38] sm:$0xff]  ;;  %v5172_v63 = vld [vmem:[%s7037_s1 + $0xda0] ss:$8 sps:$4 sm:$0xff]  }
 0x187   :  { %v3561_v6 = vpop.f32.mrf.mxu1  ;;  %v6645_v7 = vadd.f32 %v3559_v4, %v3519_v41  ;;  %3813 = vmatpush1.bf16.msra.mxu0 %v5097_v1  ;;  %v5174_v19 = vld [vmem:[%s7037_s1 + $0xda4] ss:$8 sps:$4 sm:$0xff]   ;;  %v5177_v0 = vld [vmem:[%s7037_s1 + $0xc94] ss:$8 sps:$4 sm:$0xff]   ;;  %v5175_v3 = vld [vmem:[%s7037_s1 + $0xc90] ss:$8 sps:$4 sm:$0xff]   ;;  %v6807_v41 = vrot.slane %v25_v61, %v5471_v49 }
 0x188   :  { %3854 = vmatpush1.bf16.msra.mxu1 %v5100_v2  ;;  %v3521_v10 = vpop.f32.mrf.mxu0  ;;  %3814 = vmatprep.subr.bf16.mxu0 %v5105_v43  ;;  %v5180_v1 = vld [vmem:[%s7037_s1 + $0xd94] ss:$8 sps:$4 sm:$0xff]   ;;  %v153_v2 = vcombine.high %v25_v61, %v25_v61  ;;  %v5178_v4 = vld [vmem:[%s7037_s1 + $0xd90] ss:$8 sps:$4 sm:$0xff]   ;;  %v5183_v43 = vld [vmem:[%s7037_s1 + $0xc84] ss:$8 sps:$4 sm:$0xff]  }
 0x189   :  { %v3562_v11 = vpop.f32.mrf.mxu1  ;;  %3855 = vmatprep.subr.bf16.mxu1 %v5108_v46  ;;  %v5186_v46 = vld [vmem:[%s7037_s1 + $0xd84] ss:$8 sps:$4 sm:$0xff]   ;;  %v5181_v6 = vld [vmem:[%s7037_s1 + $0xc80] ss:$8 sps:$4 sm:$0xff]   ;;  %v168_v10 = vcombine.high %v6807_v41, %v6807_v41  ;;  %v5238_v61 = vld [vmem:[%s7037_s1 + $0xef4] ss:$8 sps:$4 sm:$0xff]  }
 0x18a   :  { %v6810_v5 = vrot.slane %v153_v2, %v5471_v49  ;;  %v5193_v49 = vld [vmem:[%s7037_s1 + $0xf74] ss:$8 sps:$4 sm:$0xff]   ;;  %v5247_v2 = vld [vmem:[%s7037_s1 + $0xfe4] ss:$8 sps:$4 sm:$0xff]  }
 0x18b   :  { %3815 = vmatpush1.bf16.msra.mxu0 %v5103_v8  ;;  %v5184_v8 = vld [vmem:[%s7037_s1 + $0xd80] ss:$8 sps:$4 sm:$0xff]  }
 0x18c   :  { %3856 = vmatpush1.bf16.msra.mxu1 %v5106_v9  ;;  %3816 = vmatprep.subr.bf16.mxu0 %v5111_v51  ;;  %v5190_v9 = vld [vmem:[%s7037_s1 + $0xe74] ss:$8 sps:$4 sm:$0xff]   ;;  %v169_v11 = vcombine.high %v6810_v5, %v6810_v5  ;;  %v226_v51 = vpack.c.bf16 %v6592_v47, %v6592_v47  ;;  %v5199_v47 = vld [vmem:[%s7037_s1 + $0xf64] ss:$8 sps:$4 sm:$0xff]  }
 0x18d   :  { %3857 = vmatprep.subr.bf16.mxu1 %v5114_v12  ;;  %v228_v12 = vpack.c.bf16 %v6595_v48, %v6595_v48  ;;  %v231_v48 = vpack.c.bf16 %v168_v10, %v168_v10  ;;  %v5254_v10 = vld [vmem:[%s7037_s1 + $0xec0] ss:$8 sps:$4 sm:$0xff]  }
 0x18f   :  { %3817 = vmatpush1.bf16.msra.mxu0 %v5109_v13  ;;  %v5188_v13 = vld [vmem:[%s7037_s1 + $0xe70] ss:$8 sps:$4 sm:$0xff]  }
 0x190   :  { %3858 = vmatpush1.bf16.msra.mxu1 %v5112_v14  ;;  %3818 = vmatprep.subr.bf16.mxu0 %v5117_v15  ;;  %v5191_v14 = vld [vmem:[%s7037_s1 + $0xf70] ss:$8 sps:$4 sm:$0xff]   ;;  %v5196_v15 = vld [vmem:[%s7037_s1 + $0xe64] ss:$8 sps:$4 sm:$0xff]  }
 0x191   :  { %3859 = vmatprep.subr.bf16.mxu1 %v5120_v16  ;;  %v233_v16 = vpack.c.bf16 %v169_v11, %v169_v11  ;;  %v5257_v11 = vld [vmem:[%s7037_s1 + $0xfc0] ss:$8 sps:$4 sm:$0xff]  }
 0x193   :  { %3819 = vmatpush1.bf16.msra.mxu0 %v5115_v20 }
 0x194   :  { %3860 = vmatpush1.bf16.msra.mxu1 %v5118_v21  ;;  %3820 = vmatprep.subr.bf16.mxu0 %v5123_v22 }
 0x195   :  { %3861 = vmatprep.subr.bf16.mxu1 %v5126_v24  ;;  %v5194_v24 = vld [vmem:[%s7037_s1 + $0xe60] ss:$8 sps:$4 sm:$0xff]  }
 0x197   :  { %3821 = vmatpush1.bf16.msra.mxu0 %v5121_v25  ;;  %v5197_v25 = vld [vmem:[%s7037_s1 + $0xf60] ss:$8 sps:$4 sm:$0xff]  }
 0x198   :  { %3862 = vmatpush1.bf16.msra.mxu1 %v5124_v26  ;;  %3822 = vmatprep.subr.bf16.mxu0 %v5129_v27 }
 0x199   :  { %3863 = vmatprep.subr.bf16.mxu1 %v5132_v28  ;;  %v5202_v28 = vld [vmem:[%s7037_s1 + $0xe54] ss:$8 sps:$4 sm:$0xff]  }
 0x19b   :  { %3823 = vmatpush1.bf16.msra.mxu0 %v5127_v29 }
 0x19c   :  { %3864 = vmatpush1.bf16.msra.mxu1 %v5130_v30  ;;  %3824 = vmatprep.subr.bf16.mxu0 %v5135_v31 }
 0x19d   :  { %3865 = vmatprep.subr.bf16.mxu1 %v5138_v32 }
 0x19f   :  { %3825 = vmatpush1.bf16.msra.mxu0 %v5133_v33 }
 0x1a0   :  { %3866 = vmatpush1.bf16.msra.mxu1 %v5136_v34  ;;  %3826 = vmatprep.subr.bf16.mxu0 %v5141_v36  ;;  %v5200_v34 = vld [vmem:[%s7037_s1 + $0xe50] ss:$8 sps:$4 sm:$0xff]  }
 0x1a1   :  { %3867 = vmatprep.subr.bf16.mxu1 %v5144_v37  ;;  %v5203_v36 = vld [vmem:[%s7037_s1 + $0xf50] ss:$8 sps:$4 sm:$0xff]  }
 0x1a3   :  { %3827 = vmatpush2.bf16.msra.mxu0 %v5139_v39 }
 0x1a4   :  { %3868 = vmatpush2.bf16.msra.mxu1 %v5142_v55  ;;  %3828 = vmatprep.subr.bf16.mxu0 %v5147_v38  ;;  %v5211_v55 = vld [vmem:[%s7037_s1 + $0xf44] ss:$8 sps:$4 sm:$0xff]   ;;  %v5206_v38 = vld [vmem:[%s7037_s1 + $0xe40] ss:$8 sps:$4 sm:$0xff]  }
 0x1a5   :  { %3869 = vmatprep.subr.bf16.mxu1 %v5150_v42  ;;  %v5209_v42 = vld [vmem:[%s7037_s1 + $0xf40] ss:$8 sps:$4 sm:$0xff]  }
 0x1a7   :  { %3829 = vmatpush2.bf16.msra.mxu0 %v5145_v44  ;;  %v5214_v44 = vld [vmem:[%s7037_s1 + $0xe34] ss:$8 sps:$4 sm:$0xff]  }
 0x1a8   :  { %3870 = vmatpush2.bf16.msra.mxu1 %v5148_v45  ;;  %3830 = vmatprep.subr.bf16.mxu0 %v5153_v17  ;;  %v5217_v45 = vld [vmem:[%s7037_s1 + $0xf34] ss:$8 sps:$4 sm:$0xff]   ;;  %v5212_v17 = vld [vmem:[%s7037_s1 + $0xe30] ss:$8 sps:$4 sm:$0xff]  }
 0x1a9   :  { %3871 = vmatprep.subr.bf16.mxu1 %v5156_v50  ;;  %v5215_v50 = vld [vmem:[%s7037_s1 + $0xf30] ss:$8 sps:$4 sm:$0xff]  }
 0x1ab   :  { %3831 = vmatpush2.bf16.msra.mxu0 %v5151_v52  ;;  %v5220_v52 = vld [vmem:[%s7037_s1 + $0xe24] ss:$8 sps:$4 sm:$0xff]  }
 0x1ac   :  { %3872 = vmatpush2.bf16.msra.mxu1 %v5154_v53  ;;  %3832 = vmatprep.subr.bf16.mxu0 %v5159_v54  ;;  %v5223_v53 = vld [vmem:[%s7037_s1 + $0xf24] ss:$8 sps:$4 sm:$0xff]   ;;  %v5218_v54 = vld [vmem:[%s7037_s1 + $0xe20] ss:$8 sps:$4 sm:$0xff]  }
 0x1ad   :  { %3873 = vmatprep.subr.bf16.mxu1 %v5162_v35  ;;  %v5221_v35 = vld [vmem:[%s7037_s1 + $0xf20] ss:$8 sps:$4 sm:$0xff]  }
 0x1af   :  { %3833 = vmatpush2.bf16.msra.mxu0 %v5157_v23  ;;  %v5226_v23 = vld [vmem:[%s7037_s1 + $0xe14] ss:$8 sps:$4 sm:$0xff]  }
 0x1b0   :  { %3874 = vmatpush2.bf16.msra.mxu1 %v5160_v56  ;;  %3834 = vmatprep.subr.bf16.mxu0 %v5165_v57  ;;  %v5229_v56 = vld [vmem:[%s7037_s1 + $0xf14] ss:$8 sps:$4 sm:$0xff]   ;;  %v5224_v57 = vld [vmem:[%s7037_s1 + $0xe10] ss:$8 sps:$4 sm:$0xff]  }
 0x1b1   :  { %3875 = vmatprep.subr.bf16.mxu1 %v5168_v58  ;;  %v5227_v58 = vld [vmem:[%s7037_s1 + $0xf10] ss:$8 sps:$4 sm:$0xff]  }
 0x1b3   :  { %3835 = vmatpush2.bf16.msra.mxu0 %v5163_v59  ;;  %v5232_v59 = vld [vmem:[%s7037_s1 + $0xe04] ss:$8 sps:$4 sm:$0xff]  }
 0x1b4   :  { %3876 = vmatpush2.bf16.msra.mxu1 %v5166_v60  ;;  %3836 = vmatprep.subr.bf16.mxu0 %v5171_v18  ;;  %v5235_v60 = vld [vmem:[%s7037_s1 + $0xf04] ss:$8 sps:$4 sm:$0xff]   ;;  %v5230_v18 = vld [vmem:[%s7037_s1 + $0xe00] ss:$8 sps:$4 sm:$0xff]  }
 0x1b5   :  { %3877 = vmatprep.subr.bf16.mxu1 %v5174_v19  ;;  %v5233_v19 = vld [vmem:[%s7037_s1 + $0xf00] ss:$8 sps:$4 sm:$0xff]  }
 0x1b7   :  { %3837 = vmatpush2.bf16.msra.mxu0 %v5169_v62  ;;  %v5241_v62 = vld [vmem:[%s7037_s1 + $0xff4] ss:$8 sps:$4 sm:$0xff]  }
 0x1b8   :  { %3878 = vmatpush2.bf16.msra.mxu1 %v5172_v63  ;;  %3838 = vmatprep.subr.bf16.mxu0 %v5177_v0  ;;  %v5236_v63 = vld [vmem:[%s7037_s1 + $0xef0] ss:$8 sps:$4 sm:$0xff]  }
 0x1b9   :  { %3879 = vmatprep.subr.bf16.mxu1 %v5180_v1  ;;  %v5239_v0 = vld [vmem:[%s7037_s1 + $0xff0] ss:$8 sps:$4 sm:$0xff]   ;;  %v5244_v1 = vld [vmem:[%s7037_s1 + $0xee4] ss:$8 sps:$4 sm:$0xff]  }
 0x1bb   :  { %3839 = vmatpush2.bf16.msra.mxu0 %v5175_v3  ;;  %v5242_v3 = vld [vmem:[%s7037_s1 + $0xee0] ss:$8 sps:$4 sm:$0xff]  }
 0x1bc   :  { %3880 = vmatpush2.bf16.msra.mxu1 %v5178_v4  ;;  %3840 = vmatprep.subr.bf16.mxu0 %v5183_v43  ;;  %v5245_v4 = vld [vmem:[%s7037_s1 + $0xfe0] ss:$8 sps:$4 sm:$0xff]   ;;  %v5250_v43 = vld [vmem:[%s7037_s1 + $0xed4] ss:$8 sps:$4 sm:$0xff]  }
 0x1bd   :  { %3881 = vmatprep.subr.bf16.mxu1 %v5186_v46  ;;  %v5253_v46 = vld [vmem:[%s7037_s1 + $0xfd4] ss:$8 sps:$4 sm:$0xff]  }
 0x1bf   :  { %3841 = vmatpush2.bf16.msra.mxu0 %v5181_v6  ;;  %v5248_v6 = vld [vmem:[%s7037_s1 + $0xed0] ss:$8 sps:$4 sm:$0xff]  }
 0x1c0   :  { %3882 = vmatpush2.bf16.msra.mxu1 %v5184_v8  ;;  %3892 = vmatprep.subr.bf16.mxu0 %v5190_v9  ;;  %v5251_v8 = vld [vmem:[%s7037_s1 + $0xfd0] ss:$8 sps:$4 sm:$0xff]   ;;  %v5256_v9 = vld [vmem:[%s7037_s1 + $0xec4] ss:$8 sps:$4 sm:$0xff]  }
 0x1c1   :  { %3933 = vmatprep.subr.bf16.mxu1 %v5193_v49  ;;  %v5259_v49 = vld [vmem:[%s7037_s1 + $0xfc4] ss:$8 sps:$4 sm:$0xff]  }
 0x1c2   :  { %v3598_v20 = vpop.f32.mrf.mxu0  ;;  %3843 = vmatmul.mubr.bf16.vlgmr.msra.gmra.mxu0 %v226_v51  ;;  %v5262_v51 = vld [vmem:[%s7037_s1 + $0xeb4] ss:$8 sps:$4 sm:$0xff]  }
 0x1c3   :  { %v3639_v21 = vpop.f32.mrf.mxu1  ;;  %3884 = vmatmul.mubr.bf16.vlgmr.msra.gmra.mxu1 %v228_v12  ;;  %v3599_v22 = vadd.f32 %v3598_v20, %v6642_v40  ;;  %3893 = vmatpush1.bf16.msra.mxu0 %v5188_v13  ;;  %v5205_v40 = vld [vmem:[%s7037_s1 + $0xf54] ss:$8 sps:$4 sm:$0xff]   ;;  %v5260_v13 = vld [vmem:[%s7037_s1 + $0xeb0] ss:$8 sps:$4 sm:$0xff]  }
 0x1c4   :  { %3934 = vmatpush1.bf16.msra.mxu1 %v5191_v14  ;;  %v3600_v26 = vpop.f32.mrf.mxu0  ;;  %3894 = vmatprep.subr.bf16.mxu0 %v5196_v15  ;;  %v5265_v12 = vld [vmem:[%s7037_s1 + $0xfb4] ss:$8 sps:$4 sm:$0xff]   ;;  %v5263_v14 = vld [vmem:[%s7037_s1 + $0xfb0] ss:$8 sps:$4 sm:$0xff]   ;;  %v5268_v15 = vld [vmem:[%s7037_s1 + $0xea4] ss:$8 sps:$4 sm:$0xff]  }
 0x1c5   :  { %v3641_v27 = vpop.f32.mrf.mxu1  ;;  %3935 = vmatprep.subr.bf16.mxu1 %v5199_v47  ;;  %v6857_v29 = vadd.f32 %v3639_v21, %v3599_v22  ;;  %v3601_v30 = vadd.f32 %v3600_v26, %v6645_v7  ;;  %3924 = vmatprep.mubr.bf16.mxu0 %v231_v48  ;;  %v5208_v7 = vld [vmem:[%s7037_s1 + $0xe44] ss:$8 sps:$4 sm:$0xff]   ;;  %v5266_v48 = vld [vmem:[%s7037_s1 + $0xea0] ss:$8 sps:$4 sm:$0xff]   ;;  %v5274_v20 = vld [vmem:[%s7037_s1 + $0xe94] ss:$8 sps:$4 sm:$0xff]  }
 0x1c6   :  { %3965 = vmatprep.mubr.bf16.mxu1 %v233_v16  ;;  %v3602_v31 = vpop.f32.mrf.mxu0  ;;  %v5271_v47 = vld [vmem:[%s7037_s1 + $0xfa4] ss:$8 sps:$4 sm:$0xff]   ;;  %v5269_v16 = vld [vmem:[%s7037_s1 + $0xfa0] ss:$8 sps:$4 sm:$0xff]   ;;  %v5277_v21 = vld [vmem:[%s7037_s1 + $0xf94] ss:$8 sps:$4 sm:$0xff]  }
 0x1c7   :  { %v3643_v32 = vpop.f32.mrf.mxu1  ;;  %v6860_v33 = vadd.f32 %v3641_v27, %v3601_v30  ;;  %3895 = vmatpush1.bf16.msra.mxu0 %v5194_v24  ;;  %v5272_v22 = vld [vmem:[%s7037_s1 + $0xe90] ss:$8 sps:$4 sm:$0xff]   ;;  %v5283_v26 = vld [vmem:[%s7037_s1 + $0xf84] ss:$8 sps:$4 sm:$0xff]   ;;  %v5278_v27 = vld [vmem:[%s7037_s1 + $0xe80] ss:$8 sps:$4 sm:$0xff]   ;;  %v232_v30 = vpack.c.bf16 %v6810_v5, %v6810_v5 }
 0x1c8   :  { %3936 = vmatpush1.bf16.msra.mxu1 %v5197_v25  ;;  %v3603_v37 = vpop.f32.mrf.mxu0  ;;  %3896 = vmatprep.subr.bf16.mxu0 %v5202_v28  ;;  %v5275_v24 = vld [vmem:[%s7037_s1 + $0xf90] ss:$8 sps:$4 sm:$0xff]   ;;  %v5280_v25 = vld [vmem:[%s7037_s1 + $0xe84] ss:$8 sps:$4 sm:$0xff]   ;;  %v5281_v28 = vld [vmem:[%s7037_s1 + $0xf80] ss:$8 sps:$4 sm:$0xff]  }
 0x1c9   :  { %v3644_v39 = vpop.f32.mrf.mxu1  ;;  %3937 = vmatprep.subr.bf16.mxu1 %v5205_v40  ;;  %v230_v40 = vpack.c.bf16 %v6807_v41, %v6807_v41 }
 0x1cb   :  { %3897 = vmatpush1.bf16.msra.mxu0 %v5200_v34 }
 0x1cc   :  { %3938 = vmatpush1.bf16.msra.mxu1 %v5203_v36  ;;  %3898 = vmatprep.subr.bf16.mxu0 %v5208_v7 }
 0x1cd   :  { %3939 = vmatprep.subr.bf16.mxu1 %v5211_v55 }
 0x1cf   :  { %3899 = vmatpush1.bf16.msra.mxu0 %v5206_v38 }
 0x1d0   :  { %3940 = vmatpush1.bf16.msra.mxu1 %v5209_v42  ;;  %3900 = vmatprep.subr.bf16.mxu0 %v5214_v44 }
 0x1d1   :  { %3941 = vmatprep.subr.bf16.mxu1 %v5217_v45 }
 0x1d3   :  { %3901 = vmatpush1.bf16.msra.mxu0 %v5212_v17 }
 0x1d4   :  { %3942 = vmatpush1.bf16.msra.mxu1 %v5215_v50  ;;  %3902 = vmatprep.subr.bf16.mxu0 %v5220_v52 }
 0x1d5   :  { %3943 = vmatprep.subr.bf16.mxu1 %v5223_v53 }
 0x1d7   :  { %3903 = vmatpush1.bf16.msra.mxu0 %v5218_v54 }
 0x1d8   :  { %3944 = vmatpush1.bf16.msra.mxu1 %v5221_v35  ;;  %3904 = vmatprep.subr.bf16.mxu0 %v5226_v23 }
 0x1d9   :  { %3945 = vmatprep.subr.bf16.mxu1 %v5229_v56 }
 0x1db   :  { %3905 = vmatpush1.bf16.msra.mxu0 %v5224_v57 }
 0x1dc   :  { %3946 = vmatpush1.bf16.msra.mxu1 %v5227_v58  ;;  %3906 = vmatprep.subr.bf16.mxu0 %v5232_v59 }
 0x1dd   :  { %3947 = vmatprep.subr.bf16.mxu1 %v5235_v60 }
 0x1df   :  { %3907 = vmatpush1.bf16.msra.mxu0 %v5230_v18 }
 0x1e0   :  { %3948 = vmatpush1.bf16.msra.mxu1 %v5233_v19  ;;  %3908 = vmatprep.subr.bf16.mxu0 %v5238_v61 }
 0x1e1   :  { %3949 = vmatprep.subr.bf16.mxu1 %v5241_v62 }
 0x1e3   :  { %3909 = vmatpush2.bf16.msra.mxu0 %v5236_v63 }
 0x1e4   :  { %3950 = vmatpush2.bf16.msra.mxu1 %v5239_v0  ;;  %3910 = vmatprep.subr.bf16.mxu0 %v5244_v1 }
 0x1e5   :  { %3951 = vmatprep.subr.bf16.mxu1 %v5247_v2 }
 0x1e7   :  { %3911 = vmatpush2.bf16.msra.mxu0 %v5242_v3 }
 0x1e8   :  { %3952 = vmatpush2.bf16.msra.mxu1 %v5245_v4  ;;  %3912 = vmatprep.subr.bf16.mxu0 %v5250_v43 }
 0x1e9   :  { %3953 = vmatprep.subr.bf16.mxu1 %v5253_v46 }
 0x1eb   :  { %3913 = vmatpush2.bf16.msra.mxu0 %v5248_v6 }
 0x1ec   :  { %3954 = vmatpush2.bf16.msra.mxu1 %v5251_v8  ;;  %3914 = vmatprep.subr.bf16.mxu0 %v5256_v9 }
 0x1ed   :  { %3955 = vmatprep.subr.bf16.mxu1 %v5259_v49 }
 0x1ef   :  { %3915 = vmatpush2.bf16.msra.mxu0 %v5254_v10 }
 0x1f0   :  { %3956 = vmatpush2.bf16.msra.mxu1 %v5257_v11  ;;  %3916 = vmatprep.subr.bf16.mxu0 %v5262_v51 }
 0x1f1   :  { %3957 = vmatprep.subr.bf16.mxu1 %v5265_v12 }
 0x1f3   :  { %3917 = vmatpush2.bf16.msra.mxu0 %v5260_v13 }
 0x1f4   :  { %3958 = vmatpush2.bf16.msra.mxu1 %v5263_v14  ;;  %3918 = vmatprep.subr.bf16.mxu0 %v5268_v15  ;;  %v3974_v14 = vld [vmem:[%s7039_s3] sm:$0x3] }
 0x1f5   :  { %3959 = vmatprep.subr.bf16.mxu1 %v5271_v47 }
 0x1f7   :  { %3919 = vmatpush2.bf16.msra.mxu0 %v5266_v48 }
 0x1f8   :  { %3960 = vmatpush2.bf16.msra.mxu1 %v5269_v16  ;;  %3920 = vmatprep.subr.bf16.mxu0 %v5274_v20 }
 0x1f9   :  { %3961 = vmatprep.subr.bf16.mxu1 %v5277_v21 }
 0x1fb   :  { %3921 = vmatpush2.bf16.msra.mxu0 %v5272_v22 }
 0x1fc   :  { %3962 = vmatpush2.bf16.msra.mxu1 %v5275_v24  ;;  %3922 = vmatprep.subr.bf16.mxu0 %v5280_v25 }
 0x1fd   :  { %3963 = vmatprep.subr.bf16.mxu1 %v5283_v26 }
 0x1ff   :  { %3923 = vmatpush2.bf16.msra.mxu0 %v5278_v27 }
 0x200   :  { %3964 = vmatpush2.bf16.msra.mxu1 %v5281_v28 }
 0x202   :  { %v3680_v31 = vpop.f32.mrf.mxu0  ;;  %3925 = vmatmul.mubr.bf16.vlgmr.msra.gmra.mxu0 %v230_v40 }
 0x203   :  { %v3721_v32 = vpop.f32.mrf.mxu1  ;;  %3966 = vmatmul.mubr.bf16.vlgmr.msra.gmra.mxu1 %v232_v30  ;;  %v3681_v34 = vadd.f32 %v3680_v31, %v6857_v29 }
 0x204   :  { %v3682_v36 = vpop.f32.mrf.mxu0 }
 0x205   :  { %v3723_v37 = vpop.f32.mrf.mxu1  ;;  %v3722_v39 = vadd.f32 %v3721_v32, %v3681_v34  ;;  %v3683_v7 = vadd.f32 %v3682_v36, %v6860_v33 }
 0x206   :  { %v3684_v55 = vpop.f32.mrf.mxu0 }
 0x207   :  { %v3725_v38 = vpop.f32.mrf.mxu1  ;;  %v3724_v42 = vadd.f32 %v3723_v37, %v3683_v7 }
 0x208   :  { %v3685_v41 = vpop.f32.mrf.mxu0 }
 0x209   :  { %v3726_v44 = vpop.f32.mrf.mxu1 }
 0x242   :  { %v3762_v45 = vpop.f32.mrf.mxu0 }
 0x243   :  { %v3803_v5 = vpop.f32.mrf.mxu1  ;;  %v3763_v17 = vadd.f32 %v3762_v45, %v3722_v39 }
 0x244   :  { %v3764_v50 = vpop.f32.mrf.mxu0 }
 0x245   :  { %v3805_v52 = vpop.f32.mrf.mxu1  ;;  %v3804_v53 = vadd.f32 %v3803_v5, %v3763_v17  ;;  %v3765_v54 = vadd.f32 %v3764_v50, %v3724_v42 }
 0x246   :  { %v3766_v35 = vpop.f32.mrf.mxu0 }
 0x247   :  { %v3807_v23 = vpop.f32.mrf.mxu1  ;;  %v3806_v29 = vadd.f32 %v3805_v52, %v3765_v54 }
 0x248   :  { %v3767_v56 = vpop.f32.mrf.mxu0 }
 0x249   :  { %v3808_v57 = vpop.f32.mrf.mxu1 }
 0x282   :  { %v3844_v58 = vpop.f32.mrf.mxu0 }
 0x283   :  { %v3885_v59 = vpop.f32.mrf.mxu1  ;;  %v3845_v33 = vadd.f32 %v3844_v58, %v3804_v53 }
 0x284   :  { %v3846_v60 = vpop.f32.mrf.mxu0 }
 0x285   :  { %v3887_v18 = vpop.f32.mrf.mxu1  ;;  %v3886_v19 = vadd.f32 %v3885_v59, %v3845_v33  ;;  %v3847_v1 = vadd.f32 %v3846_v60, %v3806_v29 }
 0x286   :  { %v3848_v61 = vpop.f32.mrf.mxu0 }
 0x287   :  { %v3889_v62 = vpop.f32.mrf.mxu1  ;;  %v3888_v4 = vadd.f32 %v3887_v18, %v3847_v1 }
 0x288   :  { %v3849_v63 = vpop.f32.mrf.mxu0 }
 0x289   :  { %v3890_v0 = vpop.f32.mrf.mxu1 }
 0x2c2   :  { %v3926_v2 = vpop.f32.mrf.mxu0 }
 0x2c3   :  { %v3967_v3 = vpop.f32.mrf.mxu1  ;;  %v3927_v13 = vadd.f32 %v3926_v2, %v3886_v19 }
 0x2c4   :  { %v3928_v43 = vpop.f32.mrf.mxu0 }
 0x2c5   :  { %v3969_v46 = vpop.f32.mrf.mxu1  ;;  %v3929_v6 = vadd.f32 %v3928_v43, %v3888_v4  ;;  %v3968_v47 = vadd.f32 %v3967_v3, %v3927_v13 }
 0x2c6   :  { %v3930_v8 = vpop.f32.mrf.mxu0 }
 0x2c7   :  { %v3971_v9 = vpop.f32.mrf.mxu1  ;;  %v3970_v49 = vadd.f32 %v3969_v46, %v3929_v6 }
 0x2c8   :  { %v3931_v10 = vpop.f32.mrf.mxu0 }
 0x2c9   :  { %v3972_v11 = vpop.f32.mrf.mxu1  ;;  %v3975_v51 = vmul.f32 0.5, %v3970_v49 }
 0x2cb   :  { %v3976_v12 = vmul.f32 1.442695, %v3975_v51 }
 0x2cd   :  { %5285 = vpow2.f32 %v3976_v12 }
 0x2da   :  { %v5286_v15 = vpop.eup %5285 }
 0x2db   :  { %v3978_v48 = vmul.f32 %v5286_v15, %v3974_v14 }
 0x2dd   :  { %v3979_v16 = vadd.f32 %v3978_v48, %v3968_v47 }
 0x2df   :  { %3980 = vst [vmem:[#allocation2] sm:$0x3] %v3979_v16 }
 0x2e0   :  { %5298 = shalt.err (!%p5295_p4)
}
 0x2e1   :  { %3990 = dma.vmem_to_hbm [thread:$0]  %s3988_s20, 32, %s7040_s4, [#allocation3]  }
 0x2e2   :  { %5307 = dma.done.wait [#allocation3], 32  }
 0x2e3   :  { %5308 = vsyncadd [#allocation3], 4294967264 }
 0x2e4   :  { %3994 = vsyncpa [#allocation3], 1 }

// kernel: vae_forward.2
= control target key start
LH: loop header
LB: loop body
LE: loop exit
PB: predicated region body
PF: predicated region fallthrough
CT: control target
= control target key end

     0   :  { %s15888_s0 = inlined_call_operand.vmem [shape: bf16[2,12288], index: 0, kind: input, shape index: {}]   ;;  %s15889_s1 = inlined_call_operand.hbm [shape: bf16[12288,4096], index: 1, kind: input, shape index: {}]   ;;  %s15890_s2 = inlined_call_operand.hbm [shape: f32[1,4096], index: 2, kind: input, shape index: {}]   ;;  %s15891_s3 = inlined_call_operand.vmem [shape: f32[2,4096], index: 3, kind: output, shape index: {}]  }
   0x1   :  { %15892 = sst [smem:[#allocation8_spill]] %s15888_s0 }
   0x2   :  { %15893 = sst [smem:[#allocation9_spill]] %s15889_s1 }
   0x3   :  { %15894 = sst [smem:[#allocation10_spill]] %s15891_s3 }
   0x4   :  { %8 = vsyncpa [#allocation3], 0 }
   0x5   :  { %10 = vsyncpa [#allocation3 + $0x1], 0 }
   0x6   :  { %11 = vsyncpa [#allocation5], 0 }
   0x7   :  { %13 = vsyncpa [#allocation5 + $0x1], 0  ;;  %s13729_s12 = smov 0   ;;  %s13731_s13 = smov 0  }
   0x8   :  { %s13733_s14 = smov 0   ;;  %s13735_s15 = smov 0  }
   0x9   :  { %s13737_s16 = smov 0   ;;  %s13739_s17 = smov 0  }
   0xa   :  { %s13741_s18 = smov 0   ;;  %s13743_s19 = smov 0  }
   0xb   :  { %s13745_s20 = smov 0   ;;  %s13747_s21 = smov 0  }
   0xc   :  { %s13749_s22 = smov 0  }
   0xd LB: > { %s28_s23 = sadd.s32 1, %s13691_s20  ;;  %p73_p1 = scmp.ne.s32.totalorder %s13679_s17, %s13675_s16  ;;  %s13699_s22 = sphi %s13749_s22, %s19_s22   ;;  %s13695_s21 = sphi %s13747_s21, %s15917_s21   ;;  %s13691_s20 = sphi %s13745_s20, %s15916_s20   ;;  %s13687_s19 = sphi %s13743_s19, %s15915_s19   ;;  %s13683_s18 = sphi %s13741_s18, %s15914_s18   ;;  %s13679_s17 = sphi %s13739_s17, %s15913_s17   ;;  %s13675_s16 = sphi %s13737_s16, %s15912_s16   ;;  %s13671_s15 = sphi %s13735_s15, %s15911_s15   ;;  %s13667_s14 = sphi %s13733_s14, %s15910_s14   ;;  %s13663_s13 = sphi %s13731_s13, %s15909_s13   ;;  %s13659_s12 = sphi %s13729_s12, %s15908_s12  }
   0xe   : > { %p13786_p0 = scmp.ge.s32.totalorder %s28_s23, 4  ;;  %p74_p2 = scmp.eq.s32.totalorder %s13699_s22, 0 }
   0xf   : > { %p13451_p4 = scmp.lt.s32.totalorder %s13699_s22, 16  ;;  %s163_s27 = sand.u32 1, %s13679_s17  }
  0x10   : > { %s15919_s23 = smov (%p13786_p0, %s28_s23), 0  ;;  %p75_p3 = por %p74_p2, %p73_p1 }
  0x11   : > { %s13438_s28 = smul.u32 12288, %s163_s27  ;;  %s11886_s29 = sshll.u32 %s13695_s21, 3 }
  0x12   : > { %s13436_s30 = smul.u32 12288, %s13691_s20  ;;  %p13807_p5 = pnand %p13451_p4, %p75_p3 }
  0x13   : > { %s167_s6 = scalar_lea.vmem [#allocation2], %s13438_s28  ;;  %s15897_s1 = sld [smem:[#allocation9_spill]] }
  0x14   : > { %s174_s5 = sadd.s32 %s13436_s30, %s11886_s29  ;;  %s177_s7 = sshll.u32 %s167_s6, 4  ;;  %s178_s7 = int_to_ptr.vmem [resolvable:$true] %s177_s7 }
  0x15   : > { %s11888_s8 = sshll.u32 %s174_s5, 6  ;;  %p11892_p6 = scmp.ge.s32.totalorder %s13699_s22, 1 }
  0x16   : > { %s164_s24 = scalar_lea.sflag [#allocation3], %s163_s27  ;;  %p13551_p7 = pneg %p13807_p5 }
  0x17   : > { %s13562_s26 = scalar_lea.vmem %s178_s7, 196608  ;;  %s13701_s3 = smov [#allocation2]  }
  0x18   : > { %p13563_p8 = scmp.ne.s32.totalorder %s178_s7, %s13562_s26  ;;  %s13567_s0 = sshll.u32 %s13701_s3, 4  ;;  %s13568_s0 = int_to_ptr.vmem [resolvable:$false] %s13567_s0 }
  0x19   : > { %s176_s11 = scalar_lea.hbm %s15897_s1, %s11888_s8  ;;  %s13569_s29 = scalar_lea.vmem %s13568_s0, 393216 }
  0x1a   : > { %p13565_p9 = pnand %p13563_p8, %p13551_p7  ;;  %p13570_p11 = scmp.lt.s32.totalorder %s178_s7, %s13568_s0 }
  0x1b   : > { %p13571_p12 = scmp.lt.s32.totalorder %s13569_s29, %s13562_s26 }
  0x1c   : > { %p13566_p10 = pneg %p13565_p9 }
  0x1d   : > { %p13572_p13 = por %p13571_p12, %p13570_p11 }
  0x1f   : > { %p13573_p1 = pnand %p13572_p13, %p13566_p10 }
  0x21   : > { %13576 = shalt.err (!%p13573_p1)
}
  0x22   : > { %s13702_s28 = smov 2048   ;;  %s13703_s3 = smov 512  }
  0x23   : > { %s13704_s0 = smov 32   ;;  %p204_p3 = scmp.lt.s32.totalorder %s13699_s22, 17 }
  0x24   : > { %13447 = dma.hbm_to_vmem [thread:$0]  (!%p13807_p5), %s176_s11, 196608, %s178_s7, %s164_s24, %s13702_s28, %s13703_s3, %s13704_s0  }
  0x25   : > { %p13822_p7 = pnand %p11892_p6, %p204_p3  ;;  %s11882_s27 = sadd.s32 4294967295, %s13699_s22  }
  0x26   : > { %s31_s30 = sadd.s32 1, %s13695_s21  ;;  %p79_p8 = scmp.ne.s32.totalorder %s13675_s16, %s13671_s15 }
  0x27   : > { %s15921_s30 = smov (!%p13786_p0, %s31_s30), %s13695_s21  ;;  %p13833_p9 = scmp.eq.s32.totalorder %s11882_s27, 0 }
  0x28   : > { %p33_p5 = scmp.ge.s32.totalorder %s15921_s30, 4  ;;  %s92_s24 = sadd.s32 1, %s13667_s14 }
  0x29   : > { %p13840_p6 = por %p13833_p9, %p79_p8  ;;  %p99_p10 = scmp.ne.s32.totalorder %s13667_s14, %s13663_s13 }
  0x2a   : > { %s15923_s30 = smov (%p33_p5, %s15921_s30), 0  ;;  %p105_p11 = scmp.ne.s32.totalorder %s13663_s13, %s13659_s12 }
  0x2b   : > { %p13850_p0 = por %p99_p10, %p74_p2  ;;  %s62_s25 = ssub.s32 %s13695_s21, %s15923_s30 }
  0x2c   : > { %s187_s6 = sand.u32 1, %s13667_s14   ;;  %s15902_s7 = ssub.s32 %s13691_s20, %s15919_s23 }
  0x2d   : > { %s63_s8 = sor.u32 %s62_s25, %s15902_s7  ;;  %p90_p12 = scmp.eq.s32.totalorder %s62_s25, 0 }
  0x2e   : > { %p64_p13 = scmp.eq.s32.totalorder %s63_s8, 0  ;;  %p13864_p1 = por %p105_p11, %p13833_p9 }
  0x2f   : > { %s13869_s10 = scalar_select %p90_p12, %s13667_s14, %s92_s24  }
  0x30   : > { %s15904_s11 = sadd.s32 1, %s13679_s17  ;;  %s11889_s28 = sshll.u32 %s187_s6, 3 }
  0x31   : > { %s13874_s29 = scalar_select %p64_p13, %s13679_s17, %s15904_s11  }
  0x32   : > { %s13437_s3 = sshll.u32 %s13695_s21, 7  ;;  %s191_s1 = scalar_lea.vmem [#allocation4], %s11889_s28 }
  0x33   : > { %s197_s27 = scalar_lea.hbm %s15890_s2, %s13437_s3  ;;  %s199_s7 = sshll.u32 %s191_s1, 4  ;;  %s200_s7 = int_to_ptr.vmem [resolvable:$true] %s199_s7 }
  0x34   : > { %p13884_p2 = pnand %p13451_p4, %p13850_p0  ;;  %s188_s24 = scalar_lea.sflag [#allocation5], %s187_s6 }
  0x35   : > { %s13590_s25 = scalar_lea.vmem %s200_s7, 128  ;;  %s13705_s8 = smov [#allocation4]  }
  0x36   : > { %p13579_p3 = pneg %p13884_p2  ;;  %p13591_p8 = scmp.ne.s32.totalorder %s200_s7, %s13590_s25 }
  0x37   : > { %s13595_s11 = sshll.u32 %s13705_s8, 4  ;;  %s13596_s11 = int_to_ptr.vmem [resolvable:$false] %s13595_s11 }
  0x38   : > { %p13593_p9 = pnand %p13591_p8, %p13579_p3  ;;  %s13597_s28 = scalar_lea.vmem %s13596_s11, 256 }
  0x39   : > { %p13598_p10 = scmp.lt.s32.totalorder %s200_s7, %s13596_s11  ;;  %p13599_p11 = scmp.lt.s32.totalorder %s13597_s28, %s13590_s25 }
  0x3a   : > { %p13594_p5 = pneg %p13593_p9 }
  0x3b   : > { %p13600_p12 = por %p13599_p11, %p13598_p10 }
  0x3d   : > { %p13601_p13 = pnand %p13600_p12, %p13594_p5 }
  0x3f   : > { %13604 = shalt.err (!%p13601_p13)
}
  0x40   : > { %13450 = dma.hbm_to_vmem [thread:$0]  (!%p13884_p2), %s197_s27, 128, %s200_s7, %s188_s24  }
  0x41   : > { %208 = sbr.rel (%p13822_p7) target bundleno = 1852 (0x73c), region = 32  ;;  %s210_s1 = sand.u32 (!%p13822_p7), 1, %s13675_s16  }
  0x42   : > { %s13439_s15 = smul.u32 (!%p13822_p7), 12288, %s210_s1  ;;  %s211_s6 = scalar_lea.sflag (!%p13822_p7), [#allocation3], %s210_s1 }
  0x44   : > { %s13895_s3 = scalar_lea.vmem (!%p13822_p7), [#allocation2], %s13439_s15 }
  0x46   : > { %13650 = dma.done.wait (%p13840_p6), %s211_s6, 196608  }
  0x47   : > { %13652 = vsyncadd (%p13840_p6), %s211_s6, 4294770688  ;;  %s219_s0 = sand.u32 1, %s13663_s13  }
  0x48   : > { %s13902_s12 = sshll.u32 %s219_s0, 3  ;;  %s220_s26 = scalar_lea.sflag [#allocation5], %s219_s0 }
  0x49   : > { %s223_s27 = scalar_lea.vmem [#allocation4], %s13902_s12 }
  0x4a   : > { %13654 = dma.done.wait (%p13864_p1), %s220_s26, 128  }
  0x4b   : > { %13656 = vsyncadd (%p13864_p1), %s220_s26, 4294967168  ;;  %s255_s7 = smul.u32 24, %s13683_s18  ;;  %s11894_s4 = sshll.u32 %s13687_s19, 3 }
  0x4c   : > { %p264_p4 = scmp.lt.s32.totalorder %s11894_s4, 31  ;;  %s15906_s8 = sld [smem:[#allocation8_spill]] }
  0x4d   : > { %p256_p7 = scmp.lt.s32.totalorder %s255_s7, 95  ;;  %s15907_s15 = sld [smem:[#allocation10_spill]] }
  0x4e   : > { %s15925_s4 = smov (!%p264_p4, %s11894_s4), 31  ;;  %p11896_p6 = scmp.ne.s32.totalorder %s13683_s18, 0 }
  0x4f   : > { %s15927_s7 = smov (!%p256_p7, %s255_s7), 95  ;;  %s11895_s5 = sshll.u32 %s15925_s4, 1 }
  0x50   : > { %272 = sbr.rel (%p11896_p6) target bundleno = 87 (0x57), region = 44 }
  0x52   : > { %s13914_s11 = scalar_lea.vmem %s15906_s8, %s15927_s7 }
  0x53   : > { %s13919_s6 = scalar_lea.vmem %s15907_s15, %s11895_s5 }
  0x55   : > { %v13706_v0 = vmov 0.0  }
  0x56   : > { %273 = vst [vmem:[%s13919_s6] sm:$0xff] %v13706_v0  ;;  %274 = vst [vmem:[%s13919_s6 + $0x8] sm:$0xff] %v13706_v0 }
  0x57 PF: > { %v336_v1 = vld [vmem:[%s13895_s3 + $0x1c0] sm:$0xff]  ;;  %v13707_v33 = vmov 1966171168   ;;  %v1823_v35 = vlaneseq  ;;  %p13433_p0 = scmp.ne.s32.totalorder %s13683_s18, 3 }
  0x58   : > { %v340_v2 = vld [vmem:[%s13895_s3 + $0x1e0] sm:$0xff]  ;;  %v1821_v34 = vunpack.c.l.s4 %v13707_v33 }
  0x59   : > { %v464_v3 = vld [vmem:[%s13895_s3 + $0x5c0] sm:$0xff]  ;;  %v11954_v4 = vcombine.high %v336_v1, %v340_v2  ;;  %v11953_v6 = vcombine.low %v336_v1, %v340_v2  ;;  %v13946_v45 = vshrl.u32 %v1823_v35, 7 }
  0x5a   : > { %v468_v5 = vld [vmem:[%s13895_s3 + $0x5e0] sm:$0xff]  ;;  %v1822_v44 = vunpack.c.0.s8 %v1821_v34 }
  0x5b   : > { %v328_v7 = vld [vmem:[%s13895_s3 + $0x180] sm:$0xff]  ;;  %v12082_v9 = vcombine.high %v464_v3, %v468_v5  ;;  %v12081_v10 = vcombine.low %v464_v3, %v468_v5  ;;  %9670 = vmatprep.subr.bf16.mxu0 %v11954_v4 }
  0x5c   : > { %v332_v8 = vld [vmem:[%s13895_s3 + $0x1a0] sm:$0xff]  ;;  %9671 = vmatpush1.bf16.msra.mxu0 %v11953_v6  ;;  %v13953_v54 = vsub.s32 %v1822_v44, %v13946_v45 }
  0x5d   : > { %v11946_v11 = vcombine.high %v328_v7, %v332_v8  ;;  %v456_v12 = vld [vmem:[%s13895_s3 + $0x580] sm:$0xff]  ;;  %9711 = vmatprep.subr.bf16.mxu1 %v12082_v9  ;;  %v11945_v19 = vcombine.low %v328_v7, %v332_v8 }
  0x5e   : > { %v460_v13 = vld [vmem:[%s13895_s3 + $0x5a0] sm:$0xff]  ;;  %9712 = vmatpush1.bf16.msra.mxu1 %v12081_v10 }
  0x5f   : > { %v320_v14 = vld [vmem:[%s13895_s3 + $0x140] sm:$0xff]  ;;  %v12074_v15 = vcombine.high %v456_v12, %v460_v13  ;;  %9672 = vmatprep.subr.bf16.mxu0 %v11946_v11  ;;  %v12073_v20 = vcombine.low %v456_v12, %v460_v13 }
  0x60   : > { %v324_v16 = vld [vmem:[%s13895_s3 + $0x160] sm:$0xff]  ;;  %9673 = vmatpush1.bf16.msra.mxu0 %v11945_v19 }
  0x61   : > { %v448_v17 = vld [vmem:[%s13895_s3 + $0x540] sm:$0xff]  ;;  %v11938_v21 = vcombine.high %v320_v14, %v324_v16  ;;  %9713 = vmatprep.subr.bf16.mxu1 %v12074_v15  ;;  %v11937_v27 = vcombine.low %v320_v14, %v324_v16 }
  0x62   : > { %v452_v18 = vld [vmem:[%s13895_s3 + $0x560] sm:$0xff]  ;;  %9714 = vmatpush1.bf16.msra.mxu1 %v12073_v20 }
  0x63   : > { %v12066_v22 = vcombine.high %v448_v17, %v452_v18  ;;  %v312_v23 = vld [vmem:[%s13895_s3 + $0x100] sm:$0xff]  ;;  %9674 = vmatprep.subr.bf16.mxu0 %v11938_v21  ;;  %v12065_v28 = vcombine.low %v448_v17, %v452_v18 }
  0x64   : > { %v316_v24 = vld [vmem:[%s13895_s3 + $0x120] sm:$0xff]  ;;  %9675 = vmatpush1.bf16.msra.mxu0 %v11937_v27 }
  0x65   : > { %v440_v25 = vld [vmem:[%s13895_s3 + $0x500] sm:$0xff]  ;;  %v11930_v29 = vcombine.high %v312_v23, %v316_v24  ;;  %9715 = vmatprep.subr.bf16.mxu1 %v12066_v22  ;;  %v11929_v38 = vcombine.low %v312_v23, %v316_v24 }
  0x66   : > { %v444_v26 = vld [vmem:[%s13895_s3 + $0x520] sm:$0xff]  ;;  %9716 = vmatpush1.bf16.msra.mxu1 %v12065_v28 }
  0x67   : > { %v12058_v30 = vcombine.high %v440_v25, %v444_v26  ;;  %v304_v31 = vld [vmem:[%s13895_s3 + $0xc0] sm:$0xff]  ;;  %9676 = vmatprep.subr.bf16.mxu0 %v11930_v29  ;;  %v12057_v39 = vcombine.low %v440_v25, %v444_v26 }
  0x68   : > { %v308_v32 = vld [vmem:[%s13895_s3 + $0xe0] sm:$0xff]  ;;  %9677 = vmatpush1.bf16.msra.mxu0 %v11929_v38 }
  0x69   : > { %v432_v36 = vld [vmem:[%s13895_s3 + $0x4c0] sm:$0xff]  ;;  %v11922_v40 = vcombine.high %v304_v31, %v308_v32  ;;  %9717 = vmatprep.subr.bf16.mxu1 %v12058_v30  ;;  %v11921_v48 = vcombine.low %v304_v31, %v308_v32 }
  0x6a   : > { %v436_v37 = vld [vmem:[%s13895_s3 + $0x4e0] sm:$0xff]  ;;  %9718 = vmatpush1.bf16.msra.mxu1 %v12057_v39 }
  0x6b   : > { %v12050_v41 = vcombine.high %v432_v36, %v436_v37  ;;  %v296_v42 = vld [vmem:[%s13895_s3 + $0x80] sm:$0xff]  ;;  %9678 = vmatprep.subr.bf16.mxu0 %v11922_v40  ;;  %v12049_v49 = vcombine.low %v432_v36, %v436_v37 }
  0x6c   : > { %v300_v43 = vld [vmem:[%s13895_s3 + $0xa0] sm:$0xff]  ;;  %9679 = vmatpush1.bf16.msra.mxu0 %v11921_v48 }
  0x6d   : > { %v424_v46 = vld [vmem:[%s13895_s3 + $0x480] sm:$0xff]  ;;  %v11914_v50 = vcombine.high %v296_v42, %v300_v43  ;;  %9719 = vmatprep.subr.bf16.mxu1 %v12050_v41  ;;  %v11913_v57 = vcombine.low %v296_v42, %v300_v43 }
  0x6e   : > { %v428_v47 = vld [vmem:[%s13895_s3 + $0x4a0] sm:$0xff]  ;;  %9720 = vmatpush1.bf16.msra.mxu1 %v12049_v49 }
  0x6f   : > { %v12042_v51 = vcombine.high %v424_v46, %v428_v47  ;;  %v288_v52 = vld [vmem:[%s13895_s3 + $0x40] sm:$0xff]  ;;  %9680 = vmatprep.subr.bf16.mxu0 %v11914_v50  ;;  %v12041_v58 = vcombine.low %v424_v46, %v428_v47 }
  0x70   : > { %v292_v53 = vld [vmem:[%s13895_s3 + $0x60] sm:$0xff]  ;;  %9681 = vmatpush1.bf16.msra.mxu0 %v11913_v57 }
  0x71   : > { %v416_v55 = vld [vmem:[%s13895_s3 + $0x440] sm:$0xff]  ;;  %v11906_v59 = vcombine.high %v288_v52, %v292_v53  ;;  %9721 = vmatprep.subr.bf16.mxu1 %v12042_v51  ;;  %v11905_v3 = vcombine.low %v288_v52, %v292_v53 }
  0x72   : > { %v420_v56 = vld [vmem:[%s13895_s3 + $0x460] sm:$0xff]  ;;  %9722 = vmatpush1.bf16.msra.mxu1 %v12041_v58 }
  0x73   : > { %v13958_v60 = vld [vmem:[%s13914_s11] sm:$0xff]  ;;  %v12034_v61 = vcombine.high %v416_v55, %v420_v56  ;;  %9682 = vmatprep.subr.bf16.mxu0 %v11906_v59  ;;  %v12033_v5 = vcombine.low %v416_v55, %v420_v56 }
  0x74   : > { %v280_v62 = vld [vmem:[%s13895_s3] sm:$0xff]  ;;  %v13964_v0 = vrot.slane %v13958_v60, %v13953_v54  ;;  %9683 = vmatpush1.bf16.msra.mxu0 %v11905_v3 }
  0x75   : > { %v284_v63 = vld [vmem:[%s13895_s3 + $0x20] sm:$0xff]  ;;  %9723 = vmatprep.subr.bf16.mxu1 %v12034_v61 }
  0x76   : > { %v408_v1 = vld [vmem:[%s13895_s3 + $0x400] sm:$0xff]  ;;  %v1834_v4 = vcombine.high %v13964_v0, %v13964_v0  ;;  %v11898_v6 = vcombine.high %v280_v62, %v284_v63  ;;  %v11897_v13 = vcombine.low %v280_v62, %v284_v63  ;;  %9724 = vmatpush1.bf16.msra.mxu1 %v12033_v5 }
  0x77   : > { %v412_v2 = vld [vmem:[%s13895_s3 + $0x420] sm:$0xff] }
  0x78   : > { %v12026_v7 = vcombine.high %v408_v1, %v412_v2  ;;  %v400_v8 = vld [vmem:[%s13895_s3 + $0x3c0] sm:$0xff]  ;;  %v13973_v10 = vrot.slane %v1834_v4, %v13953_v54  ;;  %9684 = vmatprep.subr.bf16.mxu0 %v11898_v6  ;;  %v12025_v15 = vcombine.low %v408_v1, %v412_v2  ;;  %v1819_v2 = vcombine.high %v13958_v60, %v13958_v60 }
  0x79   : > { %v404_v9 = vld [vmem:[%s13895_s3 + $0x3e0] sm:$0xff]  ;;  %9685 = vmatpush1.bf16.msra.mxu0 %v11897_v13 }
  0x7a   : > { %v528_v11 = vld [vmem:[%s13895_s3 + $0x7c0] sm:$0xff]  ;;  %9702 = vmatprep.mubr.bf16.mxu0 %v13973_v10  ;;  %v13980_v14 = vcombine.high %v13973_v10, %v13973_v10  ;;  %v12018_v16 = vcombine.high %v400_v8, %v404_v9  ;;  %9725 = vmatprep.subr.bf16.mxu1 %v12026_v7  ;;  %v12017_v22 = vcombine.low %v400_v8, %v404_v9 }
  0x7b   : > { %v532_v12 = vld [vmem:[%s13895_s3 + $0x7e0] sm:$0xff]  ;;  %9726 = vmatpush1.bf16.msra.mxu1 %v12025_v15 }
  0x7c   : > { %v12146_v17 = vcombine.high %v528_v11, %v532_v12  ;;  %v392_v18 = vld [vmem:[%s13895_s3 + $0x380] sm:$0xff]  ;;  %9743 = vmatprep.mubr.bf16.mxu1 %v13980_v14  ;;  %9686 = vmatprep.subr.bf16.mxu0 %v12018_v16  ;;  %v12145_v23 = vcombine.low %v528_v11, %v532_v12  ;;  %v14014_v12 = vrot.slane %v1819_v2, %v13953_v54 }
  0x7d   : > { %v396_v19 = vld [vmem:[%s13895_s3 + $0x3a0] sm:$0xff]  ;;  %9687 = vmatpush2.bf16.msra.mxu0 %v12017_v22 }
  0x7e   : > { %v520_v20 = vld [vmem:[%s13895_s3 + $0x780] sm:$0xff]  ;;  %v12010_v24 = vcombine.high %v392_v18, %v396_v19  ;;  %9727 = vmatprep.subr.bf16.mxu1 %v12146_v17  ;;  %v12009_v30 = vcombine.low %v392_v18, %v396_v19 }
  0x7f   : > { %v524_v21 = vld [vmem:[%s13895_s3 + $0x7a0] sm:$0xff]  ;;  %9728 = vmatpush2.bf16.msra.mxu1 %v12145_v23  ;;  %v14024_v23 = vrot.slane %v13964_v0, %v13953_v54 }
  0x80   : > { %v12138_v25 = vcombine.high %v520_v20, %v524_v21  ;;  %v384_v26 = vld [vmem:[%s13895_s3 + $0x340] sm:$0xff]  ;;  %9688 = vmatprep.subr.bf16.mxu0 %v12010_v24  ;;  %v12137_v31 = vcombine.low %v520_v20, %v524_v21  ;;  %v1835_v21 = vcombine.high %v14014_v12, %v14014_v12 }
  0x81   : > { %v388_v27 = vld [vmem:[%s13895_s3 + $0x360] sm:$0xff]  ;;  %9689 = vmatpush2.bf16.msra.mxu0 %v12009_v30  ;;  %v14035_v0 = vcombine.high %v14024_v23, %v14024_v23 }
  0x82   : > { %v512_v28 = vld [vmem:[%s13895_s3 + $0x740] sm:$0xff]  ;;  %v12002_v32 = vcombine.high %v384_v26, %v388_v27  ;;  %9729 = vmatprep.subr.bf16.mxu1 %v12138_v25  ;;  %v12001_v38 = vcombine.low %v384_v26, %v388_v27 }
  0x83   : > { %v516_v29 = vld [vmem:[%s13895_s3 + $0x760] sm:$0xff]  ;;  %9730 = vmatpush2.bf16.msra.mxu1 %v12137_v31  ;;  %v14031_v31 = vrot.slane %v1835_v21, %v13953_v54 }
  0x84   : > { %v12130_v33 = vcombine.high %v512_v28, %v516_v29  ;;  %v376_v34 = vld [vmem:[%s13895_s3 + $0x300] sm:$0xff]  ;;  %9690 = vmatprep.subr.bf16.mxu0 %v12002_v32  ;;  %v12129_v39 = vcombine.low %v512_v28, %v516_v29 }
  0x85   : > { %v380_v35 = vld [vmem:[%s13895_s3 + $0x320] sm:$0xff]  ;;  %9691 = vmatpush2.bf16.msra.mxu0 %v12001_v38 }
  0x86   : > { %v504_v36 = vld [vmem:[%s13895_s3 + $0x700] sm:$0xff]  ;;  %v11994_v40 = vcombine.high %v376_v34, %v380_v35  ;;  %9731 = vmatprep.subr.bf16.mxu1 %v12130_v33  ;;  %v11993_v47 = vcombine.low %v376_v34, %v380_v35 }
  0x87   : > { %v508_v37 = vld [vmem:[%s13895_s3 + $0x720] sm:$0xff]  ;;  %9732 = vmatpush2.bf16.msra.mxu1 %v12129_v39 }
  0x88   : > { %v12122_v41 = vcombine.high %v504_v36, %v508_v37  ;;  %v368_v42 = vld [vmem:[%s13895_s3 + $0x2c0] sm:$0xff]  ;;  %9692 = vmatprep.subr.bf16.mxu0 %v11994_v40  ;;  %v12121_v48 = vcombine.low %v504_v36, %v508_v37  ;;  %v14044_v40 = vcombine.high %v14031_v31, %v14031_v31 }
  0x89   : > { %v372_v43 = vld [vmem:[%s13895_s3 + $0x2e0] sm:$0xff]  ;;  %9693 = vmatpush2.bf16.msra.mxu0 %v11993_v47 }
  0x8a   : > { %v496_v44 = vld [vmem:[%s13895_s3 + $0x6c0] sm:$0xff]  ;;  %v11986_v49 = vcombine.high %v368_v42, %v372_v43  ;;  %9733 = vmatprep.subr.bf16.mxu1 %v12122_v41  ;;  %v11985_v56 = vcombine.low %v368_v42, %v372_v43 }
  0x8b   : > { %v500_v46 = vld [vmem:[%s13895_s3 + $0x6e0] sm:$0xff]  ;;  %9734 = vmatpush2.bf16.msra.mxu1 %v12121_v48 }
  0x8c   : > { %v12114_v50 = vcombine.high %v496_v44, %v500_v46  ;;  %v360_v51 = vld [vmem:[%s13895_s3 + $0x280] sm:$0xff]  ;;  %9694 = vmatprep.subr.bf16.mxu0 %v11986_v49  ;;  %v12113_v57 = vcombine.low %v496_v44, %v500_v46 }
  0x8d   : > { %v364_v52 = vld [vmem:[%s13895_s3 + $0x2a0] sm:$0xff]  ;;  %9695 = vmatpush2.bf16.msra.mxu0 %v11985_v56 }
  0x8e   : > { %v488_v53 = vld [vmem:[%s13895_s3 + $0x680] sm:$0xff]  ;;  %v11978_v58 = vcombine.high %v360_v51, %v364_v52  ;;  %9735 = vmatprep.subr.bf16.mxu1 %v12114_v50  ;;  %v11977_v3 = vcombine.low %v360_v51, %v364_v52 }
  0x8f   : > { %v492_v55 = vld [vmem:[%s13895_s3 + $0x6a0] sm:$0xff]  ;;  %9736 = vmatpush2.bf16.msra.mxu1 %v12113_v57 }
  0x90   : > { %v12106_v59 = vcombine.high %v488_v53, %v492_v55  ;;  %v352_v61 = vld [vmem:[%s13895_s3 + $0x240] sm:$0xff]  ;;  %9696 = vmatprep.subr.bf16.mxu0 %v11978_v58  ;;  %v12105_v4 = vcombine.low %v488_v53, %v492_v55 }
  0x91   : > { %v356_v62 = vld [vmem:[%s13895_s3 + $0x260] sm:$0xff]  ;;  %9697 = vmatpush2.bf16.msra.mxu0 %v11977_v3 }
  0x92   : > { %v480_v63 = vld [vmem:[%s13895_s3 + $0x640] sm:$0xff]  ;;  %v11970_v5 = vcombine.high %v352_v61, %v356_v62  ;;  %9737 = vmatprep.subr.bf16.mxu1 %v12106_v59  ;;  %v11969_v60 = vcombine.low %v352_v61, %v356_v62 }
  0x93   : > { %v484_v1 = vld [vmem:[%s13895_s3 + $0x660] sm:$0xff]  ;;  %9738 = vmatpush2.bf16.msra.mxu1 %v12105_v4 }
  0x94   : > { %v12098_v6 = vcombine.high %v480_v63, %v484_v1  ;;  %v344_v7 = vld [vmem:[%s13895_s3 + $0x200] sm:$0xff]  ;;  %9698 = vmatprep.subr.bf16.mxu0 %v11970_v5  ;;  %v12097_v13 = vcombine.low %v480_v63, %v484_v1 }
  0x95   : > { %v348_v8 = vld [vmem:[%s13895_s3 + $0x220] sm:$0xff]  ;;  %9699 = vmatpush2.bf16.msra.mxu0 %v11969_v60 }
  0x96   : > { %v472_v9 = vld [vmem:[%s13895_s3 + $0x600] sm:$0xff]  ;;  %v11962_v15 = vcombine.high %v344_v7, %v348_v8  ;;  %9739 = vmatprep.subr.bf16.mxu1 %v12098_v6  ;;  %v11961_v22 = vcombine.low %v344_v7, %v348_v8 }
  0x97   : > { %v476_v11 = vld [vmem:[%s13895_s3 + $0x620] sm:$0xff]  ;;  %9740 = vmatpush2.bf16.msra.mxu1 %v12097_v13 }
  0x98   : > { %v12090_v16 = vcombine.high %v472_v9, %v476_v11  ;;  %v592_v17 = vld [vmem:[%s13895_s3 + $0x9c0] sm:$0xff]  ;;  %9700 = vmatprep.subr.bf16.mxu0 %v11962_v15  ;;  %v12089_v24 = vcombine.low %v472_v9, %v476_v11 }
  0x99   : > { %v596_v18 = vld [vmem:[%s13895_s3 + $0x9e0] sm:$0xff]  ;;  %9701 = vmatpush2.bf16.msra.mxu0 %v11961_v22 }
  0x9a   : > { %v720_v19 = vld [vmem:[%s13895_s3 + $0xdc0] sm:$0xff]  ;;  %v12210_v25 = vcombine.high %v592_v17, %v596_v18  ;;  %9741 = vmatprep.subr.bf16.mxu1 %v12090_v16  ;;  %v12209_v32 = vcombine.low %v592_v17, %v596_v18 }
  0x9b   : > { %v724_v20 = vld [vmem:[%s13895_s3 + $0xde0] sm:$0xff]  ;;  %9742 = vmatpush2.bf16.msra.mxu1 %v12089_v24 }
  0x9c   : > { %v12338_v26 = vcombine.high %v720_v19, %v724_v20  ;;  %v584_v27 = vld [vmem:[%s13895_s3 + $0x980] sm:$0xff]  ;;  %9752 = vmatprep.subr.bf16.mxu0 %v12210_v25  ;;  %v12337_v33 = vcombine.low %v720_v19, %v724_v20  ;;  %9703 = vmatmul.mubr.bf16.vlgmr.msra.gmra.mxu0 %v14024_v23 }
  0x9d   : > { %v588_v28 = vld [vmem:[%s13895_s3 + $0x9a0] sm:$0xff]  ;;  %9753 = vmatpush1.bf16.msra.mxu0 %v12209_v32  ;;  %9784 = vmatprep.mubr.bf16.mxu0 %v14031_v31 }
  0x9e   : > { %v712_v29 = vld [vmem:[%s13895_s3 + $0xd80] sm:$0xff]  ;;  %v12202_v34 = vcombine.high %v584_v27, %v588_v28  ;;  %9793 = vmatprep.subr.bf16.mxu1 %v12338_v26  ;;  %9744 = vmatmul.mubr.bf16.vlgmr.msra.gmra.mxu1 %v14035_v0  ;;  %v12201_v41 = vcombine.low %v584_v27, %v588_v28 }
  0x9f   : > { %v716_v30 = vld [vmem:[%s13895_s3 + $0xda0] sm:$0xff]  ;;  %9794 = vmatpush1.bf16.msra.mxu1 %v12337_v33  ;;  %9825 = vmatprep.mubr.bf16.mxu1 %v14044_v40 }
  0xa0   : > { %v12330_v35 = vcombine.high %v712_v29, %v716_v30  ;;  %v576_v36 = vld [vmem:[%s13895_s3 + $0x940] sm:$0xff]  ;;  %9754 = vmatprep.subr.bf16.mxu0 %v12202_v34  ;;  %v12329_v42 = vcombine.low %v712_v29, %v716_v30 }
  0xa1   : > { %v580_v37 = vld [vmem:[%s13895_s3 + $0x960] sm:$0xff]  ;;  %9755 = vmatpush1.bf16.msra.mxu0 %v12201_v41 }
  0xa2   : > { %v704_v38 = vld [vmem:[%s13895_s3 + $0xd40] sm:$0xff]  ;;  %v12194_v43 = vcombine.high %v576_v36, %v580_v37  ;;  %9795 = vmatprep.subr.bf16.mxu1 %v12330_v35  ;;  %v12193_v50 = vcombine.low %v576_v36, %v580_v37 }
  0xa3   : > { %v708_v39 = vld [vmem:[%s13895_s3 + $0xd60] sm:$0xff]  ;;  %9796 = vmatpush1.bf16.msra.mxu1 %v12329_v42 }
  0xa4   : > { %v12322_v44 = vcombine.high %v704_v38, %v708_v39  ;;  %v568_v46 = vld [vmem:[%s13895_s3 + $0x900] sm:$0xff]  ;;  %9756 = vmatprep.subr.bf16.mxu0 %v12194_v43  ;;  %v12321_v51 = vcombine.low %v704_v38, %v708_v39 }
  0xa5   : > { %v572_v47 = vld [vmem:[%s13895_s3 + $0x920] sm:$0xff]  ;;  %9757 = vmatpush1.bf16.msra.mxu0 %v12193_v50 }
  0xa6   : > { %v696_v48 = vld [vmem:[%s13895_s3 + $0xd00] sm:$0xff]  ;;  %v12186_v52 = vcombine.high %v568_v46, %v572_v47  ;;  %9797 = vmatprep.subr.bf16.mxu1 %v12322_v44  ;;  %v12185_v59 = vcombine.low %v568_v46, %v572_v47 }
  0xa7   : > { %v700_v49 = vld [vmem:[%s13895_s3 + $0xd20] sm:$0xff]  ;;  %9798 = vmatpush1.bf16.msra.mxu1 %v12321_v51 }
  0xa8   : > { %v12314_v53 = vcombine.high %v696_v48, %v700_v49  ;;  %v560_v55 = vld [vmem:[%s13895_s3 + $0x8c0] sm:$0xff]  ;;  %9758 = vmatprep.subr.bf16.mxu0 %v12186_v52  ;;  %v12313_v61 = vcombine.low %v696_v48, %v700_v49 }
  0xa9   : > { %v564_v56 = vld [vmem:[%s13895_s3 + $0x8e0] sm:$0xff]  ;;  %9759 = vmatpush1.bf16.msra.mxu0 %v12185_v59 }
  0xaa   : > { %v688_v57 = vld [vmem:[%s13895_s3 + $0xcc0] sm:$0xff]  ;;  %v12178_v62 = vcombine.high %v560_v55, %v564_v56  ;;  %9799 = vmatprep.subr.bf16.mxu1 %v12314_v53  ;;  %v12177_v5 = vcombine.low %v560_v55, %v564_v56 }
  0xab   : > { %v692_v58 = vld [vmem:[%s13895_s3 + $0xce0] sm:$0xff]  ;;  %9800 = vmatpush1.bf16.msra.mxu1 %v12313_v61 }
  0xac   : > { %v12306_v63 = vcombine.high %v688_v57, %v692_v58  ;;  %v552_v1 = vld [vmem:[%s13895_s3 + $0x880] sm:$0xff]  ;;  %9760 = vmatprep.subr.bf16.mxu0 %v12178_v62  ;;  %v12305_v6 = vcombine.low %v688_v57, %v692_v58 }
  0xad   : > { %v556_v2 = vld [vmem:[%s13895_s3 + $0x8a0] sm:$0xff]  ;;  %9761 = vmatpush1.bf16.msra.mxu0 %v12177_v5 }
  0xae   : > { %v680_v3 = vld [vmem:[%s13895_s3 + $0xc80] sm:$0xff]  ;;  %v12170_v7 = vcombine.high %v552_v1, %v556_v2  ;;  %9801 = vmatprep.subr.bf16.mxu1 %v12306_v63  ;;  %v12169_v15 = vcombine.low %v552_v1, %v556_v2 }
  0xaf   : > { %v684_v4 = vld [vmem:[%s13895_s3 + $0xca0] sm:$0xff]  ;;  %9802 = vmatpush1.bf16.msra.mxu1 %v12305_v6 }
  0xb0   : > { %v12298_v8 = vcombine.high %v680_v3, %v684_v4  ;;  %v544_v9 = vld [vmem:[%s13895_s3 + $0x840] sm:$0xff]  ;;  %9762 = vmatprep.subr.bf16.mxu0 %v12170_v7  ;;  %v12297_v16 = vcombine.low %v680_v3, %v684_v4 }
  0xb1   : > { %v548_v11 = vld [vmem:[%s13895_s3 + $0x860] sm:$0xff]  ;;  %9763 = vmatpush1.bf16.msra.mxu0 %v12169_v15 }
  0xb2   : > { %v672_v60 = vld [vmem:[%s13895_s3 + $0xc40] sm:$0xff]  ;;  %v12162_v17 = vcombine.high %v544_v9, %v548_v11  ;;  %9803 = vmatprep.subr.bf16.mxu1 %v12298_v8  ;;  %v12161_v24 = vcombine.low %v544_v9, %v548_v11 }
  0xb3   : > { %v676_v13 = vld [vmem:[%s13895_s3 + $0xc60] sm:$0xff]  ;;  %9804 = vmatpush1.bf16.msra.mxu1 %v12297_v16 }
  0xb4   : > { %v12290_v18 = vcombine.high %v672_v60, %v676_v13  ;;  %v536_v19 = vld [vmem:[%s13895_s3 + $0x800] sm:$0xff]  ;;  %9764 = vmatprep.subr.bf16.mxu0 %v12162_v17  ;;  %v12289_v25 = vcombine.low %v672_v60, %v676_v13 }
  0xb5   : > { %v540_v20 = vld [vmem:[%s13895_s3 + $0x820] sm:$0xff]  ;;  %9765 = vmatpush1.bf16.msra.mxu0 %v12161_v24 }
  0xb6   : > { %v664_v21 = vld [vmem:[%s13895_s3 + $0xc00] sm:$0xff]  ;;  %v12154_v26 = vcombine.high %v536_v19, %v540_v20  ;;  %9805 = vmatprep.subr.bf16.mxu1 %v12290_v18  ;;  %v12153_v33 = vcombine.low %v536_v19, %v540_v20 }
  0xb7   : > { %v668_v22 = vld [vmem:[%s13895_s3 + $0xc20] sm:$0xff]  ;;  %9806 = vmatpush1.bf16.msra.mxu1 %v12289_v25 }
  0xb8   : > { %v12282_v27 = vcombine.high %v664_v21, %v668_v22  ;;  %v656_v28 = vld [vmem:[%s13895_s3 + $0xbc0] sm:$0xff]  ;;  %9766 = vmatprep.subr.bf16.mxu0 %v12154_v26  ;;  %v12281_v34 = vcombine.low %v664_v21, %v668_v22  ;;  %v14098_v26 = vld [vmem:[%s13914_s11 + $0x8] sm:$0xff] }
  0xb9   : > { %v660_v29 = vld [vmem:[%s13895_s3 + $0xbe0] sm:$0xff]  ;;  %9767 = vmatpush1.bf16.msra.mxu0 %v12153_v33 }
  0xba   : > { %v784_v30 = vld [vmem:[%s13895_s3 + $0xfc0] sm:$0xff]  ;;  %v12274_v35 = vcombine.high %v656_v28, %v660_v29  ;;  %9807 = vmatprep.subr.bf16.mxu1 %v12282_v27  ;;  %v12273_v42 = vcombine.low %v656_v28, %v660_v29 }
  0xbb   : > { %v788_v32 = vld [vmem:[%s13895_s3 + $0xfe0] sm:$0xff]  ;;  %9808 = vmatpush1.bf16.msra.mxu1 %v12281_v34 }
  0xbc   : > { %v12402_v36 = vcombine.high %v784_v30, %v788_v32  ;;  %v648_v37 = vld [vmem:[%s13895_s3 + $0xb80] sm:$0xff]  ;;  %9768 = vmatprep.subr.bf16.mxu0 %v12274_v35  ;;  %v12401_v43 = vcombine.low %v784_v30, %v788_v32  ;;  %v14106_v35 = vrot.slane %v14098_v26, %v13953_v54 }
  0xbd   : > { %v652_v38 = vld [vmem:[%s13895_s3 + $0xba0] sm:$0xff]  ;;  %9769 = vmatpush2.bf16.msra.mxu0 %v12273_v42 }
  0xbe   : > { %v776_v39 = vld [vmem:[%s13895_s3 + $0xf80] sm:$0xff]  ;;  %v12266_v44 = vcombine.high %v648_v37, %v652_v38  ;;  %9809 = vmatprep.subr.bf16.mxu1 %v12402_v36  ;;  %v12265_v51 = vcombine.low %v648_v37, %v652_v38 }
  0xbf   : > { %v780_v41 = vld [vmem:[%s13895_s3 + $0xfa0] sm:$0xff]  ;;  %9810 = vmatpush2.bf16.msra.mxu1 %v12401_v43 }
  0xc0   : > { %v12394_v46 = vcombine.high %v776_v39, %v780_v41  ;;  %v640_v47 = vld [vmem:[%s13895_s3 + $0xb40] sm:$0xff]  ;;  %9770 = vmatprep.subr.bf16.mxu0 %v12266_v44  ;;  %v12393_v52 = vcombine.low %v776_v39, %v780_v41 }
  0xc1   : > { %v644_v48 = vld [vmem:[%s13895_s3 + $0xb60] sm:$0xff]  ;;  %9771 = vmatpush2.bf16.msra.mxu0 %v12265_v51 }
  0xc2   : > { %v768_v49 = vld [vmem:[%s13895_s3 + $0xf40] sm:$0xff]  ;;  %v12258_v53 = vcombine.high %v640_v47, %v644_v48  ;;  %9811 = vmatprep.subr.bf16.mxu1 %v12394_v46  ;;  %v12257_v61 = vcombine.low %v640_v47, %v644_v48  ;;  %v1883_v46 = vcombine.high %v14106_v35, %v14106_v35  ;;  %v14116_v48 = vrot.slane %v14014_v12, %v13953_v54 }
  0xc3   : > { %v772_v50 = vld [vmem:[%s13895_s3 + $0xf60] sm:$0xff]  ;;  %9812 = vmatpush2.bf16.msra.mxu1 %v12393_v52 }
  0xc4   : > { %v12386_v55 = vcombine.high %v768_v49, %v772_v50  ;;  %v632_v56 = vld [vmem:[%s13895_s3 + $0xb00] sm:$0xff]  ;;  %9772 = vmatprep.subr.bf16.mxu0 %v12258_v53  ;;  %v12385_v62 = vcombine.low %v768_v49, %v772_v50  ;;  %v14127_v12 = vcombine.high %v14116_v48, %v14116_v48 }
  0xc5   : > { %v636_v57 = vld [vmem:[%s13895_s3 + $0xb20] sm:$0xff]  ;;  %9773 = vmatpush2.bf16.msra.mxu0 %v12257_v61 }
  0xc6   : > { %v760_v58 = vld [vmem:[%s13895_s3 + $0xf00] sm:$0xff]  ;;  %v12250_v63 = vcombine.high %v632_v56, %v636_v57  ;;  %9813 = vmatprep.subr.bf16.mxu1 %v12386_v55  ;;  %v12249_v6 = vcombine.low %v632_v56, %v636_v57  ;;  %v14123_v57 = vrot.slane %v1883_v46, %v13953_v54 }
  0xc7   : > { %v764_v59 = vld [vmem:[%s13895_s3 + $0xf20] sm:$0xff]  ;;  %9814 = vmatpush2.bf16.msra.mxu1 %v12385_v62 }
  0xc8   : > { %v12378_v1 = vcombine.high %v760_v58, %v764_v59  ;;  %v624_v2 = vld [vmem:[%s13895_s3 + $0xac0] sm:$0xff]  ;;  %9774 = vmatprep.subr.bf16.mxu0 %v12250_v63  ;;  %v12377_v7 = vcombine.low %v760_v58, %v764_v59 }
  0xc9   : > { %v628_v3 = vld [vmem:[%s13895_s3 + $0xae0] sm:$0xff]  ;;  %9775 = vmatpush2.bf16.msra.mxu0 %v12249_v6 }
  0xca   : > { %v752_v4 = vld [vmem:[%s13895_s3 + $0xec0] sm:$0xff]  ;;  %v12242_v8 = vcombine.high %v624_v2, %v628_v3  ;;  %9815 = vmatprep.subr.bf16.mxu1 %v12378_v1  ;;  %v12241_v16 = vcombine.low %v624_v2, %v628_v3 }
  0xcb   : > { %v756_v5 = vld [vmem:[%s13895_s3 + $0xee0] sm:$0xff]  ;;  %9816 = vmatpush2.bf16.msra.mxu1 %v12377_v7 }
  0xcc   : > { %v12370_v9 = vcombine.high %v752_v4, %v756_v5  ;;  %v616_v11 = vld [vmem:[%s13895_s3 + $0xa80] sm:$0xff]  ;;  %9776 = vmatprep.subr.bf16.mxu0 %v12242_v8  ;;  %v12369_v17 = vcombine.low %v752_v4, %v756_v5  ;;  %v14136_v4 = vcombine.high %v14123_v57, %v14123_v57 }
  0xcd   : > { %v620_v60 = vld [vmem:[%s13895_s3 + $0xaa0] sm:$0xff]  ;;  %9777 = vmatpush2.bf16.msra.mxu0 %v12241_v16 }
  0xce   : > { %v744_v13 = vld [vmem:[%s13895_s3 + $0xe80] sm:$0xff]  ;;  %v12234_v18 = vcombine.high %v616_v11, %v620_v60  ;;  %9817 = vmatprep.subr.bf16.mxu1 %v12370_v9  ;;  %v12233_v25 = vcombine.low %v616_v11, %v620_v60 }
  0xcf   : > { %v748_v15 = vld [vmem:[%s13895_s3 + $0xea0] sm:$0xff]  ;;  %9818 = vmatpush2.bf16.msra.mxu1 %v12369_v17 }
  0xd0   : > { %v12362_v19 = vcombine.high %v744_v13, %v748_v15  ;;  %v608_v20 = vld [vmem:[%s13895_s3 + $0xa40] sm:$0xff]  ;;  %9778 = vmatprep.subr.bf16.mxu0 %v12234_v18  ;;  %v12361_v27 = vcombine.low %v744_v13, %v748_v15 }
  0xd1   : > { %v612_v21 = vld [vmem:[%s13895_s3 + $0xa60] sm:$0xff]  ;;  %9779 = vmatpush2.bf16.msra.mxu0 %v12233_v25 }
  0xd2   : > { %v736_v22 = vld [vmem:[%s13895_s3 + $0xe40] sm:$0xff]  ;;  %v12226_v28 = vcombine.high %v608_v20, %v612_v21  ;;  %9819 = vmatprep.subr.bf16.mxu1 %v12362_v19  ;;  %v12225_v36 = vcombine.low %v608_v20, %v612_v21 }
  0xd3   : > { %v740_v24 = vld [vmem:[%s13895_s3 + $0xe60] sm:$0xff]  ;;  %9820 = vmatpush2.bf16.msra.mxu1 %v12361_v27 }
  0xd4   : > { %v12354_v29 = vcombine.high %v736_v22, %v740_v24  ;;  %v600_v30 = vld [vmem:[%s13895_s3 + $0xa00] sm:$0xff]  ;;  %9780 = vmatprep.subr.bf16.mxu0 %v12226_v28  ;;  %v12353_v37 = vcombine.low %v736_v22, %v740_v24 }
  0xd5   : > { %v604_v32 = vld [vmem:[%s13895_s3 + $0xa20] sm:$0xff]  ;;  %9781 = vmatpush2.bf16.msra.mxu0 %v12225_v36 }
  0xd6   : > { %v728_v33 = vld [vmem:[%s13895_s3 + $0xe00] sm:$0xff]  ;;  %v12218_v38 = vcombine.high %v600_v30, %v604_v32  ;;  %9821 = vmatprep.subr.bf16.mxu1 %v12354_v29  ;;  %v12217_v47 = vcombine.low %v600_v30, %v604_v32 }
  0xd7   : > { %v732_v34 = vld [vmem:[%s13895_s3 + $0xe20] sm:$0xff]  ;;  %9822 = vmatpush2.bf16.msra.mxu1 %v12353_v37 }
  0xd8   : > { %v12346_v39 = vcombine.high %v728_v33, %v732_v34  ;;  %v848_v41 = vld [vmem:[%s13895_s3 + $0x11c0] sm:$0xff]  ;;  %9782 = vmatprep.subr.bf16.mxu0 %v12218_v38  ;;  %v12345_v49 = vcombine.low %v728_v33, %v732_v34 }
  0xd9   : > { %v852_v42 = vld [vmem:[%s13895_s3 + $0x11e0] sm:$0xff]  ;;  %9783 = vmatpush2.bf16.msra.mxu0 %v12217_v47 }
  0xda   : > { %v976_v43 = vld [vmem:[%s13895_s3 + $0x15c0] sm:$0xff]  ;;  %v12466_v50 = vcombine.high %v848_v41, %v852_v42  ;;  %9823 = vmatprep.subr.bf16.mxu1 %v12346_v39  ;;  %v12465_v58 = vcombine.low %v848_v41, %v852_v42 }
  0xdb   : > { %v980_v44 = vld [vmem:[%s13895_s3 + $0x15e0] sm:$0xff]  ;;  %9824 = vmatpush2.bf16.msra.mxu1 %v12345_v49 }
  0xdc   : > { %v12594_v51 = vcombine.high %v976_v43, %v980_v44  ;;  %v840_v52 = vld [vmem:[%s13895_s3 + $0x1180] sm:$0xff]  ;;  %9834 = vmatprep.subr.bf16.mxu0 %v12466_v50  ;;  %v12593_v59 = vcombine.low %v976_v43, %v980_v44  ;;  %9785 = vmatmul.mubr.bf16.vlgmr.msra.gmra.mxu0 %v14116_v48 }
  0xdd   : > { %v844_v53 = vld [vmem:[%s13895_s3 + $0x11a0] sm:$0xff]  ;;  %9835 = vmatpush1.bf16.msra.mxu0 %v12465_v58  ;;  %9866 = vmatprep.mubr.bf16.mxu0 %v14123_v57 }
  0xde   : > { %v968_v55 = vld [vmem:[%s13895_s3 + $0x1580] sm:$0xff]  ;;  %v12458_v61 = vcombine.high %v840_v52, %v844_v53  ;;  %9875 = vmatprep.subr.bf16.mxu1 %v12594_v51  ;;  %9826 = vmatmul.mubr.bf16.vlgmr.msra.gmra.mxu1 %v14127_v12  ;;  %v12457_v5 = vcombine.low %v840_v52, %v844_v53 }
  0xdf   : > { %v972_v56 = vld [vmem:[%s13895_s3 + $0x15a0] sm:$0xff]  ;;  %9876 = vmatpush1.bf16.msra.mxu1 %v12593_v59  ;;  %9907 = vmatprep.mubr.bf16.mxu1 %v14136_v4 }
  0xe0   : > { %v12586_v62 = vcombine.high %v968_v55, %v972_v56  ;;  %v832_v63 = vld [vmem:[%s13895_s3 + $0x1140] sm:$0xff]  ;;  %9836 = vmatprep.subr.bf16.mxu0 %v12458_v61  ;;  %v12585_v6 = vcombine.low %v968_v55, %v972_v56 }
  0xe1   : > { %v836_v1 = vld [vmem:[%s13895_s3 + $0x1160] sm:$0xff]  ;;  %9837 = vmatpush1.bf16.msra.mxu0 %v12457_v5 }
  0xe2   : > { %v960_v2 = vld [vmem:[%s13895_s3 + $0x1540] sm:$0xff]  ;;  %v12450_v7 = vcombine.high %v832_v63, %v836_v1  ;;  %9877 = vmatprep.subr.bf16.mxu1 %v12586_v62  ;;  %v12449_v15 = vcombine.low %v832_v63, %v836_v1 }
  0xe3   : > { %v964_v3 = vld [vmem:[%s13895_s3 + $0x1560] sm:$0xff]  ;;  %9878 = vmatpush1.bf16.msra.mxu1 %v12585_v6 }
  0xe4   : > { %v12578_v8 = vcombine.high %v960_v2, %v964_v3  ;;  %v824_v9 = vld [vmem:[%s13895_s3 + $0x1100] sm:$0xff]  ;;  %9838 = vmatprep.subr.bf16.mxu0 %v12450_v7  ;;  %v12577_v16 = vcombine.low %v960_v2, %v964_v3 }
  0xe5   : > { %v828_v11 = vld [vmem:[%s13895_s3 + $0x1120] sm:$0xff]  ;;  %9839 = vmatpush1.bf16.msra.mxu0 %v12449_v15 }
  0xe6   : > { %v952_v60 = vld [vmem:[%s13895_s3 + $0x1500] sm:$0xff]  ;;  %v12442_v17 = vcombine.high %v824_v9, %v828_v11  ;;  %9879 = vmatprep.subr.bf16.mxu1 %v12578_v8  ;;  %v12441_v24 = vcombine.low %v824_v9, %v828_v11 }
  0xe7   : > { %v956_v13 = vld [vmem:[%s13895_s3 + $0x1520] sm:$0xff]  ;;  %9880 = vmatpush1.bf16.msra.mxu1 %v12577_v16 }
  0xe8   : > { %v12570_v18 = vcombine.high %v952_v60, %v956_v13  ;;  %v816_v19 = vld [vmem:[%s13895_s3 + $0x10c0] sm:$0xff]  ;;  %9840 = vmatprep.subr.bf16.mxu0 %v12442_v17  ;;  %v12569_v25 = vcombine.low %v952_v60, %v956_v13 }
  0xe9   : > { %v820_v20 = vld [vmem:[%s13895_s3 + $0x10e0] sm:$0xff]  ;;  %9841 = vmatpush1.bf16.msra.mxu0 %v12441_v24 }
  0xea   : > { %v944_v21 = vld [vmem:[%s13895_s3 + $0x14c0] sm:$0xff]  ;;  %v12434_v27 = vcombine.high %v816_v19, %v820_v20  ;;  %9881 = vmatprep.subr.bf16.mxu1 %v12570_v18  ;;  %v12433_v34 = vcombine.low %v816_v19, %v820_v20 }
  0xeb   : > { %v948_v22 = vld [vmem:[%s13895_s3 + $0x14e0] sm:$0xff]  ;;  %9882 = vmatpush1.bf16.msra.mxu1 %v12569_v25 }
  0xec   : > { %v12562_v28 = vcombine.high %v944_v21, %v948_v22  ;;  %v808_v29 = vld [vmem:[%s13895_s3 + $0x1080] sm:$0xff]  ;;  %9842 = vmatprep.subr.bf16.mxu0 %v12434_v27  ;;  %v12561_v36 = vcombine.low %v944_v21, %v948_v22 }
  0xed   : > { %v812_v30 = vld [vmem:[%s13895_s3 + $0x10a0] sm:$0xff]  ;;  %9843 = vmatpush1.bf16.msra.mxu0 %v12433_v34 }
  0xee   : > { %v936_v32 = vld [vmem:[%s13895_s3 + $0x1480] sm:$0xff]  ;;  %v12426_v37 = vcombine.high %v808_v29, %v812_v30  ;;  %9883 = vmatprep.subr.bf16.mxu1 %v12562_v28  ;;  %v12425_v44 = vcombine.low %v808_v29, %v812_v30 }
  0xef   : > { %v940_v33 = vld [vmem:[%s13895_s3 + $0x14a0] sm:$0xff]  ;;  %9884 = vmatpush1.bf16.msra.mxu1 %v12561_v36 }
  0xf0   : > { %v12554_v38 = vcombine.high %v936_v32, %v940_v33  ;;  %v800_v39 = vld [vmem:[%s13895_s3 + $0x1040] sm:$0xff]  ;;  %9844 = vmatprep.subr.bf16.mxu0 %v12426_v37  ;;  %v12553_v46 = vcombine.low %v936_v32, %v940_v33 }
  0xf1   : > { %v804_v41 = vld [vmem:[%s13895_s3 + $0x1060] sm:$0xff]  ;;  %9845 = vmatpush1.bf16.msra.mxu0 %v12425_v44 }
  0xf2   : > { %v928_v42 = vld [vmem:[%s13895_s3 + $0x1440] sm:$0xff]  ;;  %v12418_v47 = vcombine.high %v800_v39, %v804_v41  ;;  %9885 = vmatprep.subr.bf16.mxu1 %v12554_v38  ;;  %v12417_v55 = vcombine.low %v800_v39, %v804_v41 }
  0xf3   : > { %v932_v43 = vld [vmem:[%s13895_s3 + $0x1460] sm:$0xff]  ;;  %9886 = vmatpush1.bf16.msra.mxu1 %v12553_v46 }
  0xf4   : > { %v12546_v49 = vcombine.high %v928_v42, %v932_v43  ;;  %v792_v50 = vld [vmem:[%s13895_s3 + $0x1000] sm:$0xff]  ;;  %9846 = vmatprep.subr.bf16.mxu0 %v12418_v47  ;;  %v12545_v56 = vcombine.low %v928_v42, %v932_v43 }
  0xf5   : > { %v796_v51 = vld [vmem:[%s13895_s3 + $0x1020] sm:$0xff]  ;;  %9847 = vmatpush1.bf16.msra.mxu0 %v12417_v55 }
  0xf6   : > { %v920_v52 = vld [vmem:[%s13895_s3 + $0x1400] sm:$0xff]  ;;  %v12410_v58 = vcombine.high %v792_v50, %v796_v51  ;;  %9887 = vmatprep.subr.bf16.mxu1 %v12546_v49  ;;  %v12409_v2 = vcombine.low %v792_v50, %v796_v51 }
  0xf7   : > { %v924_v53 = vld [vmem:[%s13895_s3 + $0x1420] sm:$0xff]  ;;  %9888 = vmatpush1.bf16.msra.mxu1 %v12545_v56 }
  0xf8   : > { %v12538_v59 = vcombine.high %v920_v52, %v924_v53  ;;  %v912_v61 = vld [vmem:[%s13895_s3 + $0x13c0] sm:$0xff]  ;;  %9848 = vmatprep.subr.bf16.mxu0 %v12410_v58  ;;  %v12537_v3 = vcombine.low %v920_v52, %v924_v53 }
  0xf9   : > { %v916_v62 = vld [vmem:[%s13895_s3 + $0x13e0] sm:$0xff]  ;;  %9849 = vmatpush1.bf16.msra.mxu0 %v12409_v2 }
  0xfa   : > { %v1040_v63 = vld [vmem:[%s13895_s3 + $0x17c0] sm:$0xff]  ;;  %v12530_v5 = vcombine.high %v912_v61, %v916_v62  ;;  %9889 = vmatprep.subr.bf16.mxu1 %v12538_v59  ;;  %v12529_v60 = vcombine.low %v912_v61, %v916_v62 }
  0xfb   : > { %v1044_v1 = vld [vmem:[%s13895_s3 + $0x17e0] sm:$0xff]  ;;  %9890 = vmatpush1.bf16.msra.mxu1 %v12537_v3 }
  0xfc   : > { %v12658_v6 = vcombine.high %v1040_v63, %v1044_v1  ;;  %v904_v7 = vld [vmem:[%s13895_s3 + $0x1380] sm:$0xff]  ;;  %9850 = vmatprep.subr.bf16.mxu0 %v12530_v5  ;;  %v12657_v13 = vcombine.low %v1040_v63, %v1044_v1  ;;  %v1868_v63 = vcombine.high %v14098_v26, %v14098_v26 }
  0xfd   : > { %v908_v8 = vld [vmem:[%s13895_s3 + $0x13a0] sm:$0xff]  ;;  %9851 = vmatpush2.bf16.msra.mxu0 %v12529_v60 }
  0xfe   : > { %v1032_v9 = vld [vmem:[%s13895_s3 + $0x1780] sm:$0xff]  ;;  %v12522_v15 = vcombine.high %v904_v7, %v908_v8  ;;  %9891 = vmatprep.subr.bf16.mxu1 %v12658_v6  ;;  %v12521_v21 = vcombine.low %v904_v7, %v908_v8 }
  0xff   : > { %v1036_v11 = vld [vmem:[%s13895_s3 + $0x17a0] sm:$0xff]  ;;  %9892 = vmatpush2.bf16.msra.mxu1 %v12657_v13 }
 0x100   : > { %v12650_v16 = vcombine.high %v1032_v9, %v1036_v11  ;;  %v896_v17 = vld [vmem:[%s13895_s3 + $0x1340] sm:$0xff]  ;;  %9852 = vmatprep.subr.bf16.mxu0 %v12522_v15  ;;  %v12649_v22 = vcombine.low %v1032_v9, %v1036_v11  ;;  %v14196_v11 = vrot.slane %v1868_v63, %v13953_v54 }
 0x101   : > { %v900_v18 = vld [vmem:[%s13895_s3 + $0x1360] sm:$0xff]  ;;  %9853 = vmatpush2.bf16.msra.mxu0 %v12521_v21 }
 0x102   : > { %v1024_v19 = vld [vmem:[%s13895_s3 + $0x1740] sm:$0xff]  ;;  %v12514_v24 = vcombine.high %v896_v17, %v900_v18  ;;  %9893 = vmatprep.subr.bf16.mxu1 %v12650_v16  ;;  %v12513_v32 = vcombine.low %v896_v17, %v900_v18 }
 0x103   : > { %v1028_v20 = vld [vmem:[%s13895_s3 + $0x1760] sm:$0xff]  ;;  %9894 = vmatpush2.bf16.msra.mxu1 %v12649_v22  ;;  %v14206_v22 = vrot.slane %v14106_v35, %v13953_v54 }
 0x104   : > { %v12642_v25 = vcombine.high %v1024_v19, %v1028_v20  ;;  %v888_v27 = vld [vmem:[%s13895_s3 + $0x1300] sm:$0xff]  ;;  %9854 = vmatprep.subr.bf16.mxu0 %v12514_v24  ;;  %v12641_v33 = vcombine.low %v1024_v19, %v1028_v20  ;;  %v1884_v20 = vcombine.high %v14196_v11, %v14196_v11 }
 0x105   : > { %v892_v28 = vld [vmem:[%s13895_s3 + $0x1320] sm:$0xff]  ;;  %9855 = vmatpush2.bf16.msra.mxu0 %v12513_v32  ;;  %v14217_v35 = vcombine.high %v14206_v22, %v14206_v22 }
 0x106   : > { %v1016_v29 = vld [vmem:[%s13895_s3 + $0x1700] sm:$0xff]  ;;  %v12506_v34 = vcombine.high %v888_v27, %v892_v28  ;;  %9895 = vmatprep.subr.bf16.mxu1 %v12642_v25  ;;  %v12505_v42 = vcombine.low %v888_v27, %v892_v28 }
 0x107   : > { %v1020_v30 = vld [vmem:[%s13895_s3 + $0x1720] sm:$0xff]  ;;  %9896 = vmatpush2.bf16.msra.mxu1 %v12641_v33  ;;  %v14213_v33 = vrot.slane %v1884_v20, %v13953_v54 }
 0x108   : > { %v12634_v36 = vcombine.high %v1016_v29, %v1020_v30  ;;  %v880_v37 = vld [vmem:[%s13895_s3 + $0x12c0] sm:$0xff]  ;;  %9856 = vmatprep.subr.bf16.mxu0 %v12506_v34  ;;  %v12633_v43 = vcombine.low %v1016_v29, %v1020_v30 }
 0x109   : > { %v884_v38 = vld [vmem:[%s13895_s3 + $0x12e0] sm:$0xff]  ;;  %9857 = vmatpush2.bf16.msra.mxu0 %v12505_v42 }
 0x10a   : > { %v1008_v39 = vld [vmem:[%s13895_s3 + $0x16c0] sm:$0xff]  ;;  %v12498_v44 = vcombine.high %v880_v37, %v884_v38  ;;  %9897 = vmatprep.subr.bf16.mxu1 %v12634_v36  ;;  %v12497_v52 = vcombine.low %v880_v37, %v884_v38 }
 0x10b   : > { %v1012_v41 = vld [vmem:[%s13895_s3 + $0x16e0] sm:$0xff]  ;;  %9898 = vmatpush2.bf16.msra.mxu1 %v12633_v43 }
 0x10c   : > { %v12626_v46 = vcombine.high %v1008_v39, %v1012_v41  ;;  %v872_v47 = vld [vmem:[%s13895_s3 + $0x1280] sm:$0xff]  ;;  %9858 = vmatprep.subr.bf16.mxu0 %v12498_v44  ;;  %v12625_v53 = vcombine.low %v1008_v39, %v1012_v41  ;;  %v14226_v44 = vcombine.high %v14213_v33, %v14213_v33 }
 0x10d   : > { %v876_v49 = vld [vmem:[%s13895_s3 + $0x12a0] sm:$0xff]  ;;  %9859 = vmatpush2.bf16.msra.mxu0 %v12497_v52 }
 0x10e   : > { %v1000_v50 = vld [vmem:[%s13895_s3 + $0x1680] sm:$0xff]  ;;  %v12490_v55 = vcombine.high %v872_v47, %v876_v49  ;;  %9899 = vmatprep.subr.bf16.mxu1 %v12626_v46  ;;  %v12489_v1 = vcombine.low %v872_v47, %v876_v49 }
 0x10f   : > { %v1004_v51 = vld [vmem:[%s13895_s3 + $0x16a0] sm:$0xff]  ;;  %9900 = vmatpush2.bf16.msra.mxu1 %v12625_v53 }
 0x110   : > { %v12618_v56 = vcombine.high %v1000_v50, %v1004_v51  ;;  %v864_v58 = vld [vmem:[%s13895_s3 + $0x1240] sm:$0xff]  ;;  %9860 = vmatprep.subr.bf16.mxu0 %v12490_v55  ;;  %v12617_v2 = vcombine.low %v1000_v50, %v1004_v51 }
 0x111   : > { %v868_v59 = vld [vmem:[%s13895_s3 + $0x1260] sm:$0xff]  ;;  %9861 = vmatpush2.bf16.msra.mxu0 %v12489_v1 }
 0x112   : > { %v992_v61 = vld [vmem:[%s13895_s3 + $0x1640] sm:$0xff]  ;;  %v12482_v3 = vcombine.high %v864_v58, %v868_v59  ;;  %9901 = vmatprep.subr.bf16.mxu1 %v12618_v56  ;;  %v12481_v26 = vcombine.low %v864_v58, %v868_v59 }
 0x113   : > { %v996_v62 = vld [vmem:[%s13895_s3 + $0x1660] sm:$0xff]  ;;  %9902 = vmatpush2.bf16.msra.mxu1 %v12617_v2 }
 0x114   : > { %v12610_v5 = vcombine.high %v992_v61, %v996_v62  ;;  %v856_v6 = vld [vmem:[%s13895_s3 + $0x1200] sm:$0xff]  ;;  %9862 = vmatprep.subr.bf16.mxu0 %v12482_v3  ;;  %v12609_v60 = vcombine.low %v992_v61, %v996_v62 }
 0x115   : > { %v860_v7 = vld [vmem:[%s13895_s3 + $0x1220] sm:$0xff]  ;;  %9863 = vmatpush2.bf16.msra.mxu0 %v12481_v26 }
 0x116   : > { %v984_v8 = vld [vmem:[%s13895_s3 + $0x1600] sm:$0xff]  ;;  %v12474_v13 = vcombine.high %v856_v6, %v860_v7  ;;  %9903 = vmatprep.subr.bf16.mxu1 %v12610_v5  ;;  %v12473_v21 = vcombine.low %v856_v6, %v860_v7 }
 0x117   : > { %v988_v9 = vld [vmem:[%s13895_s3 + $0x1620] sm:$0xff]  ;;  %9904 = vmatpush2.bf16.msra.mxu1 %v12609_v60 }
 0x118   : > { %v12602_v15 = vcombine.high %v984_v8, %v988_v9  ;;  %v1104_v16 = vld [vmem:[%s13895_s3 + $0x19c0] sm:$0xff]  ;;  %9864 = vmatprep.subr.bf16.mxu0 %v12474_v13  ;;  %v12601_v24 = vcombine.low %v984_v8, %v988_v9 }
 0x119   : > { %v1108_v17 = vld [vmem:[%s13895_s3 + $0x19e0] sm:$0xff]  ;;  %9865 = vmatpush2.bf16.msra.mxu0 %v12473_v21 }
 0x11a   : > { %v1232_v18 = vld [vmem:[%s13895_s3 + $0x1dc0] sm:$0xff]  ;;  %v12722_v25 = vcombine.high %v1104_v16, %v1108_v17  ;;  %9905 = vmatprep.subr.bf16.mxu1 %v12602_v15  ;;  %v12721_v34 = vcombine.low %v1104_v16, %v1108_v17 }
 0x11b   : > { %v1236_v19 = vld [vmem:[%s13895_s3 + $0x1de0] sm:$0xff]  ;;  %9906 = vmatpush2.bf16.msra.mxu1 %v12601_v24 }
 0x11c   : > { %v12850_v27 = vcombine.high %v1232_v18, %v1236_v19  ;;  %v1096_v28 = vld [vmem:[%s13895_s3 + $0x1980] sm:$0xff]  ;;  %9916 = vmatprep.subr.bf16.mxu0 %v12722_v25  ;;  %v12849_v36 = vcombine.low %v1232_v18, %v1236_v19  ;;  %9867 = vmatmul.mubr.bf16.vlgmr.msra.gmra.mxu0 %v14206_v22 }
 0x11d   : > { %v1100_v29 = vld [vmem:[%s13895_s3 + $0x19a0] sm:$0xff]  ;;  %9917 = vmatpush1.bf16.msra.mxu0 %v12721_v34  ;;  %9948 = vmatprep.mubr.bf16.mxu0 %v14213_v33 }
 0x11e   : > { %v1224_v30 = vld [vmem:[%s13895_s3 + $0x1d80] sm:$0xff]  ;;  %v12714_v37 = vcombine.high %v1096_v28, %v1100_v29  ;;  %9957 = vmatprep.subr.bf16.mxu1 %v12850_v27  ;;  %9908 = vmatmul.mubr.bf16.vlgmr.msra.gmra.mxu1 %v14217_v35  ;;  %v12713_v46 = vcombine.low %v1096_v28, %v1100_v29 }
 0x11f   : > { %v1228_v32 = vld [vmem:[%s13895_s3 + $0x1da0] sm:$0xff]  ;;  %9958 = vmatpush1.bf16.msra.mxu1 %v12849_v36  ;;  %9989 = vmatprep.mubr.bf16.mxu1 %v14226_v44 }
 0x120   : > { %v12842_v38 = vcombine.high %v1224_v30, %v1228_v32  ;;  %v1088_v39 = vld [vmem:[%s13895_s3 + $0x1940] sm:$0xff]  ;;  %9918 = vmatprep.subr.bf16.mxu0 %v12714_v37  ;;  %v12841_v47 = vcombine.low %v1224_v30, %v1228_v32 }
 0x121   : > { %v1092_v41 = vld [vmem:[%s13895_s3 + $0x1960] sm:$0xff]  ;;  %9919 = vmatpush1.bf16.msra.mxu0 %v12713_v46 }
 0x122   : > { %v1216_v42 = vld [vmem:[%s13895_s3 + $0x1d40] sm:$0xff]  ;;  %v12706_v49 = vcombine.high %v1088_v39, %v1092_v41  ;;  %9959 = vmatprep.subr.bf16.mxu1 %v12842_v38  ;;  %v12705_v56 = vcombine.low %v1088_v39, %v1092_v41 }
 0x123   : > { %v1220_v43 = vld [vmem:[%s13895_s3 + $0x1d60] sm:$0xff]  ;;  %9960 = vmatpush1.bf16.msra.mxu1 %v12841_v47 }
 0x124   : > { %v12834_v50 = vcombine.high %v1216_v42, %v1220_v43  ;;  %v1080_v51 = vld [vmem:[%s13895_s3 + $0x1900] sm:$0xff]  ;;  %9920 = vmatprep.subr.bf16.mxu0 %v12706_v49  ;;  %v12833_v58 = vcombine.low %v1216_v42, %v1220_v43 }
 0x125   : > { %v1084_v52 = vld [vmem:[%s13895_s3 + $0x1920] sm:$0xff]  ;;  %9921 = vmatpush1.bf16.msra.mxu0 %v12705_v56 }
 0x126   : > { %v1208_v53 = vld [vmem:[%s13895_s3 + $0x1d00] sm:$0xff]  ;;  %v12698_v59 = vcombine.high %v1080_v51, %v1084_v52  ;;  %9961 = vmatprep.subr.bf16.mxu1 %v12834_v50  ;;  %v12697_v3 = vcombine.low %v1080_v51, %v1084_v52 }
 0x127   : > { %v1212_v55 = vld [vmem:[%s13895_s3 + $0x1d20] sm:$0xff]  ;;  %9962 = vmatpush1.bf16.msra.mxu1 %v12833_v58 }
 0x128   : > { %v12826_v61 = vcombine.high %v1208_v53, %v1212_v55  ;;  %v1072_v62 = vld [vmem:[%s13895_s3 + $0x18c0] sm:$0xff]  ;;  %9922 = vmatprep.subr.bf16.mxu0 %v12698_v59  ;;  %v12825_v5 = vcombine.low %v1208_v53, %v1212_v55 }
 0x129   : > { %v1076_v63 = vld [vmem:[%s13895_s3 + $0x18e0] sm:$0xff]  ;;  %9923 = vmatpush1.bf16.msra.mxu0 %v12697_v3 }
 0x12a   : > { %v1200_v1 = vld [vmem:[%s13895_s3 + $0x1cc0] sm:$0xff]  ;;  %v12690_v6 = vcombine.high %v1072_v62, %v1076_v63  ;;  %9963 = vmatprep.subr.bf16.mxu1 %v12826_v61  ;;  %v12689_v13 = vcombine.low %v1072_v62, %v1076_v63 }
 0x12b   : > { %v1204_v2 = vld [vmem:[%s13895_s3 + $0x1ce0] sm:$0xff]  ;;  %9964 = vmatpush1.bf16.msra.mxu1 %v12825_v5 }
 0x12c   : > { %v12818_v7 = vcombine.high %v1200_v1, %v1204_v2  ;;  %v1064_v8 = vld [vmem:[%s13895_s3 + $0x1880] sm:$0xff]  ;;  %9924 = vmatprep.subr.bf16.mxu0 %v12690_v6  ;;  %v12817_v15 = vcombine.low %v1200_v1, %v1204_v2 }
 0x12d   : > { %v1068_v9 = vld [vmem:[%s13895_s3 + $0x18a0] sm:$0xff]  ;;  %9925 = vmatpush1.bf16.msra.mxu0 %v12689_v13 }
 0x12e   : > { %v1192_v26 = vld [vmem:[%s13895_s3 + $0x1c80] sm:$0xff]  ;;  %v12682_v16 = vcombine.high %v1064_v8, %v1068_v9  ;;  %9965 = vmatprep.subr.bf16.mxu1 %v12818_v7  ;;  %v12681_v24 = vcombine.low %v1064_v8, %v1068_v9 }
 0x12f   : > { %v1196_v60 = vld [vmem:[%s13895_s3 + $0x1ca0] sm:$0xff]  ;;  %9966 = vmatpush1.bf16.msra.mxu1 %v12817_v15 }
 0x130   : > { %v12810_v17 = vcombine.high %v1192_v26, %v1196_v60  ;;  %v1056_v18 = vld [vmem:[%s13895_s3 + $0x1840] sm:$0xff]  ;;  %9926 = vmatprep.subr.bf16.mxu0 %v12682_v16  ;;  %v12809_v25 = vcombine.low %v1192_v26, %v1196_v60 }
 0x131   : > { %v1060_v19 = vld [vmem:[%s13895_s3 + $0x1860] sm:$0xff]  ;;  %9927 = vmatpush1.bf16.msra.mxu0 %v12681_v24 }
 0x132   : > { %v1184_v20 = vld [vmem:[%s13895_s3 + $0x1c40] sm:$0xff]  ;;  %v12674_v27 = vcombine.high %v1056_v18, %v1060_v19  ;;  %9967 = vmatprep.subr.bf16.mxu1 %v12810_v17  ;;  %v12673_v36 = vcombine.low %v1056_v18, %v1060_v19 }
 0x133   : > { %v1188_v21 = vld [vmem:[%s13895_s3 + $0x1c60] sm:$0xff]  ;;  %9968 = vmatpush1.bf16.msra.mxu1 %v12809_v25 }
 0x134   : > { %v12802_v28 = vcombine.high %v1184_v20, %v1188_v21  ;;  %v1048_v29 = vld [vmem:[%s13895_s3 + $0x1800] sm:$0xff]  ;;  %9928 = vmatprep.subr.bf16.mxu0 %v12674_v27  ;;  %v12801_v37 = vcombine.low %v1184_v20, %v1188_v21 }
 0x135   : > { %v1052_v30 = vld [vmem:[%s13895_s3 + $0x1820] sm:$0xff]  ;;  %9929 = vmatpush1.bf16.msra.mxu0 %v12673_v36 }
 0x136   : > { %v1176_v32 = vld [vmem:[%s13895_s3 + $0x1c00] sm:$0xff]  ;;  %v12666_v38 = vcombine.high %v1048_v29, %v1052_v30  ;;  %9969 = vmatprep.subr.bf16.mxu1 %v12802_v28  ;;  %v12665_v47 = vcombine.low %v1048_v29, %v1052_v30 }
 0x137   : > { %v1180_v34 = vld [vmem:[%s13895_s3 + $0x1c20] sm:$0xff]  ;;  %9970 = vmatpush1.bf16.msra.mxu1 %v12801_v37 }
 0x138   : > { %v12794_v39 = vcombine.high %v1176_v32, %v1180_v34  ;;  %v1168_v41 = vld [vmem:[%s13895_s3 + $0x1bc0] sm:$0xff]  ;;  %9930 = vmatprep.subr.bf16.mxu0 %v12666_v38  ;;  %v12793_v49 = vcombine.low %v1176_v32, %v1180_v34 }
 0x139   : > { %v1172_v42 = vld [vmem:[%s13895_s3 + $0x1be0] sm:$0xff]  ;;  %9931 = vmatpush1.bf16.msra.mxu0 %v12665_v47 }
 0x13a   : > { %v1296_v43 = vld [vmem:[%s13895_s3 + $0x1fc0] sm:$0xff]  ;;  %v12786_v50 = vcombine.high %v1168_v41, %v1172_v42  ;;  %9971 = vmatprep.subr.bf16.mxu1 %v12794_v39  ;;  %v12785_v58 = vcombine.low %v1168_v41, %v1172_v42 }
 0x13b   : > { %v1300_v46 = vld [vmem:[%s13895_s3 + $0x1fe0] sm:$0xff]  ;;  %9972 = vmatpush1.bf16.msra.mxu1 %v12793_v49 }
 0x13c   : > { %v12914_v51 = vcombine.high %v1296_v43, %v1300_v46  ;;  %v1160_v52 = vld [vmem:[%s13895_s3 + $0x1b80] sm:$0xff]  ;;  %9932 = vmatprep.subr.bf16.mxu0 %v12786_v50  ;;  %v12913_v59 = vcombine.low %v1296_v43, %v1300_v46  ;;  %v14280_v50 = vld [vmem:[%s13914_s11 + $0x10] sm:$0xff] }
 0x13d   : > { %v1164_v53 = vld [vmem:[%s13895_s3 + $0x1ba0] sm:$0xff]  ;;  %9933 = vmatpush2.bf16.msra.mxu0 %v12785_v58 }
 0x13e   : > { %v1288_v55 = vld [vmem:[%s13895_s3 + $0x1f80] sm:$0xff]  ;;  %v12778_v61 = vcombine.high %v1160_v52, %v1164_v53  ;;  %9973 = vmatprep.subr.bf16.mxu1 %v12914_v51  ;;  %v12777_v5 = vcombine.low %v1160_v52, %v1164_v53 }
 0x13f   : > { %v1292_v56 = vld [vmem:[%s13895_s3 + $0x1fa0] sm:$0xff]  ;;  %9974 = vmatpush2.bf16.msra.mxu1 %v12913_v59 }
 0x140   : > { %v12906_v62 = vcombine.high %v1288_v55, %v1292_v56  ;;  %v1152_v63 = vld [vmem:[%s13895_s3 + $0x1b40] sm:$0xff]  ;;  %9934 = vmatprep.subr.bf16.mxu0 %v12778_v61  ;;  %v12905_v6 = vcombine.low %v1288_v55, %v1292_v56  ;;  %v14288_v61 = vrot.slane %v14280_v50, %v13953_v54 }
 0x141   : > { %v1156_v1 = vld [vmem:[%s13895_s3 + $0x1b60] sm:$0xff]  ;;  %9935 = vmatpush2.bf16.msra.mxu0 %v12777_v5 }
 0x142   : > { %v1280_v2 = vld [vmem:[%s13895_s3 + $0x1f40] sm:$0xff]  ;;  %v12770_v7 = vcombine.high %v1152_v63, %v1156_v1  ;;  %9975 = vmatprep.subr.bf16.mxu1 %v12906_v62  ;;  %v12769_v15 = vcombine.low %v1152_v63, %v1156_v1 }
 0x143   : > { %v1284_v3 = vld [vmem:[%s13895_s3 + $0x1f60] sm:$0xff]  ;;  %9976 = vmatpush2.bf16.msra.mxu1 %v12905_v6 }
 0x144   : > { %v12898_v8 = vcombine.high %v1280_v2, %v1284_v3  ;;  %v1144_v9 = vld [vmem:[%s13895_s3 + $0x1b00] sm:$0xff]  ;;  %9936 = vmatprep.subr.bf16.mxu0 %v12770_v7  ;;  %v12897_v16 = vcombine.low %v1280_v2, %v1284_v3 }
 0x145   : > { %v1148_v26 = vld [vmem:[%s13895_s3 + $0x1b20] sm:$0xff]  ;;  %9937 = vmatpush2.bf16.msra.mxu0 %v12769_v15 }
 0x146   : > { %v1272_v60 = vld [vmem:[%s13895_s3 + $0x1f00] sm:$0xff]  ;;  %v12762_v17 = vcombine.high %v1144_v9, %v1148_v26  ;;  %9977 = vmatprep.subr.bf16.mxu1 %v12898_v8  ;;  %v12761_v25 = vcombine.low %v1144_v9, %v1148_v26  ;;  %v1932_v8 = vcombine.high %v14288_v61, %v14288_v61  ;;  %v14298_v26 = vrot.slane %v14196_v11, %v13953_v54 }
 0x147   : > { %v1276_v13 = vld [vmem:[%s13895_s3 + $0x1f20] sm:$0xff]  ;;  %9978 = vmatpush2.bf16.msra.mxu1 %v12897_v16 }
 0x148   : > { %v12890_v18 = vcombine.high %v1272_v60, %v1276_v13  ;;  %v1136_v19 = vld [vmem:[%s13895_s3 + $0x1ac0] sm:$0xff]  ;;  %9938 = vmatprep.subr.bf16.mxu0 %v12762_v17  ;;  %v12889_v27 = vcombine.low %v1272_v60, %v1276_v13  ;;  %v14309_v11 = vcombine.high %v14298_v26, %v14298_v26 }
 0x149   : > { %v1140_v20 = vld [vmem:[%s13895_s3 + $0x1ae0] sm:$0xff]  ;;  %9939 = vmatpush2.bf16.msra.mxu0 %v12761_v25 }
 0x14a   : > { %v1264_v21 = vld [vmem:[%s13895_s3 + $0x1ec0] sm:$0xff]  ;;  %v12754_v28 = vcombine.high %v1136_v19, %v1140_v20  ;;  %9979 = vmatprep.subr.bf16.mxu1 %v12890_v18  ;;  %v12753_v37 = vcombine.low %v1136_v19, %v1140_v20  ;;  %v14305_v20 = vrot.slane %v1932_v8, %v13953_v54 }
 0x14b   : > { %v1268_v24 = vld [vmem:[%s13895_s3 + $0x1ee0] sm:$0xff]  ;;  %9980 = vmatpush2.bf16.msra.mxu1 %v12889_v27 }
 0x14c   : > { %v12882_v29 = vcombine.high %v1264_v21, %v1268_v24  ;;  %v1128_v30 = vld [vmem:[%s13895_s3 + $0x1a80] sm:$0xff]  ;;  %9940 = vmatprep.subr.bf16.mxu0 %v12754_v28  ;;  %v12881_v38 = vcombine.low %v1264_v21, %v1268_v24 }
 0x14d   : > { %v1132_v32 = vld [vmem:[%s13895_s3 + $0x1aa0] sm:$0xff]  ;;  %9941 = vmatpush2.bf16.msra.mxu0 %v12753_v37 }
 0x14e   : > { %v1256_v34 = vld [vmem:[%s13895_s3 + $0x1e80] sm:$0xff]  ;;  %v12746_v39 = vcombine.high %v1128_v30, %v1132_v32  ;;  %9981 = vmatprep.subr.bf16.mxu1 %v12882_v29  ;;  %v12745_v49 = vcombine.low %v1128_v30, %v1132_v32 }
 0x14f   : > { %v1260_v36 = vld [vmem:[%s13895_s3 + $0x1ea0] sm:$0xff]  ;;  %9982 = vmatpush2.bf16.msra.mxu1 %v12881_v38 }
 0x150   : > { %v12874_v41 = vcombine.high %v1256_v34, %v1260_v36  ;;  %v1120_v42 = vld [vmem:[%s13895_s3 + $0x1a40] sm:$0xff]  ;;  %9942 = vmatprep.subr.bf16.mxu0 %v12746_v39  ;;  %v12873_v51 = vcombine.low %v1256_v34, %v1260_v36  ;;  %v14318_v36 = vcombine.high %v14305_v20, %v14305_v20 }
 0x151   : > { %v1124_v43 = vld [vmem:[%s13895_s3 + $0x1a60] sm:$0xff]  ;;  %9943 = vmatpush2.bf16.msra.mxu0 %v12745_v49 }
 0x152   : > { %v1248_v46 = vld [vmem:[%s13895_s3 + $0x1e40] sm:$0xff]  ;;  %v12738_v52 = vcombine.high %v1120_v42, %v1124_v43  ;;  %9983 = vmatprep.subr.bf16.mxu1 %v12874_v41  ;;  %v12737_v62 = vcombine.low %v1120_v42, %v1124_v43 }
 0x153   : > { %v1252_v47 = vld [vmem:[%s13895_s3 + $0x1e60] sm:$0xff]  ;;  %9984 = vmatpush2.bf16.msra.mxu1 %v12873_v51 }
 0x154   : > { %v12866_v53 = vcombine.high %v1248_v46, %v1252_v47  ;;  %v1112_v55 = vld [vmem:[%s13895_s3 + $0x1a00] sm:$0xff]  ;;  %9944 = vmatprep.subr.bf16.mxu0 %v12738_v52  ;;  %v12865_v63 = vcombine.low %v1248_v46, %v1252_v47 }
 0x155   : > { %v1116_v56 = vld [vmem:[%s13895_s3 + $0x1a20] sm:$0xff]  ;;  %9945 = vmatpush2.bf16.msra.mxu0 %v12737_v62 }
 0x156   : > { %v1240_v58 = vld [vmem:[%s13895_s3 + $0x1e00] sm:$0xff]  ;;  %v12730_v1 = vcombine.high %v1112_v55, %v1116_v56  ;;  %9985 = vmatprep.subr.bf16.mxu1 %v12866_v53  ;;  %v12729_v9 = vcombine.low %v1112_v55, %v1116_v56 }
 0x157   : > { %v1244_v59 = vld [vmem:[%s13895_s3 + $0x1e20] sm:$0xff]  ;;  %9986 = vmatpush2.bf16.msra.mxu1 %v12865_v63 }
 0x158   : > { %v12858_v2 = vcombine.high %v1240_v58, %v1244_v59  ;;  %v1360_v3 = vld [vmem:[%s13895_s3 + $0x21c0] sm:$0xff]  ;;  %9946 = vmatprep.subr.bf16.mxu0 %v12730_v1  ;;  %v12857_v60 = vcombine.low %v1240_v58, %v1244_v59 }
 0x159   : > { %v1364_v5 = vld [vmem:[%s13895_s3 + $0x21e0] sm:$0xff]  ;;  %9947 = vmatpush2.bf16.msra.mxu0 %v12729_v9 }
 0x15a   : > { %v1488_v6 = vld [vmem:[%s13895_s3 + $0x25c0] sm:$0xff]  ;;  %v12978_v13 = vcombine.high %v1360_v3, %v1364_v5  ;;  %9987 = vmatprep.subr.bf16.mxu1 %v12858_v2  ;;  %v12977_v21 = vcombine.low %v1360_v3, %v1364_v5 }
 0x15b   : > { %v1492_v7 = vld [vmem:[%s13895_s3 + $0x25e0] sm:$0xff]  ;;  %9988 = vmatpush2.bf16.msra.mxu1 %v12857_v60 }
 0x15c   : > { %v13106_v15 = vcombine.high %v1488_v6, %v1492_v7  ;;  %v1352_v16 = vld [vmem:[%s13895_s3 + $0x2180] sm:$0xff]  ;;  %9998 = vmatprep.subr.bf16.mxu0 %v12978_v13  ;;  %v13105_v24 = vcombine.low %v1488_v6, %v1492_v7  ;;  %v9704_v30 = vpop.f32.mrf.mxu0  ;;  %9949 = vmatmul.mubr.bf16.vlgmr.msra.gmra.mxu0 %v14298_v26 }
 0x15d   : > { %v1356_v17 = vld [vmem:[%s13895_s3 + $0x21a0] sm:$0xff]  ;;  %9999 = vmatpush1.bf16.msra.mxu0 %v12977_v21  ;;  %10030 = vmatprep.mubr.bf16.mxu0 %v14305_v20 }
 0x15e   : > { %v1480_v18 = vld [vmem:[%s13895_s3 + $0x2580] sm:$0xff]  ;;  %v12970_v25 = vcombine.high %v1352_v16, %v1356_v17  ;;  %10039 = vmatprep.subr.bf16.mxu1 %v13106_v15  ;;  %v9745_v37 = vpop.f32.mrf.mxu1  ;;  %9990 = vmatmul.mubr.bf16.vlgmr.msra.gmra.mxu1 %v14309_v11  ;;  %v12969_v38 = vcombine.low %v1352_v16, %v1356_v17  ;;  %v9706_v41 = vpop.f32.mrf.mxu0 }
 0x15f   : > { %v1484_v19 = vld [vmem:[%s13895_s3 + $0x25a0] sm:$0xff]  ;;  %v14321_v39 = vadd.f32 %v9745_v37, %v9704_v30  ;;  %10040 = vmatpush1.bf16.msra.mxu1 %v13105_v24  ;;  %10071 = vmatprep.mubr.bf16.mxu1 %v14318_v36 }
 0x160   : > { %v13098_v27 = vcombine.high %v1480_v18, %v1484_v19  ;;  %v1344_v28 = vld [vmem:[%s13895_s3 + $0x2140] sm:$0xff]  ;;  %10000 = vmatprep.subr.bf16.mxu0 %v12970_v25  ;;  %v13097_v42 = vcombine.low %v1480_v18, %v1484_v19  ;;  %v9747_v46 = vpop.f32.mrf.mxu1  ;;  %v9708_v53 = vpop.f32.mrf.mxu0 }
 0x161   : > { %v1348_v29 = vld [vmem:[%s13895_s3 + $0x2160] sm:$0xff]  ;;  %v14326_v52 = vadd.f32 %v9747_v46, %v9706_v41  ;;  %10001 = vmatpush1.bf16.msra.mxu0 %v12969_v38 }
 0x162   : > { %v1472_v32 = vld [vmem:[%s13895_s3 + $0x2540] sm:$0xff]  ;;  %v12962_v43 = vcombine.high %v1344_v28, %v1348_v29  ;;  %10041 = vmatprep.subr.bf16.mxu1 %v13098_v27  ;;  %v9749_v58 = vpop.f32.mrf.mxu1  ;;  %v12961_v59 = vcombine.low %v1344_v28, %v1348_v29  ;;  %v9709_v62 = vpop.f32.mrf.mxu0 }
 0x163   : > { %v1476_v34 = vld [vmem:[%s13895_s3 + $0x2560] sm:$0xff]  ;;  %10042 = vmatpush1.bf16.msra.mxu1 %v13097_v42 }
 0x164   : > { %v13090_v47 = vcombine.high %v1472_v32, %v1476_v34  ;;  %v1336_v49 = vld [vmem:[%s13895_s3 + $0x2100] sm:$0xff]  ;;  %10002 = vmatprep.subr.bf16.mxu0 %v12962_v43  ;;  %v13089_v63 = vcombine.low %v1472_v32, %v1476_v34  ;;  %v9750_v2 = vpop.f32.mrf.mxu1 }
 0x165   : > { %v1340_v51 = vld [vmem:[%s13895_s3 + $0x2120] sm:$0xff]  ;;  %10003 = vmatpush1.bf16.msra.mxu0 %v12961_v59 }
 0x166   : > { %v1464_v55 = vld [vmem:[%s13895_s3 + $0x2500] sm:$0xff]  ;;  %v12954_v1 = vcombine.high %v1336_v49, %v1340_v51  ;;  %10043 = vmatprep.subr.bf16.mxu1 %v13090_v47  ;;  %v12953_v9 = vcombine.low %v1336_v49, %v1340_v51 }
 0x167   : > { %v1468_v56 = vld [vmem:[%s13895_s3 + $0x2520] sm:$0xff]  ;;  %10044 = vmatpush1.bf16.msra.mxu1 %v13089_v63 }
 0x168   : > { %v13082_v3 = vcombine.high %v1464_v55, %v1468_v56  ;;  %v1328_v5 = vld [vmem:[%s13895_s3 + $0x20c0] sm:$0xff]  ;;  %10004 = vmatprep.subr.bf16.mxu0 %v12954_v1  ;;  %v13081_v60 = vcombine.low %v1464_v55, %v1468_v56 }
 0x169   : > { %v1332_v6 = vld [vmem:[%s13895_s3 + $0x20e0] sm:$0xff]  ;;  %10005 = vmatpush1.bf16.msra.mxu0 %v12953_v9 }
 0x16a   : > { %v1456_v7 = vld [vmem:[%s13895_s3 + $0x24c0] sm:$0xff]  ;;  %v12946_v13 = vcombine.high %v1328_v5, %v1332_v6  ;;  %10045 = vmatprep.subr.bf16.mxu1 %v13082_v3  ;;  %v12945_v21 = vcombine.low %v1328_v5, %v1332_v6 }
 0x16b   : > { %v1460_v8 = vld [vmem:[%s13895_s3 + $0x24e0] sm:$0xff]  ;;  %10046 = vmatpush1.bf16.msra.mxu1 %v13081_v60 }
 0x16c   : > { %v13074_v15 = vcombine.high %v1456_v7, %v1460_v8  ;;  %v1320_v16 = vld [vmem:[%s13895_s3 + $0x2080] sm:$0xff]  ;;  %10006 = vmatprep.subr.bf16.mxu0 %v12946_v13  ;;  %v13073_v24 = vcombine.low %v1456_v7, %v1460_v8 }
 0x16d   : > { %v1324_v17 = vld [vmem:[%s13895_s3 + $0x20a0] sm:$0xff]  ;;  %10007 = vmatpush1.bf16.msra.mxu0 %v12945_v21 }
 0x16e   : > { %v1448_v18 = vld [vmem:[%s13895_s3 + $0x2480] sm:$0xff]  ;;  %v12938_v25 = vcombine.high %v1320_v16, %v1324_v17  ;;  %10047 = vmatprep.subr.bf16.mxu1 %v13074_v15  ;;  %v12937_v34 = vcombine.low %v1320_v16, %v1324_v17 }
 0x16f   : > { %v1452_v19 = vld [vmem:[%s13895_s3 + $0x24a0] sm:$0xff]  ;;  %10048 = vmatpush1.bf16.msra.mxu1 %v13073_v24 }
 0x170   : > { %v13066_v27 = vcombine.high %v1448_v18, %v1452_v19  ;;  %v1312_v28 = vld [vmem:[%s13895_s3 + $0x2040] sm:$0xff]  ;;  %10008 = vmatprep.subr.bf16.mxu0 %v12938_v25  ;;  %v13065_v37 = vcombine.low %v1448_v18, %v1452_v19 }
 0x171   : > { %v1316_v29 = vld [vmem:[%s13895_s3 + $0x2060] sm:$0xff]  ;;  %10009 = vmatpush1.bf16.msra.mxu0 %v12937_v34 }
 0x172   : > { %v1440_v30 = vld [vmem:[%s13895_s3 + $0x2440] sm:$0xff]  ;;  %v12930_v38 = vcombine.high %v1312_v28, %v1316_v29  ;;  %10049 = vmatprep.subr.bf16.mxu1 %v13066_v27  ;;  %v12929_v49 = vcombine.low %v1312_v28, %v1316_v29 }
 0x173   : > { %v1444_v32 = vld [vmem:[%s13895_s3 + $0x2460] sm:$0xff]  ;;  %10050 = vmatpush1.bf16.msra.mxu1 %v13065_v37 }
 0x174   : > { %v13058_v41 = vcombine.high %v1440_v30, %v1444_v32  ;;  %v1304_v42 = vld [vmem:[%s13895_s3 + $0x2000] sm:$0xff]  ;;  %10010 = vmatprep.subr.bf16.mxu0 %v12930_v38  ;;  %v13057_v51 = vcombine.low %v1440_v30, %v1444_v32 }
 0x175   : > { %v1308_v43 = vld [vmem:[%s13895_s3 + $0x2020] sm:$0xff]  ;;  %10011 = vmatpush1.bf16.msra.mxu0 %v12929_v49 }
 0x176   : > { %v1432_v46 = vld [vmem:[%s13895_s3 + $0x2400] sm:$0xff]  ;;  %v12922_v53 = vcombine.high %v1304_v42, %v1308_v43  ;;  %10051 = vmatprep.subr.bf16.mxu1 %v13058_v41  ;;  %v12921_v63 = vcombine.low %v1304_v42, %v1308_v43 }
 0x177   : > { %v1436_v47 = vld [vmem:[%s13895_s3 + $0x2420] sm:$0xff]  ;;  %10052 = vmatpush1.bf16.msra.mxu1 %v13057_v51 }
 0x178   : > { %v13050_v55 = vcombine.high %v1432_v46, %v1436_v47  ;;  %v1424_v56 = vld [vmem:[%s13895_s3 + $0x23c0] sm:$0xff]  ;;  %10012 = vmatprep.subr.bf16.mxu0 %v12922_v53  ;;  %v13049_v1 = vcombine.low %v1432_v46, %v1436_v47 }
 0x179   : > { %v1428_v58 = vld [vmem:[%s13895_s3 + $0x23e0] sm:$0xff]  ;;  %10013 = vmatpush1.bf16.msra.mxu0 %v12921_v63 }
 0x17a   : > { %v1552_v59 = vld [vmem:[%s13895_s3 + $0x27c0] sm:$0xff]  ;;  %v13042_v2 = vcombine.high %v1424_v56, %v1428_v58  ;;  %10053 = vmatprep.subr.bf16.mxu1 %v13050_v55  ;;  %v13041_v9 = vcombine.low %v1424_v56, %v1428_v58 }
 0x17b   : > { %v1556_v62 = vld [vmem:[%s13895_s3 + $0x27e0] sm:$0xff]  ;;  %10054 = vmatpush1.bf16.msra.mxu1 %v13049_v1 }
 0x17c   : > { %v13170_v3 = vcombine.high %v1552_v59, %v1556_v62  ;;  %v1416_v5 = vld [vmem:[%s13895_s3 + $0x2380] sm:$0xff]  ;;  %10014 = vmatprep.subr.bf16.mxu0 %v13042_v2  ;;  %v13169_v60 = vcombine.low %v1552_v59, %v1556_v62 }
 0x17d   : > { %v1420_v6 = vld [vmem:[%s13895_s3 + $0x23a0] sm:$0xff]  ;;  %10015 = vmatpush2.bf16.msra.mxu0 %v13041_v9  ;;  %v1917_v9 = vcombine.high %v14280_v50, %v14280_v50 }
 0x17e   : > { %v1544_v7 = vld [vmem:[%s13895_s3 + $0x2780] sm:$0xff]  ;;  %v13034_v13 = vcombine.high %v1416_v5, %v1420_v6  ;;  %10055 = vmatprep.subr.bf16.mxu1 %v13170_v3  ;;  %v13033_v21 = vcombine.low %v1416_v5, %v1420_v6 }
 0x17f   : > { %v1548_v8 = vld [vmem:[%s13895_s3 + $0x27a0] sm:$0xff]  ;;  %10056 = vmatpush2.bf16.msra.mxu1 %v13169_v60 }
 0x180   : > { %v13162_v15 = vcombine.high %v1544_v7, %v1548_v8  ;;  %v1408_v16 = vld [vmem:[%s13895_s3 + $0x2340] sm:$0xff]  ;;  %10016 = vmatprep.subr.bf16.mxu0 %v13034_v13  ;;  %v13161_v24 = vcombine.low %v1544_v7, %v1548_v8 }
 0x181   : > { %v1412_v17 = vld [vmem:[%s13895_s3 + $0x2360] sm:$0xff]  ;;  %10017 = vmatpush2.bf16.msra.mxu0 %v13033_v21 }
 0x182   : > { %v1536_v18 = vld [vmem:[%s13895_s3 + $0x2740] sm:$0xff]  ;;  %v13026_v25 = vcombine.high %v1408_v16, %v1412_v17  ;;  %10057 = vmatprep.subr.bf16.mxu1 %v13162_v15  ;;  %v13025_v34 = vcombine.low %v1408_v16, %v1412_v17 }
 0x183   : > { %v1540_v19 = vld [vmem:[%s13895_s3 + $0x2760] sm:$0xff]  ;;  %10058 = vmatpush2.bf16.msra.mxu1 %v13161_v24  ;;  %v14382_v24 = vrot.slane %v1917_v9, %v13953_v54 }
 0x184   : > { %v13154_v27 = vcombine.high %v1536_v18, %v1540_v19  ;;  %v1400_v28 = vld [vmem:[%s13895_s3 + $0x2300] sm:$0xff]  ;;  %10018 = vmatprep.subr.bf16.mxu0 %v13026_v25  ;;  %v13153_v37 = vcombine.low %v1536_v18, %v1540_v19 }
 0x185   : > { %v1404_v29 = vld [vmem:[%s13895_s3 + $0x2320] sm:$0xff]  ;;  %10019 = vmatpush2.bf16.msra.mxu0 %v13025_v34 }
 0x186   : > { %v1528_v30 = vld [vmem:[%s13895_s3 + $0x2700] sm:$0xff]  ;;  %v13018_v38 = vcombine.high %v1400_v28, %v1404_v29  ;;  %10059 = vmatprep.subr.bf16.mxu1 %v13154_v27  ;;  %v13017_v49 = vcombine.low %v1400_v28, %v1404_v29 }
 0x187   : > { %v1532_v32 = vld [vmem:[%s13895_s3 + $0x2720] sm:$0xff]  ;;  %10060 = vmatpush2.bf16.msra.mxu1 %v13153_v37  ;;  %v1933_v37 = vcombine.high %v14382_v24, %v14382_v24 }
 0x188   : > { %v13146_v41 = vcombine.high %v1528_v30, %v1532_v32  ;;  %v1392_v42 = vld [vmem:[%s13895_s3 + $0x22c0] sm:$0xff]  ;;  %10020 = vmatprep.subr.bf16.mxu0 %v13018_v38  ;;  %v13145_v51 = vcombine.low %v1528_v30, %v1532_v32 }
 0x189   : > { %v1396_v43 = vld [vmem:[%s13895_s3 + $0x22e0] sm:$0xff]  ;;  %10021 = vmatpush2.bf16.msra.mxu0 %v13017_v49 }
 0x18a   : > { %v1520_v46 = vld [vmem:[%s13895_s3 + $0x26c0] sm:$0xff]  ;;  %v13010_v53 = vcombine.high %v1392_v42, %v1396_v43  ;;  %10061 = vmatprep.subr.bf16.mxu1 %v13146_v41  ;;  %v13009_v63 = vcombine.low %v1392_v42, %v1396_v43  ;;  %v14392_v41 = vrot.slane %v14288_v61, %v13953_v54 }
 0x18b   : > { %v1524_v47 = vld [vmem:[%s13895_s3 + $0x26e0] sm:$0xff]  ;;  %10062 = vmatpush2.bf16.msra.mxu1 %v13145_v51 }
 0x18c   : > { %v13138_v55 = vcombine.high %v1520_v46, %v1524_v47  ;;  %v1384_v56 = vld [vmem:[%s13895_s3 + $0x2280] sm:$0xff]  ;;  %10022 = vmatprep.subr.bf16.mxu0 %v13010_v53  ;;  %v13137_v1 = vcombine.low %v1520_v46, %v1524_v47  ;;  %v14403_v61 = vcombine.high %v14392_v41, %v14392_v41 }
 0x18d   : > { %v1388_v58 = vld [vmem:[%s13895_s3 + $0x22a0] sm:$0xff]  ;;  %10023 = vmatpush2.bf16.msra.mxu0 %v13009_v63 }
 0x18e   : > { %v1512_v59 = vld [vmem:[%s13895_s3 + $0x2680] sm:$0xff]  ;;  %v13002_v2 = vcombine.high %v1384_v56, %v1388_v58  ;;  %10063 = vmatprep.subr.bf16.mxu1 %v13138_v55  ;;  %v13001_v60 = vcombine.low %v1384_v56, %v1388_v58  ;;  %v14399_v55 = vrot.slane %v1933_v37, %v13953_v54 }
 0x18f   : > { %v1516_v62 = vld [vmem:[%s13895_s3 + $0x26a0] sm:$0xff]  ;;  %10064 = vmatpush2.bf16.msra.mxu1 %v13137_v1 }
 0x190   : > { %v13130_v3 = vcombine.high %v1512_v59, %v1516_v62  ;;  %v1376_v5 = vld [vmem:[%s13895_s3 + $0x2240] sm:$0xff]  ;;  %10024 = vmatprep.subr.bf16.mxu0 %v13002_v2  ;;  %v13129_v13 = vcombine.low %v1512_v59, %v1516_v62 }
 0x191   : > { %v1380_v6 = vld [vmem:[%s13895_s3 + $0x2260] sm:$0xff]  ;;  %10025 = vmatpush2.bf16.msra.mxu0 %v13001_v60 }
 0x192   : > { %v1504_v7 = vld [vmem:[%s13895_s3 + $0x2640] sm:$0xff]  ;;  %v12994_v15 = vcombine.high %v1376_v5, %v1380_v6  ;;  %10065 = vmatprep.subr.bf16.mxu1 %v13130_v3  ;;  %v12993_v50 = vcombine.low %v1376_v5, %v1380_v6  ;;  %v14412_v6 = vcombine.high %v14399_v55, %v14399_v55 }
 0x193   : > { %v1508_v8 = vld [vmem:[%s13895_s3 + $0x2660] sm:$0xff]  ;;  %10066 = vmatpush2.bf16.msra.mxu1 %v13129_v13 }
 0x194   : > { %v13122_v16 = vcombine.high %v1504_v7, %v1508_v8  ;;  %v1368_v17 = vld [vmem:[%s13895_s3 + $0x2200] sm:$0xff]  ;;  %10026 = vmatprep.subr.bf16.mxu0 %v12994_v15  ;;  %v13121_v25 = vcombine.low %v1504_v7, %v1508_v8 }
 0x195   : > { %v1372_v18 = vld [vmem:[%s13895_s3 + $0x2220] sm:$0xff]  ;;  %10027 = vmatpush2.bf16.msra.mxu0 %v12993_v50 }
 0x196   : > { %v1496_v19 = vld [vmem:[%s13895_s3 + $0x2600] sm:$0xff]  ;;  %v12986_v27 = vcombine.high %v1368_v17, %v1372_v18  ;;  %10067 = vmatprep.subr.bf16.mxu1 %v13122_v16  ;;  %v12985_v38 = vcombine.low %v1368_v17, %v1372_v18 }
 0x197   : > { %v1500_v21 = vld [vmem:[%s13895_s3 + $0x2620] sm:$0xff]  ;;  %10068 = vmatpush2.bf16.msra.mxu1 %v13121_v25 }
 0x198   : > { %v13114_v28 = vcombine.high %v1496_v19, %v1500_v21  ;;  %v1616_v29 = vld [vmem:[%s13895_s3 + $0x29c0] sm:$0xff]  ;;  %10028 = vmatprep.subr.bf16.mxu0 %v12986_v27  ;;  %v13113_v42 = vcombine.low %v1496_v19, %v1500_v21 }
 0x199   : > { %v1620_v30 = vld [vmem:[%s13895_s3 + $0x29e0] sm:$0xff]  ;;  %10029 = vmatpush2.bf16.msra.mxu0 %v12985_v38 }
 0x19a   : > { %v1744_v32 = vld [vmem:[%s13895_s3 + $0x2dc0] sm:$0xff]  ;;  %v13234_v43 = vcombine.high %v1616_v29, %v1620_v30  ;;  %10069 = vmatprep.subr.bf16.mxu1 %v13114_v28  ;;  %v13233_v56 = vcombine.low %v1616_v29, %v1620_v30 }
 0x19b   : > { %v1748_v34 = vld [vmem:[%s13895_s3 + $0x2de0] sm:$0xff]  ;;  %10070 = vmatpush2.bf16.msra.mxu1 %v13113_v42 }
 0x19c   : > { %v13362_v46 = vcombine.high %v1744_v32, %v1748_v34  ;;  %v1608_v47 = vld [vmem:[%s13895_s3 + $0x2980] sm:$0xff]  ;;  %10080 = vmatprep.subr.bf16.mxu0 %v13234_v43  ;;  %v13361_v58 = vcombine.low %v1744_v32, %v1748_v34  ;;  %v9786_v2 = vpop.f32.mrf.mxu0  ;;  %10031 = vmatmul.mubr.bf16.vlgmr.msra.gmra.mxu0 %v14392_v41 }
 0x19d   : > { %v1612_v49 = vld [vmem:[%s13895_s3 + $0x29a0] sm:$0xff]  ;;  %v9787_v7 = vadd.f32 %v9786_v2, %v14321_v39  ;;  %10081 = vmatpush1.bf16.msra.mxu0 %v13233_v56  ;;  %10112 = vmatprep.mubr.bf16.mxu0 %v14399_v55 }
 0x19e   : > { %v1736_v51 = vld [vmem:[%s13895_s3 + $0x2d80] sm:$0xff]  ;;  %v13226_v59 = vcombine.high %v1608_v47, %v1612_v49  ;;  %10121 = vmatprep.subr.bf16.mxu1 %v13362_v46  ;;  %v9827_v8 = vpop.f32.mrf.mxu1  ;;  %10072 = vmatmul.mubr.bf16.vlgmr.msra.gmra.mxu1 %v14403_v61  ;;  %v13225_v9 = vcombine.low %v1608_v47, %v1612_v49  ;;  %v9788_v60 = vpop.f32.mrf.mxu0 }
 0x19f   : > { %v1740_v53 = vld [vmem:[%s13895_s3 + $0x2da0] sm:$0xff]  ;;  %10122 = vmatpush1.bf16.msra.mxu1 %v13361_v58  ;;  %v14416_v16 = vadd.f32 %v9827_v8, %v9787_v7  ;;  %v9789_v17 = vadd.f32 %v9788_v60, %v14326_v52  ;;  %10153 = vmatprep.mubr.bf16.mxu1 %v14412_v6 }
 0x1a0   : > { %v13354_v62 = vcombine.high %v1736_v51, %v1740_v53  ;;  %v1600_v63 = vld [vmem:[%s13895_s3 + $0x2940] sm:$0xff]  ;;  %10082 = vmatprep.subr.bf16.mxu0 %v13226_v59  ;;  %v13353_v13 = vcombine.low %v1736_v51, %v1740_v53  ;;  %v9829_v18 = vpop.f32.mrf.mxu1  ;;  %v9790_v50 = vpop.f32.mrf.mxu0 }
 0x1a1   : > { %v1604_v1 = vld [vmem:[%s13895_s3 + $0x2960] sm:$0xff]  ;;  %v14425_v28 = vadd.f32 %v9829_v18, %v9789_v17  ;;  %10083 = vmatpush1.bf16.msra.mxu0 %v13225_v9 }
 0x1a2   : > { %v1728_v3 = vld [vmem:[%s13895_s3 + $0x2d40] sm:$0xff]  ;;  %v13218_v15 = vcombine.high %v1600_v63, %v1604_v1  ;;  %10123 = vmatprep.subr.bf16.mxu1 %v13354_v62  ;;  %v9831_v29 = vpop.f32.mrf.mxu1  ;;  %v13217_v52 = vcombine.low %v1600_v63, %v1604_v1  ;;  %v9791_v30 = vpop.f32.mrf.mxu0 }
 0x1a3   : > { %v1732_v5 = vld [vmem:[%s13895_s3 + $0x2d60] sm:$0xff]  ;;  %10124 = vmatpush1.bf16.msra.mxu1 %v13353_v13 }
 0x1a4   : > { %v13346_v39 = vcombine.high %v1728_v3, %v1732_v5  ;;  %v1592_v19 = vld [vmem:[%s13895_s3 + $0x2900] sm:$0xff]  ;;  %10084 = vmatprep.subr.bf16.mxu0 %v13218_v15  ;;  %v13345_v32 = vcombine.low %v1728_v3, %v1732_v5  ;;  %v9832_v37 = vpop.f32.mrf.mxu1 }
 0x1a5   : > { %v1596_v21 = vld [vmem:[%s13895_s3 + $0x2920] sm:$0xff]  ;;  %10085 = vmatpush1.bf16.msra.mxu0 %v13217_v52 }
 0x1a6   : > { %v1720_v25 = vld [vmem:[%s13895_s3 + $0x2d00] sm:$0xff]  ;;  %v13210_v34 = vcombine.high %v1592_v19, %v1596_v21  ;;  %10125 = vmatprep.subr.bf16.mxu1 %v13346_v39  ;;  %v13209_v49 = vcombine.low %v1592_v19, %v1596_v21 }
 0x1a7   : > { %v1724_v27 = vld [vmem:[%s13895_s3 + $0x2d20] sm:$0xff]  ;;  %10126 = vmatpush1.bf16.msra.mxu1 %v13345_v32 }
 0x1a8   : > { %v13338_v38 = vcombine.high %v1720_v25, %v1724_v27  ;;  %v1584_v42 = vld [vmem:[%s13895_s3 + $0x28c0] sm:$0xff]  ;;  %10086 = vmatprep.subr.bf16.mxu0 %v13210_v34  ;;  %v13337_v51 = vcombine.low %v1720_v25, %v1724_v27 }
 0x1a9   : > { %v1588_v43 = vld [vmem:[%s13895_s3 + $0x28e0] sm:$0xff]  ;;  %10087 = vmatpush1.bf16.msra.mxu0 %v13209_v49 }
 0x1aa   : > { %v1712_v46 = vld [vmem:[%s13895_s3 + $0x2cc0] sm:$0xff]  ;;  %v13202_v53 = vcombine.high %v1584_v42, %v1588_v43  ;;  %10127 = vmatprep.subr.bf16.mxu1 %v13338_v38  ;;  %v13201_v1 = vcombine.low %v1584_v42, %v1588_v43 }
 0x1ab   : > { %v1716_v47 = vld [vmem:[%s13895_s3 + $0x2ce0] sm:$0xff]  ;;  %10128 = vmatpush1.bf16.msra.mxu1 %v13337_v51 }
 0x1ac   : > { %v13330_v56 = vcombine.high %v1712_v46, %v1716_v47  ;;  %v1576_v58 = vld [vmem:[%s13895_s3 + $0x2880] sm:$0xff]  ;;  %10088 = vmatprep.subr.bf16.mxu0 %v13202_v53  ;;  %v13329_v2 = vcombine.low %v1712_v46, %v1716_v47 }
 0x1ad   : > { %v1580_v59 = vld [vmem:[%s13895_s3 + $0x28a0] sm:$0xff]  ;;  %10089 = vmatpush1.bf16.msra.mxu0 %v13201_v1 }
 0x1ae   : > { %v1704_v62 = vld [vmem:[%s13895_s3 + $0x2c80] sm:$0xff]  ;;  %v13194_v3 = vcombine.high %v1576_v58, %v1580_v59  ;;  %10129 = vmatprep.subr.bf16.mxu1 %v13330_v56  ;;  %v13193_v13 = vcombine.low %v1576_v58, %v1580_v59 }
 0x1af   : > { %v1708_v63 = vld [vmem:[%s13895_s3 + $0x2ca0] sm:$0xff]  ;;  %10130 = vmatpush1.bf16.msra.mxu1 %v13329_v2 }
 0x1b0   : > { %v13322_v5 = vcombine.high %v1704_v62, %v1708_v63  ;;  %v1568_v7 = vld [vmem:[%s13895_s3 + $0x2840] sm:$0xff]  ;;  %10090 = vmatprep.subr.bf16.mxu0 %v13194_v3  ;;  %v13321_v15 = vcombine.low %v1704_v62, %v1708_v63 }
 0x1b1   : > { %v1572_v8 = vld [vmem:[%s13895_s3 + $0x2860] sm:$0xff]  ;;  %10091 = vmatpush1.bf16.msra.mxu0 %v13193_v13 }
 0x1b2   : > { %v1696_v9 = vld [vmem:[%s13895_s3 + $0x2c40] sm:$0xff]  ;;  %v13186_v17 = vcombine.high %v1568_v7, %v1572_v8  ;;  %10131 = vmatprep.subr.bf16.mxu1 %v13322_v5  ;;  %v13185_v25 = vcombine.low %v1568_v7, %v1572_v8 }
 0x1b3   : > { %v1700_v60 = vld [vmem:[%s13895_s3 + $0x2c60] sm:$0xff]  ;;  %10132 = vmatpush1.bf16.msra.mxu1 %v13321_v15 }
 0x1b4   : > { %v13314_v18 = vcombine.high %v1696_v9, %v1700_v60  ;;  %v1560_v39 = vld [vmem:[%s13895_s3 + $0x2800] sm:$0xff]  ;;  %10092 = vmatprep.subr.bf16.mxu0 %v13186_v17  ;;  %v13313_v27 = vcombine.low %v1696_v9, %v1700_v60 }
 0x1b5   : > { %v1564_v19 = vld [vmem:[%s13895_s3 + $0x2820] sm:$0xff]  ;;  %10093 = vmatpush1.bf16.msra.mxu0 %v13185_v25 }
 0x1b6   : > { %v1688_v21 = vld [vmem:[%s13895_s3 + $0x2c00] sm:$0xff]  ;;  %v13178_v29 = vcombine.high %v1560_v39, %v1564_v19  ;;  %10133 = vmatprep.subr.bf16.mxu1 %v13314_v18  ;;  %v13177_v38 = vcombine.low %v1560_v39, %v1564_v19 }
 0x1b7   : > { %v1692_v50 = vld [vmem:[%s13895_s3 + $0x2c20] sm:$0xff]  ;;  %10134 = vmatpush1.bf16.msra.mxu1 %v13313_v27 }
 0x1b8   : > { %v13306_v52 = vcombine.high %v1688_v21, %v1692_v50  ;;  %v1680_v30 = vld [vmem:[%s13895_s3 + $0x2bc0] sm:$0xff]  ;;  %10094 = vmatprep.subr.bf16.mxu0 %v13178_v29  ;;  %v13305_v42 = vcombine.low %v1688_v21, %v1692_v50 }
 0x1b9   : > { %v1684_v32 = vld [vmem:[%s13895_s3 + $0x2be0] sm:$0xff]  ;;  %10095 = vmatpush1.bf16.msra.mxu0 %v13177_v38 }
 0x1ba   : > { %v1808_v34 = vld [vmem:[%s13895_s3 + $0x2fc0] sm:$0xff]  ;;  %v13298_v43 = vcombine.high %v1680_v30, %v1684_v32  ;;  %10135 = vmatprep.subr.bf16.mxu1 %v13306_v52  ;;  %v13297_v56 = vcombine.low %v1680_v30, %v1684_v32 }
 0x1bb   : > { %v1812_v37 = vld [vmem:[%s13895_s3 + $0x2fe0] sm:$0xff]  ;;  %10136 = vmatpush1.bf16.msra.mxu1 %v13305_v42 }
 0x1bc   : > { %v13426_v46 = vcombine.high %v1808_v34, %v1812_v37  ;;  %v1672_v47 = vld [vmem:[%s13895_s3 + $0x2b80] sm:$0xff]  ;;  %10096 = vmatprep.subr.bf16.mxu0 %v13298_v43  ;;  %v13425_v58 = vcombine.low %v1808_v34, %v1812_v37 }
 0x1bd   : > { %v1676_v49 = vld [vmem:[%s13895_s3 + $0x2ba0] sm:$0xff]  ;;  %10097 = vmatpush2.bf16.msra.mxu0 %v13297_v56 }
 0x1be   : > { %v1800_v51 = vld [vmem:[%s13895_s3 + $0x2f80] sm:$0xff]  ;;  %v13290_v59 = vcombine.high %v1672_v47, %v1676_v49  ;;  %10137 = vmatprep.subr.bf16.mxu1 %v13426_v46  ;;  %v13289_v5 = vcombine.low %v1672_v47, %v1676_v49 }
 0x1bf   : > { %v1804_v53 = vld [vmem:[%s13895_s3 + $0x2fa0] sm:$0xff]  ;;  %10138 = vmatpush2.bf16.msra.mxu1 %v13425_v58 }
 0x1c0   : > { %v13418_v62 = vcombine.high %v1800_v51, %v1804_v53  ;;  %v1664_v63 = vld [vmem:[%s13895_s3 + $0x2b40] sm:$0xff]  ;;  %10098 = vmatprep.subr.bf16.mxu0 %v13290_v59  ;;  %v13417_v7 = vcombine.low %v1800_v51, %v1804_v53 }
 0x1c1   : > { %v1668_v1 = vld [vmem:[%s13895_s3 + $0x2b60] sm:$0xff]  ;;  %10099 = vmatpush2.bf16.msra.mxu0 %v13289_v5 }
 0x1c2   : > { %v1792_v2 = vld [vmem:[%s13895_s3 + $0x2f40] sm:$0xff]  ;;  %v13282_v8 = vcombine.high %v1664_v63, %v1668_v1  ;;  %10139 = vmatprep.subr.bf16.mxu1 %v13418_v62  ;;  %v13281_v18 = vcombine.low %v1664_v63, %v1668_v1 }
 0x1c3   : > { %v1796_v3 = vld [vmem:[%s13895_s3 + $0x2f60] sm:$0xff]  ;;  %10140 = vmatpush2.bf16.msra.mxu1 %v13417_v7 }
 0x1c4   : > { %v13410_v9 = vcombine.high %v1792_v2, %v1796_v3  ;;  %v1656_v60 = vld [vmem:[%s13895_s3 + $0x2b00] sm:$0xff]  ;;  %10100 = vmatprep.subr.bf16.mxu0 %v13282_v8  ;;  %v13409_v39 = vcombine.low %v1792_v2, %v1796_v3 }
 0x1c5   : > { %v1660_v13 = vld [vmem:[%s13895_s3 + $0x2b20] sm:$0xff]  ;;  %10101 = vmatpush2.bf16.msra.mxu0 %v13281_v18  ;;  %v341_v18 = vld [vmem:[%s13895_s3 + $0x1e8] sm:$0xff] }
 0x1c6   : > { %v1784_v15 = vld [vmem:[%s13895_s3 + $0x2f00] sm:$0xff]  ;;  %v13274_v19 = vcombine.high %v1656_v60, %v1660_v13  ;;  %10141 = vmatprep.subr.bf16.mxu1 %v13410_v9  ;;  %v13273_v52 = vcombine.low %v1656_v60, %v1660_v13 }
 0x1c7   : > { %v1788_v17 = vld [vmem:[%s13895_s3 + $0x2f20] sm:$0xff]  ;;  %10142 = vmatpush2.bf16.msra.mxu1 %v13409_v39  ;;  %v465_v39 = vld [vmem:[%s13895_s3 + $0x5c8] sm:$0xff] }
 0x1c8   : > { %v13402_v21 = vcombine.high %v1784_v15, %v1788_v17  ;;  %v1648_v50 = vld [vmem:[%s13895_s3 + $0x2ac0] sm:$0xff]  ;;  %10102 = vmatprep.subr.bf16.mxu0 %v13274_v19  ;;  %v13401_v30 = vcombine.low %v1784_v15, %v1788_v17  ;;  %v337_v17 = vld [vmem:[%s13895_s3 + $0x1c8] sm:$0xff] }
 0x1c9   : > { %v1652_v25 = vld [vmem:[%s13895_s3 + $0x2ae0] sm:$0xff]  ;;  %10103 = vmatpush2.bf16.msra.mxu0 %v13273_v52  ;;  %v469_v19 = vld [vmem:[%s13895_s3 + $0x5e8] sm:$0xff] }
 0x1ca   : > { %v1776_v27 = vld [vmem:[%s13895_s3 + $0x2ec0] sm:$0xff]  ;;  %v13266_v32 = vcombine.high %v1648_v50, %v1652_v25  ;;  %10143 = vmatprep.subr.bf16.mxu1 %v13402_v21  ;;  %v13265_v46 = vcombine.low %v1648_v50, %v1652_v25  ;;  %v14481_v50 = vrot.slane %v14382_v24, %v13953_v54  ;;  %v329_v52 = vld [vmem:[%s13895_s3 + $0x188] sm:$0xff]  ;;  %v11955_v54 = vcombine.low %v337_v17, %v341_v18 }
 0x1cb   : > { %v1780_v29 = vld [vmem:[%s13895_s3 + $0x2ee0] sm:$0xff]  ;;  %10144 = vmatpush2.bf16.msra.mxu1 %v13401_v30  ;;  %v333_v30 = vld [vmem:[%s13895_s3 + $0x1a8] sm:$0xff]  ;;  %v12083_v24 = vcombine.low %v465_v39, %v469_v19 }
 0x1cc   : > { %v13394_v34 = vcombine.high %v1776_v27, %v1780_v29  ;;  %v1640_v37 = vld [vmem:[%s13895_s3 + $0x2a80] sm:$0xff]  ;;  %10104 = vmatprep.subr.bf16.mxu0 %v13266_v32  ;;  %v13393_v47 = vcombine.low %v1776_v27, %v1780_v29  ;;  %v11956_v27 = vcombine.high %v337_v17, %v341_v18  ;;  %v12084_v29 = vcombine.high %v465_v39, %v469_v19  ;;  %v457_v32 = vld [vmem:[%s13895_s3 + $0x588] sm:$0xff] }
 0x1cd   : > { %v1644_v38 = vld [vmem:[%s13895_s3 + $0x2aa0] sm:$0xff]  ;;  %10105 = vmatpush2.bf16.msra.mxu0 %v13265_v46  ;;  %v325_v46 = vld [vmem:[%s13895_s3 + $0x168] sm:$0xff] }
 0x1ce   : > { %v1768_v42 = vld [vmem:[%s13895_s3 + $0x2e80] sm:$0xff]  ;;  %v13258_v49 = vcombine.high %v1640_v37, %v1644_v38  ;;  %10145 = vmatprep.subr.bf16.mxu1 %v13394_v34  ;;  %v13257_v62 = vcombine.low %v1640_v37, %v1644_v38  ;;  %v461_v34 = vld [vmem:[%s13895_s3 + $0x5a8] sm:$0xff]  ;;  %v14489_v37 = vcombine.high %v14481_v50, %v14481_v50  ;;  %v11948_v38 = vcombine.high %v329_v52, %v333_v30 }
 0x1cf   : > { %v1772_v43 = vld [vmem:[%s13895_s3 + $0x2ea0] sm:$0xff]  ;;  %10146 = vmatpush2.bf16.msra.mxu1 %v13393_v47 }
 0x1d0   : > { %v13386_v51 = vcombine.high %v1768_v42, %v1772_v43  ;;  %v1632_v53 = vld [vmem:[%s13895_s3 + $0x2a40] sm:$0xff]  ;;  %10106 = vmatprep.subr.bf16.mxu0 %v13258_v49  ;;  %v13385_v63 = vcombine.low %v1768_v42, %v1772_v43  ;;  %v12076_v42 = vcombine.high %v457_v32, %v461_v34  ;;  %v321_v43 = vld [vmem:[%s13895_s3 + $0x148] sm:$0xff] }
 0x1d1   : > { %v1636_v56 = vld [vmem:[%s13895_s3 + $0x2a60] sm:$0xff]  ;;  %10107 = vmatpush2.bf16.msra.mxu0 %v13257_v62  ;;  %v449_v49 = vld [vmem:[%s13895_s3 + $0x548] sm:$0xff]  ;;  %v12075_v62 = vcombine.low %v457_v32, %v461_v34 }
 0x1d2   : > { %v1760_v58 = vld [vmem:[%s13895_s3 + $0x2e40] sm:$0xff]  ;;  %v13250_v1 = vcombine.high %v1632_v53, %v1636_v56  ;;  %10147 = vmatprep.subr.bf16.mxu1 %v13386_v51  ;;  %v13249_v9 = vcombine.low %v1632_v53, %v1636_v56  ;;  %v453_v51 = vld [vmem:[%s13895_s3 + $0x568] sm:$0xff] }
 0x1d3   : > { %v1764_v59 = vld [vmem:[%s13895_s3 + $0x2e60] sm:$0xff]  ;;  %10148 = vmatpush2.bf16.msra.mxu1 %v13385_v63  ;;  %v11940_v63 = vcombine.high %v321_v43, %v325_v46  ;;  %v12067_v18 = vcombine.low %v449_v49, %v453_v51 }
 0x1d4   : > { %v13378_v2 = vcombine.high %v1760_v58, %v1764_v59  ;;  %v1624_v3 = vld [vmem:[%s13895_s3 + $0x2a00] sm:$0xff]  ;;  %10108 = vmatprep.subr.bf16.mxu0 %v13250_v1  ;;  %v13377_v60 = vcombine.low %v1760_v58, %v1764_v59  ;;  %v11947_v58 = vcombine.low %v329_v52, %v333_v30  ;;  %v437_v52 = vld [vmem:[%s13895_s3 + $0x4e8] sm:$0xff] }
 0x1d5   : > { %v1628_v5 = vld [vmem:[%s13895_s3 + $0x2a20] sm:$0xff]  ;;  %10109 = vmatpush2.bf16.msra.mxu0 %v13249_v9  ;;  %v441_v9 = vld [vmem:[%s13895_s3 + $0x508] sm:$0xff] }
 0x1d6   : > { %v1752_v7 = vld [vmem:[%s13895_s3 + $0x2e00] sm:$0xff]  ;;  %v13242_v13 = vcombine.high %v1624_v3, %v1628_v5  ;;  %10149 = vmatprep.subr.bf16.mxu1 %v13378_v2  ;;  %v13241_v21 = vcombine.low %v1624_v3, %v1628_v5  ;;  %v313_v5 = vld [vmem:[%s13895_s3 + $0x108] sm:$0xff] }
 0x1d7   : > { %v1756_v8 = vld [vmem:[%s13895_s3 + $0x2e20] sm:$0xff]  ;;  %10150 = vmatpush2.bf16.msra.mxu1 %v13377_v60  ;;  %v445_v60 = vld [vmem:[%s13895_s3 + $0x528] sm:$0xff] }
 0x1d8   : > { %v13370_v15 = vcombine.high %v1752_v7, %v1756_v8  ;;  %10110 = vmatprep.subr.bf16.mxu0 %v13242_v13  ;;  %v13369_v25 = vcombine.low %v1752_v7, %v1756_v8  ;;  %v317_v7 = vld [vmem:[%s13895_s3 + $0x128] sm:$0xff]  ;;  %v12059_v32 = vcombine.low %v441_v9, %v445_v60 }
 0x1d9   : > { %10111 = vmatpush2.bf16.msra.mxu0 %v13241_v21  ;;  %v11932_v39 = vcombine.high %v313_v5, %v317_v7  ;;  %v12060_v21 = vcombine.high %v441_v9, %v445_v60  ;;  %v11931_v30 = vcombine.low %v313_v5, %v317_v7  ;;  %v285_v5 = vld [vmem:[%s13895_s3 + $0x28] sm:$0xff] }
 0x1da   : > { %10151 = vmatprep.subr.bf16.mxu1 %v13370_v15  ;;  %10162 = vmatprep.subr.bf16.mxu0 %v11956_v27  ;;  %v309_v27 = vld [vmem:[%s13895_s3 + $0xe8] sm:$0xff] }
 0x1db   : > { %10152 = vmatpush2.bf16.msra.mxu1 %v13369_v25  ;;  %v305_v25 = vld [vmem:[%s13895_s3 + $0xc8] sm:$0xff] }
 0x1dc   : > { %10203 = vmatprep.subr.bf16.mxu1 %v12084_v29  ;;  %v9868_v47 = vpop.f32.mrf.mxu0  ;;  %10113 = vmatmul.mubr.bf16.vlgmr.msra.gmra.mxu0 %v14481_v50  ;;  %v433_v29 = vld [vmem:[%s13895_s3 + $0x4c8] sm:$0xff]  ;;  %v11924_v34 = vcombine.high %v305_v25, %v309_v27 }
 0x1dd   : > { %v9869_v53 = vadd.f32 %v9868_v47, %v14416_v16  ;;  %10163 = vmatpush1.bf16.msra.mxu0 %v11955_v54  ;;  %v12068_v16 = vcombine.high %v449_v49, %v453_v51  ;;  %10194 = vmatprep.mubr.bf16.mxu0 %v13973_v10  ;;  %v12052_v54 = vcombine.high %v433_v29, %v437_v52  ;;  %v409_v7 = vld [vmem:[%s13895_s3 + $0x408] sm:$0xff] }
 0x1de   : > { %v9909_v56 = vpop.f32.mrf.mxu1  ;;  %10154 = vmatmul.mubr.bf16.vlgmr.msra.gmra.mxu1 %v14489_v37  ;;  %v9870_v59 = vpop.f32.mrf.mxu0  ;;  %10164 = vmatprep.subr.bf16.mxu0 %v11948_v38  ;;  %v301_v38 = vld [vmem:[%s13895_s3 + $0xa8] sm:$0xff]  ;;  %v12051_v47 = vcombine.low %v433_v29, %v437_v52 }
 0x1df   : > { %10204 = vmatpush1.bf16.msra.mxu1 %v12083_v24  ;;  %v14498_v1 = vadd.f32 %v9909_v56, %v9869_v53  ;;  %v9871_v2 = vadd.f32 %v9870_v59, %v14425_v28  ;;  %10235 = vmatprep.mubr.bf16.mxu1 %v13980_v14  ;;  %v11939_v28 = vcombine.low %v321_v43, %v325_v46  ;;  %v297_v24 = vld [vmem:[%s13895_s3 + $0x88] sm:$0xff] }
 0x1e0   : > { %v9911_v3 = vpop.f32.mrf.mxu1  ;;  %10205 = vmatprep.subr.bf16.mxu1 %v12076_v42  ;;  %v9872_v8 = vpop.f32.mrf.mxu0  ;;  %v425_v42 = vld [vmem:[%s13895_s3 + $0x488] sm:$0xff]  ;;  %v11923_v46 = vcombine.low %v305_v25, %v309_v27  ;;  %v11916_v49 = vcombine.high %v297_v24, %v301_v38 }
 0x1e1   : > { %v14507_v13 = vadd.f32 %v9911_v3, %v9871_v2  ;;  %10165 = vmatpush1.bf16.msra.mxu0 %v11947_v58  ;;  %v429_v43 = vld [vmem:[%s13895_s3 + $0x4a8] sm:$0xff] }
 0x1e2   : > { %v9913_v15 = vpop.f32.mrf.mxu1  ;;  %v9873_v17 = vpop.f32.mrf.mxu0  ;;  %10166 = vmatprep.subr.bf16.mxu0 %v11940_v63  ;;  %v12044_v51 = vcombine.high %v425_v42, %v429_v43  ;;  %v289_v53 = vld [vmem:[%s13895_s3 + $0x48] sm:$0xff]  ;;  %v12043_v63 = vcombine.low %v425_v42, %v429_v43 }
 0x1e3   : > { %10206 = vmatpush1.bf16.msra.mxu1 %v12075_v62  ;;  %v293_v56 = vld [vmem:[%s13895_s3 + $0x68] sm:$0xff]  ;;  %v11915_v62 = vcombine.low %v297_v24, %v301_v38 }
 0x1e4   : > { %v9914_v19 = vpop.f32.mrf.mxu1  ;;  %10207 = vmatprep.subr.bf16.mxu1 %v12068_v16  ;;  %v417_v58 = vld [vmem:[%s13895_s3 + $0x448] sm:$0xff]  ;;  %v11908_v2 = vcombine.high %v289_v53, %v293_v56  ;;  %v11907_v9 = vcombine.low %v289_v53, %v293_v56 }
 0x1e5   : > { %10167 = vmatpush1.bf16.msra.mxu0 %v11939_v28  ;;  %v421_v59 = vld [vmem:[%s13895_s3 + $0x468] sm:$0xff] }
 0x1e6   : > { %10168 = vmatprep.subr.bf16.mxu0 %v11932_v39  ;;  %v12036_v3 = vcombine.high %v417_v58, %v421_v59  ;;  %v281_v16 = vld [vmem:[%s13895_s3 + $0x8] sm:$0xff]  ;;  %v12035_v60 = vcombine.low %v417_v58, %v421_v59 }
 0x1e7   : > { %10208 = vmatpush1.bf16.msra.mxu1 %v12067_v18  ;;  %v413_v8 = vld [vmem:[%s13895_s3 + $0x428] sm:$0xff]  ;;  %v11900_v15 = vcombine.high %v281_v16, %v285_v5 }
 0x1e8   : > { %10209 = vmatprep.subr.bf16.mxu1 %v12060_v21  ;;  %v12028_v28 = vcombine.high %v409_v7, %v413_v8  ;;  %v401_v17 = vld [vmem:[%s13895_s3 + $0x3c8] sm:$0xff]  ;;  %v11899_v21 = vcombine.low %v281_v16, %v285_v5  ;;  %v12027_v25 = vcombine.low %v409_v7, %v413_v8 }
 0x1e9   : > { %10169 = vmatpush1.bf16.msra.mxu0 %v11931_v30  ;;  %v405_v18 = vld [vmem:[%s13895_s3 + $0x3e8] sm:$0xff] }
 0x1ea   : > { %10170 = vmatprep.subr.bf16.mxu0 %v11924_v34  ;;  %v529_v39 = vld [vmem:[%s13895_s3 + $0x7c8] sm:$0xff]  ;;  %v12020_v27 = vcombine.high %v401_v17, %v405_v18 }
 0x1eb   : > { %10210 = vmatpush1.bf16.msra.mxu1 %v12059_v32  ;;  %v533_v19 = vld [vmem:[%s13895_s3 + $0x7e8] sm:$0xff] }
 0x1ec   : > { %10211 = vmatprep.subr.bf16.mxu1 %v12052_v54  ;;  %v12148_v29 = vcombine.high %v529_v39, %v533_v19  ;;  %v393_v52 = vld [vmem:[%s13895_s3 + $0x388] sm:$0xff]  ;;  %v12019_v54 = vcombine.low %v401_v17, %v405_v18  ;;  %v12147_v24 = vcombine.low %v529_v39, %v533_v19 }
 0x1ed   : > { %10171 = vmatpush1.bf16.msra.mxu0 %v11923_v46  ;;  %v397_v30 = vld [vmem:[%s13895_s3 + $0x3a8] sm:$0xff] }
 0x1ee   : > { %10172 = vmatprep.subr.bf16.mxu0 %v11916_v49  ;;  %v521_v32 = vld [vmem:[%s13895_s3 + $0x788] sm:$0xff]  ;;  %v12012_v38 = vcombine.high %v393_v52, %v397_v30 }
 0x1ef   : > { %10212 = vmatpush1.bf16.msra.mxu1 %v12051_v47  ;;  %v525_v34 = vld [vmem:[%s13895_s3 + $0x7a8] sm:$0xff] }
 0x1f0   : > { %10213 = vmatprep.subr.bf16.mxu1 %v12044_v51  ;;  %v12140_v42 = vcombine.high %v521_v32, %v525_v34  ;;  %v385_v43 = vld [vmem:[%s13895_s3 + $0x348] sm:$0xff]  ;;  %v12011_v51 = vcombine.low %v393_v52, %v397_v30  ;;  %v12139_v53 = vcombine.low %v521_v32, %v525_v34 }
 0x1f1   : > { %10173 = vmatpush1.bf16.msra.mxu0 %v11915_v62  ;;  %v389_v46 = vld [vmem:[%s13895_s3 + $0x368] sm:$0xff] }
 0x1f2   : > { %10174 = vmatprep.subr.bf16.mxu0 %v11908_v2  ;;  %v513_v47 = vld [vmem:[%s13895_s3 + $0x748] sm:$0xff]  ;;  %v12004_v56 = vcombine.high %v385_v43, %v389_v46 }
 0x1f3   : > { %10214 = vmatpush1.bf16.msra.mxu1 %v12043_v63  ;;  %v517_v49 = vld [vmem:[%s13895_s3 + $0x768] sm:$0xff] }
 0x1f4   : > { %10215 = vmatprep.subr.bf16.mxu1 %v12036_v3  ;;  %v12132_v58 = vcombine.high %v513_v47, %v517_v49  ;;  %v377_v59 = vld [vmem:[%s13895_s3 + $0x308] sm:$0xff]  ;;  %v12003_v3 = vcombine.low %v385_v43, %v389_v46  ;;  %v12131_v16 = vcombine.low %v513_v47, %v517_v49 }
 0x1f5   : > { %10175 = vmatpush1.bf16.msra.mxu0 %v11907_v9  ;;  %v381_v62 = vld [vmem:[%s13895_s3 + $0x328] sm:$0xff] }
 0x1f6   : > { %10176 = vmatprep.subr.bf16.mxu0 %v11900_v15  ;;  %v505_v63 = vld [vmem:[%s13895_s3 + $0x708] sm:$0xff]  ;;  %v11996_v5 = vcombine.high %v377_v59, %v381_v62 }
 0x1f7   : > { %10216 = vmatpush1.bf16.msra.mxu1 %v12035_v60  ;;  %v509_v2 = vld [vmem:[%s13895_s3 + $0x728] sm:$0xff] }
 0x1f8   : > { %10217 = vmatprep.subr.bf16.mxu1 %v12028_v28  ;;  %v12124_v7 = vcombine.high %v505_v63, %v509_v2  ;;  %v369_v8 = vld [vmem:[%s13895_s3 + $0x2c8] sm:$0xff]  ;;  %v11995_v28 = vcombine.low %v377_v59, %v381_v62  ;;  %v12123_v17 = vcombine.low %v505_v63, %v509_v2 }
 0x1f9   : > { %10177 = vmatpush1.bf16.msra.mxu0 %v11899_v21  ;;  %v373_v9 = vld [vmem:[%s13895_s3 + $0x2e8] sm:$0xff] }
 0x1fa   : > { %10178 = vmatprep.subr.bf16.mxu0 %v12020_v27  ;;  %v497_v60 = vld [vmem:[%s13895_s3 + $0x6c8] sm:$0xff]  ;;  %v11988_v18 = vcombine.high %v369_v8, %v373_v9 }
 0x1fb   : > { %10218 = vmatpush1.bf16.msra.mxu1 %v12027_v25  ;;  %v501_v15 = vld [vmem:[%s13895_s3 + $0x6e8] sm:$0xff] }
 0x1fc   : > { %10219 = vmatprep.subr.bf16.mxu1 %v12148_v29  ;;  %v12116_v39 = vcombine.high %v497_v60, %v501_v15  ;;  %v361_v19 = vld [vmem:[%s13895_s3 + $0x288] sm:$0xff]  ;;  %v11987_v29 = vcombine.low %v369_v8, %v373_v9  ;;  %v12115_v52 = vcombine.low %v497_v60, %v501_v15 }
 0x1fd   : > { %10179 = vmatpush2.bf16.msra.mxu0 %v12019_v54  ;;  %v365_v21 = vld [vmem:[%s13895_s3 + $0x2a8] sm:$0xff] }
 0x1fe   : > { %10180 = vmatprep.subr.bf16.mxu0 %v12012_v38  ;;  %v489_v25 = vld [vmem:[%s13895_s3 + $0x688] sm:$0xff]  ;;  %v11980_v30 = vcombine.high %v361_v19, %v365_v21 }
 0x1ff   : > { %10220 = vmatpush2.bf16.msra.mxu1 %v12147_v24  ;;  %v493_v27 = vld [vmem:[%s13895_s3 + $0x6a8] sm:$0xff] }
 0x200   : > { %10221 = vmatprep.subr.bf16.mxu1 %v12140_v42  ;;  %v12108_v32 = vcombine.high %v489_v25, %v493_v27  ;;  %v353_v34 = vld [vmem:[%s13895_s3 + $0x248] sm:$0xff]  ;;  %v11979_v42 = vcombine.low %v361_v19, %v365_v21  ;;  %v12107_v43 = vcombine.low %v489_v25, %v493_v27 }
 0x201   : > { %10181 = vmatpush2.bf16.msra.mxu0 %v12011_v51  ;;  %v357_v54 = vld [vmem:[%s13895_s3 + $0x268] sm:$0xff] }
 0x202   : > { %10182 = vmatprep.subr.bf16.mxu0 %v12004_v56  ;;  %v481_v24 = vld [vmem:[%s13895_s3 + $0x648] sm:$0xff]  ;;  %v11972_v46 = vcombine.high %v353_v34, %v357_v54 }
 0x203   : > { %10222 = vmatpush2.bf16.msra.mxu1 %v12139_v53  ;;  %v485_v38 = vld [vmem:[%s13895_s3 + $0x668] sm:$0xff] }
 0x204   : > { %10223 = vmatprep.subr.bf16.mxu1 %v12132_v58  ;;  %v12100_v47 = vcombine.high %v481_v24, %v485_v38  ;;  %v345_v49 = vld [vmem:[%s13895_s3 + $0x208] sm:$0xff]  ;;  %v11971_v58 = vcombine.low %v353_v34, %v357_v54  ;;  %v12099_v59 = vcombine.low %v481_v24, %v485_v38 }
 0x205   : > { %10183 = vmatpush2.bf16.msra.mxu0 %v12003_v3  ;;  %v349_v51 = vld [vmem:[%s13895_s3 + $0x228] sm:$0xff] }
 0x206   : > { %10184 = vmatprep.subr.bf16.mxu0 %v11996_v5  ;;  %v473_v53 = vld [vmem:[%s13895_s3 + $0x608] sm:$0xff]  ;;  %v11964_v62 = vcombine.high %v345_v49, %v349_v51 }
 0x207   : > { %10224 = vmatpush2.bf16.msra.mxu1 %v12131_v16  ;;  %v477_v56 = vld [vmem:[%s13895_s3 + $0x628] sm:$0xff] }
 0x208   : > { %10225 = vmatprep.subr.bf16.mxu1 %v12124_v7  ;;  %v12092_v63 = vcombine.high %v473_v53, %v477_v56  ;;  %v593_v2 = vld [vmem:[%s13895_s3 + $0x9c8] sm:$0xff]  ;;  %v11963_v7 = vcombine.low %v345_v49, %v349_v51  ;;  %v12091_v8 = vcombine.low %v473_v53, %v477_v56 }
 0x209   : > { %10185 = vmatpush2.bf16.msra.mxu0 %v11995_v28  ;;  %v597_v3 = vld [vmem:[%s13895_s3 + $0x9e8] sm:$0xff] }
 0x20a   : > { %10186 = vmatprep.subr.bf16.mxu0 %v11988_v18  ;;  %v721_v16 = vld [vmem:[%s13895_s3 + $0xdc8] sm:$0xff]  ;;  %v12212_v9 = vcombine.high %v593_v2, %v597_v3 }
 0x20b   : > { %10226 = vmatpush2.bf16.msra.mxu1 %v12123_v17  ;;  %v725_v5 = vld [vmem:[%s13895_s3 + $0xde8] sm:$0xff] }
 0x20c   : > { %10227 = vmatprep.subr.bf16.mxu1 %v12116_v39  ;;  %v12340_v60 = vcombine.high %v721_v16, %v725_v5  ;;  %v585_v15 = vld [vmem:[%s13895_s3 + $0x988] sm:$0xff]  ;;  %v12211_v39 = vcombine.low %v593_v2, %v597_v3  ;;  %v12339_v19 = vcombine.low %v721_v16, %v725_v5 }
 0x20d   : > { %10187 = vmatpush2.bf16.msra.mxu0 %v11987_v29  ;;  %v589_v28 = vld [vmem:[%s13895_s3 + $0x9a8] sm:$0xff] }
 0x20e   : > { %10188 = vmatprep.subr.bf16.mxu0 %v11980_v30  ;;  %v713_v17 = vld [vmem:[%s13895_s3 + $0xd88] sm:$0xff]  ;;  %v12204_v21 = vcombine.high %v585_v15, %v589_v28  ;;  %v12203_v24 = vcombine.low %v585_v15, %v589_v28 }
 0x20f   : > { %10228 = vmatpush2.bf16.msra.mxu1 %v12115_v52  ;;  %v717_v18 = vld [vmem:[%s13895_s3 + $0xda8] sm:$0xff] }
 0x210   : > { %10229 = vmatprep.subr.bf16.mxu1 %v12108_v32  ;;  %v12332_v25 = vcombine.high %v713_v17, %v717_v18  ;;  %v577_v27 = vld [vmem:[%s13895_s3 + $0x948] sm:$0xff] }
 0x211   : > { %10189 = vmatpush2.bf16.msra.mxu0 %v11979_v42  ;;  %v581_v29 = vld [vmem:[%s13895_s3 + $0x968] sm:$0xff]  ;;  %v12331_v42 = vcombine.low %v713_v17, %v717_v18 }
 0x212   : > { %10190 = vmatprep.subr.bf16.mxu0 %v11972_v46  ;;  %v705_v30 = vld [vmem:[%s13895_s3 + $0xd48] sm:$0xff] }
 0x213   : > { %10230 = vmatpush2.bf16.msra.mxu1 %v12107_v43  ;;  %v709_v32 = vld [vmem:[%s13895_s3 + $0xd68] sm:$0xff]  ;;  %v12196_v43 = vcombine.high %v577_v27, %v581_v29 }
 0x214   : > { %10231 = vmatprep.subr.bf16.mxu1 %v12100_v47  ;;  %v569_v51 = vld [vmem:[%s13895_s3 + $0x908] sm:$0xff]  ;;  %v12323_v3 = vcombine.low %v705_v30, %v709_v32 }
 0x215   : > { %10191 = vmatpush2.bf16.msra.mxu0 %v11971_v58  ;;  %v573_v53 = vld [vmem:[%s13895_s3 + $0x928] sm:$0xff] }
 0x216   : > { %10192 = vmatprep.subr.bf16.mxu0 %v11964_v62  ;;  %v697_v58 = vld [vmem:[%s13895_s3 + $0xd08] sm:$0xff]  ;;  %v12188_v16 = vcombine.high %v569_v51, %v573_v53  ;;  %v12187_v28 = vcombine.low %v569_v51, %v573_v53 }
 0x217   : > { %10232 = vmatpush2.bf16.msra.mxu1 %v12099_v59  ;;  %v701_v59 = vld [vmem:[%s13895_s3 + $0xd28] sm:$0xff] }
 0x218   : > { %10233 = vmatprep.subr.bf16.mxu1 %v12092_v63  ;;  %v693_v15 = vld [vmem:[%s13895_s3 + $0xce8] sm:$0xff]  ;;  %v12315_v17 = vcombine.low %v697_v58, %v701_v59 }
 0x219   : > { %10193 = vmatpush2.bf16.msra.mxu0 %v11963_v7  ;;  %v12316_v7 = vcombine.high %v697_v58, %v701_v59  ;;  %v541_v51 = vld [vmem:[%s13895_s3 + $0x828] sm:$0xff] }
 0x21a   : > { %10244 = vmatprep.subr.bf16.mxu0 %v12212_v9  ;;  %v565_v9 = vld [vmem:[%s13895_s3 + $0x8e8] sm:$0xff] }
 0x21b   : > { %10234 = vmatpush2.bf16.msra.mxu1 %v12091_v8  ;;  %v561_v8 = vld [vmem:[%s13895_s3 + $0x8c8] sm:$0xff] }
 0x21c   : > { %10285 = vmatprep.subr.bf16.mxu1 %v12340_v60  ;;  %v9950_v52 = vpop.f32.mrf.mxu0  ;;  %10195 = vmatmul.mubr.bf16.vlgmr.msra.gmra.mxu0 %v14024_v23  ;;  %v689_v60 = vld [vmem:[%s13895_s3 + $0xcc8] sm:$0xff]  ;;  %v12180_v18 = vcombine.high %v561_v8, %v565_v9 }
 0x21d   : > { %v9951_v34 = vadd.f32 %v9950_v52, %v14498_v1  ;;  %10245 = vmatpush1.bf16.msra.mxu0 %v12211_v39  ;;  %v12324_v1 = vcombine.high %v705_v30, %v709_v32  ;;  %10276 = vmatprep.mubr.bf16.mxu0 %v14031_v31  ;;  %v12308_v39 = vcombine.high %v689_v60, %v693_v15  ;;  %v665_v53 = vld [vmem:[%s13895_s3 + $0xc08] sm:$0xff] }
 0x21e   : > { %v9991_v54 = vpop.f32.mrf.mxu1  ;;  %10236 = vmatmul.mubr.bf16.vlgmr.msra.gmra.mxu1 %v14035_v0  ;;  %v9952_v38 = vpop.f32.mrf.mxu0  ;;  %10246 = vmatprep.subr.bf16.mxu0 %v12204_v21  ;;  %v557_v21 = vld [vmem:[%s13895_s3 + $0x8a8] sm:$0xff]  ;;  %v12307_v52 = vcombine.low %v689_v60, %v693_v15 }
 0x21f   : > { %10286 = vmatpush1.bf16.msra.mxu1 %v12339_v19  ;;  %v14572_v46 = vadd.f32 %v9991_v54, %v9951_v34  ;;  %v9953_v47 = vadd.f32 %v9952_v38, %v14507_v13  ;;  %10317 = vmatprep.mubr.bf16.mxu1 %v14044_v40  ;;  %v12195_v13 = vcombine.low %v577_v27, %v581_v29  ;;  %v553_v19 = vld [vmem:[%s13895_s3 + $0x888] sm:$0xff] }
 0x220   : > { %v9993_v49 = vpop.f32.mrf.mxu1  ;;  %10287 = vmatprep.subr.bf16.mxu1 %v12332_v25  ;;  %v9954_v56 = vpop.f32.mrf.mxu0  ;;  %v681_v25 = vld [vmem:[%s13895_s3 + $0xc88] sm:$0xff]  ;;  %v12179_v29 = vcombine.low %v561_v8, %v565_v9  ;;  %v12172_v30 = vcombine.high %v553_v19, %v557_v21 }
 0x221   : > { %v14581_v62 = vadd.f32 %v9993_v49, %v9953_v47  ;;  %10247 = vmatpush1.bf16.msra.mxu0 %v12203_v24  ;;  %v685_v27 = vld [vmem:[%s13895_s3 + $0xca8] sm:$0xff] }
 0x222   : > { %v9995_v63 = vpop.f32.mrf.mxu1  ;;  %v9955_v2 = vpop.f32.mrf.mxu0  ;;  %10248 = vmatprep.subr.bf16.mxu0 %v12196_v43  ;;  %v12300_v32 = vcombine.high %v681_v25, %v685_v27  ;;  %v545_v34 = vld [vmem:[%s13895_s3 + $0x848] sm:$0xff]  ;;  %v12299_v43 = vcombine.low %v681_v25, %v685_v27 }
 0x223   : > { %10288 = vmatpush1.bf16.msra.mxu1 %v12331_v42  ;;  %v549_v54 = vld [vmem:[%s13895_s3 + $0x868] sm:$0xff]  ;;  %v12171_v42 = vcombine.low %v553_v19, %v557_v21 }
 0x224   : > { %v9996_v5 = vpop.f32.mrf.mxu1  ;;  %10289 = vmatprep.subr.bf16.mxu1 %v12324_v1  ;;  %v673_v24 = vld [vmem:[%s13895_s3 + $0xc48] sm:$0xff]  ;;  %v12164_v47 = vcombine.high %v545_v34, %v549_v54  ;;  %v12163_v58 = vcombine.low %v545_v34, %v549_v54 }
 0x225   : > { %10249 = vmatpush1.bf16.msra.mxu0 %v12195_v13  ;;  %v677_v38 = vld [vmem:[%s13895_s3 + $0xc68] sm:$0xff] }
 0x226   : > { %10250 = vmatprep.subr.bf16.mxu0 %v12188_v16  ;;  %v12292_v49 = vcombine.high %v673_v24, %v677_v38  ;;  %v537_v1 = vld [vmem:[%s13895_s3 + $0x808] sm:$0xff]  ;;  %v12291_v59 = vcombine.low %v673_v24, %v677_v38 }
 0x227   : > { %10290 = vmatpush1.bf16.msra.mxu1 %v12323_v3  ;;  %v669_v56 = vld [vmem:[%s13895_s3 + $0xc28] sm:$0xff]  ;;  %v12156_v63 = vcombine.high %v537_v1, %v541_v51 }
 0x228   : > { %10291 = vmatprep.subr.bf16.mxu1 %v12316_v7  ;;  %v12284_v13 = vcombine.high %v665_v53, %v669_v56  ;;  %v657_v2 = vld [vmem:[%s13895_s3 + $0xbc8] sm:$0xff]  ;;  %v12155_v7 = vcombine.low %v537_v1, %v541_v51  ;;  %v12283_v8 = vcombine.low %v665_v53, %v669_v56 }
 0x229   : > { %10251 = vmatpush1.bf16.msra.mxu0 %v12187_v28  ;;  %v661_v3 = vld [vmem:[%s13895_s3 + $0xbe8] sm:$0xff] }
 0x22a   : > { %10252 = vmatprep.subr.bf16.mxu0 %v12180_v18  ;;  %v785_v16 = vld [vmem:[%s13895_s3 + $0xfc8] sm:$0xff]  ;;  %v12276_v9 = vcombine.high %v657_v2, %v661_v3 }
 0x22b   : > { %10292 = vmatpush1.bf16.msra.mxu1 %v12315_v17  ;;  %v789_v5 = vld [vmem:[%s13895_s3 + $0xfe8] sm:$0xff] }
 0x22c   : > { %10293 = vmatprep.subr.bf16.mxu1 %v12308_v39  ;;  %v12404_v60 = vcombine.high %v785_v16, %v789_v5  ;;  %v649_v15 = vld [vmem:[%s13895_s3 + $0xb88] sm:$0xff]  ;;  %v12275_v39 = vcombine.low %v657_v2, %v661_v3  ;;  %v12403_v19 = vcombine.low %v785_v16, %v789_v5 }
 0x22d   : > { %10253 = vmatpush1.bf16.msra.mxu0 %v12179_v29  ;;  %v653_v28 = vld [vmem:[%s13895_s3 + $0xba8] sm:$0xff] }
 0x22e   : > { %10254 = vmatprep.subr.bf16.mxu0 %v12172_v30  ;;  %v777_v17 = vld [vmem:[%s13895_s3 + $0xf88] sm:$0xff]  ;;  %v12268_v21 = vcombine.high %v649_v15, %v653_v28 }
 0x22f   : > { %10294 = vmatpush1.bf16.msra.mxu1 %v12307_v52  ;;  %v781_v18 = vld [vmem:[%s13895_s3 + $0xfa8] sm:$0xff] }
 0x230   : > { %10295 = vmatprep.subr.bf16.mxu1 %v12300_v32  ;;  %v12396_v25 = vcombine.high %v777_v17, %v781_v18  ;;  %v641_v27 = vld [vmem:[%s13895_s3 + $0xb48] sm:$0xff]  ;;  %v12267_v32 = vcombine.low %v649_v15, %v653_v28  ;;  %v12395_v34 = vcombine.low %v777_v17, %v781_v18 }
 0x231   : > { %10255 = vmatpush1.bf16.msra.mxu0 %v12171_v42  ;;  %v645_v29 = vld [vmem:[%s13895_s3 + $0xb68] sm:$0xff] }
 0x232   : > { %10256 = vmatprep.subr.bf16.mxu0 %v12164_v47  ;;  %v769_v52 = vld [vmem:[%s13895_s3 + $0xf48] sm:$0xff]  ;;  %v12260_v54 = vcombine.high %v641_v27, %v645_v29 }
 0x233   : > { %10296 = vmatpush1.bf16.msra.mxu1 %v12299_v43  ;;  %v773_v30 = vld [vmem:[%s13895_s3 + $0xf68] sm:$0xff] }
 0x234   : > { %10297 = vmatprep.subr.bf16.mxu1 %v12292_v49  ;;  %v12388_v24 = vcombine.high %v769_v52, %v773_v30  ;;  %v633_v38 = vld [vmem:[%s13895_s3 + $0xb08] sm:$0xff]  ;;  %v12259_v49 = vcombine.low %v641_v27, %v645_v29  ;;  %v12387_v1 = vcombine.low %v769_v52, %v773_v30 }
 0x235   : > { %10257 = vmatpush1.bf16.msra.mxu0 %v12163_v58  ;;  %v637_v42 = vld [vmem:[%s13895_s3 + $0xb28] sm:$0xff] }
 0x236   : > { %10258 = vmatprep.subr.bf16.mxu0 %v12156_v63  ;;  %v761_v43 = vld [vmem:[%s13895_s3 + $0xf08] sm:$0xff]  ;;  %v12252_v51 = vcombine.high %v633_v38, %v637_v42 }
 0x237   : > { %10298 = vmatpush1.bf16.msra.mxu1 %v12291_v59  ;;  %v765_v47 = vld [vmem:[%s13895_s3 + $0xf28] sm:$0xff] }
 0x238   : > { %10299 = vmatprep.subr.bf16.mxu1 %v12284_v13  ;;  %v12380_v53 = vcombine.high %v761_v43, %v765_v47  ;;  %v625_v56 = vld [vmem:[%s13895_s3 + $0xac8] sm:$0xff]  ;;  %v12251_v13 = vcombine.low %v633_v38, %v637_v42  ;;  %v12379_v2 = vcombine.low %v761_v43, %v765_v47 }
 0x239   : > { %10259 = vmatpush1.bf16.msra.mxu0 %v12155_v7  ;;  %v629_v58 = vld [vmem:[%s13895_s3 + $0xae8] sm:$0xff] }
 0x23a   : > { %10260 = vmatprep.subr.bf16.mxu0 %v12276_v9  ;;  %v753_v59 = vld [vmem:[%s13895_s3 + $0xec8] sm:$0xff]  ;;  %v12244_v3 = vcombine.high %v625_v56, %v629_v58 }
 0x23b   : > { %10300 = vmatpush1.bf16.msra.mxu1 %v12283_v8  ;;  %v757_v63 = vld [vmem:[%s13895_s3 + $0xee8] sm:$0xff] }
 0x23c   : > { %10301 = vmatprep.subr.bf16.mxu1 %v12404_v60  ;;  %v12372_v16 = vcombine.high %v753_v59, %v757_v63  ;;  %v617_v5 = vld [vmem:[%s13895_s3 + $0xa88] sm:$0xff]  ;;  %v12243_v60 = vcombine.low %v625_v56, %v629_v58  ;;  %v12371_v15 = vcombine.low %v753_v59, %v757_v63 }
 0x23d   : > { %10261 = vmatpush2.bf16.msra.mxu0 %v12275_v39  ;;  %v621_v7 = vld [vmem:[%s13895_s3 + $0xaa8] sm:$0xff] }
 0x23e   : > { %10262 = vmatprep.subr.bf16.mxu0 %v12268_v21  ;;  %v745_v8 = vld [vmem:[%s13895_s3 + $0xe88] sm:$0xff]  ;;  %v12236_v28 = vcombine.high %v617_v5, %v621_v7 }
 0x23f   : > { %10302 = vmatpush2.bf16.msra.mxu1 %v12403_v19  ;;  %v749_v9 = vld [vmem:[%s13895_s3 + $0xea8] sm:$0xff] }
 0x240   : > { %10303 = vmatprep.subr.bf16.mxu1 %v12396_v25  ;;  %v12364_v17 = vcombine.high %v745_v8, %v749_v9  ;;  %v609_v18 = vld [vmem:[%s13895_s3 + $0xa48] sm:$0xff]  ;;  %v12235_v25 = vcombine.low %v617_v5, %v621_v7  ;;  %v12363_v27 = vcombine.low %v745_v8, %v749_v9 }
 0x241   : > { %10263 = vmatpush2.bf16.msra.mxu0 %v12267_v32  ;;  %v613_v39 = vld [vmem:[%s13895_s3 + $0xa68] sm:$0xff] }
 0x242   : > { %10264 = vmatprep.subr.bf16.mxu0 %v12260_v54  ;;  %v737_v19 = vld [vmem:[%s13895_s3 + $0xe48] sm:$0xff]  ;;  %v12228_v29 = vcombine.high %v609_v18, %v613_v39 }
 0x243   : > { %10304 = vmatpush2.bf16.msra.mxu1 %v12395_v34  ;;  %v741_v21 = vld [vmem:[%s13895_s3 + $0xe68] sm:$0xff] }
 0x244   : > { %10305 = vmatprep.subr.bf16.mxu1 %v12388_v24  ;;  %v12356_v52 = vcombine.high %v737_v19, %v741_v21  ;;  %v601_v30 = vld [vmem:[%s13895_s3 + $0xa08] sm:$0xff]  ;;  %v12227_v24 = vcombine.low %v609_v18, %v613_v39  ;;  %v12355_v38 = vcombine.low %v737_v19, %v741_v21 }
 0x245   : > { %10265 = vmatpush2.bf16.msra.mxu0 %v12259_v49  ;;  %v605_v32 = vld [vmem:[%s13895_s3 + $0xa28] sm:$0xff] }
 0x246   : > { %10266 = vmatprep.subr.bf16.mxu0 %v12252_v51  ;;  %v729_v34 = vld [vmem:[%s13895_s3 + $0xe08] sm:$0xff]  ;;  %v12220_v42 = vcombine.high %v601_v30, %v605_v32 }
 0x247   : > { %10306 = vmatpush2.bf16.msra.mxu1 %v12387_v1  ;;  %v733_v54 = vld [vmem:[%s13895_s3 + $0xe28] sm:$0xff] }
 0x248   : > { %10307 = vmatprep.subr.bf16.mxu1 %v12380_v53  ;;  %v12348_v43 = vcombine.high %v729_v34, %v733_v54  ;;  %v849_v47 = vld [vmem:[%s13895_s3 + $0x11c8] sm:$0xff]  ;;  %v12219_v53 = vcombine.low %v601_v30, %v605_v32  ;;  %v12347_v56 = vcombine.low %v729_v34, %v733_v54 }
 0x249   : > { %10267 = vmatpush2.bf16.msra.mxu0 %v12251_v13  ;;  %v853_v49 = vld [vmem:[%s13895_s3 + $0x11e8] sm:$0xff] }
 0x24a   : > { %10268 = vmatprep.subr.bf16.mxu0 %v12244_v3  ;;  %v977_v1 = vld [vmem:[%s13895_s3 + $0x15c8] sm:$0xff]  ;;  %v12468_v58 = vcombine.high %v849_v47, %v853_v49 }
 0x24b   : > { %10308 = vmatpush2.bf16.msra.mxu1 %v12379_v2  ;;  %v981_v51 = vld [vmem:[%s13895_s3 + $0x15e8] sm:$0xff] }
 0x24c   : > { %10309 = vmatprep.subr.bf16.mxu1 %v12372_v16  ;;  %v12596_v59 = vcombine.high %v977_v1, %v981_v51  ;;  %v841_v63 = vld [vmem:[%s13895_s3 + $0x1188] sm:$0xff]  ;;  %v12467_v16 = vcombine.low %v849_v47, %v853_v49  ;;  %v12595_v5 = vcombine.low %v977_v1, %v981_v51 }
 0x24d   : > { %10269 = vmatpush2.bf16.msra.mxu0 %v12243_v60  ;;  %v845_v13 = vld [vmem:[%s13895_s3 + $0x11a8] sm:$0xff] }
 0x24e   : > { %10270 = vmatprep.subr.bf16.mxu0 %v12236_v28  ;;  %v969_v2 = vld [vmem:[%s13895_s3 + $0x1588] sm:$0xff]  ;;  %v12460_v7 = vcombine.high %v841_v63, %v845_v13  ;;  %v12459_v19 = vcombine.low %v841_v63, %v845_v13 }
 0x24f   : > { %10310 = vmatpush2.bf16.msra.mxu1 %v12371_v15  ;;  %v973_v3 = vld [vmem:[%s13895_s3 + $0x15a8] sm:$0xff] }
 0x250   : > { %10311 = vmatprep.subr.bf16.mxu1 %v12364_v17  ;;  %v12588_v8 = vcombine.high %v969_v2, %v973_v3  ;;  %v833_v9 = vld [vmem:[%s13895_s3 + $0x1148] sm:$0xff] }
 0x251   : > { %10271 = vmatpush2.bf16.msra.mxu0 %v12235_v25  ;;  %v837_v60 = vld [vmem:[%s13895_s3 + $0x1168] sm:$0xff]  ;;  %v12587_v25 = vcombine.low %v969_v2, %v973_v3 }
 0x252   : > { %10272 = vmatprep.subr.bf16.mxu0 %v12228_v29  ;;  %v961_v28 = vld [vmem:[%s13895_s3 + $0x1548] sm:$0xff] }
 0x253   : > { %10312 = vmatpush2.bf16.msra.mxu1 %v12363_v27  ;;  %v965_v17 = vld [vmem:[%s13895_s3 + $0x1568] sm:$0xff]  ;;  %v12452_v27 = vcombine.high %v833_v9, %v837_v60 }
 0x254   : > { %10313 = vmatprep.subr.bf16.mxu1 %v12356_v52  ;;  %v825_v32 = vld [vmem:[%s13895_s3 + $0x1108] sm:$0xff]  ;;  %v12579_v49 = vcombine.low %v961_v28, %v965_v17 }
 0x255   : > { %10273 = vmatpush2.bf16.msra.mxu0 %v12227_v24  ;;  %v829_v34 = vld [vmem:[%s13895_s3 + $0x1128] sm:$0xff] }
 0x256   : > { %10274 = vmatprep.subr.bf16.mxu0 %v12220_v42  ;;  %v953_v24 = vld [vmem:[%s13895_s3 + $0x1508] sm:$0xff]  ;;  %v12444_v1 = vcombine.high %v825_v32, %v829_v34  ;;  %v12443_v13 = vcombine.low %v825_v32, %v829_v34 }
 0x257   : > { %10314 = vmatpush2.bf16.msra.mxu1 %v12355_v38  ;;  %v957_v38 = vld [vmem:[%s13895_s3 + $0x1528] sm:$0xff] }
 0x258   : > { %10315 = vmatprep.subr.bf16.mxu1 %v12348_v43  ;;  %v949_v63 = vld [vmem:[%s13895_s3 + $0x14e8] sm:$0xff]  ;;  %v12571_v2 = vcombine.low %v953_v24, %v957_v38 }
 0x259   : > { %10275 = vmatpush2.bf16.msra.mxu0 %v12219_v53  ;;  %v12572_v53 = vcombine.high %v953_v24, %v957_v38  ;;  %v797_v32 = vld [vmem:[%s13895_s3 + $0x1028] sm:$0xff] }
 0x25a   : > { %10326 = vmatprep.subr.bf16.mxu0 %v12468_v58  ;;  %v821_v58 = vld [vmem:[%s13895_s3 + $0x10e8] sm:$0xff] }
 0x25b   : > { %10316 = vmatpush2.bf16.msra.mxu1 %v12347_v56  ;;  %v817_v56 = vld [vmem:[%s13895_s3 + $0x10c8] sm:$0xff] }
 0x25c   : > { %10367 = vmatprep.subr.bf16.mxu1 %v12596_v59  ;;  %v10032_v15 = vpop.f32.mrf.mxu0  ;;  %10277 = vmatmul.mubr.bf16.vlgmr.msra.gmra.mxu0 %v14116_v48  ;;  %v945_v59 = vld [vmem:[%s13895_s3 + $0x14c8] sm:$0xff]  ;;  %v12436_v3 = vcombine.high %v817_v56, %v821_v58 }
 0x25d   : > { %v10033_v18 = vadd.f32 %v10032_v15, %v14572_v46  ;;  %10327 = vmatpush1.bf16.msra.mxu0 %v12467_v16  ;;  %v12580_v46 = vcombine.high %v961_v28, %v965_v17  ;;  %10358 = vmatprep.mubr.bf16.mxu0 %v14123_v57  ;;  %v12564_v16 = vcombine.high %v945_v59, %v949_v63  ;;  %v921_v34 = vld [vmem:[%s13895_s3 + $0x1408] sm:$0xff] }
 0x25e   : > { %v10073_v39 = vpop.f32.mrf.mxu1  ;;  %10318 = vmatmul.mubr.bf16.vlgmr.msra.gmra.mxu1 %v14127_v12  ;;  %v10034_v21 = vpop.f32.mrf.mxu0  ;;  %10328 = vmatprep.subr.bf16.mxu0 %v12460_v7  ;;  %v813_v7 = vld [vmem:[%s13895_s3 + $0x10a8] sm:$0xff]  ;;  %v12563_v15 = vcombine.low %v945_v59, %v949_v63 }
 0x25f   : > { %10368 = vmatpush1.bf16.msra.mxu1 %v12595_v5  ;;  %v14646_v29 = vadd.f32 %v10073_v39, %v10033_v18  ;;  %v10035_v52 = vadd.f32 %v10034_v21, %v14581_v62  ;;  %10399 = vmatprep.mubr.bf16.mxu1 %v14136_v4  ;;  %v12451_v62 = vcombine.low %v833_v9, %v837_v60  ;;  %v809_v5 = vld [vmem:[%s13895_s3 + $0x1088] sm:$0xff] }
 0x260   : > { %v10075_v30 = vpop.f32.mrf.mxu1  ;;  %10369 = vmatprep.subr.bf16.mxu1 %v12588_v8  ;;  %v10036_v54 = vpop.f32.mrf.mxu0  ;;  %v937_v8 = vld [vmem:[%s13895_s3 + $0x1488] sm:$0xff]  ;;  %v12435_v60 = vcombine.low %v817_v56, %v821_v58  ;;  %v12428_v28 = vcombine.high %v809_v5, %v813_v7 }
 0x261   : > { %v14655_v42 = vadd.f32 %v10075_v30, %v10035_v52  ;;  %10329 = vmatpush1.bf16.msra.mxu0 %v12459_v19  ;;  %v941_v9 = vld [vmem:[%s13895_s3 + $0x14a8] sm:$0xff] }
 0x262   : > { %v10077_v43 = vpop.f32.mrf.mxu1  ;;  %v10037_v47 = vpop.f32.mrf.mxu0  ;;  %10330 = vmatprep.subr.bf16.mxu0 %v12452_v27  ;;  %v12556_v17 = vcombine.high %v937_v8, %v941_v9  ;;  %v801_v18 = vld [vmem:[%s13895_s3 + $0x1048] sm:$0xff]  ;;  %v12555_v27 = vcombine.low %v937_v8, %v941_v9 }
 0x263   : > { %10370 = vmatpush1.bf16.msra.mxu1 %v12587_v25  ;;  %v805_v39 = vld [vmem:[%s13895_s3 + $0x1068] sm:$0xff]  ;;  %v12427_v25 = vcombine.low %v809_v5, %v813_v7 }
 0x264   : > { %v10078_v51 = vpop.f32.mrf.mxu1  ;;  %10371 = vmatprep.subr.bf16.mxu1 %v12580_v46  ;;  %v929_v19 = vld [vmem:[%s13895_s3 + $0x1448] sm:$0xff]  ;;  %v12420_v52 = vcombine.high %v801_v18, %v805_v39  ;;  %v12419_v24 = vcombine.low %v801_v18, %v805_v39 }
 0x265   : > { %10331 = vmatpush1.bf16.msra.mxu0 %v12451_v62  ;;  %v933_v21 = vld [vmem:[%s13895_s3 + $0x1468] sm:$0xff] }
 0x266   : > { %10332 = vmatprep.subr.bf16.mxu0 %v12444_v1  ;;  %v12548_v30 = vcombine.high %v929_v19, %v933_v21  ;;  %v793_v46 = vld [vmem:[%s13895_s3 + $0x1008] sm:$0xff]  ;;  %v12547_v38 = vcombine.low %v929_v19, %v933_v21 }
 0x267   : > { %10372 = vmatpush1.bf16.msra.mxu1 %v12579_v49  ;;  %v925_v54 = vld [vmem:[%s13895_s3 + $0x1428] sm:$0xff]  ;;  %v12412_v43 = vcombine.high %v793_v46, %v797_v32 }
 0x268   : > { %10373 = vmatprep.subr.bf16.mxu1 %v12572_v53  ;;  %v12540_v62 = vcombine.high %v921_v34, %v925_v54  ;;  %v913_v47 = vld [vmem:[%s13895_s3 + $0x13c8] sm:$0xff]  ;;  %v12411_v53 = vcombine.low %v793_v46, %v797_v32  ;;  %v12539_v56 = vcombine.low %v921_v34, %v925_v54 }
 0x269   : > { %10333 = vmatpush1.bf16.msra.mxu0 %v12443_v13  ;;  %v917_v49 = vld [vmem:[%s13895_s3 + $0x13e8] sm:$0xff] }
 0x26a   : > { %10334 = vmatprep.subr.bf16.mxu0 %v12436_v3  ;;  %v1041_v1 = vld [vmem:[%s13895_s3 + $0x17c8] sm:$0xff]  ;;  %v12532_v58 = vcombine.high %v913_v47, %v917_v49 }
 0x26b   : > { %10374 = vmatpush1.bf16.msra.mxu1 %v12571_v2  ;;  %v1045_v51 = vld [vmem:[%s13895_s3 + $0x17e8] sm:$0xff] }
 0x26c   : > { %10375 = vmatprep.subr.bf16.mxu1 %v12564_v16  ;;  %v12660_v59 = vcombine.high %v1041_v1, %v1045_v51  ;;  %v905_v63 = vld [vmem:[%s13895_s3 + $0x1388] sm:$0xff]  ;;  %v12531_v16 = vcombine.low %v913_v47, %v917_v49  ;;  %v12659_v5 = vcombine.low %v1041_v1, %v1045_v51 }
 0x26d   : > { %10335 = vmatpush1.bf16.msra.mxu0 %v12435_v60  ;;  %v909_v13 = vld [vmem:[%s13895_s3 + $0x13a8] sm:$0xff] }
 0x26e   : > { %10336 = vmatprep.subr.bf16.mxu0 %v12428_v28  ;;  %v1033_v2 = vld [vmem:[%s13895_s3 + $0x1788] sm:$0xff]  ;;  %v12524_v7 = vcombine.high %v905_v63, %v909_v13 }
 0x26f   : > { %10376 = vmatpush1.bf16.msra.mxu1 %v12563_v15  ;;  %v1037_v3 = vld [vmem:[%s13895_s3 + $0x17a8] sm:$0xff] }
 0x270   : > { %10377 = vmatprep.subr.bf16.mxu1 %v12556_v17  ;;  %v12652_v8 = vcombine.high %v1033_v2, %v1037_v3  ;;  %v897_v9 = vld [vmem:[%s13895_s3 + $0x1348] sm:$0xff]  ;;  %v12523_v17 = vcombine.low %v905_v63, %v909_v13  ;;  %v12651_v18 = vcombine.low %v1033_v2, %v1037_v3 }
 0x271   : > { %10337 = vmatpush1.bf16.msra.mxu0 %v12427_v25  ;;  %v901_v60 = vld [vmem:[%s13895_s3 + $0x1368] sm:$0xff] }
 0x272   : > { %10338 = vmatprep.subr.bf16.mxu0 %v12420_v52  ;;  %v1025_v15 = vld [vmem:[%s13895_s3 + $0x1748] sm:$0xff]  ;;  %v12516_v39 = vcombine.high %v897_v9, %v901_v60 }
 0x273   : > { %10378 = vmatpush1.bf16.msra.mxu1 %v12555_v27  ;;  %v1029_v28 = vld [vmem:[%s13895_s3 + $0x1768] sm:$0xff] }
 0x274   : > { %10379 = vmatprep.subr.bf16.mxu1 %v12548_v30  ;;  %v12644_v19 = vcombine.high %v1025_v15, %v1029_v28  ;;  %v889_v21 = vld [vmem:[%s13895_s3 + $0x1308] sm:$0xff]  ;;  %v12515_v30 = vcombine.low %v897_v9, %v901_v60  ;;  %v12643_v46 = vcombine.low %v1025_v15, %v1029_v28 }
 0x275   : > { %10339 = vmatpush1.bf16.msra.mxu0 %v12419_v24  ;;  %v893_v25 = vld [vmem:[%s13895_s3 + $0x1328] sm:$0xff] }
 0x276   : > { %10340 = vmatprep.subr.bf16.mxu0 %v12412_v43  ;;  %v1017_v27 = vld [vmem:[%s13895_s3 + $0x1708] sm:$0xff]  ;;  %v12508_v32 = vcombine.high %v889_v21, %v893_v25 }
 0x277   : > { %10380 = vmatpush1.bf16.msra.mxu1 %v12547_v38  ;;  %v1021_v52 = vld [vmem:[%s13895_s3 + $0x1728] sm:$0xff] }
 0x278   : > { %10381 = vmatprep.subr.bf16.mxu1 %v12540_v62  ;;  %v12636_v34 = vcombine.high %v1017_v27, %v1021_v52  ;;  %v881_v54 = vld [vmem:[%s13895_s3 + $0x12c8] sm:$0xff]  ;;  %v12507_v62 = vcombine.low %v889_v21, %v893_v25  ;;  %v12635_v47 = vcombine.low %v1017_v27, %v1021_v52 }
 0x279   : > { %10341 = vmatpush1.bf16.msra.mxu0 %v12411_v53  ;;  %v885_v24 = vld [vmem:[%s13895_s3 + $0x12e8] sm:$0xff] }
 0x27a   : > { %10342 = vmatprep.subr.bf16.mxu0 %v12532_v58  ;;  %v1009_v38 = vld [vmem:[%s13895_s3 + $0x16c8] sm:$0xff]  ;;  %v12500_v49 = vcombine.high %v881_v54, %v885_v24 }
 0x27b   : > { %10382 = vmatpush1.bf16.msra.mxu1 %v12539_v56  ;;  %v1013_v43 = vld [vmem:[%s13895_s3 + $0x16e8] sm:$0xff] }
 0x27c   : > { %10383 = vmatprep.subr.bf16.mxu1 %v12660_v59  ;;  %v12628_v1 = vcombine.high %v1009_v38, %v1013_v43  ;;  %v873_v51 = vld [vmem:[%s13895_s3 + $0x1288] sm:$0xff]  ;;  %v12499_v59 = vcombine.low %v881_v54, %v885_v24  ;;  %v12627_v63 = vcombine.low %v1009_v38, %v1013_v43 }
 0x27d   : > { %10343 = vmatpush2.bf16.msra.mxu0 %v12531_v16  ;;  %v877_v53 = vld [vmem:[%s13895_s3 + $0x12a8] sm:$0xff] }
 0x27e   : > { %10344 = vmatprep.subr.bf16.mxu0 %v12524_v7  ;;  %v1001_v56 = vld [vmem:[%s13895_s3 + $0x1688] sm:$0xff]  ;;  %v12492_v13 = vcombine.high %v873_v51, %v877_v53 }
 0x27f   : > { %10384 = vmatpush2.bf16.msra.mxu1 %v12659_v5  ;;  %v1005_v58 = vld [vmem:[%s13895_s3 + $0x16a8] sm:$0xff] }
 0x280   : > { %10385 = vmatprep.subr.bf16.mxu1 %v12652_v8  ;;  %v12620_v2 = vcombine.high %v1001_v56, %v1005_v58  ;;  %v865_v3 = vld [vmem:[%s13895_s3 + $0x1248] sm:$0xff]  ;;  %v12491_v8 = vcombine.low %v873_v51, %v877_v53  ;;  %v12619_v9 = vcombine.low %v1001_v56, %v1005_v58 }
 0x281   : > { %10345 = vmatpush2.bf16.msra.mxu0 %v12523_v17  ;;  %v869_v16 = vld [vmem:[%s13895_s3 + $0x1268] sm:$0xff] }
 0x282   : > { %10346 = vmatprep.subr.bf16.mxu0 %v12516_v39  ;;  %v993_v5 = vld [vmem:[%s13895_s3 + $0x1648] sm:$0xff]  ;;  %v12484_v60 = vcombine.high %v865_v3, %v869_v16 }
 0x283   : > { %10386 = vmatpush2.bf16.msra.mxu1 %v12651_v18  ;;  %v997_v7 = vld [vmem:[%s13895_s3 + $0x1668] sm:$0xff] }
 0x284   : > { %10387 = vmatprep.subr.bf16.mxu1 %v12644_v19  ;;  %v12612_v15 = vcombine.high %v993_v5, %v997_v7  ;;  %v857_v28 = vld [vmem:[%s13895_s3 + $0x1208] sm:$0xff]  ;;  %v12483_v19 = vcombine.low %v865_v3, %v869_v16  ;;  %v12611_v21 = vcombine.low %v993_v5, %v997_v7 }
 0x285   : > { %10347 = vmatpush2.bf16.msra.mxu0 %v12515_v30  ;;  %v861_v17 = vld [vmem:[%s13895_s3 + $0x1228] sm:$0xff] }
 0x286   : > { %10348 = vmatprep.subr.bf16.mxu0 %v12508_v32  ;;  %v985_v18 = vld [vmem:[%s13895_s3 + $0x1608] sm:$0xff]  ;;  %v12476_v25 = vcombine.high %v857_v28, %v861_v17 }
 0x287   : > { %10388 = vmatpush2.bf16.msra.mxu1 %v12643_v46  ;;  %v989_v39 = vld [vmem:[%s13895_s3 + $0x1628] sm:$0xff] }
 0x288   : > { %10389 = vmatprep.subr.bf16.mxu1 %v12636_v34  ;;  %v12604_v27 = vcombine.high %v985_v18, %v989_v39  ;;  %v1105_v52 = vld [vmem:[%s13895_s3 + $0x19c8] sm:$0xff]  ;;  %v12475_v34 = vcombine.low %v857_v28, %v861_v17  ;;  %v12603_v54 = vcombine.low %v985_v18, %v989_v39 }
 0x289   : > { %10349 = vmatpush2.bf16.msra.mxu0 %v12507_v62  ;;  %v1109_v30 = vld [vmem:[%s13895_s3 + $0x19e8] sm:$0xff] }
 0x28a   : > { %10350 = vmatprep.subr.bf16.mxu0 %v12500_v49  ;;  %v1233_v46 = vld [vmem:[%s13895_s3 + $0x1dc8] sm:$0xff]  ;;  %v12724_v24 = vcombine.high %v1105_v52, %v1109_v30 }
 0x28b   : > { %10390 = vmatpush2.bf16.msra.mxu1 %v12635_v47  ;;  %v1237_v32 = vld [vmem:[%s13895_s3 + $0x1de8] sm:$0xff] }
 0x28c   : > { %10391 = vmatprep.subr.bf16.mxu1 %v12628_v1  ;;  %v12852_v38 = vcombine.high %v1233_v46, %v1237_v32  ;;  %v1097_v43 = vld [vmem:[%s13895_s3 + $0x1988] sm:$0xff]  ;;  %v12723_v1 = vcombine.low %v1105_v52, %v1109_v30  ;;  %v12851_v51 = vcombine.low %v1233_v46, %v1237_v32 }
 0x28d   : > { %10351 = vmatpush2.bf16.msra.mxu0 %v12499_v59  ;;  %v1101_v62 = vld [vmem:[%s13895_s3 + $0x19a8] sm:$0xff] }
 0x28e   : > { %10352 = vmatprep.subr.bf16.mxu0 %v12492_v13  ;;  %v1225_v47 = vld [vmem:[%s13895_s3 + $0x1d88] sm:$0xff]  ;;  %v12716_v53 = vcombine.high %v1097_v43, %v1101_v62  ;;  %v12715_v5 = vcombine.low %v1097_v43, %v1101_v62 }
 0x28f   : > { %10392 = vmatpush2.bf16.msra.mxu1 %v12627_v63  ;;  %v1229_v49 = vld [vmem:[%s13895_s3 + $0x1da8] sm:$0xff] }
 0x290   : > { %10393 = vmatprep.subr.bf16.mxu1 %v12620_v2  ;;  %v12844_v56 = vcombine.high %v1225_v47, %v1229_v49  ;;  %v1089_v58 = vld [vmem:[%s13895_s3 + $0x1948] sm:$0xff] }
 0x291   : > { %10353 = vmatpush2.bf16.msra.mxu0 %v12491_v8  ;;  %v1093_v59 = vld [vmem:[%s13895_s3 + $0x1968] sm:$0xff]  ;;  %v12843_v8 = vcombine.low %v1225_v47, %v1229_v49 }
 0x292   : > { %10354 = vmatprep.subr.bf16.mxu0 %v12484_v60  ;;  %v1217_v13 = vld [vmem:[%s13895_s3 + $0x1d48] sm:$0xff] }
 0x293   : > { %10394 = vmatpush2.bf16.msra.mxu1 %v12619_v9  ;;  %v1221_v2 = vld [vmem:[%s13895_s3 + $0x1d68] sm:$0xff]  ;;  %v12708_v9 = vcombine.high %v1089_v58, %v1093_v59 }
 0x294   : > { %10395 = vmatprep.subr.bf16.mxu1 %v12612_v15  ;;  %v1081_v17 = vld [vmem:[%s13895_s3 + $0x1908] sm:$0xff]  ;;  %v12835_v30 = vcombine.low %v1217_v13, %v1221_v2 }
 0x295   : > { %10355 = vmatpush2.bf16.msra.mxu0 %v12483_v19  ;;  %v1085_v18 = vld [vmem:[%s13895_s3 + $0x1928] sm:$0xff] }
 0x296   : > { %10356 = vmatprep.subr.bf16.mxu0 %v12476_v25  ;;  %v1209_v19 = vld [vmem:[%s13895_s3 + $0x1d08] sm:$0xff]  ;;  %v12700_v46 = vcombine.high %v1081_v17, %v1085_v18  ;;  %v12699_v47 = vcombine.low %v1081_v17, %v1085_v18 }
 0x297   : > { %10396 = vmatpush2.bf16.msra.mxu1 %v12611_v21  ;;  %v1213_v21 = vld [vmem:[%s13895_s3 + $0x1d28] sm:$0xff] }
 0x298   : > { %10397 = vmatprep.subr.bf16.mxu1 %v12604_v27  ;;  %v1201_v43 = vld [vmem:[%s13895_s3 + $0x1cc8] sm:$0xff]  ;;  %v12827_v49 = vcombine.low %v1209_v19, %v1213_v21 }
 0x299   : > { %10357 = vmatpush2.bf16.msra.mxu0 %v12475_v34  ;;  %v1205_v62 = vld [vmem:[%s13895_s3 + $0x1ce8] sm:$0xff] }
 0x29a   : > { %10408 = vmatprep.subr.bf16.mxu0 %v12724_v24  ;;  %v1073_v24 = vld [vmem:[%s13895_s3 + $0x18c8] sm:$0xff] }
 0x29b   : > { %10398 = vmatpush2.bf16.msra.mxu1 %v12603_v54  ;;  %v12828_v54 = vcombine.high %v1209_v19, %v1213_v21  ;;  %v1049_v17 = vld [vmem:[%s13895_s3 + $0x1808] sm:$0xff] }
 0x29c   : > { %10449 = vmatprep.subr.bf16.mxu1 %v12852_v38  ;;  %v10114_v63 = vpop.f32.mrf.mxu0  ;;  %10359 = vmatmul.mubr.bf16.vlgmr.msra.gmra.mxu0 %v14206_v22  ;;  %v1077_v38 = vld [vmem:[%s13895_s3 + $0x18e8] sm:$0xff] }
 0x29d   : > { %v10115_v3 = vadd.f32 %v10114_v63, %v14646_v29  ;;  %10409 = vmatpush1.bf16.msra.mxu0 %v12723_v1  ;;  %v12836_v29 = vcombine.high %v1217_v13, %v1221_v2  ;;  %10440 = vmatprep.mubr.bf16.mxu0 %v14213_v33  ;;  %v12692_v1 = vcombine.high %v1073_v24, %v1077_v38  ;;  %v1053_v18 = vld [vmem:[%s13895_s3 + $0x1828] sm:$0xff] }
 0x29e   : > { %v10155_v16 = vpop.f32.mrf.mxu1  ;;  %10400 = vmatmul.mubr.bf16.vlgmr.msra.gmra.mxu1 %v14217_v35  ;;  %v10116_v7 = vpop.f32.mrf.mxu0  ;;  %10410 = vmatprep.subr.bf16.mxu0 %v12716_v53  ;;  %v1065_v53 = vld [vmem:[%s13895_s3 + $0x1888] sm:$0xff]  ;;  %v12691_v63 = vcombine.low %v1073_v24, %v1077_v38  ;;  %v12819_v13 = vcombine.low %v1201_v43, %v1205_v62  ;;  %v12667_v24 = vcombine.low %v1049_v17, %v1053_v18 }
 0x29f   : > { %10450 = vmatpush1.bf16.msra.mxu1 %v12851_v51  ;;  %v14720_v60 = vadd.f32 %v10155_v16, %v10115_v3  ;;  %v10117_v15 = vadd.f32 %v10116_v7, %v14655_v42  ;;  %10481 = vmatprep.mubr.bf16.mxu1 %v14226_v44  ;;  %v12707_v42 = vcombine.low %v1089_v58, %v1093_v59  ;;  %v1193_v58 = vld [vmem:[%s13895_s3 + $0x1c88] sm:$0xff] }
 0x2a0   : > { %v10157_v28 = vpop.f32.mrf.mxu1  ;;  %10451 = vmatprep.subr.bf16.mxu1 %v12844_v56  ;;  %v10118_v39 = vpop.f32.mrf.mxu0  ;;  %v12820_v51 = vcombine.high %v1201_v43, %v1205_v62  ;;  %v1069_v56 = vld [vmem:[%s13895_s3 + $0x18a8] sm:$0xff] }
 0x2a1   : > { %v14729_v25 = vadd.f32 %v10157_v28, %v10117_v15  ;;  %10411 = vmatpush1.bf16.msra.mxu0 %v12715_v5  ;;  %v1197_v59 = vld [vmem:[%s13895_s3 + $0x1ca8] sm:$0xff]  ;;  %v12684_v2 = vcombine.high %v1065_v53, %v1069_v56 }
 0x2a2   : > { %v10159_v27 = vpop.f32.mrf.mxu1  ;;  %v10119_v52 = vpop.f32.mrf.mxu0  ;;  %10412 = vmatprep.subr.bf16.mxu0 %v12708_v9  ;;  %v12812_v3 = vcombine.high %v1193_v58, %v1197_v59  ;;  %v1057_v16 = vld [vmem:[%s13895_s3 + $0x1848] sm:$0xff]  ;;  %v12683_v9 = vcombine.low %v1065_v53, %v1069_v56  ;;  %v12811_v15 = vcombine.low %v1193_v58, %v1197_v59 }
 0x2a3   : > { %10452 = vmatpush1.bf16.msra.mxu1 %v12843_v8  ;;  %v11646_v32 = vcombine.low %v14720_v60, %v14729_v25  ;;  %v1061_v5 = vld [vmem:[%s13895_s3 + $0x1868] sm:$0xff]  ;;  %v1070_v60 = vld [vmem:[%s13895_s3 + $0x18b0] sm:$0xff] }
 0x2a4   : > { %v10160_v34 = vpop.f32.mrf.mxu1  ;;  %10453 = vmatprep.subr.bf16.mxu1 %v12836_v29  ;;  %v1185_v7 = vld [vmem:[%s13895_s3 + $0x1c48] sm:$0xff]  ;;  %v12676_v28 = vcombine.high %v1057_v16, %v1061_v5  ;;  %v12675_v21 = vcombine.low %v1057_v16, %v1061_v5  ;;  %v1194_v25 = vld [vmem:[%s13895_s3 + $0x1c90] sm:$0xff] }
 0x2a5   : > { %10413 = vmatpush1.bf16.msra.mxu0 %v12707_v42  ;;  %v1189_v8 = vld [vmem:[%s13895_s3 + $0x1c68] sm:$0xff]  ;;  %v12668_v42 = vcombine.high %v1049_v17, %v1053_v18 }
 0x2a6   : > { %10414 = vmatprep.subr.bf16.mxu0 %v12700_v46  ;;  %v12804_v29 = vcombine.high %v1185_v7, %v1189_v8  ;;  %v1177_v39 = vld [vmem:[%s13895_s3 + $0x1c08] sm:$0xff]  ;;  %v12803_v27 = vcombine.low %v1185_v7, %v1189_v8 }
 0x2a7   : > { %10454 = vmatpush1.bf16.msra.mxu1 %v12835_v30  ;;  %v1181_v19 = vld [vmem:[%s13895_s3 + $0x1c28] sm:$0xff] }
 0x2a8   : > { %10455 = vmatprep.subr.bf16.mxu1 %v12828_v54  ;;  %v12796_v52 = vcombine.high %v1177_v39, %v1181_v19  ;;  %v1169_v30 = vld [vmem:[%s13895_s3 + $0x1bc8] sm:$0xff]  ;;  %v12795_v38 = vcombine.low %v1177_v39, %v1181_v19 }
 0x2a9   : > { %10415 = vmatpush1.bf16.msra.mxu0 %v12699_v47  ;;  %v1173_v46 = vld [vmem:[%s13895_s3 + $0x1be8] sm:$0xff] }
 0x2aa   : > { %10416 = vmatprep.subr.bf16.mxu0 %v12692_v1  ;;  %v1297_v34 = vld [vmem:[%s13895_s3 + $0x1fc8] sm:$0xff]  ;;  %v12788_v43 = vcombine.high %v1169_v30, %v1173_v46  ;;  %v12787_v53 = vcombine.low %v1169_v30, %v1173_v46 }
 0x2ab   : > { %10456 = vmatpush1.bf16.msra.mxu1 %v12827_v49  ;;  %v1301_v54 = vld [vmem:[%s13895_s3 + $0x1fe8] sm:$0xff] }
 0x2ac   : > { %10457 = vmatprep.subr.bf16.mxu1 %v12820_v51  ;;  %v12916_v62 = vcombine.high %v1297_v34, %v1301_v54  ;;  %v1161_v47 = vld [vmem:[%s13895_s3 + $0x1b88] sm:$0xff]  ;;  %v12915_v56 = vcombine.low %v1297_v34, %v1301_v54 }
 0x2ad   : > { %10417 = vmatpush1.bf16.msra.mxu0 %v12691_v63  ;;  %v1165_v49 = vld [vmem:[%s13895_s3 + $0x1ba8] sm:$0xff] }
 0x2ae   : > { %10418 = vmatprep.subr.bf16.mxu0 %v12684_v2  ;;  %v1289_v1 = vld [vmem:[%s13895_s3 + $0x1f88] sm:$0xff]  ;;  %v12780_v58 = vcombine.high %v1161_v47, %v1165_v49  ;;  %v12779_v16 = vcombine.low %v1161_v47, %v1165_v49 }
 0x2af   : > { %10458 = vmatpush1.bf16.msra.mxu1 %v12819_v13  ;;  %v1293_v51 = vld [vmem:[%s13895_s3 + $0x1fa8] sm:$0xff] }
 0x2b0   : > { %10459 = vmatprep.subr.bf16.mxu1 %v12812_v3  ;;  %v12908_v59 = vcombine.high %v1289_v1, %v1293_v51  ;;  %v1153_v63 = vld [vmem:[%s13895_s3 + $0x1b48] sm:$0xff]  ;;  %v12907_v5 = vcombine.low %v1289_v1, %v1293_v51 }
 0x2b1   : > { %10419 = vmatpush1.bf16.msra.mxu0 %v12683_v9  ;;  %v1157_v13 = vld [vmem:[%s13895_s3 + $0x1b68] sm:$0xff] }
 0x2b2   : > { %10420 = vmatprep.subr.bf16.mxu0 %v12676_v28  ;;  %v1281_v2 = vld [vmem:[%s13895_s3 + $0x1f48] sm:$0xff]  ;;  %v12772_v7 = vcombine.high %v1153_v63, %v1157_v13  ;;  %v12771_v17 = vcombine.low %v1153_v63, %v1157_v13 }
 0x2b3   : > { %10460 = vmatpush1.bf16.msra.mxu1 %v12811_v15  ;;  %v1285_v3 = vld [vmem:[%s13895_s3 + $0x1f68] sm:$0xff] }
 0x2b4   : > { %10461 = vmatprep.subr.bf16.mxu1 %v12804_v29  ;;  %v12900_v8 = vcombine.high %v1281_v2, %v1285_v3  ;;  %v1145_v9 = vld [vmem:[%s13895_s3 + $0x1b08] sm:$0xff]  ;;  %v12899_v18 = vcombine.low %v1281_v2, %v1285_v3 }
 0x2b5   : > { %10421 = vmatpush1.bf16.msra.mxu0 %v12675_v21  ;;  %v1149_v15 = vld [vmem:[%s13895_s3 + $0x1b28] sm:$0xff] }
 0x2b6   : > { %10422 = vmatprep.subr.bf16.mxu0 %v12668_v42  ;;  %v1273_v28 = vld [vmem:[%s13895_s3 + $0x1f08] sm:$0xff]  ;;  %v12764_v39 = vcombine.high %v1145_v9, %v1149_v15  ;;  %v12763_v30 = vcombine.low %v1145_v9, %v1149_v15 }
 0x2b7   : > { %10462 = vmatpush1.bf16.msra.mxu1 %v12803_v27  ;;  %v1277_v29 = vld [vmem:[%s13895_s3 + $0x1f28] sm:$0xff] }
 0x2b8   : > { %10463 = vmatprep.subr.bf16.mxu1 %v12796_v52  ;;  %v12892_v19 = vcombine.high %v1273_v28, %v1277_v29  ;;  %v1137_v21 = vld [vmem:[%s13895_s3 + $0x1ac8] sm:$0xff]  ;;  %v12891_v46 = vcombine.low %v1273_v28, %v1277_v29 }
 0x2b9   : > { %10423 = vmatpush1.bf16.msra.mxu0 %v12667_v24  ;;  %v1141_v27 = vld [vmem:[%s13895_s3 + $0x1ae8] sm:$0xff] }
 0x2ba   : > { %10424 = vmatprep.subr.bf16.mxu0 %v12788_v43  ;;  %v1265_v42 = vld [vmem:[%s13895_s3 + $0x1ec8] sm:$0xff]  ;;  %v12756_v34 = vcombine.high %v1137_v21, %v1141_v27  ;;  %v12755_v47 = vcombine.low %v1137_v21, %v1141_v27 }
 0x2bb   : > { %10464 = vmatpush1.bf16.msra.mxu1 %v12795_v38  ;;  %v1269_v52 = vld [vmem:[%s13895_s3 + $0x1ee8] sm:$0xff] }
 0x2bc   : > { %10465 = vmatprep.subr.bf16.mxu1 %v12916_v62  ;;  %v12884_v54 = vcombine.high %v1265_v42, %v1269_v52  ;;  %v1129_v24 = vld [vmem:[%s13895_s3 + $0x1a88] sm:$0xff]  ;;  %v12883_v49 = vcombine.low %v1265_v42, %v1269_v52 }
 0x2bd   : > { %10425 = vmatpush2.bf16.msra.mxu0 %v12787_v53  ;;  %v1133_v38 = vld [vmem:[%s13895_s3 + $0x1aa8] sm:$0xff] }
 0x2be   : > { %10426 = vmatprep.subr.bf16.mxu0 %v12780_v58  ;;  %v1257_v43 = vld [vmem:[%s13895_s3 + $0x1e88] sm:$0xff]  ;;  %v12748_v1 = vcombine.high %v1129_v24, %v1133_v38  ;;  %v12747_v63 = vcombine.low %v1129_v24, %v1133_v38 }
 0x2bf   : > { %10466 = vmatpush2.bf16.msra.mxu1 %v12915_v56  ;;  %v1261_v62 = vld [vmem:[%s13895_s3 + $0x1ea8] sm:$0xff] }
 0x2c0   : > { %10467 = vmatprep.subr.bf16.mxu1 %v12908_v59  ;;  %v12876_v51 = vcombine.high %v1257_v43, %v1261_v62  ;;  %v1121_v53 = vld [vmem:[%s13895_s3 + $0x1a48] sm:$0xff]  ;;  %v12875_v13 = vcombine.low %v1257_v43, %v1261_v62 }
 0x2c1   : > { %10427 = vmatpush2.bf16.msra.mxu0 %v12779_v16  ;;  %v1125_v56 = vld [vmem:[%s13895_s3 + $0x1a68] sm:$0xff] }
 0x2c2   : > { %10428 = vmatprep.subr.bf16.mxu0 %v12772_v7  ;;  %v1249_v58 = vld [vmem:[%s13895_s3 + $0x1e48] sm:$0xff]  ;;  %v12740_v2 = vcombine.high %v1121_v53, %v1125_v56  ;;  %v12739_v9 = vcombine.low %v1121_v53, %v1125_v56 }
 0x2c3   : > { %10468 = vmatpush2.bf16.msra.mxu1 %v12907_v5  ;;  %v1253_v59 = vld [vmem:[%s13895_s3 + $0x1e68] sm:$0xff] }
 0x2c4   : > { %10469 = vmatprep.subr.bf16.mxu1 %v12900_v8  ;;  %v12868_v3 = vcombine.high %v1249_v58, %v1253_v59  ;;  %v1113_v16 = vld [vmem:[%s13895_s3 + $0x1a08] sm:$0xff]  ;;  %v12867_v15 = vcombine.low %v1249_v58, %v1253_v59 }
 0x2c5   : > { %10429 = vmatpush2.bf16.msra.mxu0 %v12771_v17  ;;  %v1117_v5 = vld [vmem:[%s13895_s3 + $0x1a28] sm:$0xff] }
 0x2c6   : > { %10430 = vmatprep.subr.bf16.mxu0 %v12764_v39  ;;  %v1241_v7 = vld [vmem:[%s13895_s3 + $0x1e08] sm:$0xff]  ;;  %v12732_v28 = vcombine.high %v1113_v16, %v1117_v5  ;;  %v12731_v21 = vcombine.low %v1113_v16, %v1117_v5 }
 0x2c7   : > { %10470 = vmatpush2.bf16.msra.mxu1 %v12899_v18  ;;  %v1245_v8 = vld [vmem:[%s13895_s3 + $0x1e28] sm:$0xff] }
 0x2c8   : > { %10471 = vmatprep.subr.bf16.mxu1 %v12892_v19  ;;  %v12860_v29 = vcombine.high %v1241_v7, %v1245_v8  ;;  %v1361_v17 = vld [vmem:[%s13895_s3 + $0x21c8] sm:$0xff]  ;;  %v12859_v27 = vcombine.low %v1241_v7, %v1245_v8 }
 0x2c9   : > { %10431 = vmatpush2.bf16.msra.mxu0 %v12763_v30  ;;  %v1365_v18 = vld [vmem:[%s13895_s3 + $0x21e8] sm:$0xff] }
 0x2ca   : > { %10432 = vmatprep.subr.bf16.mxu0 %v12756_v34  ;;  %v1489_v39 = vld [vmem:[%s13895_s3 + $0x25c8] sm:$0xff]  ;;  %v12980_v42 = vcombine.high %v1361_v17, %v1365_v18  ;;  %v12979_v24 = vcombine.low %v1361_v17, %v1365_v18 }
 0x2cb   : > { %10472 = vmatpush2.bf16.msra.mxu1 %v12891_v46  ;;  %v1493_v19 = vld [vmem:[%s13895_s3 + $0x25e8] sm:$0xff] }
 0x2cc   : > { %10473 = vmatprep.subr.bf16.mxu1 %v12884_v54  ;;  %v13108_v52 = vcombine.high %v1489_v39, %v1493_v19  ;;  %v1353_v30 = vld [vmem:[%s13895_s3 + $0x2188] sm:$0xff]  ;;  %v13107_v38 = vcombine.low %v1489_v39, %v1493_v19 }
 0x2cd   : > { %10433 = vmatpush2.bf16.msra.mxu0 %v12755_v47  ;;  %v1357_v46 = vld [vmem:[%s13895_s3 + $0x21a8] sm:$0xff] }
 0x2ce   : > { %10434 = vmatprep.subr.bf16.mxu0 %v12748_v1  ;;  %v1481_v34 = vld [vmem:[%s13895_s3 + $0x2588] sm:$0xff]  ;;  %v12972_v43 = vcombine.high %v1353_v30, %v1357_v46  ;;  %v12971_v58 = vcombine.low %v1353_v30, %v1357_v46 }
 0x2cf   : > { %10474 = vmatpush2.bf16.msra.mxu1 %v12883_v49  ;;  %v1485_v54 = vld [vmem:[%s13895_s3 + $0x25a8] sm:$0xff] }
 0x2d0   : > { %10475 = vmatprep.subr.bf16.mxu1 %v12876_v51  ;;  %v13100_v62 = vcombine.high %v1481_v34, %v1485_v54  ;;  %v1345_v47 = vld [vmem:[%s13895_s3 + $0x2148] sm:$0xff] }
 0x2d1   : > { %10435 = vmatpush2.bf16.msra.mxu0 %v12747_v63  ;;  %v1349_v49 = vld [vmem:[%s13895_s3 + $0x2168] sm:$0xff] }
 0x2d2   : > { %10436 = vmatprep.subr.bf16.mxu0 %v12740_v2  ;;  %v1473_v51 = vld [vmem:[%s13895_s3 + $0x2548] sm:$0xff]  ;;  %v12964_v2 = vcombine.high %v1345_v47, %v1349_v49  ;;  %v12963_v17 = vcombine.low %v1345_v47, %v1349_v49 }
 0x2d3   : > { %10476 = vmatpush2.bf16.msra.mxu1 %v12875_v13  ;;  %v1477_v53 = vld [vmem:[%s13895_s3 + $0x2568] sm:$0xff]  ;;  %v13099_v13 = vcombine.low %v1481_v34, %v1485_v54 }
 0x2d4   : > { %10477 = vmatprep.subr.bf16.mxu1 %v12868_v3  ;;  %v13092_v16 = vcombine.high %v1473_v51, %v1477_v53  ;;  %v1337_v5 = vld [vmem:[%s13895_s3 + $0x2108] sm:$0xff]  ;;  %v13091_v39 = vcombine.low %v1473_v51, %v1477_v53 }
 0x2d5   : > { %10437 = vmatpush2.bf16.msra.mxu0 %v12739_v9  ;;  %v1341_v7 = vld [vmem:[%s13895_s3 + $0x2128] sm:$0xff] }
 0x2d6   : > { %10438 = vmatprep.subr.bf16.mxu0 %v12732_v28  ;;  %v1469_v28 = vld [vmem:[%s13895_s3 + $0x2528] sm:$0xff]  ;;  %v12956_v19 = vcombine.high %v1337_v5, %v1341_v7  ;;  %v12955_v34 = vcombine.low %v1337_v5, %v1341_v7 }
 0x2d7   : > { %10478 = vmatpush2.bf16.msra.mxu1 %v12867_v15  ;;  %v1465_v15 = vld [vmem:[%s13895_s3 + $0x2508] sm:$0xff] }
 0x2d8   : > { %10479 = vmatprep.subr.bf16.mxu1 %v12860_v29  ;;  %v1457_v30 = vld [vmem:[%s13895_s3 + $0x24c8] sm:$0xff]  ;;  %v13083_v54 = vcombine.low %v1465_v15, %v1469_v28 }
 0x2d9   : > { %10439 = vmatpush2.bf16.msra.mxu0 %v12731_v21  ;;  %v1461_v46 = vld [vmem:[%s13895_s3 + $0x24e8] sm:$0xff] }
 0x2da   : > { %10490 = vmatprep.subr.bf16.mxu0 %v12980_v42  ;;  %v1329_v42 = vld [vmem:[%s13895_s3 + $0x20c8] sm:$0xff]  ;;  %v13075_v51 = vcombine.low %v1457_v30, %v1461_v46 }
 0x2db   : > { %10480 = vmatpush2.bf16.msra.mxu1 %v12859_v27  ;;  %v13084_v27 = vcombine.high %v1465_v15, %v1469_v28  ;;  %v1449_v47 = vld [vmem:[%s13895_s3 + $0x2488] sm:$0xff] }
 0x2dc   : > { %10531 = vmatprep.subr.bf16.mxu1 %v13108_v52  ;;  %v10196_v1 = vpop.f32.mrf.mxu0  ;;  %10441 = vmatmul.mubr.bf16.vlgmr.msra.gmra.mxu0 %v14298_v26  ;;  %v1333_v52 = vld [vmem:[%s13895_s3 + $0x20e8] sm:$0xff] }
 0x2dd   : > { %10491 = vmatpush1.bf16.msra.mxu0 %v12979_v24  ;;  %10522 = vmatprep.mubr.bf16.mxu0 %v14305_v20  ;;  %v12948_v24 = vcombine.high %v1329_v42, %v1333_v52  ;;  %v1453_v49 = vld [vmem:[%s13895_s3 + $0x24a8] sm:$0xff] }
 0x2de   : > { %v10237_v56 = vpop.f32.mrf.mxu1  ;;  %10482 = vmatmul.mubr.bf16.vlgmr.msra.gmra.mxu1 %v14309_v11  ;;  %v10198_v63 = vpop.f32.mrf.mxu0  ;;  %10492 = vmatprep.subr.bf16.mxu0 %v12972_v43  ;;  %v1321_v43 = vld [vmem:[%s13895_s3 + $0x2088] sm:$0xff] }
 0x2df   : > { %v14795_v59 = vadd.f32 %v10237_v56, %v10196_v1  ;;  %10532 = vmatpush1.bf16.msra.mxu1 %v13107_v38  ;;  %10563 = vmatprep.mubr.bf16.mxu1 %v14318_v36  ;;  %v13076_v38 = vcombine.high %v1457_v30, %v1461_v46  ;;  %v12947_v1 = vcombine.low %v1329_v42, %v1333_v52  ;;  %v1309_v15 = vld [vmem:[%s13895_s3 + $0x2028] sm:$0xff] }
 0x2e0   : > { %v10239_v3 = vpop.f32.mrf.mxu1  ;;  %10533 = vmatprep.subr.bf16.mxu1 %v13100_v62  ;;  %v10200_v9 = vpop.f32.mrf.mxu0  ;;  %v1325_v62 = vld [vmem:[%s13895_s3 + $0x20a8] sm:$0xff]  ;;  %v13068_v56 = vcombine.high %v1449_v47, %v1453_v49 }
 0x2e1   : > { %v14800_v8 = vadd.f32 %v10239_v3, %v10198_v63  ;;  %10493 = vmatpush1.bf16.msra.mxu0 %v12971_v58  ;;  %v12940_v53 = vcombine.high %v1321_v43, %v1325_v62  ;;  %v1313_v58 = vld [vmem:[%s13895_s3 + $0x2048] sm:$0xff]  ;;  %v12939_v3 = vcombine.low %v1321_v43, %v1325_v62 }
 0x2e2   : > { %v10241_v29 = vpop.f32.mrf.mxu1  ;;  %v10201_v18 = vpop.f32.mrf.mxu0  ;;  %10494 = vmatprep.subr.bf16.mxu0 %v12964_v2  ;;  %v1317_v63 = vld [vmem:[%s13895_s3 + $0x2068] sm:$0xff] }
 0x2e3   : > { %10534 = vmatpush1.bf16.msra.mxu1 %v13099_v13  ;;  %v1441_v13 = vld [vmem:[%s13895_s3 + $0x2448] sm:$0xff]  ;;  %v12932_v5 = vcombine.high %v1313_v58, %v1317_v63 }
 0x2e4   : > { %v10242_v21 = vpop.f32.mrf.mxu1  ;;  %10535 = vmatprep.subr.bf16.mxu1 %v13092_v16  ;;  %v1445_v2 = vld [vmem:[%s13895_s3 + $0x2468] sm:$0xff]  ;;  %v13067_v16 = vcombine.low %v1449_v47, %v1453_v49 }
 0x2e5   : > { %10495 = vmatpush1.bf16.msra.mxu0 %v12963_v17  ;;  %v13060_v7 = vcombine.high %v1441_v13, %v1445_v2  ;;  %v1305_v9 = vld [vmem:[%s13895_s3 + $0x2008] sm:$0xff]  ;;  %v12931_v17 = vcombine.low %v1313_v58, %v1317_v63  ;;  %v13059_v18 = vcombine.low %v1441_v13, %v1445_v2 }
 0x2e6   : > { %10496 = vmatprep.subr.bf16.mxu0 %v12956_v19  ;;  %v1433_v28 = vld [vmem:[%s13895_s3 + $0x2408] sm:$0xff]  ;;  %v12923_v30 = vcombine.low %v1305_v9, %v1309_v15 }
 0x2e7   : > { %10536 = vmatpush1.bf16.msra.mxu1 %v13091_v39  ;;  %v1437_v29 = vld [vmem:[%s13895_s3 + $0x2428] sm:$0xff]  ;;  %v12924_v39 = vcombine.high %v1305_v9, %v1309_v15 }
 0x2e8   : > { %10537 = vmatprep.subr.bf16.mxu1 %v13084_v27  ;;  %v13052_v19 = vcombine.high %v1433_v28, %v1437_v29  ;;  %v1425_v21 = vld [vmem:[%s13895_s3 + $0x23c8] sm:$0xff]  ;;  %v13051_v46 = vcombine.low %v1433_v28, %v1437_v29 }
 0x2e9   : > { %10497 = vmatpush1.bf16.msra.mxu0 %v12955_v34  ;;  %v1429_v27 = vld [vmem:[%s13895_s3 + $0x23e8] sm:$0xff] }
 0x2ea   : > { %10498 = vmatprep.subr.bf16.mxu0 %v12948_v24  ;;  %v1553_v42 = vld [vmem:[%s13895_s3 + $0x27c8] sm:$0xff]  ;;  %v13044_v34 = vcombine.high %v1425_v21, %v1429_v27  ;;  %v13043_v47 = vcombine.low %v1425_v21, %v1429_v27 }
 0x2eb   : > { %10538 = vmatpush1.bf16.msra.mxu1 %v13083_v54  ;;  %v1557_v52 = vld [vmem:[%s13895_s3 + $0x27e8] sm:$0xff] }
 0x2ec   : > { %10539 = vmatprep.subr.bf16.mxu1 %v13076_v38  ;;  %v13172_v54 = vcombine.high %v1553_v42, %v1557_v52  ;;  %v1417_v24 = vld [vmem:[%s13895_s3 + $0x2388] sm:$0xff]  ;;  %v13171_v49 = vcombine.low %v1553_v42, %v1557_v52 }
 0x2ed   : > { %10499 = vmatpush1.bf16.msra.mxu0 %v12947_v1  ;;  %v1421_v38 = vld [vmem:[%s13895_s3 + $0x23a8] sm:$0xff] }
 0x2ee   : > { %10500 = vmatprep.subr.bf16.mxu0 %v12940_v53  ;;  %v1545_v43 = vld [vmem:[%s13895_s3 + $0x2788] sm:$0xff]  ;;  %v13036_v1 = vcombine.high %v1417_v24, %v1421_v38  ;;  %v13035_v13 = vcombine.low %v1417_v24, %v1421_v38 }
 0x2ef   : > { %10540 = vmatpush1.bf16.msra.mxu1 %v13075_v51  ;;  %v1549_v62 = vld [vmem:[%s13895_s3 + $0x27a8] sm:$0xff] }
 0x2f0   : > { %10541 = vmatprep.subr.bf16.mxu1 %v13068_v56  ;;  %v13164_v51 = vcombine.high %v1545_v43, %v1549_v62  ;;  %v1409_v53 = vld [vmem:[%s13895_s3 + $0x2348] sm:$0xff]  ;;  %v13163_v2 = vcombine.low %v1545_v43, %v1549_v62 }
 0x2f1   : > { %10501 = vmatpush1.bf16.msra.mxu0 %v12939_v3  ;;  %v1413_v56 = vld [vmem:[%s13895_s3 + $0x2368] sm:$0xff] }
 0x2f2   : > { %10502 = vmatprep.subr.bf16.mxu0 %v12932_v5  ;;  %v1537_v58 = vld [vmem:[%s13895_s3 + $0x2748] sm:$0xff]  ;;  %v13028_v3 = vcombine.high %v1409_v53, %v1413_v56  ;;  %v13027_v28 = vcombine.low %v1409_v53, %v1413_v56 }
 0x2f3   : > { %10542 = vmatpush1.bf16.msra.mxu1 %v13067_v16  ;;  %v1541_v63 = vld [vmem:[%s13895_s3 + $0x2768] sm:$0xff] }
 0x2f4   : > { %10543 = vmatprep.subr.bf16.mxu1 %v13060_v7  ;;  %v13156_v16 = vcombine.high %v1537_v58, %v1541_v63  ;;  %v1401_v5 = vld [vmem:[%s13895_s3 + $0x2308] sm:$0xff]  ;;  %v13155_v29 = vcombine.low %v1537_v58, %v1541_v63 }
 0x2f5   : > { %10503 = vmatpush1.bf16.msra.mxu0 %v12931_v17  ;;  %v1405_v7 = vld [vmem:[%s13895_s3 + $0x2328] sm:$0xff] }
 0x2f6   : > { %10504 = vmatprep.subr.bf16.mxu0 %v12924_v39  ;;  %v1529_v9 = vld [vmem:[%s13895_s3 + $0x2708] sm:$0xff]  ;;  %v13020_v17 = vcombine.high %v1401_v5, %v1405_v7  ;;  %v13019_v42 = vcombine.low %v1401_v5, %v1405_v7 }
 0x2f7   : > { %10544 = vmatpush1.bf16.msra.mxu1 %v13059_v18  ;;  %v1533_v15 = vld [vmem:[%s13895_s3 + $0x2728] sm:$0xff] }
 0x2f8   : > { %10545 = vmatprep.subr.bf16.mxu1 %v13052_v19  ;;  %v13148_v18 = vcombine.high %v1529_v9, %v1533_v15  ;;  %v1393_v39 = vld [vmem:[%s13895_s3 + $0x22c8] sm:$0xff]  ;;  %v13147_v52 = vcombine.low %v1529_v9, %v1533_v15 }
 0x2f9   : > { %10505 = vmatpush1.bf16.msra.mxu0 %v12923_v30  ;;  %v1397_v19 = vld [vmem:[%s13895_s3 + $0x22e8] sm:$0xff] }
 0x2fa   : > { %10506 = vmatprep.subr.bf16.mxu0 %v13044_v34  ;;  %v1521_v21 = vld [vmem:[%s13895_s3 + $0x26c8] sm:$0xff]  ;;  %v13012_v30 = vcombine.high %v1393_v39, %v1397_v19  ;;  %v13011_v43 = vcombine.low %v1393_v39, %v1397_v19 }
 0x2fb   : > { %10546 = vmatpush1.bf16.msra.mxu1 %v13051_v46  ;;  %v1525_v27 = vld [vmem:[%s13895_s3 + $0x26e8] sm:$0xff] }
 0x2fc   : > { %10547 = vmatprep.subr.bf16.mxu1 %v13172_v54  ;;  %v13140_v46 = vcombine.high %v1521_v21, %v1525_v27  ;;  %v1385_v34 = vld [vmem:[%s13895_s3 + $0x2288] sm:$0xff]  ;;  %v13139_v62 = vcombine.low %v1521_v21, %v1525_v27 }
 0x2fd   : > { %10507 = vmatpush2.bf16.msra.mxu0 %v13043_v47  ;;  %v1389_v54 = vld [vmem:[%s13895_s3 + $0x22a8] sm:$0xff] }
 0x2fe   : > { %10508 = vmatprep.subr.bf16.mxu0 %v13036_v1  ;;  %v1513_v24 = vld [vmem:[%s13895_s3 + $0x2688] sm:$0xff]  ;;  %v13004_v47 = vcombine.high %v1385_v34, %v1389_v54  ;;  %v13003_v58 = vcombine.low %v1385_v34, %v1389_v54 }
 0x2ff   : > { %10548 = vmatpush2.bf16.msra.mxu1 %v13171_v49  ;;  %v1517_v38 = vld [vmem:[%s13895_s3 + $0x26a8] sm:$0xff] }
 0x300   : > { %10549 = vmatprep.subr.bf16.mxu1 %v13164_v51  ;;  %v13132_v49 = vcombine.high %v1513_v24, %v1517_v38  ;;  %v1377_v1 = vld [vmem:[%s13895_s3 + $0x2248] sm:$0xff]  ;;  %v13131_v63 = vcombine.low %v1513_v24, %v1517_v38 }
 0x301   : > { %10509 = vmatpush2.bf16.msra.mxu0 %v13035_v13  ;;  %v1381_v51 = vld [vmem:[%s13895_s3 + $0x2268] sm:$0xff] }
 0x302   : > { %10510 = vmatprep.subr.bf16.mxu0 %v13028_v3  ;;  %v1505_v53 = vld [vmem:[%s13895_s3 + $0x2648] sm:$0xff]  ;;  %v12996_v13 = vcombine.high %v1377_v1, %v1381_v51  ;;  %v12995_v9 = vcombine.low %v1377_v1, %v1381_v51 }
 0x303   : > { %10550 = vmatpush2.bf16.msra.mxu1 %v13163_v2  ;;  %v1509_v56 = vld [vmem:[%s13895_s3 + $0x2668] sm:$0xff] }
 0x304   : > { %10551 = vmatprep.subr.bf16.mxu1 %v13156_v16  ;;  %v13124_v2 = vcombine.high %v1505_v53, %v1509_v56  ;;  %v1369_v3 = vld [vmem:[%s13895_s3 + $0x2208] sm:$0xff]  ;;  %v13123_v15 = vcombine.low %v1505_v53, %v1509_v56 }
 0x305   : > { %10511 = vmatpush2.bf16.msra.mxu0 %v13027_v28  ;;  %v1373_v16 = vld [vmem:[%s13895_s3 + $0x2228] sm:$0xff] }
 0x306   : > { %10512 = vmatprep.subr.bf16.mxu0 %v13020_v17  ;;  %v1497_v5 = vld [vmem:[%s13895_s3 + $0x2608] sm:$0xff]  ;;  %v12988_v28 = vcombine.high %v1369_v3, %v1373_v16  ;;  %v12987_v21 = vcombine.low %v1369_v3, %v1373_v16 }
 0x307   : > { %10552 = vmatpush2.bf16.msra.mxu1 %v13155_v29  ;;  %v1501_v7 = vld [vmem:[%s13895_s3 + $0x2628] sm:$0xff] }
 0x308   : > { %10553 = vmatprep.subr.bf16.mxu1 %v13148_v18  ;;  %v13116_v29 = vcombine.high %v1497_v5, %v1501_v7  ;;  %v1617_v17 = vld [vmem:[%s13895_s3 + $0x29c8] sm:$0xff]  ;;  %v13115_v27 = vcombine.low %v1497_v5, %v1501_v7 }
 0x309   : > { %10513 = vmatpush2.bf16.msra.mxu0 %v13019_v42  ;;  %v1621_v18 = vld [vmem:[%s13895_s3 + $0x29e8] sm:$0xff] }
 0x30a   : > { %10514 = vmatprep.subr.bf16.mxu0 %v13012_v30  ;;  %v1745_v39 = vld [vmem:[%s13895_s3 + $0x2dc8] sm:$0xff]  ;;  %v13236_v42 = vcombine.high %v1617_v17, %v1621_v18  ;;  %v13235_v24 = vcombine.low %v1617_v17, %v1621_v18 }
 0x30b   : > { %10554 = vmatpush2.bf16.msra.mxu1 %v13147_v52  ;;  %v1749_v19 = vld [vmem:[%s13895_s3 + $0x2de8] sm:$0xff] }
 0x30c   : > { %10555 = vmatprep.subr.bf16.mxu1 %v13140_v46  ;;  %v13364_v52 = vcombine.high %v1745_v39, %v1749_v19  ;;  %v1609_v30 = vld [vmem:[%s13895_s3 + $0x2988] sm:$0xff]  ;;  %v13363_v38 = vcombine.low %v1745_v39, %v1749_v19 }
 0x30d   : > { %10515 = vmatpush2.bf16.msra.mxu0 %v13011_v43  ;;  %v1613_v46 = vld [vmem:[%s13895_s3 + $0x29a8] sm:$0xff] }
 0x30e   : > { %10516 = vmatprep.subr.bf16.mxu0 %v13004_v47  ;;  %v1737_v34 = vld [vmem:[%s13895_s3 + $0x2d88] sm:$0xff]  ;;  %v13228_v43 = vcombine.high %v1609_v30, %v1613_v46 }
 0x30f   : > { %10556 = vmatpush2.bf16.msra.mxu1 %v13139_v62  ;;  %v1741_v54 = vld [vmem:[%s13895_s3 + $0x2da8] sm:$0xff] }
 0x310   : > { %10557 = vmatprep.subr.bf16.mxu1 %v13132_v49  ;;  %v13356_v62 = vcombine.high %v1737_v34, %v1741_v54  ;;  %v1601_v47 = vld [vmem:[%s13895_s3 + $0x2948] sm:$0xff] }
 0x311   : > { %10517 = vmatpush2.bf16.msra.mxu0 %v13003_v58  ;;  %v1605_v49 = vld [vmem:[%s13895_s3 + $0x2968] sm:$0xff] }
 0x312   : > { %10518 = vmatprep.subr.bf16.mxu0 %v12996_v13  ;;  %v1729_v51 = vld [vmem:[%s13895_s3 + $0x2d48] sm:$0xff]  ;;  %v13220_v3 = vcombine.high %v1601_v47, %v1605_v49 }
 0x313   : > { %10558 = vmatpush2.bf16.msra.mxu1 %v13131_v63  ;;  %v1733_v53 = vld [vmem:[%s13895_s3 + $0x2d68] sm:$0xff]  ;;  %v13227_v63 = vcombine.low %v1609_v30, %v1613_v46 }
 0x314   : > { %10559 = vmatprep.subr.bf16.mxu1 %v13124_v2  ;;  %v13355_v2 = vcombine.low %v1737_v34, %v1741_v54  ;;  %v1725_v17 = vld [vmem:[%s13895_s3 + $0x2d28] sm:$0xff] }
 0x315   : > { %10519 = vmatpush2.bf16.msra.mxu0 %v12995_v9  ;;  %v1593_v9 = vld [vmem:[%s13895_s3 + $0x2908] sm:$0xff] }
 0x316   : > { %10520 = vmatprep.subr.bf16.mxu0 %v12988_v28  ;;  %v1585_v30 = vld [vmem:[%s13895_s3 + $0x28c8] sm:$0xff] }
 0x317   : > { %10560 = vmatpush2.bf16.msra.mxu1 %v13123_v15  ;;  %v1597_v15 = vld [vmem:[%s13895_s3 + $0x2928] sm:$0xff] }
 0x318   : > { %10561 = vmatprep.subr.bf16.mxu1 %v13116_v29  ;;  %v1721_v29 = vld [vmem:[%s13895_s3 + $0x2d08] sm:$0xff] }
 0x319   : > { %10521 = vmatpush2.bf16.msra.mxu0 %v12987_v21  ;;  %v13347_v21 = vcombine.low %v1729_v51, %v1733_v53  ;;  %v1589_v46 = vld [vmem:[%s13895_s3 + $0x28e8] sm:$0xff] }
 0x31a   : > { %10572 = vmatprep.subr.bf16.mxu0 %v13236_v42  ;;  %v1713_v34 = vld [vmem:[%s13895_s3 + $0x2cc8] sm:$0xff] }
 0x31b   : > { %10562 = vmatpush2.bf16.msra.mxu1 %v13115_v27  ;;  %v13212_v27 = vcombine.high %v1593_v9, %v1597_v15  ;;  %v1717_v54 = vld [vmem:[%s13895_s3 + $0x2ce8] sm:$0xff] }
 0x31c   : > { %10613 = vmatprep.subr.bf16.mxu1 %v13364_v52  ;;  %v10278_v1 = vpop.f32.mrf.mxu0  ;;  %10523 = vmatmul.mubr.bf16.vlgmr.msra.gmra.mxu0 %v14392_v41  ;;  %v13340_v52 = vcombine.high %v1721_v29, %v1725_v17 }
 0x31d   : > { %v10279_v56 = vadd.f32 %v10278_v1, %v14795_v59  ;;  %10573 = vmatpush1.bf16.msra.mxu0 %v13235_v24  ;;  %v13348_v59 = vcombine.high %v1729_v51, %v1733_v53  ;;  %10604 = vmatprep.mubr.bf16.mxu0 %v14399_v55  ;;  %v13211_v24 = vcombine.low %v1593_v9, %v1597_v15  ;;  %v1705_v1 = vld [vmem:[%s13895_s3 + $0x2c88] sm:$0xff] }
 0x31e   : > { %v10319_v58 = vpop.f32.mrf.mxu1  ;;  %10564 = vmatmul.mubr.bf16.vlgmr.msra.gmra.mxu1 %v14403_v61  ;;  %v10280_v13 = vpop.f32.mrf.mxu0  ;;  %10574 = vmatprep.subr.bf16.mxu0 %v13228_v43  ;;  %v13204_v43 = vcombine.high %v1585_v30, %v1589_v46  ;;  %v1709_v51 = vld [vmem:[%s13895_s3 + $0x2ca8] sm:$0xff]  ;;  %v13203_v53 = vcombine.low %v1585_v30, %v1589_v46 }
 0x31f   : > { %10614 = vmatpush1.bf16.msra.mxu1 %v13363_v38  ;;  %v14868_v16 = vadd.f32 %v10319_v58, %v10279_v56  ;;  %v10281_v5 = vadd.f32 %v10280_v13, %v14800_v8  ;;  %10645 = vmatprep.mubr.bf16.mxu1 %v14412_v6  ;;  %v13219_v8 = vcombine.low %v1601_v47, %v1605_v49  ;;  %v1577_v47 = vld [vmem:[%s13895_s3 + $0x2888] sm:$0xff] }
 0x320   : > { %v10321_v7 = vpop.f32.mrf.mxu1  ;;  %10615 = vmatprep.subr.bf16.mxu1 %v13356_v62  ;;  %v10282_v28 = vpop.f32.mrf.mxu0  ;;  %v13339_v38 = vcombine.low %v1721_v29, %v1725_v17  ;;  %v13332_v62 = vcombine.high %v1713_v34, %v1717_v54  ;;  %v1581_v49 = vld [vmem:[%s13895_s3 + $0x28a8] sm:$0xff]  ;;  %v13331_v56 = vcombine.low %v1713_v34, %v1717_v54 }
 0x321   : > { %v14877_v18 = vadd.f32 %v10321_v7, %v10281_v5  ;;  %10575 = vmatpush1.bf16.msra.mxu0 %v13227_v63  ;;  %v13196_v58 = vcombine.high %v1577_v47, %v1581_v49  ;;  %v13324_v63 = vcombine.high %v1705_v1, %v1709_v51  ;;  %v1569_v13 = vld [vmem:[%s13895_s3 + $0x2848] sm:$0xff]  ;;  %v13195_v7 = vcombine.low %v1577_v47, %v1581_v49 }
 0x322   : > { %v10323_v39 = vpop.f32.mrf.mxu1  ;;  %v10283_v19 = vpop.f32.mrf.mxu0  ;;  %10576 = vmatprep.subr.bf16.mxu0 %v13220_v3  ;;  %v1697_v3 = vld [vmem:[%s13895_s3 + $0x2c48] sm:$0xff] }
 0x323   : > { %10616 = vmatpush1.bf16.msra.mxu1 %v13355_v2  ;;  %v1573_v2 = vld [vmem:[%s13895_s3 + $0x2868] sm:$0xff] }
 0x324   : > { %v10324_v42 = vpop.f32.mrf.mxu1  ;;  %10617 = vmatprep.subr.bf16.mxu1 %v13348_v59  ;;  %v1701_v5 = vld [vmem:[%s13895_s3 + $0x2c68] sm:$0xff]  ;;  %v13323_v59 = vcombine.low %v1705_v1, %v1709_v51  ;;  %v13188_v9 = vcombine.high %v1569_v13, %v1573_v2 }
 0x325   : > { %10577 = vmatpush1.bf16.msra.mxu0 %v13219_v8  ;;  %v13316_v15 = vcombine.high %v1697_v3, %v1701_v5  ;;  %v1561_v28 = vld [vmem:[%s13895_s3 + $0x2808] sm:$0xff]  ;;  %v13187_v8 = vcombine.low %v1569_v13, %v1573_v2  ;;  %v13315_v19 = vcombine.low %v1697_v3, %v1701_v5 }
 0x326   : > { %10578 = vmatprep.subr.bf16.mxu0 %v13212_v27  ;;  %v1565_v29 = vld [vmem:[%s13895_s3 + $0x2828] sm:$0xff] }
 0x327   : > { %10618 = vmatpush1.bf16.msra.mxu1 %v13347_v21  ;;  %v1689_v17 = vld [vmem:[%s13895_s3 + $0x2c08] sm:$0xff]  ;;  %v13180_v21 = vcombine.high %v1561_v28, %v1565_v29  ;;  %v13179_v34 = vcombine.low %v1561_v28, %v1565_v29 }
 0x328   : > { %10619 = vmatprep.subr.bf16.mxu1 %v13340_v52  ;;  %v1693_v39 = vld [vmem:[%s13895_s3 + $0x2c28] sm:$0xff] }
 0x329   : > { %10579 = vmatpush1.bf16.msra.mxu0 %v13211_v24  ;;  %v13308_v27 = vcombine.high %v1689_v17, %v1693_v39  ;;  %v1681_v42 = vld [vmem:[%s13895_s3 + $0x2bc8] sm:$0xff]  ;;  %v13307_v54 = vcombine.low %v1689_v17, %v1693_v39 }
 0x32a   : > { %10580 = vmatprep.subr.bf16.mxu0 %v13204_v43  ;;  %v1685_v52 = vld [vmem:[%s13895_s3 + $0x2be8] sm:$0xff] }
 0x32b   : > { %10620 = vmatpush1.bf16.msra.mxu1 %v13339_v38  ;;  %v1809_v30 = vld [vmem:[%s13895_s3 + $0x2fc8] sm:$0xff]  ;;  %v13300_v24 = vcombine.high %v1681_v42, %v1685_v52  ;;  %v13299_v1 = vcombine.low %v1681_v42, %v1685_v52 }
 0x32c   : > { %10621 = vmatprep.subr.bf16.mxu1 %v13332_v62  ;;  %v1813_v46 = vld [vmem:[%s13895_s3 + $0x2fe8] sm:$0xff] }
 0x32d   : > { %10581 = vmatpush1.bf16.msra.mxu0 %v13203_v53  ;;  %v13428_v38 = vcombine.high %v1809_v30, %v1813_v46  ;;  %v1673_v43 = vld [vmem:[%s13895_s3 + $0x2b88] sm:$0xff]  ;;  %v13427_v51 = vcombine.low %v1809_v30, %v1813_v46 }
 0x32e   : > { %10582 = vmatprep.subr.bf16.mxu0 %v13196_v58  ;;  %v1677_v62 = vld [vmem:[%s13895_s3 + $0x2ba8] sm:$0xff] }
 0x32f   : > { %10622 = vmatpush1.bf16.msra.mxu1 %v13331_v56  ;;  %v1801_v47 = vld [vmem:[%s13895_s3 + $0x2f88] sm:$0xff]  ;;  %v13292_v53 = vcombine.high %v1673_v43, %v1677_v62  ;;  %v13291_v3 = vcombine.low %v1673_v43, %v1677_v62 }
 0x330   : > { %10623 = vmatprep.subr.bf16.mxu1 %v13324_v63  ;;  %v1805_v49 = vld [vmem:[%s13895_s3 + $0x2fa8] sm:$0xff] }
 0x331   : > { %10583 = vmatpush1.bf16.msra.mxu0 %v13195_v7  ;;  %v13420_v56 = vcombine.high %v1801_v47, %v1805_v49  ;;  %v1665_v58 = vld [vmem:[%s13895_s3 + $0x2b48] sm:$0xff]  ;;  %v13419_v5 = vcombine.low %v1801_v47, %v1805_v49 }
 0x332   : > { %10584 = vmatprep.subr.bf16.mxu0 %v13188_v9  ;;  %v1669_v63 = vld [vmem:[%s13895_s3 + $0x2b68] sm:$0xff] }
 0x333   : > { %10624 = vmatpush1.bf16.msra.mxu1 %v13323_v59  ;;  %v1793_v13 = vld [vmem:[%s13895_s3 + $0x2f48] sm:$0xff]  ;;  %v13284_v7 = vcombine.high %v1665_v58, %v1669_v63  ;;  %v13283_v17 = vcombine.low %v1665_v58, %v1669_v63 }
 0x334   : > { %10625 = vmatprep.subr.bf16.mxu1 %v13316_v15  ;;  %v1797_v2 = vld [vmem:[%s13895_s3 + $0x2f68] sm:$0xff] }
 0x335   : > { %10585 = vmatpush1.bf16.msra.mxu0 %v13187_v8  ;;  %v13412_v59 = vcombine.high %v1793_v13, %v1797_v2  ;;  %v1657_v9 = vld [vmem:[%s13895_s3 + $0x2b08] sm:$0xff]  ;;  %v13411_v39 = vcombine.low %v1793_v13, %v1797_v2 }
 0x336   : > { %10586 = vmatprep.subr.bf16.mxu0 %v13180_v21  ;;  %v1661_v15 = vld [vmem:[%s13895_s3 + $0x2b28] sm:$0xff] }
 0x337   : > { %10626 = vmatpush1.bf16.msra.mxu1 %v13315_v19  ;;  %v1785_v28 = vld [vmem:[%s13895_s3 + $0x2f08] sm:$0xff]  ;;  %v13276_v8 = vcombine.high %v1657_v9, %v1661_v15  ;;  %v13275_v30 = vcombine.low %v1657_v9, %v1661_v15 }
 0x338   : > { %10627 = vmatprep.subr.bf16.mxu1 %v13308_v27  ;;  %v1789_v29 = vld [vmem:[%s13895_s3 + $0x2f28] sm:$0xff] }
 0x339   : > { %10587 = vmatpush1.bf16.msra.mxu0 %v13179_v34  ;;  %v13404_v19 = vcombine.high %v1785_v28, %v1789_v29  ;;  %v1649_v21 = vld [vmem:[%s13895_s3 + $0x2ac8] sm:$0xff]  ;;  %v13403_v46 = vcombine.low %v1785_v28, %v1789_v29 }
 0x33a   : > { %10588 = vmatprep.subr.bf16.mxu0 %v13300_v24  ;;  %v1653_v27 = vld [vmem:[%s13895_s3 + $0x2ae8] sm:$0xff] }
 0x33b   : > { %10628 = vmatpush1.bf16.msra.mxu1 %v13307_v54  ;;  %v1777_v42 = vld [vmem:[%s13895_s3 + $0x2ec8] sm:$0xff]  ;;  %v13268_v34 = vcombine.high %v1649_v21, %v1653_v27  ;;  %v13267_v47 = vcombine.low %v1649_v21, %v1653_v27  ;;  %v466_v21 = vld [vmem:[%s13895_s3 + $0x5d0] sm:$0xff] }
 0x33c   : > { %10629 = vmatprep.subr.bf16.mxu1 %v13428_v38  ;;  %v1781_v52 = vld [vmem:[%s13895_s3 + $0x2ee8] sm:$0xff]  ;;  %v470_v27 = vld [vmem:[%s13895_s3 + $0x5f0] sm:$0xff] }
 0x33d   : > { %10589 = vmatpush2.bf16.msra.mxu0 %v13299_v1  ;;  %v13396_v54 = vcombine.high %v1777_v42, %v1781_v52  ;;  %v1641_v24 = vld [vmem:[%s13895_s3 + $0x2a88] sm:$0xff]  ;;  %v13395_v49 = vcombine.low %v1777_v42, %v1781_v52 }
 0x33e   : > { %10590 = vmatprep.subr.bf16.mxu0 %v13292_v53  ;;  %v1645_v38 = vld [vmem:[%s13895_s3 + $0x2aa8] sm:$0xff] }
 0x33f   : > { %10630 = vmatpush2.bf16.msra.mxu1 %v13427_v51  ;;  %v1769_v43 = vld [vmem:[%s13895_s3 + $0x2e88] sm:$0xff]  ;;  %v13260_v1 = vcombine.high %v1641_v24, %v1645_v38  ;;  %v13259_v13 = vcombine.low %v1641_v24, %v1645_v38  ;;  %v458_v24 = vld [vmem:[%s13895_s3 + $0x590] sm:$0xff] }
 0x340   : > { %10631 = vmatprep.subr.bf16.mxu1 %v13420_v56  ;;  %v1773_v62 = vld [vmem:[%s13895_s3 + $0x2ea8] sm:$0xff]  ;;  %v462_v38 = vld [vmem:[%s13895_s3 + $0x5b0] sm:$0xff] }
 0x341   : > { %10591 = vmatpush2.bf16.msra.mxu0 %v13291_v3  ;;  %v13388_v51 = vcombine.high %v1769_v43, %v1773_v62  ;;  %v1633_v53 = vld [vmem:[%s13895_s3 + $0x2a48] sm:$0xff]  ;;  %v13387_v2 = vcombine.low %v1769_v43, %v1773_v62  ;;  %v12085_v62 = vcombine.low %v466_v21, %v470_v27 }
 0x342   : > { %10592 = vmatprep.subr.bf16.mxu0 %v13284_v7  ;;  %v1637_v56 = vld [vmem:[%s13895_s3 + $0x2a68] sm:$0xff] }
 0x343   : > { %10632 = vmatpush2.bf16.msra.mxu1 %v13419_v5  ;;  %v1761_v58 = vld [vmem:[%s13895_s3 + $0x2e48] sm:$0xff]  ;;  %v13252_v3 = vcombine.high %v1633_v53, %v1637_v56  ;;  %v13251_v28 = vcombine.low %v1633_v53, %v1637_v56  ;;  %v450_v56 = vld [vmem:[%s13895_s3 + $0x550] sm:$0xff] }
 0x344   : > { %10633 = vmatprep.subr.bf16.mxu1 %v13412_v59  ;;  %v1765_v63 = vld [vmem:[%s13895_s3 + $0x2e68] sm:$0xff] }
 0x345   : > { %10593 = vmatpush2.bf16.msra.mxu0 %v13283_v17  ;;  %v13380_v5 = vcombine.high %v1761_v58, %v1765_v63  ;;  %v1625_v7 = vld [vmem:[%s13895_s3 + $0x2a08] sm:$0xff]  ;;  %v13379_v29 = vcombine.low %v1761_v58, %v1765_v63  ;;  %v454_v58 = vld [vmem:[%s13895_s3 + $0x570] sm:$0xff] }
 0x346   : > { %10594 = vmatprep.subr.bf16.mxu0 %v13276_v8  ;;  %v1629_v59 = vld [vmem:[%s13895_s3 + $0x2a28] sm:$0xff]  ;;  %v338_v8 = vld [vmem:[%s13895_s3 + $0x1d0] sm:$0xff] }
 0x347   : > { %10634 = vmatpush2.bf16.msra.mxu1 %v13411_v39  ;;  %v1753_v9 = vld [vmem:[%s13895_s3 + $0x2e08] sm:$0xff]  ;;  %v13244_v17 = vcombine.high %v1625_v7, %v1629_v59  ;;  %v13243_v42 = vcombine.low %v1625_v7, %v1629_v59 }
 0x348   : > { %10635 = vmatprep.subr.bf16.mxu1 %v13404_v19  ;;  %v1757_v15 = vld [vmem:[%s13895_s3 + $0x2e28] sm:$0xff]  ;;  %v342_v19 = vld [vmem:[%s13895_s3 + $0x1f0] sm:$0xff] }
 0x349   : > { %10595 = vmatpush2.bf16.msra.mxu0 %v13275_v30  ;;  %v13372_v39 = vcombine.high %v1753_v9, %v1757_v15  ;;  %v13371_v52 = vcombine.low %v1753_v9, %v1757_v15  ;;  %v11958_v30 = vcombine.high %v338_v8, %v342_v19  ;;  %v11957_v43 = vcombine.low %v338_v8, %v342_v19  ;;  %v446_v8 = vld [vmem:[%s13895_s3 + $0x530] sm:$0xff] }
 0x34a   : > { %10596 = vmatprep.subr.bf16.mxu0 %v13268_v34  ;;  %v330_v34 = vld [vmem:[%s13895_s3 + $0x190] sm:$0xff] }
 0x34b   : > { %10636 = vmatpush2.bf16.msra.mxu1 %v13403_v46  ;;  %v12086_v46 = vcombine.high %v466_v21, %v470_v27 }
 0x34c   : > { %10637 = vmatprep.subr.bf16.mxu1 %v13396_v54  ;;  %v334_v54 = vld [vmem:[%s13895_s3 + $0x1b0] sm:$0xff] }
 0x34d   : > { %10597 = vmatpush2.bf16.msra.mxu0 %v13267_v47  ;;  %v11950_v47 = vcombine.high %v330_v34, %v334_v54 }
 0x34e   : > { %10598 = vmatprep.subr.bf16.mxu0 %v13260_v1  ;;  %v322_v1 = vld [vmem:[%s13895_s3 + $0x150] sm:$0xff] }
 0x34f   : > { %10638 = vmatpush2.bf16.msra.mxu1 %v13395_v49  ;;  %v12078_v49 = vcombine.high %v458_v24, %v462_v38 }
 0x350   : > { %10639 = vmatprep.subr.bf16.mxu1 %v13388_v51  ;;  %v326_v51 = vld [vmem:[%s13895_s3 + $0x170] sm:$0xff] }
 0x351   : > { %10599 = vmatpush2.bf16.msra.mxu0 %v13259_v13  ;;  %v11942_v7 = vcombine.high %v322_v1, %v326_v51 }
 0x352   : > { %10600 = vmatprep.subr.bf16.mxu0 %v13252_v3 }
 0x353   : > { %10640 = vmatpush2.bf16.msra.mxu1 %v13387_v2  ;;  %v11949_v2 = vcombine.low %v330_v34, %v334_v54  ;;  %v306_v34 = vld [vmem:[%s13895_s3 + $0xd0] sm:$0xff] }
 0x354   : > { %10641 = vmatprep.subr.bf16.mxu1 %v13380_v5  ;;  %v12077_v5 = vcombine.low %v458_v24, %v462_v38  ;;  %v310_v54 = vld [vmem:[%s13895_s3 + $0xf0] sm:$0xff] }
 0x355   : > { %10601 = vmatpush2.bf16.msra.mxu0 %v13251_v28  ;;  %v314_v28 = vld [vmem:[%s13895_s3 + $0x110] sm:$0xff] }
 0x356   : > { %10602 = vmatprep.subr.bf16.mxu0 %v13244_v17  ;;  %v434_v24 = vld [vmem:[%s13895_s3 + $0x4d0] sm:$0xff] }
 0x357   : > { %10642 = vmatpush2.bf16.msra.mxu1 %v13379_v29  ;;  %v318_v29 = vld [vmem:[%s13895_s3 + $0x130] sm:$0xff] }
 0x358   : > { %10643 = vmatprep.subr.bf16.mxu1 %v13372_v39  ;;  %v442_v39 = vld [vmem:[%s13895_s3 + $0x510] sm:$0xff] }
 0x359   : > { %10603 = vmatpush2.bf16.msra.mxu0 %v13243_v42  ;;  %v12069_v42 = vcombine.low %v450_v56, %v454_v58  ;;  %v438_v38 = vld [vmem:[%s13895_s3 + $0x4f0] sm:$0xff] }
 0x35a   : > { %10654 = vmatprep.subr.bf16.mxu0 %v11958_v30 }
 0x35b   : > { %10644 = vmatpush2.bf16.msra.mxu1 %v13371_v52  ;;  %v11934_v52 = vcombine.high %v314_v28, %v318_v29 }
 0x35c   : > { %10695 = vmatprep.subr.bf16.mxu1 %v12086_v46  ;;  %v10360_v53 = vpop.f32.mrf.mxu0  ;;  %10605 = vmatmul.mubr.bf16.vlgmr.msra.gmra.mxu0 %v14481_v50  ;;  %v12062_v46 = vcombine.high %v442_v39, %v446_v8 }
 0x35d   : > { %v10361_v63 = vadd.f32 %v10360_v53, %v14868_v16  ;;  %10655 = vmatpush1.bf16.msra.mxu0 %v11957_v43  ;;  %v12070_v16 = vcombine.high %v450_v56, %v454_v58  ;;  %10686 = vmatprep.mubr.bf16.mxu0 %v13973_v10  ;;  %v11933_v43 = vcombine.low %v314_v28, %v318_v29  ;;  %v426_v53 = vld [vmem:[%s13895_s3 + $0x490] sm:$0xff] }
 0x35e   : > { %v10401_v13 = vpop.f32.mrf.mxu1  ;;  %10646 = vmatmul.mubr.bf16.vlgmr.msra.gmra.mxu1 %v14489_v37  ;;  %v10362_v3 = vpop.f32.mrf.mxu0  ;;  %10656 = vmatprep.subr.bf16.mxu0 %v11950_v47  ;;  %v11926_v47 = vcombine.high %v306_v34, %v310_v54  ;;  %v430_v56 = vld [vmem:[%s13895_s3 + $0x4b0] sm:$0xff]  ;;  %v11925_v58 = vcombine.low %v306_v34, %v310_v54 }
 0x35f   : > { %10696 = vmatpush1.bf16.msra.mxu1 %v12085_v62  ;;  %v14942_v59 = vadd.f32 %v10401_v13, %v10361_v63  ;;  %v10363_v9 = vadd.f32 %v10362_v3, %v14877_v18  ;;  %10727 = vmatprep.mubr.bf16.mxu1 %v13980_v14  ;;  %v11941_v18 = vcombine.low %v322_v1, %v326_v51  ;;  %v298_v1 = vld [vmem:[%s13895_s3 + $0x90] sm:$0xff] }
 0x360   : > { %v10403_v15 = vpop.f32.mrf.mxu1  ;;  %10697 = vmatprep.subr.bf16.mxu1 %v12078_v49  ;;  %v10364_v17 = vpop.f32.mrf.mxu0  ;;  %v12061_v62 = vcombine.low %v442_v39, %v446_v8  ;;  %v12054_v49 = vcombine.high %v434_v24, %v438_v38  ;;  %v302_v51 = vld [vmem:[%s13895_s3 + $0xb0] sm:$0xff]  ;;  %v12053_v63 = vcombine.low %v434_v24, %v438_v38 }
 0x361   : > { %v14951_v19 = vadd.f32 %v10403_v15, %v10363_v9  ;;  %10657 = vmatpush1.bf16.msra.mxu0 %v11949_v2  ;;  %v11918_v13 = vcombine.high %v298_v1, %v302_v51  ;;  %v12046_v2 = vcombine.high %v426_v53, %v430_v56  ;;  %v290_v3 = vld [vmem:[%s13895_s3 + $0x50] sm:$0xff]  ;;  %v11917_v15 = vcombine.low %v298_v1, %v302_v51 }
 0x362   : > { %v10405_v21 = vpop.f32.mrf.mxu1  ;;  %v10365_v27 = vpop.f32.mrf.mxu0  ;;  %10658 = vmatprep.subr.bf16.mxu0 %v11942_v7  ;;  %v418_v7 = vld [vmem:[%s13895_s3 + $0x450] sm:$0xff] }
 0x363   : > { %10698 = vmatpush1.bf16.msra.mxu1 %v12077_v5  ;;  %v294_v5 = vld [vmem:[%s13895_s3 + $0x70] sm:$0xff] }
 0x364   : > { %v10406_v30 = vpop.f32.mrf.mxu1  ;;  %10699 = vmatprep.subr.bf16.mxu1 %v12070_v16  ;;  %v422_v9 = vld [vmem:[%s13895_s3 + $0x470] sm:$0xff]  ;;  %v12045_v16 = vcombine.low %v426_v53, %v430_v56  ;;  %v11910_v28 = vcombine.high %v290_v3, %v294_v5 }
 0x365   : > { %10659 = vmatpush1.bf16.msra.mxu0 %v11941_v18  ;;  %v12038_v29 = vcombine.high %v418_v7, %v422_v9  ;;  %v282_v17 = vld [vmem:[%s13895_s3 + $0x10] sm:$0xff]  ;;  %v11909_v18 = vcombine.low %v290_v3, %v294_v5  ;;  %v12037_v27 = vcombine.low %v418_v7, %v422_v9 }
 0x366   : > { %10660 = vmatprep.subr.bf16.mxu0 %v11934_v52  ;;  %v286_v39 = vld [vmem:[%s13895_s3 + $0x30] sm:$0xff] }
 0x367   : > { %10700 = vmatpush1.bf16.msra.mxu1 %v12069_v42  ;;  %v410_v8 = vld [vmem:[%s13895_s3 + $0x410] sm:$0xff]  ;;  %v11902_v42 = vcombine.high %v282_v17, %v286_v39  ;;  %v11901_v24 = vcombine.low %v282_v17, %v286_v39 }
 0x368   : > { %10701 = vmatprep.subr.bf16.mxu1 %v12062_v46  ;;  %v414_v21 = vld [vmem:[%s13895_s3 + $0x430] sm:$0xff] }
 0x369   : > { %10661 = vmatpush1.bf16.msra.mxu0 %v11933_v43  ;;  %v12030_v52 = vcombine.high %v410_v8, %v414_v21  ;;  %v402_v30 = vld [vmem:[%s13895_s3 + $0x3d0] sm:$0xff]  ;;  %v12029_v38 = vcombine.low %v410_v8, %v414_v21 }
 0x36a   : > { %10662 = vmatprep.subr.bf16.mxu0 %v11926_v47  ;;  %v406_v46 = vld [vmem:[%s13895_s3 + $0x3f0] sm:$0xff] }
 0x36b   : > { %10702 = vmatpush1.bf16.msra.mxu1 %v12061_v62  ;;  %v530_v34 = vld [vmem:[%s13895_s3 + $0x7d0] sm:$0xff]  ;;  %v12022_v43 = vcombine.high %v402_v30, %v406_v46  ;;  %v12021_v53 = vcombine.low %v402_v30, %v406_v46 }
 0x36c   : > { %10703 = vmatprep.subr.bf16.mxu1 %v12054_v49  ;;  %v534_v54 = vld [vmem:[%s13895_s3 + $0x7f0] sm:$0xff] }
 0x36d   : > { %10663 = vmatpush1.bf16.msra.mxu0 %v11925_v58  ;;  %v12150_v62 = vcombine.high %v530_v34, %v534_v54  ;;  %v394_v47 = vld [vmem:[%s13895_s3 + $0x390] sm:$0xff]  ;;  %v12149_v56 = vcombine.low %v530_v34, %v534_v54 }
 0x36e   : > { %10664 = vmatprep.subr.bf16.mxu0 %v11918_v13  ;;  %v398_v49 = vld [vmem:[%s13895_s3 + $0x3b0] sm:$0xff] }
 0x36f   : > { %10704 = vmatpush1.bf16.msra.mxu1 %v12053_v63  ;;  %v522_v1 = vld [vmem:[%s13895_s3 + $0x790] sm:$0xff]  ;;  %v12014_v58 = vcombine.high %v394_v47, %v398_v49  ;;  %v12013_v7 = vcombine.low %v394_v47, %v398_v49 }
 0x370   : > { %10705 = vmatprep.subr.bf16.mxu1 %v12046_v2  ;;  %v526_v51 = vld [vmem:[%s13895_s3 + $0x7b0] sm:$0xff] }
 0x371   : > { %10665 = vmatpush1.bf16.msra.mxu0 %v11917_v15  ;;  %v12142_v63 = vcombine.high %v522_v1, %v526_v51  ;;  %v386_v13 = vld [vmem:[%s13895_s3 + $0x350] sm:$0xff]  ;;  %v12141_v9 = vcombine.low %v522_v1, %v526_v51 }
 0x372   : > { %10666 = vmatprep.subr.bf16.mxu0 %v11910_v28  ;;  %v390_v2 = vld [vmem:[%s13895_s3 + $0x370] sm:$0xff] }
 0x373   : > { %10706 = vmatpush1.bf16.msra.mxu1 %v12045_v16  ;;  %v514_v3 = vld [vmem:[%s13895_s3 + $0x750] sm:$0xff]  ;;  %v12006_v15 = vcombine.high %v386_v13, %v390_v2  ;;  %v12005_v8 = vcombine.low %v386_v13, %v390_v2 }
 0x374   : > { %10707 = vmatprep.subr.bf16.mxu1 %v12038_v29  ;;  %v518_v5 = vld [vmem:[%s13895_s3 + $0x770] sm:$0xff] }
 0x375   : > { %10667 = vmatpush1.bf16.msra.mxu0 %v11909_v18  ;;  %v12134_v16 = vcombine.high %v514_v3, %v518_v5  ;;  %v378_v28 = vld [vmem:[%s13895_s3 + $0x310] sm:$0xff]  ;;  %v12133_v21 = vcombine.low %v514_v3, %v518_v5 }
 0x376   : > { %10668 = vmatprep.subr.bf16.mxu0 %v11902_v42  ;;  %v382_v29 = vld [vmem:[%s13895_s3 + $0x330] sm:$0xff] }
 0x377   : > { %10708 = vmatpush1.bf16.msra.mxu1 %v12037_v27  ;;  %v506_v17 = vld [vmem:[%s13895_s3 + $0x710] sm:$0xff]  ;;  %v11998_v18 = vcombine.high %v378_v28, %v382_v29  ;;  %v11997_v34 = vcombine.low %v378_v28, %v382_v29 }
 0x378   : > { %10709 = vmatprep.subr.bf16.mxu1 %v12030_v52  ;;  %v510_v39 = vld [vmem:[%s13895_s3 + $0x730] sm:$0xff] }
 0x379   : > { %10669 = vmatpush1.bf16.msra.mxu0 %v11901_v24  ;;  %v12126_v27 = vcombine.high %v506_v17, %v510_v39  ;;  %v370_v42 = vld [vmem:[%s13895_s3 + $0x2d0] sm:$0xff]  ;;  %v12125_v54 = vcombine.low %v506_v17, %v510_v39 }
 0x37a   : > { %10670 = vmatprep.subr.bf16.mxu0 %v12022_v43  ;;  %v374_v52 = vld [vmem:[%s13895_s3 + $0x2f0] sm:$0xff] }
 0x37b   : > { %10710 = vmatpush1.bf16.msra.mxu1 %v12029_v38  ;;  %v498_v30 = vld [vmem:[%s13895_s3 + $0x6d0] sm:$0xff]  ;;  %v11990_v24 = vcombine.high %v370_v42, %v374_v52  ;;  %v11989_v1 = vcombine.low %v370_v42, %v374_v52 }
 0x37c   : > { %10711 = vmatprep.subr.bf16.mxu1 %v12150_v62  ;;  %v502_v46 = vld [vmem:[%s13895_s3 + $0x6f0] sm:$0xff] }
 0x37d   : > { %10671 = vmatpush2.bf16.msra.mxu0 %v12021_v53  ;;  %v12118_v38 = vcombine.high %v498_v30, %v502_v46  ;;  %v362_v43 = vld [vmem:[%s13895_s3 + $0x290] sm:$0xff]  ;;  %v12117_v51 = vcombine.low %v498_v30, %v502_v46 }
 0x37e   : > { %10672 = vmatprep.subr.bf16.mxu0 %v12014_v58  ;;  %v366_v62 = vld [vmem:[%s13895_s3 + $0x2b0] sm:$0xff] }
 0x37f   : > { %10712 = vmatpush2.bf16.msra.mxu1 %v12149_v56  ;;  %v490_v47 = vld [vmem:[%s13895_s3 + $0x690] sm:$0xff]  ;;  %v11982_v53 = vcombine.high %v362_v43, %v366_v62  ;;  %v11981_v3 = vcombine.low %v362_v43, %v366_v62 }
 0x380   : > { %10713 = vmatprep.subr.bf16.mxu1 %v12142_v63  ;;  %v494_v49 = vld [vmem:[%s13895_s3 + $0x6b0] sm:$0xff] }
 0x381   : > { %10673 = vmatpush2.bf16.msra.mxu0 %v12013_v7  ;;  %v12110_v56 = vcombine.high %v490_v47, %v494_v49  ;;  %v354_v58 = vld [vmem:[%s13895_s3 + $0x250] sm:$0xff]  ;;  %v12109_v5 = vcombine.low %v490_v47, %v494_v49 }
 0x382   : > { %10674 = vmatprep.subr.bf16.mxu0 %v12006_v15  ;;  %v358_v63 = vld [vmem:[%s13895_s3 + $0x270] sm:$0xff] }
 0x383   : > { %10714 = vmatpush2.bf16.msra.mxu1 %v12141_v9  ;;  %v482_v13 = vld [vmem:[%s13895_s3 + $0x650] sm:$0xff]  ;;  %v11974_v7 = vcombine.high %v354_v58, %v358_v63  ;;  %v11973_v17 = vcombine.low %v354_v58, %v358_v63 }
 0x384   : > { %10715 = vmatprep.subr.bf16.mxu1 %v12134_v16  ;;  %v486_v2 = vld [vmem:[%s13895_s3 + $0x670] sm:$0xff] }
 0x385   : > { %10675 = vmatpush2.bf16.msra.mxu0 %v12005_v8  ;;  %v12102_v9 = vcombine.high %v482_v13, %v486_v2  ;;  %v346_v15 = vld [vmem:[%s13895_s3 + $0x210] sm:$0xff]  ;;  %v12101_v39 = vcombine.low %v482_v13, %v486_v2 }
 0x386   : > { %10676 = vmatprep.subr.bf16.mxu0 %v11998_v18  ;;  %v350_v16 = vld [vmem:[%s13895_s3 + $0x230] sm:$0xff] }
 0x387   : > { %10716 = vmatpush2.bf16.msra.mxu1 %v12133_v21  ;;  %v474_v28 = vld [vmem:[%s13895_s3 + $0x610] sm:$0xff]  ;;  %v11966_v8 = vcombine.high %v346_v15, %v350_v16  ;;  %v11965_v30 = vcombine.low %v346_v15, %v350_v16 }
 0x388   : > { %10717 = vmatprep.subr.bf16.mxu1 %v12126_v27  ;;  %v478_v29 = vld [vmem:[%s13895_s3 + $0x630] sm:$0xff] }
 0x389   : > { %10677 = vmatpush2.bf16.msra.mxu0 %v11997_v34  ;;  %v12094_v21 = vcombine.high %v474_v28, %v478_v29  ;;  %v594_v18 = vld [vmem:[%s13895_s3 + $0x9d0] sm:$0xff]  ;;  %v12093_v46 = vcombine.low %v474_v28, %v478_v29 }
 0x38a   : > { %10678 = vmatprep.subr.bf16.mxu0 %v11990_v24  ;;  %v598_v27 = vld [vmem:[%s13895_s3 + $0x9f0] sm:$0xff] }
 0x38b   : > { %10718 = vmatpush2.bf16.msra.mxu1 %v12125_v54  ;;  %v722_v42 = vld [vmem:[%s13895_s3 + $0xdd0] sm:$0xff]  ;;  %v12214_v34 = vcombine.high %v594_v18, %v598_v27  ;;  %v12213_v47 = vcombine.low %v594_v18, %v598_v27 }
 0x38c   : > { %10719 = vmatprep.subr.bf16.mxu1 %v12118_v38  ;;  %v726_v52 = vld [vmem:[%s13895_s3 + $0xdf0] sm:$0xff] }
 0x38d   : > { %10679 = vmatpush2.bf16.msra.mxu0 %v11989_v1  ;;  %v12342_v54 = vcombine.high %v722_v42, %v726_v52  ;;  %v586_v24 = vld [vmem:[%s13895_s3 + $0x990] sm:$0xff]  ;;  %v12341_v49 = vcombine.low %v722_v42, %v726_v52 }
 0x38e   : > { %10680 = vmatprep.subr.bf16.mxu0 %v11982_v53  ;;  %v590_v38 = vld [vmem:[%s13895_s3 + $0x9b0] sm:$0xff] }
 0x38f   : > { %10720 = vmatpush2.bf16.msra.mxu1 %v12117_v51  ;;  %v714_v43 = vld [vmem:[%s13895_s3 + $0xd90] sm:$0xff]  ;;  %v12206_v1 = vcombine.high %v586_v24, %v590_v38 }
 0x390   : > { %10721 = vmatprep.subr.bf16.mxu1 %v12110_v56  ;;  %v718_v62 = vld [vmem:[%s13895_s3 + $0xdb0] sm:$0xff] }
 0x391   : > { %10681 = vmatpush2.bf16.msra.mxu0 %v11981_v3  ;;  %v12334_v51 = vcombine.high %v714_v43, %v718_v62  ;;  %v578_v53 = vld [vmem:[%s13895_s3 + $0x950] sm:$0xff] }
 0x392   : > { %10682 = vmatprep.subr.bf16.mxu0 %v11974_v7  ;;  %v582_v56 = vld [vmem:[%s13895_s3 + $0x970] sm:$0xff] }
 0x393   : > { %10722 = vmatpush2.bf16.msra.mxu1 %v12109_v5  ;;  %v706_v63 = vld [vmem:[%s13895_s3 + $0xd50] sm:$0xff]  ;;  %v12205_v5 = vcombine.low %v586_v24, %v590_v38  ;;  %v12198_v15 = vcombine.high %v578_v53, %v582_v56 }
 0x394   : > { %10723 = vmatprep.subr.bf16.mxu1 %v12102_v9  ;;  %v710_v13 = vld [vmem:[%s13895_s3 + $0xd70] sm:$0xff]  ;;  %v12333_v9 = vcombine.low %v714_v43, %v718_v62 }
 0x395   : > { %10683 = vmatpush2.bf16.msra.mxu0 %v11973_v17  ;;  %v570_v17 = vld [vmem:[%s13895_s3 + $0x910] sm:$0xff] }
 0x396   : > { %10684 = vmatprep.subr.bf16.mxu0 %v11966_v8  ;;  %v702_v18 = vld [vmem:[%s13895_s3 + $0xd30] sm:$0xff] }
 0x397   : > { %10724 = vmatpush2.bf16.msra.mxu1 %v12101_v39  ;;  %v574_v39 = vld [vmem:[%s13895_s3 + $0x930] sm:$0xff] }
 0x398   : > { %10725 = vmatprep.subr.bf16.mxu1 %v12094_v21  ;;  %v698_v21 = vld [vmem:[%s13895_s3 + $0xd10] sm:$0xff] }
 0x399   : > { %10685 = vmatpush2.bf16.msra.mxu0 %v11965_v30  ;;  %v12325_v30 = vcombine.low %v706_v63, %v710_v13  ;;  %v562_v24 = vld [vmem:[%s13895_s3 + $0x8d0] sm:$0xff] }
 0x39a   : > { %10736 = vmatprep.subr.bf16.mxu0 %v12214_v34  ;;  %v566_v38 = vld [vmem:[%s13895_s3 + $0x8f0] sm:$0xff] }
 0x39b   : > { %10726 = vmatpush2.bf16.msra.mxu1 %v12093_v46  ;;  %v12190_v46 = vcombine.high %v570_v17, %v574_v39  ;;  %v690_v43 = vld [vmem:[%s13895_s3 + $0xcd0] sm:$0xff] }
 0x39c   : > { %10777 = vmatprep.subr.bf16.mxu1 %v12342_v54  ;;  %v10442_v58 = vpop.f32.mrf.mxu0  ;;  %10687 = vmatmul.mubr.bf16.vlgmr.msra.gmra.mxu0 %v14024_v23  ;;  %v12318_v54 = vcombine.high %v698_v21, %v702_v18  ;;  %v694_v62 = vld [vmem:[%s13895_s3 + $0xcf0] sm:$0xff] }
 0x39d   : > { %v10443_v2 = vadd.f32 %v10442_v58, %v14942_v59  ;;  %10737 = vmatpush1.bf16.msra.mxu0 %v12213_v47  ;;  %v12326_v59 = vcombine.high %v706_v63, %v710_v13  ;;  %10768 = vmatprep.mubr.bf16.mxu0 %v14031_v31  ;;  %v12189_v47 = vcombine.low %v570_v17, %v574_v39  ;;  %v682_v58 = vld [vmem:[%s13895_s3 + $0xc90] sm:$0xff] }
 0x39e   : > { %v10483_v3 = vpop.f32.mrf.mxu1  ;;  %10728 = vmatmul.mubr.bf16.vlgmr.msra.gmra.mxu1 %v14035_v0  ;;  %v10444_v7 = vpop.f32.mrf.mxu0  ;;  %10738 = vmatprep.subr.bf16.mxu0 %v12206_v1  ;;  %v12182_v1 = vcombine.high %v562_v24, %v566_v38  ;;  %v686_v63 = vld [vmem:[%s13895_s3 + $0xcb0] sm:$0xff]  ;;  %v12181_v13 = vcombine.low %v562_v24, %v566_v38 }
 0x39f   : > { %10778 = vmatpush1.bf16.msra.mxu1 %v12341_v49  ;;  %v15016_v16 = vadd.f32 %v10483_v3, %v10443_v2  ;;  %v10445_v28 = vadd.f32 %v10444_v7, %v14951_v19  ;;  %10809 = vmatprep.mubr.bf16.mxu1 %v14044_v40  ;;  %v12197_v19 = vcombine.low %v578_v53, %v582_v56  ;;  %v554_v53 = vld [vmem:[%s13895_s3 + $0x890] sm:$0xff] }
 0x3a0   : > { %v10485_v29 = vpop.f32.mrf.mxu1  ;;  %10779 = vmatprep.subr.bf16.mxu1 %v12334_v51  ;;  %v10446_v8 = vpop.f32.mrf.mxu0  ;;  %v12317_v49 = vcombine.low %v698_v21, %v702_v18  ;;  %v12310_v51 = vcombine.high %v690_v43, %v694_v62  ;;  %v558_v56 = vld [vmem:[%s13895_s3 + $0x8b0] sm:$0xff]  ;;  %v12309_v2 = vcombine.low %v690_v43, %v694_v62 }
 0x3a1   : > { %v15025_v27 = vadd.f32 %v10485_v29, %v10445_v28  ;;  %10739 = vmatpush1.bf16.msra.mxu0 %v12205_v5  ;;  %v12174_v3 = vcombine.high %v554_v53, %v558_v56  ;;  %v12302_v5 = vcombine.high %v682_v58, %v686_v63  ;;  %v546_v7 = vld [vmem:[%s13895_s3 + $0x850] sm:$0xff]  ;;  %v12173_v29 = vcombine.low %v554_v53, %v558_v56 }
 0x3a2   : > { %v10487_v42 = vpop.f32.mrf.mxu1  ;;  %v10447_v52 = vpop.f32.mrf.mxu0  ;;  %10740 = vmatprep.subr.bf16.mxu0 %v12198_v15  ;;  %v674_v15 = vld [vmem:[%s13895_s3 + $0xc50] sm:$0xff] }
 0x3a3   : > { %10780 = vmatpush1.bf16.msra.mxu1 %v12333_v9  ;;  %v550_v9 = vld [vmem:[%s13895_s3 + $0x870] sm:$0xff] }
 0x3a4   : > { %v10488_v34 = vpop.f32.mrf.mxu1  ;;  %10781 = vmatprep.subr.bf16.mxu1 %v12326_v59  ;;  %v678_v28 = vld [vmem:[%s13895_s3 + $0xc70] sm:$0xff]  ;;  %v12301_v59 = vcombine.low %v682_v58, %v686_v63  ;;  %v12166_v17 = vcombine.high %v546_v7, %v550_v9 }
 0x3a5   : > { %10741 = vmatpush1.bf16.msra.mxu0 %v12197_v19  ;;  %v12294_v39 = vcombine.high %v674_v15, %v678_v28  ;;  %v538_v8 = vld [vmem:[%s13895_s3 + $0x810] sm:$0xff]  ;;  %v12165_v19 = vcombine.low %v546_v7, %v550_v9  ;;  %v12293_v52 = vcombine.low %v674_v15, %v678_v28 }
 0x3a6   : > { %10742 = vmatprep.subr.bf16.mxu0 %v12190_v46  ;;  %v542_v21 = vld [vmem:[%s13895_s3 + $0x830] sm:$0xff] }
 0x3a7   : > { %10782 = vmatpush1.bf16.msra.mxu1 %v12325_v30  ;;  %v666_v18 = vld [vmem:[%s13895_s3 + $0xc10] sm:$0xff]  ;;  %v12158_v30 = vcombine.high %v538_v8, %v542_v21  ;;  %v12157_v43 = vcombine.low %v538_v8, %v542_v21 }
 0x3a8   : > { %10783 = vmatprep.subr.bf16.mxu1 %v12318_v54  ;;  %v670_v42 = vld [vmem:[%s13895_s3 + $0xc30] sm:$0xff] }
 0x3a9   : > { %10743 = vmatpush1.bf16.msra.mxu0 %v12189_v47  ;;  %v12286_v46 = vcombine.high %v666_v18, %v670_v42  ;;  %v658_v34 = vld [vmem:[%s13895_s3 + $0xbd0] sm:$0xff]  ;;  %v12285_v62 = vcombine.low %v666_v18, %v670_v42 }
 0x3aa   : > { %10744 = vmatprep.subr.bf16.mxu0 %v12182_v1  ;;  %v662_v54 = vld [vmem:[%s13895_s3 + $0xbf0] sm:$0xff] }
 0x3ab   : > { %10784 = vmatpush1.bf16.msra.mxu1 %v12317_v49  ;;  %v786_v24 = vld [vmem:[%s13895_s3 + $0xfd0] sm:$0xff]  ;;  %v12278_v47 = vcombine.high %v658_v34, %v662_v54  ;;  %v12277_v58 = vcombine.low %v658_v34, %v662_v54 }
 0x3ac   : > { %10785 = vmatprep.subr.bf16.mxu1 %v12310_v51  ;;  %v790_v38 = vld [vmem:[%s13895_s3 + $0xff0] sm:$0xff] }
 0x3ad   : > { %10745 = vmatpush1.bf16.msra.mxu0 %v12181_v13  ;;  %v12406_v49 = vcombine.high %v786_v24, %v790_v38  ;;  %v650_v1 = vld [vmem:[%s13895_s3 + $0xb90] sm:$0xff]  ;;  %v12405_v63 = vcombine.low %v786_v24, %v790_v38 }
 0x3ae   : > { %10746 = vmatprep.subr.bf16.mxu0 %v12174_v3  ;;  %v654_v51 = vld [vmem:[%s13895_s3 + $0xbb0] sm:$0xff] }
 0x3af   : > { %10786 = vmatpush1.bf16.msra.mxu1 %v12309_v2  ;;  %v778_v53 = vld [vmem:[%s13895_s3 + $0xf90] sm:$0xff]  ;;  %v12270_v13 = vcombine.high %v650_v1, %v654_v51  ;;  %v12269_v15 = vcombine.low %v650_v1, %v654_v51 }
 0x3b0   : > { %10787 = vmatprep.subr.bf16.mxu1 %v12302_v5  ;;  %v782_v56 = vld [vmem:[%s13895_s3 + $0xfb0] sm:$0xff] }
 0x3b1   : > { %10747 = vmatpush1.bf16.msra.mxu0 %v12173_v29  ;;  %v12398_v2 = vcombine.high %v778_v53, %v782_v56  ;;  %v642_v3 = vld [vmem:[%s13895_s3 + $0xb50] sm:$0xff]  ;;  %v12397_v28 = vcombine.low %v778_v53, %v782_v56 }
 0x3b2   : > { %10748 = vmatprep.subr.bf16.mxu0 %v12166_v17  ;;  %v646_v5 = vld [vmem:[%s13895_s3 + $0xb70] sm:$0xff] }
 0x3b3   : > { %10788 = vmatpush1.bf16.msra.mxu1 %v12301_v59  ;;  %v770_v7 = vld [vmem:[%s13895_s3 + $0xf50] sm:$0xff]  ;;  %v12262_v29 = vcombine.high %v642_v3, %v646_v5  ;;  %v12261_v18 = vcombine.low %v642_v3, %v646_v5 }
 0x3b4   : > { %10789 = vmatprep.subr.bf16.mxu1 %v12294_v39  ;;  %v774_v9 = vld [vmem:[%s13895_s3 + $0xf70] sm:$0xff] }
 0x3b5   : > { %10749 = vmatpush1.bf16.msra.mxu0 %v12165_v19  ;;  %v12390_v59 = vcombine.high %v770_v7, %v774_v9  ;;  %v634_v17 = vld [vmem:[%s13895_s3 + $0xb10] sm:$0xff]  ;;  %v12389_v42 = vcombine.low %v770_v7, %v774_v9 }
 0x3b6   : > { %10750 = vmatprep.subr.bf16.mxu0 %v12158_v30  ;;  %v638_v39 = vld [vmem:[%s13895_s3 + $0xb30] sm:$0xff] }
 0x3b7   : > { %10790 = vmatpush1.bf16.msra.mxu1 %v12293_v52  ;;  %v762_v8 = vld [vmem:[%s13895_s3 + $0xf10] sm:$0xff]  ;;  %v12254_v19 = vcombine.high %v634_v17, %v638_v39  ;;  %v12253_v24 = vcombine.low %v634_v17, %v638_v39 }
 0x3b8   : > { %10791 = vmatprep.subr.bf16.mxu1 %v12286_v46  ;;  %v766_v21 = vld [vmem:[%s13895_s3 + $0xf30] sm:$0xff] }
 0x3b9   : > { %10751 = vmatpush1.bf16.msra.mxu0 %v12157_v43  ;;  %v12382_v52 = vcombine.high %v762_v8, %v766_v21  ;;  %v626_v30 = vld [vmem:[%s13895_s3 + $0xad0] sm:$0xff]  ;;  %v12381_v38 = vcombine.low %v762_v8, %v766_v21 }
 0x3ba   : > { %10752 = vmatprep.subr.bf16.mxu0 %v12278_v47  ;;  %v630_v46 = vld [vmem:[%s13895_s3 + $0xaf0] sm:$0xff] }
 0x3bb   : > { %10792 = vmatpush1.bf16.msra.mxu1 %v12285_v62  ;;  %v754_v34 = vld [vmem:[%s13895_s3 + $0xed0] sm:$0xff]  ;;  %v12246_v43 = vcombine.high %v626_v30, %v630_v46  ;;  %v12245_v53 = vcombine.low %v626_v30, %v630_v46 }
 0x3bc   : > { %10793 = vmatprep.subr.bf16.mxu1 %v12406_v49  ;;  %v758_v54 = vld [vmem:[%s13895_s3 + $0xef0] sm:$0xff] }
 0x3bd   : > { %10753 = vmatpush2.bf16.msra.mxu0 %v12277_v58  ;;  %v12374_v62 = vcombine.high %v754_v34, %v758_v54  ;;  %v618_v47 = vld [vmem:[%s13895_s3 + $0xa90] sm:$0xff]  ;;  %v12373_v56 = vcombine.low %v754_v34, %v758_v54 }
 0x3be   : > { %10754 = vmatprep.subr.bf16.mxu0 %v12270_v13  ;;  %v622_v49 = vld [vmem:[%s13895_s3 + $0xab0] sm:$0xff] }
 0x3bf   : > { %10794 = vmatpush2.bf16.msra.mxu1 %v12405_v63  ;;  %v746_v1 = vld [vmem:[%s13895_s3 + $0xe90] sm:$0xff]  ;;  %v12238_v58 = vcombine.high %v618_v47, %v622_v49  ;;  %v12237_v7 = vcombine.low %v618_v47, %v622_v49 }
 0x3c0   : > { %10795 = vmatprep.subr.bf16.mxu1 %v12398_v2  ;;  %v750_v51 = vld [vmem:[%s13895_s3 + $0xeb0] sm:$0xff] }
 0x3c1   : > { %10755 = vmatpush2.bf16.msra.mxu0 %v12269_v15  ;;  %v12366_v63 = vcombine.high %v746_v1, %v750_v51  ;;  %v610_v13 = vld [vmem:[%s13895_s3 + $0xa50] sm:$0xff]  ;;  %v12365_v9 = vcombine.low %v746_v1, %v750_v51 }
 0x3c2   : > { %10756 = vmatprep.subr.bf16.mxu0 %v12262_v29  ;;  %v614_v2 = vld [vmem:[%s13895_s3 + $0xa70] sm:$0xff] }
 0x3c3   : > { %10796 = vmatpush2.bf16.msra.mxu1 %v12397_v28  ;;  %v738_v3 = vld [vmem:[%s13895_s3 + $0xe50] sm:$0xff]  ;;  %v12230_v15 = vcombine.high %v610_v13, %v614_v2  ;;  %v12229_v8 = vcombine.low %v610_v13, %v614_v2 }
 0x3c4   : > { %10797 = vmatprep.subr.bf16.mxu1 %v12390_v59  ;;  %v742_v5 = vld [vmem:[%s13895_s3 + $0xe70] sm:$0xff] }
 0x3c5   : > { %10757 = vmatpush2.bf16.msra.mxu0 %v12261_v18  ;;  %v12358_v28 = vcombine.high %v738_v3, %v742_v5  ;;  %v602_v29 = vld [vmem:[%s13895_s3 + $0xa10] sm:$0xff]  ;;  %v12357_v21 = vcombine.low %v738_v3, %v742_v5 }
 0x3c6   : > { %10758 = vmatprep.subr.bf16.mxu0 %v12254_v19  ;;  %v606_v59 = vld [vmem:[%s13895_s3 + $0xa30] sm:$0xff] }
 0x3c7   : > { %10798 = vmatpush2.bf16.msra.mxu1 %v12389_v42  ;;  %v730_v17 = vld [vmem:[%s13895_s3 + $0xe10] sm:$0xff]  ;;  %v12222_v18 = vcombine.high %v602_v29, %v606_v59  ;;  %v12221_v34 = vcombine.low %v602_v29, %v606_v59 }
 0x3c8   : > { %10799 = vmatprep.subr.bf16.mxu1 %v12382_v52  ;;  %v734_v39 = vld [vmem:[%s13895_s3 + $0xe30] sm:$0xff] }
 0x3c9   : > { %10759 = vmatpush2.bf16.msra.mxu0 %v12253_v24  ;;  %v12350_v42 = vcombine.high %v730_v17, %v734_v39  ;;  %v850_v19 = vld [vmem:[%s13895_s3 + $0x11d0] sm:$0xff]  ;;  %v12349_v54 = vcombine.low %v730_v17, %v734_v39 }
 0x3ca   : > { %10760 = vmatprep.subr.bf16.mxu0 %v12246_v43  ;;  %v854_v52 = vld [vmem:[%s13895_s3 + $0x11f0] sm:$0xff] }
 0x3cb   : > { %10800 = vmatpush2.bf16.msra.mxu1 %v12381_v38  ;;  %v978_v30 = vld [vmem:[%s13895_s3 + $0x15d0] sm:$0xff]  ;;  %v12470_v24 = vcombine.high %v850_v19, %v854_v52  ;;  %v12469_v1 = vcombine.low %v850_v19, %v854_v52 }
 0x3cc   : > { %10801 = vmatprep.subr.bf16.mxu1 %v12374_v62  ;;  %v982_v46 = vld [vmem:[%s13895_s3 + $0x15f0] sm:$0xff] }
 0x3cd   : > { %10761 = vmatpush2.bf16.msra.mxu0 %v12245_v53  ;;  %v12598_v38 = vcombine.high %v978_v30, %v982_v46  ;;  %v842_v43 = vld [vmem:[%s13895_s3 + $0x1190] sm:$0xff]  ;;  %v12597_v51 = vcombine.low %v978_v30, %v982_v46 }
 0x3ce   : > { %10762 = vmatprep.subr.bf16.mxu0 %v12238_v58  ;;  %v846_v62 = vld [vmem:[%s13895_s3 + $0x11b0] sm:$0xff] }
 0x3cf   : > { %10802 = vmatpush2.bf16.msra.mxu1 %v12373_v56  ;;  %v970_v47 = vld [vmem:[%s13895_s3 + $0x1590] sm:$0xff]  ;;  %v12462_v53 = vcombine.high %v842_v43, %v846_v62 }
 0x3d0   : > { %10803 = vmatprep.subr.bf16.mxu1 %v12366_v63  ;;  %v974_v49 = vld [vmem:[%s13895_s3 + $0x15b0] sm:$0xff] }
 0x3d1   : > { %10763 = vmatpush2.bf16.msra.mxu0 %v12237_v7  ;;  %v12590_v56 = vcombine.high %v970_v47, %v974_v49  ;;  %v834_v58 = vld [vmem:[%s13895_s3 + $0x1150] sm:$0xff]  ;;  %v12461_v7 = vcombine.low %v842_v43, %v846_v62 }
 0x3d2   : > { %10764 = vmatprep.subr.bf16.mxu0 %v12230_v15  ;;  %v838_v63 = vld [vmem:[%s13895_s3 + $0x1170] sm:$0xff]  ;;  %v12589_v15 = vcombine.low %v970_v47, %v974_v49 }
 0x3d3   : > { %10804 = vmatpush2.bf16.msra.mxu1 %v12365_v9  ;;  %v962_v2 = vld [vmem:[%s13895_s3 + $0x1550] sm:$0xff]  ;;  %v12453_v19 = vcombine.low %v834_v58, %v838_v63 }
 0x3d4   : > { %10805 = vmatprep.subr.bf16.mxu1 %v12358_v28  ;;  %v966_v3 = vld [vmem:[%s13895_s3 + $0x1570] sm:$0xff]  ;;  %v12454_v28 = vcombine.high %v834_v58, %v838_v63 }
 0x3d5   : > { %10765 = vmatpush2.bf16.msra.mxu0 %v12229_v8  ;;  %v12582_v59 = vcombine.high %v962_v2, %v966_v3  ;;  %v826_v17 = vld [vmem:[%s13895_s3 + $0x1110] sm:$0xff]  ;;  %v12581_v30 = vcombine.low %v962_v2, %v966_v3 }
 0x3d6   : > { %10766 = vmatprep.subr.bf16.mxu0 %v12222_v18  ;;  %v830_v39 = vld [vmem:[%s13895_s3 + $0x1130] sm:$0xff] }
 0x3d7   : > { %10806 = vmatpush2.bf16.msra.mxu1 %v12357_v21  ;;  %v954_v21 = vld [vmem:[%s13895_s3 + $0x1510] sm:$0xff]  ;;  %v12446_v46 = vcombine.high %v826_v17, %v830_v39  ;;  %v12445_v47 = vcombine.low %v826_v17, %v830_v39 }
 0x3d8   : > { %10807 = vmatprep.subr.bf16.mxu1 %v12350_v42  ;;  %v958_v18 = vld [vmem:[%s13895_s3 + $0x1530] sm:$0xff] }
 0x3d9   : > { %10767 = vmatpush2.bf16.msra.mxu0 %v12221_v34  ;;  %v946_v43 = vld [vmem:[%s13895_s3 + $0x14d0] sm:$0xff]  ;;  %v12573_v49 = vcombine.low %v954_v21, %v958_v18 }
 0x3da   : > { %10818 = vmatprep.subr.bf16.mxu0 %v12470_v24  ;;  %v818_v24 = vld [vmem:[%s13895_s3 + $0x10d0] sm:$0xff] }
 0x3db   : > { %10808 = vmatpush2.bf16.msra.mxu1 %v12349_v54  ;;  %v12574_v54 = vcombine.high %v954_v21, %v958_v18  ;;  %v950_v62 = vld [vmem:[%s13895_s3 + $0x14f0] sm:$0xff] }
 0x3dc   : > { %10859 = vmatprep.subr.bf16.mxu1 %v12598_v38  ;;  %v15085_v13 = vpop.f32.mrf.mxu0  ;;  %10769 = vmatmul.mubr.bf16.vlgmr.msra.gmra.mxu0 %v14116_v48  ;;  %v822_v38 = vld [vmem:[%s13895_s3 + $0x10f0] sm:$0xff]  ;;  %v12565_v3 = vcombine.low %v946_v43, %v950_v62 }
 0x3dd   : > { %10819 = vmatpush1.bf16.msra.mxu0 %v12469_v1  ;;  %10850 = vmatprep.mubr.bf16.mxu0 %v14123_v57  ;;  %v12438_v1 = vcombine.high %v818_v24, %v822_v38  ;;  %v938_v58 = vld [vmem:[%s13895_s3 + $0x1490] sm:$0xff]  ;;  %v12437_v2 = vcombine.low %v818_v24, %v822_v38 }
 0x3de   : > { %v15090_v5 = vpop.f32.mrf.mxu1  ;;  %10810 = vmatmul.mubr.bf16.vlgmr.msra.gmra.mxu1 %v14127_v12  ;;  %v15093_v9 = vpop.f32.mrf.mxu0  ;;  %10820 = vmatprep.subr.bf16.mxu0 %v12462_v53  ;;  %v810_v53 = vld [vmem:[%s13895_s3 + $0x1090] sm:$0xff] }
 0x3df   : > { %10860 = vmatpush1.bf16.msra.mxu1 %v12597_v51  ;;  %10891 = vmatprep.mubr.bf16.mxu1 %v14136_v4  ;;  %v12566_v51 = vcombine.high %v946_v43, %v950_v62  ;;  %v942_v63 = vld [vmem:[%s13895_s3 + $0x14b0] sm:$0xff] }
 0x3e0   : > { %v15095_v29 = vpop.f32.mrf.mxu1  ;;  %10861 = vmatprep.subr.bf16.mxu1 %v12590_v56  ;;  %v10528_v8 = vpop.f32.mrf.mxu0  ;;  %v814_v56 = vld [vmem:[%s13895_s3 + $0x10b0] sm:$0xff]  ;;  %v12557_v21 = vcombine.low %v938_v58, %v942_v63 }
 0x3e1   : > { %10821 = vmatpush1.bf16.msra.mxu0 %v12461_v7  ;;  %v12430_v7 = vcombine.high %v810_v53, %v814_v56  ;;  %v930_v17 = vld [vmem:[%s13895_s3 + $0x1450] sm:$0xff]  ;;  %v12429_v8 = vcombine.low %v810_v53, %v814_v56 }
 0x3e2   : > { %v10569_v42 = vpop.f32.mrf.mxu1  ;;  %v10529_v52 = vpop.f32.mrf.mxu0  ;;  %10822 = vmatprep.subr.bf16.mxu0 %v12454_v28  ;;  %v802_v28 = vld [vmem:[%s13895_s3 + $0x1050] sm:$0xff] }
 0x3e3   : > { %10862 = vmatpush1.bf16.msra.mxu1 %v12589_v15  ;;  %v12558_v15 = vcombine.high %v938_v58, %v942_v63  ;;  %v934_v39 = vld [vmem:[%s13895_s3 + $0x1470] sm:$0xff] }
 0x3e4   : > { %v10570_v34 = vpop.f32.mrf.mxu1  ;;  %10863 = vmatprep.subr.bf16.mxu1 %v12582_v59  ;;  %v806_v59 = vld [vmem:[%s13895_s3 + $0x1070] sm:$0xff]  ;;  %v12550_v42 = vcombine.high %v930_v17, %v934_v39 }
 0x3e5   : > { %10823 = vmatpush1.bf16.msra.mxu0 %v12453_v19  ;;  %v12422_v18 = vcombine.high %v802_v28, %v806_v59  ;;  %v794_v19 = vld [vmem:[%s13895_s3 + $0x1010] sm:$0xff]  ;;  %v12421_v34 = vcombine.low %v802_v28, %v806_v59 }
 0x3e6   : > { %10824 = vmatprep.subr.bf16.mxu0 %v12446_v46  ;;  %v798_v52 = vld [vmem:[%s13895_s3 + $0x1030] sm:$0xff] }
 0x3e7   : > { %10864 = vmatpush1.bf16.msra.mxu1 %v12581_v30  ;;  %v922_v30 = vld [vmem:[%s13895_s3 + $0x1410] sm:$0xff]  ;;  %v12414_v24 = vcombine.high %v794_v19, %v798_v52 }
 0x3e8   : > { %10865 = vmatprep.subr.bf16.mxu1 %v12574_v54  ;;  %v926_v46 = vld [vmem:[%s13895_s3 + $0x1430] sm:$0xff]  ;;  %v12549_v54 = vcombine.low %v930_v17, %v934_v39 }
 0x3e9   : > { %10825 = vmatpush1.bf16.msra.mxu0 %v12445_v47  ;;  %v12542_v38 = vcombine.high %v922_v30, %v926_v46  ;;  %v914_v43 = vld [vmem:[%s13895_s3 + $0x13d0] sm:$0xff] }
 0x3ea   : > { %10826 = vmatprep.subr.bf16.mxu0 %v12438_v1  ;;  %v918_v62 = vld [vmem:[%s13895_s3 + $0x13f0] sm:$0xff]  ;;  %v12413_v1 = vcombine.low %v794_v19, %v798_v52 }
 0x3eb   : > { %10866 = vmatpush1.bf16.msra.mxu1 %v12573_v49  ;;  %v1042_v47 = vld [vmem:[%s13895_s3 + $0x17d0] sm:$0xff]  ;;  %v12534_v53 = vcombine.high %v914_v43, %v918_v62 }
 0x3ec   : > { %10867 = vmatprep.subr.bf16.mxu1 %v12566_v51  ;;  %v1046_v49 = vld [vmem:[%s13895_s3 + $0x17f0] sm:$0xff]  ;;  %v12541_v51 = vcombine.low %v922_v30, %v926_v46 }
 0x3ed   : > { %10827 = vmatpush1.bf16.msra.mxu0 %v12437_v2  ;;  %v12662_v56 = vcombine.high %v1042_v47, %v1046_v49  ;;  %v906_v58 = vld [vmem:[%s13895_s3 + $0x1390] sm:$0xff] }
 0x3ee   : > { %10828 = vmatprep.subr.bf16.mxu0 %v12430_v7  ;;  %v910_v63 = vld [vmem:[%s13895_s3 + $0x13b0] sm:$0xff]  ;;  %v12533_v7 = vcombine.low %v914_v43, %v918_v62 }
 0x3ef   : > { %10868 = vmatpush1.bf16.msra.mxu1 %v12565_v3  ;;  %v1034_v2 = vld [vmem:[%s13895_s3 + $0x1790] sm:$0xff]  ;;  %v12526_v28 = vcombine.high %v906_v58, %v910_v63 }
 0x3f0   : > { %10869 = vmatprep.subr.bf16.mxu1 %v12558_v15  ;;  %v1038_v3 = vld [vmem:[%s13895_s3 + $0x17b0] sm:$0xff]  ;;  %v12661_v15 = vcombine.low %v1042_v47, %v1046_v49 }
 0x3f1   : > { %10829 = vmatpush1.bf16.msra.mxu0 %v12429_v8  ;;  %v12654_v59 = vcombine.high %v1034_v2, %v1038_v3  ;;  %v898_v17 = vld [vmem:[%s13895_s3 + $0x1350] sm:$0xff] }
 0x3f2   : > { %10830 = vmatprep.subr.bf16.mxu0 %v12422_v18  ;;  %v902_v39 = vld [vmem:[%s13895_s3 + $0x1370] sm:$0xff]  ;;  %v12525_v18 = vcombine.low %v906_v58, %v910_v63 }
 0x3f3   : > { %10870 = vmatpush1.bf16.msra.mxu1 %v12557_v21  ;;  %v1026_v8 = vld [vmem:[%s13895_s3 + $0x1750] sm:$0xff]  ;;  %v12518_v19 = vcombine.high %v898_v17, %v902_v39 }
 0x3f4   : > { %10871 = vmatprep.subr.bf16.mxu1 %v12550_v42  ;;  %v1030_v21 = vld [vmem:[%s13895_s3 + $0x1770] sm:$0xff]  ;;  %v12653_v42 = vcombine.low %v1034_v2, %v1038_v3 }
 0x3f5   : > { %10831 = vmatpush1.bf16.msra.mxu0 %v12421_v34  ;;  %v12646_v52 = vcombine.high %v1026_v8, %v1030_v21  ;;  %v890_v30 = vld [vmem:[%s13895_s3 + $0x1310] sm:$0xff] }
 0x3f6   : > { %10832 = vmatprep.subr.bf16.mxu0 %v12414_v24  ;;  %v894_v46 = vld [vmem:[%s13895_s3 + $0x1330] sm:$0xff]  ;;  %v12517_v24 = vcombine.low %v898_v17, %v902_v39 }
 0x3f7   : > { %10872 = vmatpush1.bf16.msra.mxu1 %v12549_v54  ;;  %v1018_v34 = vld [vmem:[%s13895_s3 + $0x1710] sm:$0xff]  ;;  %v12510_v43 = vcombine.high %v890_v30, %v894_v46 }
 0x3f8   : > { %10873 = vmatprep.subr.bf16.mxu1 %v12542_v38  ;;  %v1022_v54 = vld [vmem:[%s13895_s3 + $0x1730] sm:$0xff]  ;;  %v12645_v38 = vcombine.low %v1026_v8, %v1030_v21 }
 0x3f9   : > { %10833 = vmatpush1.bf16.msra.mxu0 %v12413_v1  ;;  %v12638_v62 = vcombine.high %v1018_v34, %v1022_v54  ;;  %v882_v47 = vld [vmem:[%s13895_s3 + $0x12d0] sm:$0xff] }
 0x3fa   : > { %10834 = vmatprep.subr.bf16.mxu0 %v12534_v53  ;;  %v886_v49 = vld [vmem:[%s13895_s3 + $0x12f0] sm:$0xff]  ;;  %v12509_v53 = vcombine.low %v890_v30, %v894_v46 }
 0x3fb   : > { %10874 = vmatpush1.bf16.msra.mxu1 %v12541_v51  ;;  %v1010_v1 = vld [vmem:[%s13895_s3 + $0x16d0] sm:$0xff]  ;;  %v12502_v58 = vcombine.high %v882_v47, %v886_v49 }
 0x3fc   : > { %10875 = vmatprep.subr.bf16.mxu1 %v12662_v56  ;;  %v1014_v51 = vld [vmem:[%s13895_s3 + $0x16f0] sm:$0xff]  ;;  %v12637_v56 = vcombine.low %v1018_v34, %v1022_v54 }
 0x3fd   : > { %10835 = vmatpush2.bf16.msra.mxu0 %v12533_v7  ;;  %v12630_v63 = vcombine.high %v1010_v1, %v1014_v51  ;;  %v874_v2 = vld [vmem:[%s13895_s3 + $0x1290] sm:$0xff] }
 0x3fe   : > { %10836 = vmatprep.subr.bf16.mxu0 %v12526_v28  ;;  %v878_v3 = vld [vmem:[%s13895_s3 + $0x12b0] sm:$0xff]  ;;  %v12501_v28 = vcombine.low %v882_v47, %v886_v49 }
 0x3ff   : > { %10876 = vmatpush2.bf16.msra.mxu1 %v12661_v15  ;;  %v1002_v7 = vld [vmem:[%s13895_s3 + $0x1690] sm:$0xff]  ;;  %v12494_v17 = vcombine.high %v874_v2, %v878_v3 }
 0x400   : > { %10877 = vmatprep.subr.bf16.mxu1 %v12654_v59  ;;  %v1006_v15 = vld [vmem:[%s13895_s3 + $0x16b0] sm:$0xff]  ;;  %v12629_v59 = vcombine.low %v1010_v1, %v1014_v51 }
 0x401   : > { %10837 = vmatpush2.bf16.msra.mxu0 %v12525_v18  ;;  %v12622_v39 = vcombine.high %v1002_v7, %v1006_v15  ;;  %v866_v8 = vld [vmem:[%s13895_s3 + $0x1250] sm:$0xff] }
 0x402   : > { %10838 = vmatprep.subr.bf16.mxu0 %v12518_v19  ;;  %v870_v21 = vld [vmem:[%s13895_s3 + $0x1270] sm:$0xff]  ;;  %v12493_v19 = vcombine.low %v874_v2, %v878_v3  ;;  %v10525_v3 = vadd.f32 %v15085_v13, %v15016_v16 }
 0x403   : > { %10878 = vmatpush2.bf16.msra.mxu1 %v12653_v42  ;;  %v994_v18 = vld [vmem:[%s13895_s3 + $0x1650] sm:$0xff]  ;;  %v12486_v30 = vcombine.high %v866_v8, %v870_v21 }
 0x404   : > { %10879 = vmatprep.subr.bf16.mxu1 %v12646_v52  ;;  %v998_v42 = vld [vmem:[%s13895_s3 + $0x1670] sm:$0xff]  ;;  %v12621_v52 = vcombine.low %v1002_v7, %v1006_v15 }
 0x405   : > { %10839 = vmatpush2.bf16.msra.mxu0 %v12517_v24  ;;  %v12614_v46 = vcombine.high %v994_v18, %v998_v42  ;;  %v858_v34 = vld [vmem:[%s13895_s3 + $0x1210] sm:$0xff] }
 0x406   : > { %10840 = vmatprep.subr.bf16.mxu0 %v12510_v43  ;;  %v862_v54 = vld [vmem:[%s13895_s3 + $0x1230] sm:$0xff]  ;;  %v12485_v43 = vcombine.low %v866_v8, %v870_v21  ;;  %v10527_v21 = vadd.f32 %v15093_v9, %v15025_v27 }
 0x407   : > { %10880 = vmatpush2.bf16.msra.mxu1 %v12645_v38  ;;  %v986_v24 = vld [vmem:[%s13895_s3 + $0x1610] sm:$0xff]  ;;  %v12478_v47 = vcombine.high %v858_v34, %v862_v54 }
 0x408   : > { %10881 = vmatprep.subr.bf16.mxu1 %v12638_v62  ;;  %v990_v38 = vld [vmem:[%s13895_s3 + $0x1630] sm:$0xff]  ;;  %v12613_v62 = vcombine.low %v994_v18, %v998_v42  ;;  %v10566_v42 = vadd.f32 %v15090_v5, %v10525_v3  ;;  %v10568_v27 = vadd.f32 %v15095_v29, %v10527_v21 }
 0x409   : > { %10841 = vmatpush2.bf16.msra.mxu0 %v12509_v53  ;;  %v12606_v49 = vcombine.high %v986_v24, %v990_v38  ;;  %v1106_v1 = vld [vmem:[%s13895_s3 + $0x19d0] sm:$0xff] }
 0x40a   : > { %10842 = vmatprep.subr.bf16.mxu0 %v12502_v58  ;;  %v1110_v51 = vld [vmem:[%s13895_s3 + $0x19f0] sm:$0xff]  ;;  %v12477_v58 = vcombine.low %v858_v34, %v862_v54 }
 0x40b   : > { %10882 = vmatpush2.bf16.msra.mxu1 %v12637_v56  ;;  %v1234_v53 = vld [vmem:[%s13895_s3 + $0x1dd0] sm:$0xff]  ;;  %v12726_v2 = vcombine.high %v1106_v1, %v1110_v51  ;;  %v12725_v18 = vcombine.low %v1106_v1, %v1110_v51 }
 0x40c   : > { %10883 = vmatprep.subr.bf16.mxu1 %v12630_v63  ;;  %v1238_v56 = vld [vmem:[%s13895_s3 + $0x1df0] sm:$0xff]  ;;  %v12605_v63 = vcombine.low %v986_v24, %v990_v38 }
 0x40d   : > { %10843 = vmatpush2.bf16.msra.mxu0 %v12501_v28  ;;  %v12854_v7 = vcombine.high %v1234_v53, %v1238_v56  ;;  %v1098_v15 = vld [vmem:[%s13895_s3 + $0x1990] sm:$0xff]  ;;  %v12853_v16 = vcombine.low %v1234_v53, %v1238_v56 }
 0x40e   : > { %10844 = vmatprep.subr.bf16.mxu0 %v12494_v17  ;;  %v1102_v28 = vld [vmem:[%s13895_s3 + $0x19b0] sm:$0xff] }
 0x40f   : > { %10884 = vmatpush2.bf16.msra.mxu1 %v12629_v59  ;;  %v1226_v59 = vld [vmem:[%s13895_s3 + $0x1d90] sm:$0xff]  ;;  %v12718_v13 = vcombine.high %v1098_v15, %v1102_v28  ;;  %v12717_v5 = vcombine.low %v1098_v15, %v1102_v28 }
 0x410   : > { %10885 = vmatprep.subr.bf16.mxu1 %v12622_v39  ;;  %v1230_v17 = vld [vmem:[%s13895_s3 + $0x1db0] sm:$0xff]  ;;  %v13708_v39 = vmov 1983009808  }
 0x411   : > { %10845 = vmatpush2.bf16.msra.mxu0 %v12493_v19  ;;  %v11649_v8 = vunpack.c.l.s4 %v13708_v39  ;;  %v12846_v19 = vcombine.high %v1226_v59, %v1230_v17  ;;  %v1218_v34 = vld [vmem:[%s13895_s3 + $0x1d50] sm:$0xff] }
 0x412   : > { %10846 = vmatprep.subr.bf16.mxu0 %v12486_v30  ;;  %v1094_v30 = vld [vmem:[%s13895_s3 + $0x1970] sm:$0xff] }
 0x413   : > { %10886 = vmatpush2.bf16.msra.mxu1 %v12621_v52  ;;  %v1090_v52 = vld [vmem:[%s13895_s3 + $0x1950] sm:$0xff]  ;;  %v11650_v24 = vunpack.c.0.s8 %v11649_v8 }
 0x414   : > { %10887 = vmatprep.subr.bf16.mxu1 %v12614_v46  ;;  %v1222_v54 = vld [vmem:[%s13895_s3 + $0x1d70] sm:$0xff]  ;;  %v12709_v28 = vcombine.low %v1090_v52, %v1094_v30 }
 0x415   : > { %10847 = vmatpush2.bf16.msra.mxu0 %v12485_v43  ;;  %v12838_v51 = vcombine.high %v1218_v34, %v1222_v54  ;;  %v1082_v53 = vld [vmem:[%s13895_s3 + $0x1910] sm:$0xff] }
 0x416   : > { %10848 = vmatprep.subr.bf16.mxu0 %v12478_v47  ;;  %v12710_v47 = vcombine.high %v1090_v52, %v1094_v30  ;;  %v1086_v29 = vld [vmem:[%s13895_s3 + $0x1930] sm:$0xff] }
 0x417   : > { %10888 = vmatpush2.bf16.msra.mxu1 %v12613_v62  ;;  %v12845_v62 = vcombine.low %v1226_v59, %v1230_v17  ;;  %v12837_v17 = vcombine.low %v1218_v34, %v1222_v54  ;;  %v12702_v39 = vcombine.high %v1082_v53, %v1086_v29  ;;  %v275_v34 = vld [vmem:[%s13919_s6] sm:$0xff] }
 0x418   : > { %10889 = vmatprep.subr.bf16.mxu1 %v12606_v49 }
 0x419   : > { %10849 = vmatpush2.bf16.msra.mxu0 %v12477_v58  ;;  %v1210_v58 = vld [vmem:[%s13895_s3 + $0x1d10] sm:$0xff] }
 0x41a   : > { %10900 = vmatprep.subr.bf16.mxu0 %v12726_v2  ;;  %v15178_v2 = vsub.s32 %v11650_v24, %v13946_v45 }
 0x41b   : > { %10890 = vmatpush2.bf16.msra.mxu1 %v12605_v63  ;;  %v1214_v63 = vld [vmem:[%s13895_s3 + $0x1d30] sm:$0xff] }
 0x41c   : > { %10941 = vmatprep.subr.bf16.mxu1 %v12854_v7  ;;  %v10606_v46 = vpop.f32.mrf.mxu0  ;;  %10851 = vmatmul.mubr.bf16.vlgmr.msra.gmra.mxu0 %v14206_v22  ;;  %v11654_v52 = vrot.slane %v11646_v32, %v15178_v2  ;;  %v12829_v54 = vcombine.low %v1210_v58, %v1214_v63  ;;  %v1198_v32 = vld [vmem:[%s13895_s3 + $0x1cb0] sm:$0xff] }
 0x41d   : > { %v10607_v9 = vadd.f32 %v10606_v46, %v10566_v42  ;;  %10901 = vmatpush1.bf16.msra.mxu0 %v12725_v18  ;;  %10932 = vmatprep.mubr.bf16.mxu0 %v14213_v33  ;;  %v12830_v18 = vcombine.high %v1210_v58, %v1214_v63  ;;  %v1202_v42 = vld [vmem:[%s13895_s3 + $0x1cd0] sm:$0xff]  ;;  %v12701_v46 = vcombine.low %v1082_v53, %v1086_v29 }
 0x41e   : > { %v10647_v38 = vpop.f32.mrf.mxu1  ;;  %10892 = vmatmul.mubr.bf16.vlgmr.msra.gmra.mxu1 %v14217_v35  ;;  %v10608_v43 = vpop.f32.mrf.mxu0  ;;  %10902 = vmatprep.subr.bf16.mxu0 %v12718_v13  ;;  %v1078_v13 = vld [vmem:[%s13895_s3 + $0x18f0] sm:$0xff]  ;;  %v12813_v58 = vcombine.low %v1194_v25, %v1198_v32 }
 0x41f   : > { %10942 = vmatpush1.bf16.msra.mxu1 %v12853_v16  ;;  %v10609_v49 = vadd.f32 %v10608_v43, %v10568_v27  ;;  %10973 = vmatprep.mubr.bf16.mxu1 %v14226_v44  ;;  %v10648_v3 = vadd.f32 %v10647_v38, %v10607_v9  ;;  %v1074_v16 = vld [vmem:[%s13895_s3 + $0x18d0] sm:$0xff] }
 0x420   : > { %v10649_v1 = vpop.f32.mrf.mxu1  ;;  %10943 = vmatprep.subr.bf16.mxu1 %v12846_v19  ;;  %v10610_v56 = vpop.f32.mrf.mxu0  ;;  %v1206_v19 = vld [vmem:[%s13895_s3 + $0x1cf0] sm:$0xff]  ;;  %v12694_v24 = vcombine.high %v1074_v16, %v1078_v13  ;;  %v12693_v43 = vcombine.low %v1074_v16, %v1078_v13 }
 0x421   : > { %v10650_v7 = vadd.f32 %v10649_v1, %v10609_v49  ;;  %10903 = vmatpush1.bf16.msra.mxu0 %v12717_v5  ;;  %v12822_v9 = vcombine.high %v1202_v42, %v1206_v19  ;;  %v1066_v38 = vld [vmem:[%s13895_s3 + $0x1890] sm:$0xff]  ;;  %v12814_v49 = vcombine.high %v1194_v25, %v1198_v32 }
 0x422   : > { %v10651_v15 = vpop.f32.mrf.mxu1  ;;  %v10611_v59 = vpop.f32.mrf.mxu0  ;;  %10904 = vmatprep.subr.bf16.mxu0 %v12710_v47  ;;  %v12686_v47 = vcombine.high %v1066_v38, %v1070_v60  ;;  %v1058_v1 = vld [vmem:[%s13895_s3 + $0x1850] sm:$0xff]  ;;  %v12685_v56 = vcombine.low %v1066_v38, %v1070_v60 }
 0x423   : > { %10944 = vmatpush1.bf16.msra.mxu1 %v12845_v62  ;;  %v11647_v8 = vcombine.low %v10648_v3, %v10650_v7  ;;  %v12821_v62 = vcombine.low %v1202_v42, %v1206_v19  ;;  %v1186_v53 = vld [vmem:[%s13895_s3 + $0x1c50] sm:$0xff] }
 0x424   : > { %v10652_v21 = vpop.f32.mrf.mxu1  ;;  %10945 = vmatprep.subr.bf16.mxu1 %v12838_v51  ;;  %v1062_v51 = vld [vmem:[%s13895_s3 + $0x1870] sm:$0xff] }
 0x425   : > { %v11661_v30 = vrot.slane %v11647_v8, %v15178_v2  ;;  %10905 = vmatpush1.bf16.msra.mxu0 %v12709_v28  ;;  %v1190_v29 = vld [vmem:[%s13895_s3 + $0x1c70] sm:$0xff]  ;;  %v12678_v63 = vcombine.high %v1058_v1, %v1062_v51 }
 0x426   : > { %10906 = vmatprep.subr.bf16.mxu0 %v12702_v39  ;;  %v12806_v3 = vcombine.high %v1186_v53, %v1190_v29  ;;  %v1050_v7 = vld [vmem:[%s13895_s3 + $0x1810] sm:$0xff]  ;;  %v12805_v39 = vcombine.low %v1186_v53, %v1190_v29 }
 0x427   : > { %10946 = vmatpush1.bf16.msra.mxu1 %v12837_v17  ;;  %v11662_v27 = vcombine.low %v11654_v52, %v11661_v30  ;;  %v1054_v15 = vld [vmem:[%s13895_s3 + $0x1830] sm:$0xff]  ;;  %v12677_v17 = vcombine.low %v1058_v1, %v1062_v51 }
 0x428   : > { %10947 = vmatprep.subr.bf16.mxu1 %v12830_v18  ;;  %v1178_v28 = vld [vmem:[%s13895_s3 + $0x1c10] sm:$0xff]  ;;  %v12670_v8 = vcombine.high %v1050_v7, %v1054_v15  ;;  %v12669_v19 = vcombine.low %v1050_v7, %v1054_v15 }
 0x429   : > { %v11682_v5 = vadd.f32 %v11662_v27, %v275_v34  ;;  %10907 = vmatpush1.bf16.msra.mxu0 %v12701_v46  ;;  %v1182_v59 = vld [vmem:[%s13895_s3 + $0x1c30] sm:$0xff] }
 0x42a   : > { %10908 = vmatprep.subr.bf16.mxu0 %v12694_v24  ;;  %v12798_v21 = vcombine.high %v1178_v28, %v1182_v59  ;;  %v1170_v18 = vld [vmem:[%s13895_s3 + $0x1bd0] sm:$0xff]  ;;  %v12797_v52 = vcombine.low %v1178_v28, %v1182_v59 }
 0x42b   : > { %10948 = vmatpush1.bf16.msra.mxu1 %v12829_v54  ;;  %11684 = vst [vmem:[%s13919_s6] sm:$0xff] %v11682_v5  ;;  %v1174_v16 = vld [vmem:[%s13895_s3 + $0x1bf0] sm:$0xff] }
 0x42c   : > { %10949 = vmatprep.subr.bf16.mxu1 %v12822_v9  ;;  %v1298_v13 = vld [vmem:[%s13895_s3 + $0x1fd0] sm:$0xff]  ;;  %v12790_v30 = vcombine.high %v1170_v18, %v1174_v16  ;;  %v12789_v9 = vcombine.low %v1170_v18, %v1174_v16 }
 0x42d   : > { %10909 = vmatpush1.bf16.msra.mxu0 %v12693_v43  ;;  %v1302_v42 = vld [vmem:[%s13895_s3 + $0x1ff0] sm:$0xff] }
 0x42e   : > { %10910 = vmatprep.subr.bf16.mxu0 %v12686_v47  ;;  %v12918_v46 = vcombine.high %v1298_v13, %v1302_v42  ;;  %v1162_v34 = vld [vmem:[%s13895_s3 + $0x1b90] sm:$0xff]  ;;  %v12917_v38 = vcombine.low %v1298_v13, %v1302_v42 }
 0x42f   : > { %10950 = vmatpush1.bf16.msra.mxu1 %v12821_v62  ;;  %v1166_v54 = vld [vmem:[%s13895_s3 + $0x1bb0] sm:$0xff] }
 0x430   : > { %10951 = vmatprep.subr.bf16.mxu1 %v12814_v49  ;;  %v1290_v24 = vld [vmem:[%s13895_s3 + $0x1f90] sm:$0xff]  ;;  %v12782_v60 = vcombine.high %v1162_v34, %v1166_v54  ;;  %v12781_v47 = vcombine.low %v1162_v34, %v1166_v54 }
 0x431   : > { %10911 = vmatpush1.bf16.msra.mxu0 %v12685_v56  ;;  %v1294_v27 = vld [vmem:[%s13895_s3 + $0x1fb0] sm:$0xff] }
 0x432   : > { %10912 = vmatprep.subr.bf16.mxu0 %v12678_v63  ;;  %v12910_v25 = vcombine.high %v1290_v24, %v1294_v27  ;;  %v1154_v32 = vld [vmem:[%s13895_s3 + $0x1b50] sm:$0xff]  ;;  %v12909_v49 = vcombine.low %v1290_v24, %v1294_v27 }
 0x433   : > { %10952 = vmatpush1.bf16.msra.mxu1 %v12813_v58  ;;  %v1158_v5 = vld [vmem:[%s13895_s3 + $0x1b70] sm:$0xff] }
 0x434   : > { %10953 = vmatprep.subr.bf16.mxu1 %v12806_v3  ;;  %v1282_v43 = vld [vmem:[%s13895_s3 + $0x1f50] sm:$0xff]  ;;  %v12774_v1 = vcombine.high %v1154_v32, %v1158_v5  ;;  %v12773_v63 = vcombine.low %v1154_v32, %v1158_v5 }
 0x435   : > { %10913 = vmatpush1.bf16.msra.mxu0 %v12677_v17  ;;  %v1286_v62 = vld [vmem:[%s13895_s3 + $0x1f70] sm:$0xff] }
 0x436   : > { %10914 = vmatprep.subr.bf16.mxu0 %v12670_v8  ;;  %v12902_v51 = vcombine.high %v1282_v43, %v1286_v62  ;;  %v1146_v53 = vld [vmem:[%s13895_s3 + $0x1b10] sm:$0xff]  ;;  %v12901_v3 = vcombine.low %v1282_v43, %v1286_v62 }
 0x437   : > { %10954 = vmatpush1.bf16.msra.mxu1 %v12805_v39  ;;  %v1150_v29 = vld [vmem:[%s13895_s3 + $0x1b30] sm:$0xff] }
 0x438   : > { %10955 = vmatprep.subr.bf16.mxu1 %v12798_v21  ;;  %v1274_v56 = vld [vmem:[%s13895_s3 + $0x1f10] sm:$0xff]  ;;  %v12766_v7 = vcombine.high %v1146_v53, %v1150_v29  ;;  %v12765_v8 = vcombine.low %v1146_v53, %v1150_v29 }
 0x439   : > { %10915 = vmatpush1.bf16.msra.mxu0 %v12669_v19  ;;  %v1278_v58 = vld [vmem:[%s13895_s3 + $0x1f30] sm:$0xff] }
 0x43a   : > { %10916 = vmatprep.subr.bf16.mxu0 %v12790_v30  ;;  %v12894_v15 = vcombine.high %v1274_v56, %v1278_v58  ;;  %v1138_v28 = vld [vmem:[%s13895_s3 + $0x1ad0] sm:$0xff]  ;;  %v12893_v21 = vcombine.low %v1274_v56, %v1278_v58 }
 0x43b   : > { %10956 = vmatpush1.bf16.msra.mxu1 %v12797_v52  ;;  %v1142_v59 = vld [vmem:[%s13895_s3 + $0x1af0] sm:$0xff] }
 0x43c   : > { %10957 = vmatprep.subr.bf16.mxu1 %v12918_v46  ;;  %v1266_v17 = vld [vmem:[%s13895_s3 + $0x1ed0] sm:$0xff]  ;;  %v12758_v18 = vcombine.high %v1138_v28, %v1142_v59  ;;  %v12757_v30 = vcombine.low %v1138_v28, %v1142_v59 }
 0x43d   : > { %10917 = vmatpush2.bf16.msra.mxu0 %v12789_v9  ;;  %v1270_v39 = vld [vmem:[%s13895_s3 + $0x1ef0] sm:$0xff] }
 0x43e   : > { %10918 = vmatprep.subr.bf16.mxu0 %v12782_v60  ;;  %v12886_v16 = vcombine.high %v1266_v17, %v1270_v39  ;;  %v1130_v13 = vld [vmem:[%s13895_s3 + $0x1a90] sm:$0xff]  ;;  %v12885_v46 = vcombine.low %v1266_v17, %v1270_v39 }
 0x43f   : > { %10958 = vmatpush2.bf16.msra.mxu1 %v12917_v38  ;;  %v1134_v42 = vld [vmem:[%s13895_s3 + $0x1ab0] sm:$0xff] }
 0x440   : > { %10959 = vmatprep.subr.bf16.mxu1 %v12910_v25  ;;  %v1258_v19 = vld [vmem:[%s13895_s3 + $0x1e90] sm:$0xff]  ;;  %v12750_v34 = vcombine.high %v1130_v13, %v1134_v42  ;;  %v12749_v60 = vcombine.low %v1130_v13, %v1134_v42 }
 0x441   : > { %10919 = vmatpush2.bf16.msra.mxu0 %v12781_v47  ;;  %v1262_v52 = vld [vmem:[%s13895_s3 + $0x1eb0] sm:$0xff] }
 0x442   : > { %10920 = vmatprep.subr.bf16.mxu0 %v12774_v1  ;;  %v12878_v54 = vcombine.high %v1258_v19, %v1262_v52  ;;  %v1122_v24 = vld [vmem:[%s13895_s3 + $0x1a50] sm:$0xff]  ;;  %v12877_v25 = vcombine.low %v1258_v19, %v1262_v52 }
 0x443   : > { %10960 = vmatpush2.bf16.msra.mxu1 %v12909_v49  ;;  %v1126_v27 = vld [vmem:[%s13895_s3 + $0x1a70] sm:$0xff] }
 0x444   : > { %10961 = vmatprep.subr.bf16.mxu1 %v12902_v51  ;;  %v1250_v9 = vld [vmem:[%s13895_s3 + $0x1e50] sm:$0xff]  ;;  %v12742_v32 = vcombine.high %v1122_v24, %v1126_v27  ;;  %v12741_v1 = vcombine.low %v1122_v24, %v1126_v27 }
 0x445   : > { %10921 = vmatpush2.bf16.msra.mxu0 %v12773_v63  ;;  %v1254_v38 = vld [vmem:[%s13895_s3 + $0x1e70] sm:$0xff] }
 0x446   : > { %10922 = vmatprep.subr.bf16.mxu0 %v12766_v7  ;;  %v12870_v5 = vcombine.high %v1250_v9, %v1254_v38  ;;  %v1114_v43 = vld [vmem:[%s13895_s3 + $0x1a10] sm:$0xff]  ;;  %v12869_v51 = vcombine.low %v1250_v9, %v1254_v38 }
 0x447   : > { %10962 = vmatpush2.bf16.msra.mxu1 %v12901_v3  ;;  %v1118_v62 = vld [vmem:[%s13895_s3 + $0x1a30] sm:$0xff] }
 0x448   : > { %10963 = vmatprep.subr.bf16.mxu1 %v12894_v15  ;;  %v1242_v47 = vld [vmem:[%s13895_s3 + $0x1e10] sm:$0xff]  ;;  %v12734_v53 = vcombine.high %v1114_v43, %v1118_v62  ;;  %v12733_v7 = vcombine.low %v1114_v43, %v1118_v62 }
 0x449   : > { %10923 = vmatpush2.bf16.msra.mxu0 %v12765_v8  ;;  %v1246_v49 = vld [vmem:[%s13895_s3 + $0x1e30] sm:$0xff] }
 0x44a   : > { %10924 = vmatprep.subr.bf16.mxu0 %v12758_v18  ;;  %v12862_v29 = vcombine.high %v1242_v47, %v1246_v49  ;;  %v1362_v56 = vld [vmem:[%s13895_s3 + $0x21d0] sm:$0xff]  ;;  %v12861_v15 = vcombine.low %v1242_v47, %v1246_v49 }
 0x44b   : > { %10964 = vmatpush2.bf16.msra.mxu1 %v12893_v21  ;;  %v1366_v58 = vld [vmem:[%s13895_s3 + $0x21f0] sm:$0xff] }
 0x44c   : > { %10965 = vmatprep.subr.bf16.mxu1 %v12886_v16  ;;  %v1490_v63 = vld [vmem:[%s13895_s3 + $0x25d0] sm:$0xff]  ;;  %v12982_v28 = vcombine.high %v1362_v56, %v1366_v58  ;;  %v12981_v18 = vcombine.low %v1362_v56, %v1366_v58 }
 0x44d   : > { %10925 = vmatpush2.bf16.msra.mxu0 %v12757_v30  ;;  %v1494_v3 = vld [vmem:[%s13895_s3 + $0x25f0] sm:$0xff] }
 0x44e   : > { %10926 = vmatprep.subr.bf16.mxu0 %v12750_v34  ;;  %v13110_v59 = vcombine.high %v1490_v63, %v1494_v3  ;;  %v1354_v17 = vld [vmem:[%s13895_s3 + $0x2190] sm:$0xff]  ;;  %v13109_v16 = vcombine.low %v1490_v63, %v1494_v3 }
 0x44f   : > { %10966 = vmatpush2.bf16.msra.mxu1 %v12885_v46  ;;  %v1358_v39 = vld [vmem:[%s13895_s3 + $0x21b0] sm:$0xff] }
 0x450   : > { %10967 = vmatprep.subr.bf16.mxu1 %v12878_v54  ;;  %v1482_v8 = vld [vmem:[%s13895_s3 + $0x2590] sm:$0xff]  ;;  %v12974_v13 = vcombine.high %v1354_v17, %v1358_v39  ;;  %v12973_v24 = vcombine.low %v1354_v17, %v1358_v39 }
 0x451   : > { %10927 = vmatpush2.bf16.msra.mxu0 %v12749_v60  ;;  %v1486_v21 = vld [vmem:[%s13895_s3 + $0x25b0] sm:$0xff] }
 0x452   : > { %10928 = vmatprep.subr.bf16.mxu0 %v12742_v32  ;;  %v13102_v42 = vcombine.high %v1482_v8, %v1486_v21  ;;  %v1346_v19 = vld [vmem:[%s13895_s3 + $0x2150] sm:$0xff]  ;;  %v13101_v38 = vcombine.low %v1482_v8, %v1486_v21 }
 0x453   : > { %10968 = vmatpush2.bf16.msra.mxu1 %v12877_v25  ;;  %v1350_v52 = vld [vmem:[%s13895_s3 + $0x2170] sm:$0xff] }
 0x454   : > { %10969 = vmatprep.subr.bf16.mxu1 %v12870_v5  ;;  %v1474_v46 = vld [vmem:[%s13895_s3 + $0x2550] sm:$0xff]  ;;  %v12966_v60 = vcombine.high %v1346_v19, %v1350_v52 }
 0x455   : > { %10929 = vmatpush2.bf16.msra.mxu0 %v12741_v1  ;;  %v1478_v34 = vld [vmem:[%s13895_s3 + $0x2570] sm:$0xff] }
 0x456   : > { %10930 = vmatprep.subr.bf16.mxu0 %v12734_v53  ;;  %v13094_v32 = vcombine.high %v1474_v46, %v1478_v34  ;;  %v1338_v5 = vld [vmem:[%s13895_s3 + $0x2110] sm:$0xff]  ;;  %v12965_v53 = vcombine.low %v1346_v19, %v1350_v52  ;;  %v13093_v56 = vcombine.low %v1474_v46, %v1478_v34 }
 0x457   : > { %10970 = vmatpush2.bf16.msra.mxu1 %v12869_v51  ;;  %v1342_v43 = vld [vmem:[%s13895_s3 + $0x2130] sm:$0xff] }
 0x458   : > { %10971 = vmatprep.subr.bf16.mxu1 %v12862_v29  ;;  %v1466_v49 = vld [vmem:[%s13895_s3 + $0x2510] sm:$0xff]  ;;  %v12958_v58 = vcombine.high %v1338_v5, %v1342_v43  ;;  %v12957_v17 = vcombine.low %v1338_v5, %v1342_v43 }
 0x459   : > { %10931 = vmatpush2.bf16.msra.mxu0 %v12733_v7  ;;  %v1470_v1 = vld [vmem:[%s13895_s3 + $0x2530] sm:$0xff] }
 0x45a   : > { %10982 = vmatprep.subr.bf16.mxu0 %v12982_v28  ;;  %v13086_v3 = vcombine.high %v1466_v49, %v1470_v1  ;;  %v1330_v7 = vld [vmem:[%s13895_s3 + $0x20d0] sm:$0xff]  ;;  %v13085_v39 = vcombine.low %v1466_v49, %v1470_v1 }
 0x45b   : > { %10972 = vmatpush2.bf16.msra.mxu1 %v12861_v15  ;;  %v1334_v15 = vld [vmem:[%s13895_s3 + $0x20f0] sm:$0xff] }
 0x45c   : > { %11023 = vmatprep.subr.bf16.mxu1 %v13110_v59  ;;  %v10688_v30 = vpop.f32.mrf.mxu0  ;;  %10933 = vmatmul.mubr.bf16.vlgmr.msra.gmra.mxu0 %v14298_v26  ;;  %v1458_v28 = vld [vmem:[%s13895_s3 + $0x24d0] sm:$0xff]  ;;  %v12950_v8 = vcombine.high %v1330_v7, %v1334_v15  ;;  %v12949_v19 = vcombine.low %v1330_v7, %v1334_v15 }
 0x45d   : > { %10983 = vmatpush1.bf16.msra.mxu0 %v12981_v18  ;;  %11014 = vmatprep.mubr.bf16.mxu0 %v14305_v20  ;;  %v1462_v59 = vld [vmem:[%s13895_s3 + $0x24f0] sm:$0xff] }
 0x45e   : > { %v10729_v54 = vpop.f32.mrf.mxu1  ;;  %10974 = vmatmul.mubr.bf16.vlgmr.msra.gmra.mxu1 %v14309_v11  ;;  %v10690_v9 = vpop.f32.mrf.mxu0  ;;  %10984 = vmatprep.subr.bf16.mxu0 %v12974_v13  ;;  %v13078_v21 = vcombine.high %v1458_v28, %v1462_v59  ;;  %v1322_v18 = vld [vmem:[%s13895_s3 + $0x2090] sm:$0xff]  ;;  %v13077_v52 = vcombine.low %v1458_v28, %v1462_v59 }
 0x45f   : > { %v15249_v27 = vadd.f32 %v10729_v54, %v10688_v30  ;;  %11024 = vmatpush1.bf16.msra.mxu1 %v13109_v16  ;;  %11055 = vmatprep.mubr.bf16.mxu1 %v14318_v36  ;;  %v1326_v16 = vld [vmem:[%s13895_s3 + $0x20b0] sm:$0xff] }
 0x460   : > { %v10731_v25 = vpop.f32.mrf.mxu1  ;;  %11025 = vmatprep.subr.bf16.mxu1 %v13102_v42  ;;  %v10692_v47 = vpop.f32.mrf.mxu0  ;;  %v1450_v13 = vld [vmem:[%s13895_s3 + $0x2490] sm:$0xff]  ;;  %v12942_v30 = vcombine.high %v1322_v18, %v1326_v16 }
 0x461   : > { %v15254_v62 = vadd.f32 %v10731_v25, %v10690_v9  ;;  %10985 = vmatpush1.bf16.msra.mxu0 %v12973_v24  ;;  %v1454_v42 = vld [vmem:[%s13895_s3 + $0x24b0] sm:$0xff] }
 0x462   : > { %v10733_v51 = vpop.f32.mrf.mxu1  ;;  %v10693_v29 = vpop.f32.mrf.mxu0  ;;  %10986 = vmatprep.subr.bf16.mxu0 %v12966_v60  ;;  %v13070_v46 = vcombine.high %v1450_v13, %v1454_v42  ;;  %v1314_v34 = vld [vmem:[%s13895_s3 + $0x2050] sm:$0xff]  ;;  %v13069_v60 = vcombine.low %v1450_v13, %v1454_v42 }
 0x463   : > { %11026 = vmatpush1.bf16.msra.mxu1 %v13101_v38  ;;  %v1318_v54 = vld [vmem:[%s13895_s3 + $0x2070] sm:$0xff]  ;;  %v12941_v38 = vcombine.low %v1322_v18, %v1326_v16 }
 0x464   : > { %v10734_v63 = vpop.f32.mrf.mxu1  ;;  %11027 = vmatprep.subr.bf16.mxu1 %v13094_v32  ;;  %v1442_v24 = vld [vmem:[%s13895_s3 + $0x2450] sm:$0xff]  ;;  %v12934_v25 = vcombine.high %v1314_v34, %v1318_v54  ;;  %v12933_v1 = vcombine.low %v1314_v34, %v1318_v54 }
 0x465   : > { %10987 = vmatpush1.bf16.msra.mxu0 %v12965_v53  ;;  %v1446_v9 = vld [vmem:[%s13895_s3 + $0x2470] sm:$0xff] }
 0x466   : > { %10988 = vmatprep.subr.bf16.mxu0 %v12958_v58  ;;  %v13062_v32 = vcombine.high %v1442_v24, %v1446_v9  ;;  %v1306_v5 = vld [vmem:[%s13895_s3 + $0x2010] sm:$0xff]  ;;  %v13061_v51 = vcombine.low %v1442_v24, %v1446_v9 }
 0x467   : > { %11028 = vmatpush1.bf16.msra.mxu1 %v13093_v56  ;;  %v1310_v43 = vld [vmem:[%s13895_s3 + $0x2030] sm:$0xff] }
 0x468   : > { %11029 = vmatprep.subr.bf16.mxu1 %v13086_v3  ;;  %v1434_v47 = vld [vmem:[%s13895_s3 + $0x2410] sm:$0xff]  ;;  %v12926_v53 = vcombine.high %v1306_v5, %v1310_v43  ;;  %v12925_v7 = vcombine.low %v1306_v5, %v1310_v43 }
 0x469   : > { %10989 = vmatpush1.bf16.msra.mxu0 %v12957_v17  ;;  %v1438_v49 = vld [vmem:[%s13895_s3 + $0x2430] sm:$0xff] }
 0x46a   : > { %10990 = vmatprep.subr.bf16.mxu0 %v12950_v8  ;;  %v13054_v29 = vcombine.high %v1434_v47, %v1438_v49  ;;  %v1426_v56 = vld [vmem:[%s13895_s3 + $0x23d0] sm:$0xff]  ;;  %v13053_v15 = vcombine.low %v1434_v47, %v1438_v49 }
 0x46b   : > { %11030 = vmatpush1.bf16.msra.mxu1 %v13085_v39  ;;  %v1430_v58 = vld [vmem:[%s13895_s3 + $0x23f0] sm:$0xff] }
 0x46c   : > { %11031 = vmatprep.subr.bf16.mxu1 %v13078_v21  ;;  %v1554_v63 = vld [vmem:[%s13895_s3 + $0x27d0] sm:$0xff]  ;;  %v13046_v28 = vcombine.high %v1426_v56, %v1430_v58  ;;  %v13045_v18 = vcombine.low %v1426_v56, %v1430_v58 }
 0x46d   : > { %10991 = vmatpush1.bf16.msra.mxu0 %v12949_v19  ;;  %v1558_v3 = vld [vmem:[%s13895_s3 + $0x27f0] sm:$0xff] }
 0x46e   : > { %10992 = vmatprep.subr.bf16.mxu0 %v12942_v30  ;;  %v13174_v59 = vcombine.high %v1554_v63, %v1558_v3  ;;  %v1418_v17 = vld [vmem:[%s13895_s3 + $0x2390] sm:$0xff]  ;;  %v13173_v16 = vcombine.low %v1554_v63, %v1558_v3 }
 0x46f   : > { %11032 = vmatpush1.bf16.msra.mxu1 %v13077_v52  ;;  %v1422_v39 = vld [vmem:[%s13895_s3 + $0x23b0] sm:$0xff] }
 0x470   : > { %11033 = vmatprep.subr.bf16.mxu1 %v13070_v46  ;;  %v1546_v8 = vld [vmem:[%s13895_s3 + $0x2790] sm:$0xff]  ;;  %v13038_v13 = vcombine.high %v1418_v17, %v1422_v39  ;;  %v13037_v34 = vcombine.low %v1418_v17, %v1422_v39 }
 0x471   : > { %10993 = vmatpush1.bf16.msra.mxu0 %v12941_v38  ;;  %v1550_v21 = vld [vmem:[%s13895_s3 + $0x27b0] sm:$0xff] }
 0x472   : > { %10994 = vmatprep.subr.bf16.mxu0 %v12934_v25  ;;  %v13166_v42 = vcombine.high %v1546_v8, %v1550_v21  ;;  %v1410_v19 = vld [vmem:[%s13895_s3 + $0x2350] sm:$0xff]  ;;  %v13165_v54 = vcombine.low %v1546_v8, %v1550_v21 }
 0x473   : > { %11034 = vmatpush1.bf16.msra.mxu1 %v13069_v60  ;;  %v1414_v52 = vld [vmem:[%s13895_s3 + $0x2370] sm:$0xff] }
 0x474   : > { %11035 = vmatprep.subr.bf16.mxu1 %v13062_v32  ;;  %v1538_v30 = vld [vmem:[%s13895_s3 + $0x2750] sm:$0xff]  ;;  %v13030_v24 = vcombine.high %v1410_v19, %v1414_v52  ;;  %v13029_v5 = vcombine.low %v1410_v19, %v1414_v52 }
 0x475   : > { %10995 = vmatpush1.bf16.msra.mxu0 %v12933_v1  ;;  %v1542_v46 = vld [vmem:[%s13895_s3 + $0x2770] sm:$0xff] }
 0x476   : > { %10996 = vmatprep.subr.bf16.mxu0 %v12926_v53  ;;  %v13158_v9 = vcombine.high %v1538_v30, %v1542_v46  ;;  %v1402_v38 = vld [vmem:[%s13895_s3 + $0x2310] sm:$0xff]  ;;  %v13157_v43 = vcombine.low %v1538_v30, %v1542_v46 }
 0x477   : > { %11036 = vmatpush1.bf16.msra.mxu1 %v13061_v51  ;;  %v1406_v60 = vld [vmem:[%s13895_s3 + $0x2330] sm:$0xff] }
 0x478   : > { %11037 = vmatprep.subr.bf16.mxu1 %v13054_v29  ;;  %v1530_v25 = vld [vmem:[%s13895_s3 + $0x2710] sm:$0xff]  ;;  %v13022_v47 = vcombine.high %v1402_v38, %v1406_v60  ;;  %v13021_v56 = vcombine.low %v1402_v38, %v1406_v60 }
 0x479   : > { %10997 = vmatpush1.bf16.msra.mxu0 %v12925_v7  ;;  %v1534_v32 = vld [vmem:[%s13895_s3 + $0x2730] sm:$0xff] }
 0x47a   : > { %10998 = vmatprep.subr.bf16.mxu0 %v13046_v28  ;;  %v13150_v49 = vcombine.high %v1530_v25, %v1534_v32  ;;  %v1394_v1 = vld [vmem:[%s13895_s3 + $0x22d0] sm:$0xff]  ;;  %v13149_v58 = vcombine.low %v1530_v25, %v1534_v32 }
 0x47b   : > { %11038 = vmatpush1.bf16.msra.mxu1 %v13053_v15  ;;  %v1398_v51 = vld [vmem:[%s13895_s3 + $0x22f0] sm:$0xff] }
 0x47c   : > { %11039 = vmatprep.subr.bf16.mxu1 %v13174_v59  ;;  %v1522_v53 = vld [vmem:[%s13895_s3 + $0x26d0] sm:$0xff]  ;;  %v13014_v63 = vcombine.high %v1394_v1, %v1398_v51  ;;  %v13013_v17 = vcombine.low %v1394_v1, %v1398_v51 }
 0x47d   : > { %10999 = vmatpush2.bf16.msra.mxu0 %v13045_v18  ;;  %v1526_v29 = vld [vmem:[%s13895_s3 + $0x26f0] sm:$0xff] }
 0x47e   : > { %11000 = vmatprep.subr.bf16.mxu0 %v13038_v13  ;;  %v13142_v3 = vcombine.high %v1522_v53, %v1526_v29  ;;  %v1386_v7 = vld [vmem:[%s13895_s3 + $0x2290] sm:$0xff]  ;;  %v13141_v39 = vcombine.low %v1522_v53, %v1526_v29 }
 0x47f   : > { %11040 = vmatpush2.bf16.msra.mxu1 %v13173_v16  ;;  %v1390_v15 = vld [vmem:[%s13895_s3 + $0x22b0] sm:$0xff] }
 0x480   : > { %11041 = vmatprep.subr.bf16.mxu1 %v13166_v42  ;;  %v1514_v28 = vld [vmem:[%s13895_s3 + $0x2690] sm:$0xff]  ;;  %v13006_v8 = vcombine.high %v1386_v7, %v1390_v15  ;;  %v13005_v19 = vcombine.low %v1386_v7, %v1390_v15 }
 0x481   : > { %11001 = vmatpush2.bf16.msra.mxu0 %v13037_v34  ;;  %v1518_v59 = vld [vmem:[%s13895_s3 + $0x26b0] sm:$0xff] }
 0x482   : > { %11002 = vmatprep.subr.bf16.mxu0 %v13030_v24  ;;  %v13134_v21 = vcombine.high %v1514_v28, %v1518_v59  ;;  %v1378_v18 = vld [vmem:[%s13895_s3 + $0x2250] sm:$0xff]  ;;  %v13133_v52 = vcombine.low %v1514_v28, %v1518_v59 }
 0x483   : > { %11042 = vmatpush2.bf16.msra.mxu1 %v13165_v54  ;;  %v1382_v16 = vld [vmem:[%s13895_s3 + $0x2270] sm:$0xff] }
 0x484   : > { %11043 = vmatprep.subr.bf16.mxu1 %v13158_v9  ;;  %v1506_v13 = vld [vmem:[%s13895_s3 + $0x2650] sm:$0xff]  ;;  %v12998_v30 = vcombine.high %v1378_v18, %v1382_v16  ;;  %v12997_v38 = vcombine.low %v1378_v18, %v1382_v16 }
 0x485   : > { %11003 = vmatpush2.bf16.msra.mxu0 %v13029_v5  ;;  %v1510_v42 = vld [vmem:[%s13895_s3 + $0x2670] sm:$0xff] }
 0x486   : > { %11004 = vmatprep.subr.bf16.mxu0 %v13022_v47  ;;  %v13126_v46 = vcombine.high %v1506_v13, %v1510_v42  ;;  %v1370_v34 = vld [vmem:[%s13895_s3 + $0x2210] sm:$0xff]  ;;  %v13125_v60 = vcombine.low %v1506_v13, %v1510_v42 }
 0x487   : > { %11044 = vmatpush2.bf16.msra.mxu1 %v13157_v43  ;;  %v1374_v54 = vld [vmem:[%s13895_s3 + $0x2230] sm:$0xff] }
 0x488   : > { %11045 = vmatprep.subr.bf16.mxu1 %v13150_v49  ;;  %v1498_v24 = vld [vmem:[%s13895_s3 + $0x2610] sm:$0xff]  ;;  %v12990_v25 = vcombine.high %v1370_v34, %v1374_v54  ;;  %v12989_v1 = vcombine.low %v1370_v34, %v1374_v54 }
 0x489   : > { %11005 = vmatpush2.bf16.msra.mxu0 %v13021_v56  ;;  %v1502_v9 = vld [vmem:[%s13895_s3 + $0x2630] sm:$0xff] }
 0x48a   : > { %11006 = vmatprep.subr.bf16.mxu0 %v13014_v63  ;;  %v13118_v32 = vcombine.high %v1498_v24, %v1502_v9  ;;  %v1618_v5 = vld [vmem:[%s13895_s3 + $0x29d0] sm:$0xff]  ;;  %v13117_v51 = vcombine.low %v1498_v24, %v1502_v9 }
 0x48b   : > { %11046 = vmatpush2.bf16.msra.mxu1 %v13149_v58  ;;  %v1622_v43 = vld [vmem:[%s13895_s3 + $0x29f0] sm:$0xff] }
 0x48c   : > { %11047 = vmatprep.subr.bf16.mxu1 %v13142_v3  ;;  %v1746_v47 = vld [vmem:[%s13895_s3 + $0x2dd0] sm:$0xff]  ;;  %v13238_v53 = vcombine.high %v1618_v5, %v1622_v43  ;;  %v13237_v7 = vcombine.low %v1618_v5, %v1622_v43 }
 0x48d   : > { %11007 = vmatpush2.bf16.msra.mxu0 %v13013_v17  ;;  %v1750_v49 = vld [vmem:[%s13895_s3 + $0x2df0] sm:$0xff] }
 0x48e   : > { %11008 = vmatprep.subr.bf16.mxu0 %v13006_v8  ;;  %v13366_v29 = vcombine.high %v1746_v47, %v1750_v49  ;;  %v1610_v56 = vld [vmem:[%s13895_s3 + $0x2990] sm:$0xff]  ;;  %v13365_v15 = vcombine.low %v1746_v47, %v1750_v49 }
 0x48f   : > { %11048 = vmatpush2.bf16.msra.mxu1 %v13141_v39  ;;  %v1614_v58 = vld [vmem:[%s13895_s3 + $0x29b0] sm:$0xff] }
 0x490   : > { %11049 = vmatprep.subr.bf16.mxu1 %v13134_v21  ;;  %v1738_v63 = vld [vmem:[%s13895_s3 + $0x2d90] sm:$0xff]  ;;  %v13230_v28 = vcombine.high %v1610_v56, %v1614_v58  ;;  %v13229_v42 = vcombine.low %v1610_v56, %v1614_v58 }
 0x491   : > { %11009 = vmatpush2.bf16.msra.mxu0 %v13005_v19  ;;  %v1742_v3 = vld [vmem:[%s13895_s3 + $0x2db0] sm:$0xff] }
 0x492   : > { %11010 = vmatprep.subr.bf16.mxu0 %v12998_v30  ;;  %v13358_v59 = vcombine.high %v1738_v63, %v1742_v3  ;;  %v1602_v17 = vld [vmem:[%s13895_s3 + $0x2950] sm:$0xff] }
 0x493   : > { %11050 = vmatpush2.bf16.msra.mxu1 %v13133_v52  ;;  %v1606_v39 = vld [vmem:[%s13895_s3 + $0x2970] sm:$0xff]  ;;  %v13357_v52 = vcombine.low %v1738_v63, %v1742_v3 }
 0x494   : > { %11051 = vmatprep.subr.bf16.mxu1 %v13126_v46  ;;  %v1730_v21 = vld [vmem:[%s13895_s3 + $0x2d50] sm:$0xff]  ;;  %v13222_v30 = vcombine.high %v1602_v17, %v1606_v39 }
 0x495   : > { %11011 = vmatpush2.bf16.msra.mxu0 %v12997_v38  ;;  %v1734_v18 = vld [vmem:[%s13895_s3 + $0x2d70] sm:$0xff] }
 0x496   : > { %11012 = vmatprep.subr.bf16.mxu0 %v12990_v25  ;;  %v1594_v24 = vld [vmem:[%s13895_s3 + $0x2910] sm:$0xff]  ;;  %v13349_v47 = vcombine.low %v1730_v21, %v1734_v18 }
 0x497   : > { %11052 = vmatpush2.bf16.msra.mxu1 %v13125_v60  ;;  %v1598_v9 = vld [vmem:[%s13895_s3 + $0x2930] sm:$0xff] }
 0x498   : > { %11053 = vmatprep.subr.bf16.mxu1 %v13118_v32  ;;  %v1722_v60 = vld [vmem:[%s13895_s3 + $0x2d10] sm:$0xff]  ;;  %v13214_v49 = vcombine.high %v1594_v24, %v1598_v9  ;;  %v13213_v63 = vcombine.low %v1594_v24, %v1598_v9 }
 0x499   : > { %11013 = vmatpush2.bf16.msra.mxu0 %v12989_v1  ;;  %v1726_v25 = vld [vmem:[%s13895_s3 + $0x2d30] sm:$0xff] }
 0x49a   : > { %11064 = vmatprep.subr.bf16.mxu0 %v13238_v53  ;;  %v1586_v53 = vld [vmem:[%s13895_s3 + $0x28d0] sm:$0xff]  ;;  %v13341_v3 = vcombine.low %v1722_v60, %v1726_v25 }
 0x49b   : > { %11054 = vmatpush2.bf16.msra.mxu1 %v13117_v51  ;;  %v13342_v51 = vcombine.high %v1722_v60, %v1726_v25  ;;  %v1714_v56 = vld [vmem:[%s13895_s3 + $0x2cd0] sm:$0xff] }
 0x49c   : > { %11105 = vmatprep.subr.bf16.mxu1 %v13366_v29  ;;  %v10770_v8 = vpop.f32.mrf.mxu0  ;;  %11015 = vmatmul.mubr.bf16.vlgmr.msra.gmra.mxu0 %v14392_v41  ;;  %v1590_v29 = vld [vmem:[%s13895_s3 + $0x28f0] sm:$0xff] }
 0x49d   : > { %v10771_v16 = vadd.f32 %v10770_v8, %v15249_v27  ;;  %11065 = vmatpush1.bf16.msra.mxu0 %v13237_v7  ;;  %v13350_v27 = vcombine.high %v1730_v21, %v1734_v18  ;;  %11096 = vmatprep.mubr.bf16.mxu0 %v14399_v55  ;;  %v1718_v58 = vld [vmem:[%s13895_s3 + $0x2cf0] sm:$0xff]  ;;  %v13206_v7 = vcombine.high %v1586_v53, %v1590_v29 }
 0x49e   : > { %v10811_v13 = vpop.f32.mrf.mxu1  ;;  %11056 = vmatmul.mubr.bf16.vlgmr.msra.gmra.mxu1 %v14403_v61  ;;  %v10772_v19 = vpop.f32.mrf.mxu0  ;;  %11066 = vmatprep.subr.bf16.mxu0 %v13230_v28  ;;  %v1578_v28 = vld [vmem:[%s13895_s3 + $0x2890] sm:$0xff]  ;;  %v13205_v8 = vcombine.low %v1586_v53, %v1590_v29  ;;  %v13333_v21 = vcombine.low %v1714_v56, %v1718_v58 }
 0x49f   : > { %11106 = vmatpush1.bf16.msra.mxu1 %v13365_v15  ;;  %v15322_v46 = vadd.f32 %v10811_v13, %v10771_v16  ;;  %v10773_v34 = vadd.f32 %v10772_v19, %v15254_v62  ;;  %11137 = vmatprep.mubr.bf16.mxu1 %v14412_v6  ;;  %v13221_v62 = vcombine.low %v1602_v17, %v1606_v39  ;;  %v1706_v17 = vld [vmem:[%s13895_s3 + $0x2c90] sm:$0xff] }
 0x4a0   : > { %v10813_v54 = vpop.f32.mrf.mxu1  ;;  %11107 = vmatprep.subr.bf16.mxu1 %v13358_v59  ;;  %v10774_v38 = vpop.f32.mrf.mxu0  ;;  %v13334_v15 = vcombine.high %v1714_v56, %v1718_v58  ;;  %v1582_v59 = vld [vmem:[%s13895_s3 + $0x28b0] sm:$0xff] }
 0x4a1   : > { %v15331_v32 = vadd.f32 %v10813_v54, %v10773_v34  ;;  %11067 = vmatpush1.bf16.msra.mxu0 %v13229_v42  ;;  %v1710_v39 = vld [vmem:[%s13895_s3 + $0x2cb0] sm:$0xff]  ;;  %v13198_v18 = vcombine.high %v1578_v28, %v1582_v59 }
 0x4a2   : > { %v10815_v5 = vpop.f32.mrf.mxu1  ;;  %v10775_v43 = vpop.f32.mrf.mxu0  ;;  %11068 = vmatprep.subr.bf16.mxu0 %v13222_v30  ;;  %v13326_v16 = vcombine.high %v1706_v17, %v1710_v39  ;;  %v1570_v13 = vld [vmem:[%s13895_s3 + $0x2850] sm:$0xff]  ;;  %v13197_v30 = vcombine.low %v1578_v28, %v1582_v59  ;;  %v13325_v34 = vcombine.low %v1706_v17, %v1710_v39 }
 0x4a3   : > { %11108 = vmatpush1.bf16.msra.mxu1 %v13357_v52  ;;  %v1574_v42 = vld [vmem:[%s13895_s3 + $0x2870] sm:$0xff] }
 0x4a4   : > { %v10816_v1 = vpop.f32.mrf.mxu1  ;;  %11109 = vmatprep.subr.bf16.mxu1 %v13350_v27  ;;  %v1698_v19 = vld [vmem:[%s13895_s3 + $0x2c50] sm:$0xff]  ;;  %v13190_v54 = vcombine.high %v1570_v13, %v1574_v42  ;;  %v13189_v25 = vcombine.low %v1570_v13, %v1574_v42 }
 0x4a5   : > { %11069 = vmatpush1.bf16.msra.mxu0 %v13221_v62  ;;  %v1702_v52 = vld [vmem:[%s13895_s3 + $0x2c70] sm:$0xff] }
 0x4a6   : > { %11070 = vmatprep.subr.bf16.mxu0 %v13214_v49  ;;  %v13318_v27 = vcombine.high %v1698_v19, %v1702_v52  ;;  %v1562_v24 = vld [vmem:[%s13895_s3 + $0x2810] sm:$0xff]  ;;  %v13317_v5 = vcombine.low %v1698_v19, %v1702_v52 }
 0x4a7   : > { %11110 = vmatpush1.bf16.msra.mxu1 %v13349_v47  ;;  %v1566_v9 = vld [vmem:[%s13895_s3 + $0x2830] sm:$0xff] }
 0x4a8   : > { %11111 = vmatprep.subr.bf16.mxu1 %v13342_v51  ;;  %v1690_v38 = vld [vmem:[%s13895_s3 + $0x2c10] sm:$0xff]  ;;  %v13182_v62 = vcombine.high %v1562_v24, %v1566_v9  ;;  %v13181_v53 = vcombine.low %v1562_v24, %v1566_v9 }
 0x4a9   : > { %11071 = vmatpush1.bf16.msra.mxu0 %v13213_v63  ;;  %v1694_v60 = vld [vmem:[%s13895_s3 + $0x2c30] sm:$0xff] }
 0x4aa   : > { %11072 = vmatprep.subr.bf16.mxu0 %v13206_v7  ;;  %v13310_v43 = vcombine.high %v1690_v38, %v1694_v60  ;;  %v1682_v47 = vld [vmem:[%s13895_s3 + $0x2bd0] sm:$0xff]  ;;  %v13309_v29 = vcombine.low %v1690_v38, %v1694_v60 }
 0x4ab   : > { %11112 = vmatpush1.bf16.msra.mxu1 %v13341_v3  ;;  %v1686_v49 = vld [vmem:[%s13895_s3 + $0x2bf0] sm:$0xff] }
 0x4ac   : > { %11113 = vmatprep.subr.bf16.mxu1 %v13334_v15  ;;  %v1810_v1 = vld [vmem:[%s13895_s3 + $0x2fd0] sm:$0xff]  ;;  %v13302_v56 = vcombine.high %v1682_v47, %v1686_v49  ;;  %v13301_v28 = vcombine.low %v1682_v47, %v1686_v49 }
 0x4ad   : > { %11073 = vmatpush1.bf16.msra.mxu0 %v13205_v8  ;;  %v1814_v51 = vld [vmem:[%s13895_s3 + $0x2ff0] sm:$0xff] }
 0x4ae   : > { %11074 = vmatprep.subr.bf16.mxu0 %v13198_v18  ;;  %v13430_v58 = vcombine.high %v1810_v1, %v1814_v51  ;;  %v1674_v63 = vld [vmem:[%s13895_s3 + $0x2b90] sm:$0xff]  ;;  %v13429_v59 = vcombine.low %v1810_v1, %v1814_v51 }
 0x4af   : > { %11114 = vmatpush1.bf16.msra.mxu1 %v13333_v21  ;;  %v1678_v3 = vld [vmem:[%s13895_s3 + $0x2bb0] sm:$0xff] }
 0x4b0   : > { %11115 = vmatprep.subr.bf16.mxu1 %v13326_v16  ;;  %v1802_v7 = vld [vmem:[%s13895_s3 + $0x2f90] sm:$0xff]  ;;  %v13294_v17 = vcombine.high %v1674_v63, %v1678_v3  ;;  %v13293_v13 = vcombine.low %v1674_v63, %v1678_v3 }
 0x4b1   : > { %11075 = vmatpush1.bf16.msra.mxu0 %v13197_v30  ;;  %v1806_v15 = vld [vmem:[%s13895_s3 + $0x2fb0] sm:$0xff] }
 0x4b2   : > { %11076 = vmatprep.subr.bf16.mxu0 %v13190_v54  ;;  %v13422_v39 = vcombine.high %v1802_v7, %v1806_v15  ;;  %v1666_v8 = vld [vmem:[%s13895_s3 + $0x2b50] sm:$0xff]  ;;  %v13421_v42 = vcombine.low %v1802_v7, %v1806_v15 }
 0x4b3   : > { %11116 = vmatpush1.bf16.msra.mxu1 %v13325_v34  ;;  %v1670_v21 = vld [vmem:[%s13895_s3 + $0x2b70] sm:$0xff] }
 0x4b4   : > { %11117 = vmatprep.subr.bf16.mxu1 %v13318_v27  ;;  %v1794_v18 = vld [vmem:[%s13895_s3 + $0x2f50] sm:$0xff]  ;;  %v13286_v19 = vcombine.high %v1666_v8, %v1670_v21  ;;  %v13285_v24 = vcombine.low %v1666_v8, %v1670_v21 }
 0x4b5   : > { %11077 = vmatpush1.bf16.msra.mxu0 %v13189_v25  ;;  %v1798_v16 = vld [vmem:[%s13895_s3 + $0x2f70] sm:$0xff] }
 0x4b6   : > { %11078 = vmatprep.subr.bf16.mxu0 %v13182_v62  ;;  %v13414_v52 = vcombine.high %v1794_v18, %v1798_v16  ;;  %v1658_v30 = vld [vmem:[%s13895_s3 + $0x2b10] sm:$0xff]  ;;  %v13413_v9 = vcombine.low %v1794_v18, %v1798_v16 }
 0x4b7   : > { %11118 = vmatpush1.bf16.msra.mxu1 %v13317_v5  ;;  %v1662_v34 = vld [vmem:[%s13895_s3 + $0x2b30] sm:$0xff] }
 0x4b8   : > { %11119 = vmatprep.subr.bf16.mxu1 %v13310_v43  ;;  %v1786_v54 = vld [vmem:[%s13895_s3 + $0x2f10] sm:$0xff]  ;;  %v13278_v38 = vcombine.high %v1658_v30, %v1662_v34  ;;  %v13277_v47 = vcombine.low %v1658_v30, %v1662_v34 }
 0x4b9   : > { %11079 = vmatpush1.bf16.msra.mxu0 %v13181_v53  ;;  %v1790_v27 = vld [vmem:[%s13895_s3 + $0x2f30] sm:$0xff] }
 0x4ba   : > { %11080 = vmatprep.subr.bf16.mxu0 %v13302_v56  ;;  %v13406_v60 = vcombine.high %v1786_v54, %v1790_v27  ;;  %v1650_v25 = vld [vmem:[%s13895_s3 + $0x2ad0] sm:$0xff]  ;;  %v13405_v49 = vcombine.low %v1786_v54, %v1790_v27 }
 0x4bb   : > { %11120 = vmatpush1.bf16.msra.mxu1 %v13309_v29  ;;  %v1654_v5 = vld [vmem:[%s13895_s3 + $0x2af0] sm:$0xff] }
 0x4bc   : > { %11121 = vmatprep.subr.bf16.mxu1 %v13430_v58  ;;  %v1778_v62 = vld [vmem:[%s13895_s3 + $0x2ed0] sm:$0xff]  ;;  %v13270_v1 = vcombine.high %v1650_v25, %v1654_v5  ;;  %v13269_v63 = vcombine.low %v1650_v25, %v1654_v5 }
 0x4bd   : > { %11081 = vmatpush2.bf16.msra.mxu0 %v13301_v28  ;;  %v1782_v43 = vld [vmem:[%s13895_s3 + $0x2ef0] sm:$0xff] }
 0x4be   : > { %11082 = vmatprep.subr.bf16.mxu0 %v13294_v17  ;;  %v13398_v51 = vcombine.high %v1778_v62, %v1782_v43  ;;  %v1642_v53 = vld [vmem:[%s13895_s3 + $0x2a90] sm:$0xff]  ;;  %v13397_v3 = vcombine.low %v1778_v62, %v1782_v43 }
 0x4bf   : > { %11122 = vmatpush2.bf16.msra.mxu1 %v13429_v59  ;;  %v1646_v29 = vld [vmem:[%s13895_s3 + $0x2ab0] sm:$0xff] }
 0x4c0   : > { %11123 = vmatprep.subr.bf16.mxu1 %v13422_v39  ;;  %v1770_v56 = vld [vmem:[%s13895_s3 + $0x2e90] sm:$0xff]  ;;  %v13262_v7 = vcombine.high %v1642_v53, %v1646_v29  ;;  %v13261_v8 = vcombine.low %v1642_v53, %v1646_v29 }
 0x4c1   : > { %11083 = vmatpush2.bf16.msra.mxu0 %v13293_v13  ;;  %v1774_v58 = vld [vmem:[%s13895_s3 + $0x2eb0] sm:$0xff] }
 0x4c2   : > { %11084 = vmatprep.subr.bf16.mxu0 %v13286_v19  ;;  %v13390_v15 = vcombine.high %v1770_v56, %v1774_v58  ;;  %v1634_v28 = vld [vmem:[%s13895_s3 + $0x2a50] sm:$0xff]  ;;  %v13389_v21 = vcombine.low %v1770_v56, %v1774_v58 }
 0x4c3   : > { %11124 = vmatpush2.bf16.msra.mxu1 %v13421_v42  ;;  %v1638_v59 = vld [vmem:[%s13895_s3 + $0x2a70] sm:$0xff] }
 0x4c4   : > { %11125 = vmatprep.subr.bf16.mxu1 %v13414_v52  ;;  %v1762_v17 = vld [vmem:[%s13895_s3 + $0x2e50] sm:$0xff]  ;;  %v13254_v18 = vcombine.high %v1634_v28, %v1638_v59  ;;  %v13253_v30 = vcombine.low %v1634_v28, %v1638_v59  ;;  %v455_v28 = vld [vmem:[%s13895_s3 + $0x578] sm:$0xff] }
 0x4c5   : > { %11085 = vmatpush2.bf16.msra.mxu0 %v13285_v24  ;;  %v1766_v39 = vld [vmem:[%s13895_s3 + $0x2e70] sm:$0xff]  ;;  %v339_v24 = vld [vmem:[%s13895_s3 + $0x1d8] sm:$0xff] }
 0x4c6   : > { %11086 = vmatprep.subr.bf16.mxu0 %v13278_v38  ;;  %v13382_v16 = vcombine.high %v1762_v17, %v1766_v39  ;;  %v1626_v13 = vld [vmem:[%s13895_s3 + $0x2a10] sm:$0xff]  ;;  %v13381_v34 = vcombine.low %v1762_v17, %v1766_v39  ;;  %v467_v38 = vld [vmem:[%s13895_s3 + $0x5d8] sm:$0xff] }
 0x4c7   : > { %11126 = vmatpush2.bf16.msra.mxu1 %v13413_v9  ;;  %v1630_v42 = vld [vmem:[%s13895_s3 + $0x2a30] sm:$0xff]  ;;  %v343_v9 = vld [vmem:[%s13895_s3 + $0x1f8] sm:$0xff] }
 0x4c8   : > { %11127 = vmatprep.subr.bf16.mxu1 %v13406_v60  ;;  %v1754_v19 = vld [vmem:[%s13895_s3 + $0x2e10] sm:$0xff]  ;;  %v13246_v54 = vcombine.high %v1626_v13, %v1630_v42  ;;  %v471_v60 = vld [vmem:[%s13895_s3 + $0x5f8] sm:$0xff]  ;;  %v13245_v25 = vcombine.low %v1626_v13, %v1630_v42  ;;  %v11960_v62 = vcombine.high %v339_v24, %v343_v9  ;;  %v11959_v53 = vcombine.low %v339_v24, %v343_v9 }
 0x4c9   : > { %11087 = vmatpush2.bf16.msra.mxu0 %v13277_v47  ;;  %v1758_v52 = vld [vmem:[%s13895_s3 + $0x2e30] sm:$0xff]  ;;  %v12088_v43 = vcombine.high %v467_v38, %v471_v60  ;;  %v331_v47 = vld [vmem:[%s13895_s3 + $0x198] sm:$0xff]  ;;  %v12087_v29 = vcombine.low %v467_v38, %v471_v60 }
 0x4ca   : > { %11088 = vmatprep.subr.bf16.mxu0 %v13270_v1  ;;  %v13374_v27 = vcombine.high %v1754_v19, %v1758_v52  ;;  %v13373_v5 = vcombine.low %v1754_v19, %v1758_v52  ;;  %v459_v1 = vld [vmem:[%s13895_s3 + $0x598] sm:$0xff] }
 0x4cb   : > { %11128 = vmatpush2.bf16.msra.mxu1 %v13405_v49  ;;  %v335_v49 = vld [vmem:[%s13895_s3 + $0x1b8] sm:$0xff] }
 0x4cc   : > { %11129 = vmatprep.subr.bf16.mxu1 %v13398_v51  ;;  %v463_v51 = vld [vmem:[%s13895_s3 + $0x5b8] sm:$0xff]  ;;  %v11952_v56 = vcombine.high %v331_v47, %v335_v49  ;;  %v11951_v39 = vcombine.low %v331_v47, %v335_v49 }
 0x4cd   : > { %11089 = vmatpush2.bf16.msra.mxu0 %v13269_v63  ;;  %v12080_v58 = vcombine.high %v459_v1, %v463_v51  ;;  %v323_v63 = vld [vmem:[%s13895_s3 + $0x158] sm:$0xff] }
 0x4ce   : > { %11090 = vmatprep.subr.bf16.mxu0 %v13262_v7  ;;  %v315_v19 = vld [vmem:[%s13895_s3 + $0x118] sm:$0xff] }
 0x4cf   : > { %11130 = vmatpush2.bf16.msra.mxu1 %v13397_v3  ;;  %v327_v3 = vld [vmem:[%s13895_s3 + $0x178] sm:$0xff] }
 0x4d0   : > { %11131 = vmatprep.subr.bf16.mxu1 %v13390_v15  ;;  %v451_v15 = vld [vmem:[%s13895_s3 + $0x558] sm:$0xff] }
 0x4d1   : > { %11091 = vmatpush2.bf16.msra.mxu0 %v13261_v8  ;;  %v319_v52 = vld [vmem:[%s13895_s3 + $0x138] sm:$0xff]  ;;  %v12071_v38 = vcombine.low %v451_v15, %v455_v28 }
 0x4d2   : > { %11092 = vmatprep.subr.bf16.mxu0 %v13254_v18  ;;  %v11944_v18 = vcombine.high %v323_v63, %v327_v3  ;;  %v11936_v60 = vcombine.high %v315_v19, %v319_v52  ;;  %v11935_v47 = vcombine.low %v315_v19, %v319_v52  ;;  %v411_v19 = vld [vmem:[%s13895_s3 + $0x418] sm:$0xff] }
 0x4d3   : > { %11132 = vmatpush2.bf16.msra.mxu1 %v13389_v21  ;;  %v12079_v21 = vcombine.low %v459_v1, %v463_v51  ;;  %v415_v52 = vld [vmem:[%s13895_s3 + $0x438] sm:$0xff] }
 0x4d4   : > { %11133 = vmatprep.subr.bf16.mxu1 %v13382_v16 }
 0x4d5   : > { %11093 = vmatpush2.bf16.msra.mxu0 %v13253_v30 }
 0x4d6   : > { %11094 = vmatprep.subr.bf16.mxu0 %v13246_v54  ;;  %v447_v54 = vld [vmem:[%s13895_s3 + $0x538] sm:$0xff] }
 0x4d7   : > { %11134 = vmatpush2.bf16.msra.mxu1 %v13381_v34  ;;  %v443_v34 = vld [vmem:[%s13895_s3 + $0x518] sm:$0xff] }
 0x4d8   : > { %11135 = vmatprep.subr.bf16.mxu1 %v13374_v27  ;;  %v12063_v49 = vcombine.low %v443_v34, %v447_v54 }
 0x4d9   : > { %11095 = vmatpush2.bf16.msra.mxu0 %v13245_v25  ;;  %v12064_v25 = vcombine.high %v443_v34, %v447_v54 }
 0x4da   : > { %11146 = vmatprep.subr.bf16.mxu0 %v11960_v62  ;;  %v435_v62 = vld [vmem:[%s13895_s3 + $0x4d8] sm:$0xff] }
 0x4db   : > { %11136 = vmatpush2.bf16.msra.mxu1 %v13373_v5  ;;  %v307_v5 = vld [vmem:[%s13895_s3 + $0xd8] sm:$0xff] }
 0x4dc   : > { %11187 = vmatprep.subr.bf16.mxu1 %v12088_v43  ;;  %v10852_v7 = vpop.f32.mrf.mxu0  ;;  %11097 = vmatmul.mubr.bf16.vlgmr.msra.gmra.mxu0 %v14481_v50  ;;  %v439_v43 = vld [vmem:[%s13895_s3 + $0x4f8] sm:$0xff] }
 0x4dd   : > { %v10853_v59 = vadd.f32 %v10852_v7, %v15322_v46  ;;  %11147 = vmatpush1.bf16.msra.mxu0 %v11959_v53  ;;  %v12072_v46 = vcombine.high %v451_v15, %v455_v28  ;;  %11178 = vmatprep.mubr.bf16.mxu0 %v13973_v10  ;;  %v12056_v51 = vcombine.high %v435_v62, %v439_v43  ;;  %v299_v53 = vld [vmem:[%s13895_s3 + $0x98] sm:$0xff] }
 0x4de   : > { %v10893_v17 = vpop.f32.mrf.mxu1  ;;  %11138 = vmatmul.mubr.bf16.vlgmr.msra.gmra.mxu1 %v14489_v37  ;;  %v10854_v8 = vpop.f32.mrf.mxu0  ;;  %11148 = vmatprep.subr.bf16.mxu0 %v11952_v56  ;;  %v427_v56 = vld [vmem:[%s13895_s3 + $0x498] sm:$0xff] }
 0x4df   : > { %11188 = vmatpush1.bf16.msra.mxu1 %v12087_v29  ;;  %v15396_v16 = vadd.f32 %v10893_v17, %v10853_v59  ;;  %v10855_v13 = vadd.f32 %v10854_v8, %v15331_v32  ;;  %11219 = vmatprep.mubr.bf16.mxu1 %v13980_v14  ;;  %v11943_v32 = vcombine.low %v323_v63, %v327_v3  ;;  %v311_v14 = vld [vmem:[%s13895_s3 + $0xf8] sm:$0xff] }
 0x4e0   : > { %v10895_v42 = vpop.f32.mrf.mxu1  ;;  %11189 = vmatprep.subr.bf16.mxu1 %v12080_v58  ;;  %v10856_v30 = vpop.f32.mrf.mxu0  ;;  %v11928_v1 = vcombine.high %v307_v5, %v311_v14  ;;  %v303_v29 = vld [vmem:[%s13895_s3 + $0xb8] sm:$0xff]  ;;  %v11927_v63 = vcombine.low %v307_v5, %v311_v14  ;;  %v12055_v3 = vcombine.low %v435_v62, %v439_v43 }
 0x4e1   : > { %v15405_v27 = vadd.f32 %v10895_v42, %v10855_v13  ;;  %11149 = vmatpush1.bf16.msra.mxu0 %v11951_v39  ;;  %v431_v58 = vld [vmem:[%s13895_s3 + $0x4b8] sm:$0xff]  ;;  %v11920_v7 = vcombine.high %v299_v53, %v303_v29  ;;  %v11919_v8 = vcombine.low %v299_v53, %v303_v29 }
 0x4e2   : > { %v10897_v24 = vpop.f32.mrf.mxu1  ;;  %v10857_v9 = vpop.f32.mrf.mxu0  ;;  %11150 = vmatprep.subr.bf16.mxu0 %v11944_v18  ;;  %v12048_v15 = vcombine.high %v427_v56, %v431_v58  ;;  %v291_v28 = vld [vmem:[%s13895_s3 + $0x58] sm:$0xff] }
 0x4e3   : > { %11190 = vmatpush1.bf16.msra.mxu1 %v12079_v21  ;;  %v295_v59 = vld [vmem:[%s13895_s3 + $0x78] sm:$0xff]  ;;  %v12047_v21 = vcombine.low %v427_v56, %v431_v58  ;;  %v12032_v24 = vcombine.high %v411_v19, %v415_v52 }
 0x4e4   : > { %v10898_v10 = vpop.f32.mrf.mxu1  ;;  %11191 = vmatprep.subr.bf16.mxu1 %v12072_v46  ;;  %v419_v17 = vld [vmem:[%s13895_s3 + $0x458] sm:$0xff]  ;;  %v11912_v18 = vcombine.high %v291_v28, %v295_v59  ;;  %v11911_v30 = vcombine.low %v291_v28, %v295_v59 }
 0x4e5   : > { %11151 = vmatpush1.bf16.msra.mxu0 %v11943_v32  ;;  %v423_v39 = vld [vmem:[%s13895_s3 + $0x478] sm:$0xff] }
 0x4e6   : > { %11152 = vmatprep.subr.bf16.mxu0 %v11936_v60  ;;  %v12040_v13 = vcombine.high %v419_v17, %v423_v39  ;;  %v283_v42 = vld [vmem:[%s13895_s3 + $0x18] sm:$0xff]  ;;  %v12039_v34 = vcombine.low %v419_v17, %v423_v39 }
 0x4e7   : > { %11192 = vmatpush1.bf16.msra.mxu1 %v12071_v38  ;;  %v287_v46 = vld [vmem:[%s13895_s3 + $0x38] sm:$0xff] }
 0x4e8   : > { %11193 = vmatprep.subr.bf16.mxu1 %v12064_v25  ;;  %v11904_v54 = vcombine.high %v283_v42, %v287_v46  ;;  %v403_v32 = vld [vmem:[%s13895_s3 + $0x3d8] sm:$0xff]  ;;  %v11903_v10 = vcombine.low %v283_v42, %v287_v46  ;;  %v12031_v25 = vcombine.low %v411_v19, %v415_v52 }
 0x4e9   : > { %11153 = vmatpush1.bf16.msra.mxu0 %v11935_v47  ;;  %v407_v9 = vld [vmem:[%s13895_s3 + $0x3f8] sm:$0xff] }
 0x4ea   : > { %11154 = vmatprep.subr.bf16.mxu0 %v11928_v1  ;;  %v531_v38 = vld [vmem:[%s13895_s3 + $0x7d8] sm:$0xff]  ;;  %v12024_v5 = vcombine.high %v403_v32, %v407_v9  ;;  %v12023_v1 = vcombine.low %v403_v32, %v407_v9 }
 0x4eb   : > { %11194 = vmatpush1.bf16.msra.mxu1 %v12063_v49  ;;  %v535_v60 = vld [vmem:[%s13895_s3 + $0x7f8] sm:$0xff] }
 0x4ec   : > { %11195 = vmatprep.subr.bf16.mxu1 %v12056_v51  ;;  %v12152_v14 = vcombine.high %v531_v38, %v535_v60  ;;  %v395_v62 = vld [vmem:[%s13895_s3 + $0x398] sm:$0xff]  ;;  %v12151_v51 = vcombine.low %v531_v38, %v535_v60 }
 0x4ed   : > { %11155 = vmatpush1.bf16.msra.mxu0 %v11927_v63  ;;  %v399_v43 = vld [vmem:[%s13895_s3 + $0x3b8] sm:$0xff] }
 0x4ee   : > { %11156 = vmatprep.subr.bf16.mxu0 %v11920_v7  ;;  %v523_v47 = vld [vmem:[%s13895_s3 + $0x798] sm:$0xff]  ;;  %v12016_v53 = vcombine.high %v395_v62, %v399_v43  ;;  %v12015_v7 = vcombine.low %v395_v62, %v399_v43 }
 0x4ef   : > { %11196 = vmatpush1.bf16.msra.mxu1 %v12055_v3  ;;  %v527_v49 = vld [vmem:[%s13895_s3 + $0x7b8] sm:$0xff] }
 0x4f0   : > { %11197 = vmatprep.subr.bf16.mxu1 %v12048_v15  ;;  %v12144_v29 = vcombine.high %v523_v47, %v527_v49  ;;  %v387_v56 = vld [vmem:[%s13895_s3 + $0x358] sm:$0xff]  ;;  %v12143_v15 = vcombine.low %v523_v47, %v527_v49 }
 0x4f1   : > { %11157 = vmatpush1.bf16.msra.mxu0 %v11919_v8  ;;  %v391_v58 = vld [vmem:[%s13895_s3 + $0x378] sm:$0xff] }
 0x4f2   : > { %11158 = vmatprep.subr.bf16.mxu0 %v11912_v18  ;;  %v515_v63 = vld [vmem:[%s13895_s3 + $0x758] sm:$0xff]  ;;  %v12008_v28 = vcombine.high %v387_v56, %v391_v58  ;;  %v12007_v18 = vcombine.low %v387_v56, %v391_v58 }
 0x4f3   : > { %11198 = vmatpush1.bf16.msra.mxu1 %v12047_v21  ;;  %v519_v3 = vld [vmem:[%s13895_s3 + $0x778] sm:$0xff] }
 0x4f4   : > { %11199 = vmatprep.subr.bf16.mxu1 %v12040_v13  ;;  %v12136_v59 = vcombine.high %v515_v63, %v519_v3  ;;  %v379_v17 = vld [vmem:[%s13895_s3 + $0x318] sm:$0xff]  ;;  %v12135_v13 = vcombine.low %v515_v63, %v519_v3 }
 0x4f5   : > { %11159 = vmatpush1.bf16.msra.mxu0 %v11911_v30  ;;  %v383_v39 = vld [vmem:[%s13895_s3 + $0x338] sm:$0xff] }
 0x4f6   : > { %11160 = vmatprep.subr.bf16.mxu0 %v11904_v54  ;;  %v507_v8 = vld [vmem:[%s13895_s3 + $0x718] sm:$0xff]  ;;  %v12000_v42 = vcombine.high %v379_v17, %v383_v39  ;;  %v11999_v54 = vcombine.low %v379_v17, %v383_v39 }
 0x4f7   : > { %11200 = vmatpush1.bf16.msra.mxu1 %v12039_v34  ;;  %v511_v21 = vld [vmem:[%s13895_s3 + $0x738] sm:$0xff] }
 0x4f8   : > { %11201 = vmatprep.subr.bf16.mxu1 %v12032_v24  ;;  %v12128_v46 = vcombine.high %v507_v8, %v511_v21  ;;  %v371_v19 = vld [vmem:[%s13895_s3 + $0x2d8] sm:$0xff]  ;;  %v12127_v24 = vcombine.low %v507_v8, %v511_v21 }
 0x4f9   : > { %11161 = vmatpush1.bf16.msra.mxu0 %v11903_v10  ;;  %v375_v52 = vld [vmem:[%s13895_s3 + $0x2f8] sm:$0xff] }
 0x4fa   : > { %11162 = vmatprep.subr.bf16.mxu0 %v12024_v5  ;;  %v499_v30 = vld [vmem:[%s13895_s3 + $0x6d8] sm:$0xff]  ;;  %v11992_v32 = vcombine.high %v371_v19, %v375_v52  ;;  %v11991_v5 = vcombine.low %v371_v19, %v375_v52 }
 0x4fb   : > { %11202 = vmatpush1.bf16.msra.mxu1 %v12031_v25  ;;  %v503_v34 = vld [vmem:[%s13895_s3 + $0x6f8] sm:$0xff] }
 0x4fc   : > { %11203 = vmatprep.subr.bf16.mxu1 %v12152_v14  ;;  %v12120_v9 = vcombine.high %v499_v30, %v503_v34  ;;  %v363_v38 = vld [vmem:[%s13895_s3 + $0x298] sm:$0xff]  ;;  %v12119_v14 = vcombine.low %v499_v30, %v503_v34 }
 0x4fd   : > { %11163 = vmatpush2.bf16.msra.mxu0 %v12023_v1  ;;  %v367_v60 = vld [vmem:[%s13895_s3 + $0x2b8] sm:$0xff] }
 0x4fe   : > { %11164 = vmatprep.subr.bf16.mxu0 %v12016_v53  ;;  %v491_v10 = vld [vmem:[%s13895_s3 + $0x698] sm:$0xff]  ;;  %v11984_v62 = vcombine.high %v363_v38, %v367_v60  ;;  %v11983_v53 = vcombine.low %v363_v38, %v367_v60 }
 0x4ff   : > { %11204 = vmatpush2.bf16.msra.mxu1 %v12151_v51  ;;  %v495_v25 = vld [vmem:[%s13895_s3 + $0x6b8] sm:$0xff] }
 0x500   : > { %11205 = vmatprep.subr.bf16.mxu1 %v12144_v29  ;;  %v12112_v43 = vcombine.high %v491_v10, %v495_v25  ;;  %v355_v47 = vld [vmem:[%s13895_s3 + $0x258] sm:$0xff]  ;;  %v12111_v29 = vcombine.low %v491_v10, %v495_v25 }
 0x501   : > { %11165 = vmatpush2.bf16.msra.mxu0 %v12015_v7  ;;  %v359_v49 = vld [vmem:[%s13895_s3 + $0x278] sm:$0xff] }
 0x502   : > { %11166 = vmatprep.subr.bf16.mxu0 %v12008_v28  ;;  %v483_v1 = vld [vmem:[%s13895_s3 + $0x658] sm:$0xff]  ;;  %v11976_v56 = vcombine.high %v355_v47, %v359_v49  ;;  %v11975_v28 = vcombine.low %v355_v47, %v359_v49 }
 0x503   : > { %11206 = vmatpush2.bf16.msra.mxu1 %v12143_v15  ;;  %v487_v51 = vld [vmem:[%s13895_s3 + $0x678] sm:$0xff] }
 0x504   : > { %11207 = vmatprep.subr.bf16.mxu1 %v12136_v59  ;;  %v12104_v58 = vcombine.high %v483_v1, %v487_v51  ;;  %v347_v63 = vld [vmem:[%s13895_s3 + $0x218] sm:$0xff]  ;;  %v12103_v59 = vcombine.low %v483_v1, %v487_v51 }
 0x505   : > { %11167 = vmatpush2.bf16.msra.mxu0 %v12007_v18  ;;  %v351_v3 = vld [vmem:[%s13895_s3 + $0x238] sm:$0xff] }
 0x506   : > { %11168 = vmatprep.subr.bf16.mxu0 %v12000_v42  ;;  %v475_v7 = vld [vmem:[%s13895_s3 + $0x618] sm:$0xff]  ;;  %v11968_v17 = vcombine.high %v347_v63, %v351_v3  ;;  %v11967_v42 = vcombine.low %v347_v63, %v351_v3 }
 0x507   : > { %11208 = vmatpush2.bf16.msra.mxu1 %v12135_v13  ;;  %v479_v15 = vld [vmem:[%s13895_s3 + $0x638] sm:$0xff] }
 0x508   : > { %11209 = vmatprep.subr.bf16.mxu1 %v12128_v46  ;;  %v12096_v39 = vcombine.high %v475_v7, %v479_v15  ;;  %v595_v8 = vld [vmem:[%s13895_s3 + $0x9d8] sm:$0xff]  ;;  %v12095_v46 = vcombine.low %v475_v7, %v479_v15 }
 0x509   : > { %11169 = vmatpush2.bf16.msra.mxu0 %v11999_v54  ;;  %v599_v21 = vld [vmem:[%s13895_s3 + $0x9f8] sm:$0xff] }
 0x50a   : > { %11170 = vmatprep.subr.bf16.mxu0 %v11992_v32  ;;  %v723_v18 = vld [vmem:[%s13895_s3 + $0xdd8] sm:$0xff]  ;;  %v12216_v19 = vcombine.high %v595_v8, %v599_v21  ;;  %v12215_v32 = vcombine.low %v595_v8, %v599_v21 }
 0x50b   : > { %11210 = vmatpush2.bf16.msra.mxu1 %v12127_v24  ;;  %v727_v13 = vld [vmem:[%s13895_s3 + $0xdf8] sm:$0xff] }
 0x50c   : > { %11211 = vmatprep.subr.bf16.mxu1 %v12120_v9  ;;  %v12344_v52 = vcombine.high %v723_v18, %v727_v13  ;;  %v587_v30 = vld [vmem:[%s13895_s3 + $0x998] sm:$0xff]  ;;  %v12343_v9 = vcombine.low %v723_v18, %v727_v13 }
 0x50d   : > { %11171 = vmatpush2.bf16.msra.mxu0 %v11991_v5  ;;  %v591_v34 = vld [vmem:[%s13895_s3 + $0x9b8] sm:$0xff] }
 0x50e   : > { %11172 = vmatprep.subr.bf16.mxu0 %v11984_v62  ;;  %v715_v54 = vld [vmem:[%s13895_s3 + $0xd98] sm:$0xff]  ;;  %v12208_v38 = vcombine.high %v587_v30, %v591_v34  ;;  %v12207_v49 = vcombine.low %v587_v30, %v591_v34 }
 0x50f   : > { %11212 = vmatpush2.bf16.msra.mxu1 %v12119_v14  ;;  %v719_v24 = vld [vmem:[%s13895_s3 + $0xdb8] sm:$0xff] }
 0x510   : > { %11213 = vmatprep.subr.bf16.mxu1 %v12112_v43  ;;  %v12336_v60 = vcombine.high %v715_v54, %v719_v24  ;;  %v579_v10 = vld [vmem:[%s13895_s3 + $0x958] sm:$0xff]  ;;  %v12335_v51 = vcombine.low %v715_v54, %v719_v24 }
 0x511   : > { %11173 = vmatpush2.bf16.msra.mxu0 %v11983_v53  ;;  %v583_v25 = vld [vmem:[%s13895_s3 + $0x978] sm:$0xff] }
 0x512   : > { %11174 = vmatprep.subr.bf16.mxu0 %v11976_v56  ;;  %v707_v14 = vld [vmem:[%s13895_s3 + $0xd58] sm:$0xff]  ;;  %v12200_v53 = vcombine.high %v579_v10, %v583_v25 }
 0x513   : > { %11214 = vmatpush2.bf16.msra.mxu1 %v12111_v29  ;;  %v711_v62 = vld [vmem:[%s13895_s3 + $0xd78] sm:$0xff] }
 0x514   : > { %11215 = vmatprep.subr.bf16.mxu1 %v12104_v58  ;;  %v571_v58 = vld [vmem:[%s13895_s3 + $0x918] sm:$0xff] }
 0x515   : > { %11175 = vmatpush2.bf16.msra.mxu0 %v11975_v28  ;;  %v575_v63 = vld [vmem:[%s13895_s3 + $0x938] sm:$0xff] }
 0x516   : > { %11176 = vmatprep.subr.bf16.mxu0 %v11968_v17  ;;  %v699_v3 = vld [vmem:[%s13895_s3 + $0xd18] sm:$0xff]  ;;  %v12327_v17 = vcombine.low %v707_v14, %v711_v62 }
 0x517   : > { %11216 = vmatpush2.bf16.msra.mxu1 %v12103_v59  ;;  %v703_v7 = vld [vmem:[%s13895_s3 + $0xd38] sm:$0xff] }
 0x518   : > { %11217 = vmatprep.subr.bf16.mxu1 %v12096_v39  ;;  %v12192_v39 = vcombine.high %v571_v58, %v575_v63  ;;  %v12320_v8 = vcombine.high %v699_v3, %v703_v7  ;;  %v563_v21 = vld [vmem:[%s13895_s3 + $0x8d8] sm:$0xff] }
 0x519   : > { %11177 = vmatpush2.bf16.msra.mxu0 %v11967_v42  ;;  %v691_v18 = vld [vmem:[%s13895_s3 + $0xcd8] sm:$0xff]  ;;  %v12191_v42 = vcombine.low %v571_v58, %v575_v63 }
 0x51a   : > { %11228 = vmatprep.subr.bf16.mxu0 %v12216_v19  ;;  %v695_v13 = vld [vmem:[%s13895_s3 + $0xcf8] sm:$0xff] }
 0x51b   : > { %11218 = vmatpush2.bf16.msra.mxu1 %v12095_v46  ;;  %v12319_v46 = vcombine.low %v699_v3, %v703_v7  ;;  %v555_v30 = vld [vmem:[%s13895_s3 + $0x898] sm:$0xff] }
 0x51c   : > { %11269 = vmatprep.subr.bf16.mxu1 %v12344_v52  ;;  %v10934_v5 = vpop.f32.mrf.mxu0  ;;  %11179 = vmatmul.mubr.bf16.vlgmr.msra.gmra.mxu0 %v14024_v23  ;;  %v12312_v52 = vcombine.high %v691_v18, %v695_v13  ;;  %v559_v34 = vld [vmem:[%s13895_s3 + $0x8b8] sm:$0xff] }
 0x51d   : > { %v10935_v43 = vadd.f32 %v10934_v5, %v15396_v16  ;;  %11229 = vmatpush1.bf16.msra.mxu0 %v12215_v32  ;;  %v12328_v16 = vcombine.high %v707_v14, %v711_v62  ;;  %11260 = vmatprep.mubr.bf16.mxu0 %v14031_v31  ;;  %v683_v54 = vld [vmem:[%s13895_s3 + $0xc98] sm:$0xff]  ;;  %v12175_v62 = vcombine.low %v555_v30, %v559_v34 }
 0x51e   : > { %v10975_v47 = vpop.f32.mrf.mxu1  ;;  %11220 = vmatmul.mubr.bf16.vlgmr.msra.gmra.mxu1 %v14035_v0  ;;  %v10936_v1 = vpop.f32.mrf.mxu0  ;;  %11230 = vmatprep.subr.bf16.mxu0 %v12208_v38  ;;  %v687_v24 = vld [vmem:[%s13895_s3 + $0xcb8] sm:$0xff]  ;;  %v12176_v38 = vcombine.high %v555_v30, %v559_v34 }
 0x51f   : > { %11270 = vmatpush1.bf16.msra.mxu1 %v12343_v9  ;;  %v15470_v29 = vadd.f32 %v10975_v47, %v10935_v43  ;;  %v10937_v23 = vadd.f32 %v10936_v1, %v15405_v27  ;;  %11301 = vmatprep.mubr.bf16.mxu1 %v14044_v40  ;;  %v12199_v27 = vcombine.low %v579_v10, %v583_v25  ;;  %v567_v40 = vld [vmem:[%s13895_s3 + $0x8f8] sm:$0xff] }
 0x520   : > { %v10977_v56 = vpop.f32.mrf.mxu1  ;;  %11271 = vmatprep.subr.bf16.mxu1 %v12336_v60  ;;  %v10938_v0 = vpop.f32.mrf.mxu0  ;;  %v12184_v19 = vcombine.high %v563_v21, %v567_v40  ;;  %v12183_v32 = vcombine.low %v563_v21, %v567_v40  ;;  %v12311_v9 = vcombine.low %v691_v18, %v695_v13  ;;  %v12304_v60 = vcombine.high %v683_v54, %v687_v24  ;;  %v547_v10 = vld [vmem:[%s13895_s3 + $0x858] sm:$0xff] }
 0x521   : > { %v15479_v15 = vadd.f32 %v10977_v56, %v10937_v23  ;;  %11231 = vmatpush1.bf16.msra.mxu0 %v12207_v49  ;;  %v551_v25 = vld [vmem:[%s13895_s3 + $0x878] sm:$0xff]  ;;  %v12303_v43 = vcombine.low %v683_v54, %v687_v24 }
 0x522   : > { %v10979_v28 = vpop.f32.mrf.mxu1  ;;  %v10939_v59 = vpop.f32.mrf.mxu0  ;;  %11232 = vmatprep.subr.bf16.mxu0 %v12200_v53  ;;  %v675_v5 = vld [vmem:[%s13895_s3 + $0xc58] sm:$0xff]  ;;  %v12168_v47 = vcombine.high %v547_v10, %v551_v25  ;;  %v12167_v56 = vcombine.low %v547_v10, %v551_v25 }
 0x523   : > { %11272 = vmatpush1.bf16.msra.mxu1 %v12335_v51  ;;  %v679_v14 = vld [vmem:[%s13895_s3 + $0xc78] sm:$0xff] }
 0x524   : > { %v10980_v31 = vpop.f32.mrf.mxu1  ;;  %11273 = vmatprep.subr.bf16.mxu1 %v12328_v16  ;;  %v12296_v49 = vcombine.high %v675_v5, %v679_v14  ;;  %v539_v1 = vld [vmem:[%s13895_s3 + $0x818] sm:$0xff]  ;;  %v12295_v16 = vcombine.low %v675_v5, %v679_v14 }
 0x525   : > { %11233 = vmatpush1.bf16.msra.mxu0 %v12199_v27  ;;  %v543_v51 = vld [vmem:[%s13895_s3 + $0x838] sm:$0xff] }
 0x526   : > { %11234 = vmatprep.subr.bf16.mxu0 %v12192_v39  ;;  %v667_v53 = vld [vmem:[%s13895_s3 + $0xc18] sm:$0xff]  ;;  %v12160_v58 = vcombine.high %v539_v1, %v543_v51  ;;  %v12159_v27 = vcombine.low %v539_v1, %v543_v51 }
 0x527   : > { %11274 = vmatpush1.bf16.msra.mxu1 %v12327_v17  ;;  %v671_v23 = vld [vmem:[%s13895_s3 + $0xc38] sm:$0xff] }
 0x528   : > { %11275 = vmatprep.subr.bf16.mxu1 %v12320_v8  ;;  %v12288_v63 = vcombine.high %v667_v53, %v671_v23  ;;  %v659_v0 = vld [vmem:[%s13895_s3 + $0xbd8] sm:$0xff]  ;;  %v12287_v59 = vcombine.low %v667_v53, %v671_v23 }
 0x529   : > { %11235 = vmatpush1.bf16.msra.mxu0 %v12191_v42  ;;  %v663_v3 = vld [vmem:[%s13895_s3 + $0xbf8] sm:$0xff] }
 0x52a   : > { %11236 = vmatprep.subr.bf16.mxu0 %v12184_v19  ;;  %v787_v7 = vld [vmem:[%s13895_s3 + $0xfd8] sm:$0xff]  ;;  %v12280_v17 = vcombine.high %v659_v0, %v663_v3  ;;  %v12279_v18 = vcombine.low %v659_v0, %v663_v3 }
 0x52b   : > { %11276 = vmatpush1.bf16.msra.mxu1 %v12319_v46  ;;  %v791_v28 = vld [vmem:[%s13895_s3 + $0xff8] sm:$0xff] }
 0x52c   : > { %11277 = vmatprep.subr.bf16.mxu1 %v12312_v52  ;;  %v12408_v39 = vcombine.high %v787_v7, %v791_v28  ;;  %v651_v31 = vld [vmem:[%s13895_s3 + $0xb98] sm:$0xff]  ;;  %v12407_v13 = vcombine.low %v787_v7, %v791_v28 }
 0x52d   : > { %11237 = vmatpush1.bf16.msra.mxu0 %v12183_v32  ;;  %v655_v8 = vld [vmem:[%s13895_s3 + $0xbb8] sm:$0xff] }
 0x52e   : > { %11238 = vmatprep.subr.bf16.mxu0 %v12176_v38  ;;  %v779_v21 = vld [vmem:[%s13895_s3 + $0xf98] sm:$0xff]  ;;  %v12272_v42 = vcombine.high %v651_v31, %v655_v8  ;;  %v12271_v54 = vcombine.low %v651_v31, %v655_v8 }
 0x52f   : > { %11278 = vmatpush1.bf16.msra.mxu1 %v12311_v9  ;;  %v783_v40 = vld [vmem:[%s13895_s3 + $0xfb8] sm:$0xff] }
 0x530   : > { %11279 = vmatprep.subr.bf16.mxu1 %v12304_v60  ;;  %v12400_v46 = vcombine.high %v779_v21, %v783_v40  ;;  %v643_v19 = vld [vmem:[%s13895_s3 + $0xb58] sm:$0xff]  ;;  %v12399_v24 = vcombine.low %v779_v21, %v783_v40 }
 0x531   : > { %11239 = vmatpush1.bf16.msra.mxu0 %v12175_v62  ;;  %v647_v52 = vld [vmem:[%s13895_s3 + $0xb78] sm:$0xff] }
 0x532   : > { %11240 = vmatprep.subr.bf16.mxu0 %v12168_v47  ;;  %v771_v30 = vld [vmem:[%s13895_s3 + $0xf58] sm:$0xff]  ;;  %v12264_v32 = vcombine.high %v643_v19, %v647_v52  ;;  %v12263_v5 = vcombine.low %v643_v19, %v647_v52 }
 0x533   : > { %11280 = vmatpush1.bf16.msra.mxu1 %v12303_v43  ;;  %v775_v34 = vld [vmem:[%s13895_s3 + $0xf78] sm:$0xff] }
 0x534   : > { %11281 = vmatprep.subr.bf16.mxu1 %v12296_v49  ;;  %v12392_v9 = vcombine.high %v771_v30, %v775_v34  ;;  %v635_v38 = vld [vmem:[%s13895_s3 + $0xb18] sm:$0xff]  ;;  %v12391_v14 = vcombine.low %v771_v30, %v775_v34 }
 0x535   : > { %11241 = vmatpush1.bf16.msra.mxu0 %v12167_v56  ;;  %v639_v60 = vld [vmem:[%s13895_s3 + $0xb38] sm:$0xff] }
 0x536   : > { %11242 = vmatprep.subr.bf16.mxu0 %v12160_v58  ;;  %v763_v10 = vld [vmem:[%s13895_s3 + $0xf18] sm:$0xff]  ;;  %v12256_v62 = vcombine.high %v635_v38, %v639_v60  ;;  %v12255_v53 = vcombine.low %v635_v38, %v639_v60 }
 0x537   : > { %11282 = vmatpush1.bf16.msra.mxu1 %v12295_v16  ;;  %v767_v25 = vld [vmem:[%s13895_s3 + $0xf38] sm:$0xff] }
 0x538   : > { %11283 = vmatprep.subr.bf16.mxu1 %v12288_v63  ;;  %v12384_v43 = vcombine.high %v763_v10, %v767_v25  ;;  %v627_v47 = vld [vmem:[%s13895_s3 + $0xad8] sm:$0xff]  ;;  %v12383_v23 = vcombine.low %v763_v10, %v767_v25 }
 0x539   : > { %11243 = vmatpush1.bf16.msra.mxu0 %v12159_v27  ;;  %v631_v49 = vld [vmem:[%s13895_s3 + $0xaf8] sm:$0xff] }
 0x53a   : > { %11244 = vmatprep.subr.bf16.mxu0 %v12280_v17  ;;  %v755_v1 = vld [vmem:[%s13895_s3 + $0xed8] sm:$0xff]  ;;  %v12248_v56 = vcombine.high %v627_v47, %v631_v49  ;;  %v12247_v7 = vcombine.low %v627_v47, %v631_v49 }
 0x53b   : > { %11284 = vmatpush1.bf16.msra.mxu1 %v12287_v59  ;;  %v759_v51 = vld [vmem:[%s13895_s3 + $0xef8] sm:$0xff] }
 0x53c   : > { %11285 = vmatprep.subr.bf16.mxu1 %v12408_v39  ;;  %v12376_v16 = vcombine.high %v755_v1, %v759_v51  ;;  %v619_v58 = vld [vmem:[%s13895_s3 + $0xa98] sm:$0xff]  ;;  %v12375_v28 = vcombine.low %v755_v1, %v759_v51 }
 0x53d   : > { %11245 = vmatpush2.bf16.msra.mxu0 %v12279_v18  ;;  %v623_v63 = vld [vmem:[%s13895_s3 + $0xab8] sm:$0xff] }
 0x53e   : > { %11246 = vmatprep.subr.bf16.mxu0 %v12272_v42  ;;  %v747_v0 = vld [vmem:[%s13895_s3 + $0xe98] sm:$0xff]  ;;  %v12240_v27 = vcombine.high %v619_v58, %v623_v63  ;;  %v12239_v21 = vcombine.low %v619_v58, %v623_v63 }
 0x53f   : > { %11286 = vmatpush2.bf16.msra.mxu1 %v12407_v13  ;;  %v751_v3 = vld [vmem:[%s13895_s3 + $0xeb8] sm:$0xff] }
 0x540   : > { %11287 = vmatprep.subr.bf16.mxu1 %v12400_v46  ;;  %v12368_v59 = vcombine.high %v747_v0, %v751_v3  ;;  %v611_v17 = vld [vmem:[%s13895_s3 + $0xa58] sm:$0xff]  ;;  %v12367_v40 = vcombine.low %v747_v0, %v751_v3 }
 0x541   : > { %11247 = vmatpush2.bf16.msra.mxu0 %v12271_v54  ;;  %v615_v39 = vld [vmem:[%s13895_s3 + $0xa78] sm:$0xff] }
 0x542   : > { %11248 = vmatprep.subr.bf16.mxu0 %v12264_v32  ;;  %v739_v31 = vld [vmem:[%s13895_s3 + $0xe58] sm:$0xff]  ;;  %v12232_v18 = vcombine.high %v611_v17, %v615_v39  ;;  %v12231_v30 = vcombine.low %v611_v17, %v615_v39 }
 0x543   : > { %11288 = vmatpush2.bf16.msra.mxu1 %v12399_v24  ;;  %v743_v8 = vld [vmem:[%s13895_s3 + $0xe78] sm:$0xff] }
 0x544   : > { %11289 = vmatprep.subr.bf16.mxu1 %v12392_v9  ;;  %v12360_v13 = vcombine.high %v739_v31, %v743_v8  ;;  %v603_v42 = vld [vmem:[%s13895_s3 + $0xa18] sm:$0xff]  ;;  %v12359_v34 = vcombine.low %v739_v31, %v743_v8 }
 0x545   : > { %11249 = vmatpush2.bf16.msra.mxu0 %v12263_v5  ;;  %v607_v46 = vld [vmem:[%s13895_s3 + $0xa38] sm:$0xff] }
 0x546   : > { %11250 = vmatprep.subr.bf16.mxu0 %v12256_v62  ;;  %v731_v19 = vld [vmem:[%s13895_s3 + $0xe18] sm:$0xff]  ;;  %v12224_v54 = vcombine.high %v603_v42, %v607_v46  ;;  %v12223_v10 = vcombine.low %v603_v42, %v607_v46 }
 0x547   : > { %11290 = vmatpush2.bf16.msra.mxu1 %v12391_v14  ;;  %v735_v52 = vld [vmem:[%s13895_s3 + $0xe38] sm:$0xff] }
 0x548   : > { %11291 = vmatprep.subr.bf16.mxu1 %v12384_v43  ;;  %v12352_v24 = vcombine.high %v731_v19, %v735_v52  ;;  %v851_v32 = vld [vmem:[%s13895_s3 + $0x11d8] sm:$0xff]  ;;  %v12351_v25 = vcombine.low %v731_v19, %v735_v52 }
 0x549   : > { %11251 = vmatpush2.bf16.msra.mxu0 %v12255_v53  ;;  %v855_v9 = vld [vmem:[%s13895_s3 + $0x11f8] sm:$0xff] }
 0x54a   : > { %11252 = vmatprep.subr.bf16.mxu0 %v12248_v56  ;;  %v979_v38 = vld [vmem:[%s13895_s3 + $0x15d8] sm:$0xff]  ;;  %v12472_v5 = vcombine.high %v851_v32, %v855_v9  ;;  %v12471_v1 = vcombine.low %v851_v32, %v855_v9 }
 0x54b   : > { %11292 = vmatpush2.bf16.msra.mxu1 %v12383_v23  ;;  %v983_v60 = vld [vmem:[%s13895_s3 + $0x15f8] sm:$0xff] }
 0x54c   : > { %11293 = vmatprep.subr.bf16.mxu1 %v12376_v16  ;;  %v12600_v14 = vcombine.high %v979_v38, %v983_v60  ;;  %v843_v62 = vld [vmem:[%s13895_s3 + $0x1198] sm:$0xff]  ;;  %v12599_v51 = vcombine.low %v979_v38, %v983_v60 }
 0x54d   : > { %11253 = vmatpush2.bf16.msra.mxu0 %v12247_v7  ;;  %v847_v43 = vld [vmem:[%s13895_s3 + $0x11b8] sm:$0xff] }
 0x54e   : > { %11254 = vmatprep.subr.bf16.mxu0 %v12240_v27  ;;  %v971_v47 = vld [vmem:[%s13895_s3 + $0x1598] sm:$0xff]  ;;  %v12464_v53 = vcombine.high %v843_v62, %v847_v43 }
 0x54f   : > { %11294 = vmatpush2.bf16.msra.mxu1 %v12375_v28  ;;  %v975_v49 = vld [vmem:[%s13895_s3 + $0x15b8] sm:$0xff]  ;;  %v12463_v28 = vcombine.low %v843_v62, %v847_v43 }
 0x550   : > { %11295 = vmatprep.subr.bf16.mxu1 %v12368_v59  ;;  %v12592_v23 = vcombine.high %v971_v47, %v975_v49  ;;  %v835_v56 = vld [vmem:[%s13895_s3 + $0x1158] sm:$0xff]  ;;  %v12591_v59 = vcombine.low %v971_v47, %v975_v49 }
 0x551   : > { %11255 = vmatpush2.bf16.msra.mxu0 %v12239_v21  ;;  %v839_v16 = vld [vmem:[%s13895_s3 + $0x1178] sm:$0xff] }
 0x552   : > { %11256 = vmatprep.subr.bf16.mxu0 %v12232_v18  ;;  %v963_v63 = vld [vmem:[%s13895_s3 + $0x1558] sm:$0xff]  ;;  %v12456_v17 = vcombine.high %v835_v56, %v839_v16 }
 0x553   : > { %11296 = vmatpush2.bf16.msra.mxu1 %v12367_v40  ;;  %v967_v0 = vld [vmem:[%s13895_s3 + $0x1578] sm:$0xff] }
 0x554   : > { %11297 = vmatprep.subr.bf16.mxu1 %v12360_v13  ;;  %v827_v8 = vld [vmem:[%s13895_s3 + $0x1118] sm:$0xff]  ;;  %v12583_v19 = vcombine.low %v963_v63, %v967_v0 }
 0x555   : > { %11257 = vmatpush2.bf16.msra.mxu0 %v12231_v30  ;;  %v831_v21 = vld [vmem:[%s13895_s3 + $0x1138] sm:$0xff] }
 0x556   : > { %11258 = vmatprep.subr.bf16.mxu0 %v12224_v54  ;;  %v955_v40 = vld [vmem:[%s13895_s3 + $0x1518] sm:$0xff]  ;;  %v12448_v52 = vcombine.high %v827_v8, %v831_v21  ;;  %v12447_v32 = vcombine.low %v827_v8, %v831_v21 }
 0x557   : > { %11298 = vmatpush2.bf16.msra.mxu1 %v12359_v34  ;;  %v959_v18 = vld [vmem:[%s13895_s3 + $0x1538] sm:$0xff] }
 0x558   : > { %11299 = vmatprep.subr.bf16.mxu1 %v12352_v24  ;;  %v12576_v30 = vcombine.high %v955_v40, %v959_v18  ;;  %v819_v34 = vld [vmem:[%s13895_s3 + $0x10d8] sm:$0xff]  ;;  %v12575_v9 = vcombine.low %v955_v40, %v959_v18 }
 0x559   : > { %11259 = vmatpush2.bf16.msra.mxu0 %v12223_v10  ;;  %v947_v54 = vld [vmem:[%s13895_s3 + $0x14d8] sm:$0xff] }
 0x55a   : > { %11310 = vmatprep.subr.bf16.mxu0 %v12472_v5  ;;  %v951_v24 = vld [vmem:[%s13895_s3 + $0x14f8] sm:$0xff] }
 0x55b   : > { %11300 = vmatpush2.bf16.msra.mxu1 %v12351_v25  ;;  %v12568_v60 = vcombine.high %v947_v54, %v951_v24  ;;  %v811_v10 = vld [vmem:[%s13895_s3 + $0x1098] sm:$0xff]  ;;  %v12567_v43 = vcombine.low %v947_v54, %v951_v24 }
 0x55c   : > { %11351 = vmatprep.subr.bf16.mxu1 %v12600_v14  ;;  %v11016_v58 = vpop.f32.mrf.mxu0  ;;  %11261 = vmatmul.mubr.bf16.vlgmr.msra.gmra.mxu0 %v14116_v48  ;;  %v815_v25 = vld [vmem:[%s13895_s3 + $0x10b8] sm:$0xff] }
 0x55d   : > { %v11017_v3 = vadd.f32 %v11016_v58, %v15470_v29  ;;  %11311 = vmatpush1.bf16.msra.mxu0 %v12471_v1  ;;  %v12584_v29 = vcombine.high %v963_v63, %v967_v0  ;;  %11342 = vmatprep.mubr.bf16.mxu0 %v14123_v57  ;;  %v939_v5 = vld [vmem:[%s13895_s3 + $0x1498] sm:$0xff]  ;;  %v12432_v47 = vcombine.high %v811_v10, %v815_v25 }
 0x55e   : > { %v11057_v7 = vpop.f32.mrf.mxu1  ;;  %11302 = vmatmul.mubr.bf16.vlgmr.msra.gmra.mxu1 %v14127_v12  ;;  %v11018_v27 = vpop.f32.mrf.mxu0  ;;  %11312 = vmatprep.subr.bf16.mxu0 %v12464_v53  ;;  %v943_v14 = vld [vmem:[%s13895_s3 + $0x14b8] sm:$0xff] }
 0x55f   : > { %11352 = vmatpush1.bf16.msra.mxu1 %v12599_v51  ;;  %v15544_v39 = vadd.f32 %v11057_v7, %v11017_v3  ;;  %v11019_v48 = vadd.f32 %v11018_v27, %v15479_v15  ;;  %11383 = vmatprep.mubr.bf16.mxu1 %v14136_v4  ;;  %v12455_v15 = vcombine.low %v835_v56, %v839_v16  ;;  %v823_v4 = vld [vmem:[%s13895_s3 + $0x10f8] sm:$0xff] }
 0x560   : > { %v11059_v31 = vpop.f32.mrf.mxu1  ;;  %11353 = vmatprep.subr.bf16.mxu1 %v12592_v23  ;;  %v11020_v12 = vpop.f32.mrf.mxu0  ;;  %v12440_v38 = vcombine.high %v819_v34, %v823_v4  ;;  %v12439_v62 = vcombine.low %v819_v34, %v823_v4  ;;  %v12560_v49 = vcombine.high %v939_v5, %v943_v14  ;;  %v803_v1 = vld [vmem:[%s13895_s3 + $0x1058] sm:$0xff]  ;;  %v12431_v56 = vcombine.low %v811_v10, %v815_v25 }
 0x561   : > { %v15553_v13 = vadd.f32 %v11059_v31, %v11019_v48  ;;  %11313 = vmatpush1.bf16.msra.mxu0 %v12463_v28  ;;  %v807_v51 = vld [vmem:[%s13895_s3 + $0x1078] sm:$0xff]  ;;  %v12559_v16 = vcombine.low %v939_v5, %v943_v14 }
 0x562   : > { %v11061_v42 = vpop.f32.mrf.mxu1  ;;  %v11021_v46 = vpop.f32.mrf.mxu0  ;;  %11314 = vmatprep.subr.bf16.mxu0 %v12456_v17  ;;  %v931_v53 = vld [vmem:[%s13895_s3 + $0x1458] sm:$0xff]  ;;  %v12424_v58 = vcombine.high %v803_v1, %v807_v51  ;;  %v12423_v27 = vcombine.low %v803_v1, %v807_v51 }
 0x563   : > { %11354 = vmatpush1.bf16.msra.mxu1 %v12591_v59  ;;  %v935_v23 = vld [vmem:[%s13895_s3 + $0x1478] sm:$0xff] }
 0x564   : > { %v11062_v57 = vpop.f32.mrf.mxu1  ;;  %11355 = vmatprep.subr.bf16.mxu1 %v12584_v29  ;;  %v12552_v63 = vcombine.high %v931_v53, %v935_v23  ;;  %v795_v0 = vld [vmem:[%s13895_s3 + $0x1018] sm:$0xff]  ;;  %v12551_v59 = vcombine.low %v931_v53, %v935_v23 }
 0x565   : > { %11315 = vmatpush1.bf16.msra.mxu0 %v12455_v15  ;;  %v799_v3 = vld [vmem:[%s13895_s3 + $0x1038] sm:$0xff] }
 0x566   : > { %11316 = vmatprep.subr.bf16.mxu0 %v12448_v52  ;;  %v923_v7 = vld [vmem:[%s13895_s3 + $0x1418] sm:$0xff]  ;;  %v12416_v17 = vcombine.high %v795_v0, %v799_v3  ;;  %v12415_v12 = vcombine.low %v795_v0, %v799_v3 }
 0x567   : > { %11356 = vmatpush1.bf16.msra.mxu1 %v12583_v19  ;;  %v927_v28 = vld [vmem:[%s13895_s3 + $0x1438] sm:$0xff] }
 0x568   : > { %11357 = vmatprep.subr.bf16.mxu1 %v12576_v30  ;;  %v12544_v48 = vcombine.high %v923_v7, %v927_v28  ;;  %v915_v31 = vld [vmem:[%s13895_s3 + $0x13d8] sm:$0xff]  ;;  %v12543_v40 = vcombine.low %v923_v7, %v927_v28 }
 0x569   : > { %11317 = vmatpush1.bf16.msra.mxu0 %v12447_v32  ;;  %v919_v29 = vld [vmem:[%s13895_s3 + $0x13f8] sm:$0xff] }
 0x56a   : > { %11318 = vmatprep.subr.bf16.mxu0 %v12440_v38  ;;  %v1043_v8 = vld [vmem:[%s13895_s3 + $0x17d8] sm:$0xff]  ;;  %v12536_v18 = vcombine.high %v915_v31, %v919_v29  ;;  %v12535_v57 = vcombine.low %v915_v31, %v919_v29 }
 0x56b   : > { %11358 = vmatpush1.bf16.msra.mxu1 %v12575_v9  ;;  %v1047_v21 = vld [vmem:[%s13895_s3 + $0x17f8] sm:$0xff] }
 0x56c   : > { %11359 = vmatprep.subr.bf16.mxu1 %v12568_v60  ;;  %v12664_v42 = vcombine.high %v1043_v8, %v1047_v21  ;;  %v907_v15 = vld [vmem:[%s13895_s3 + $0x1398] sm:$0xff]  ;;  %v12663_v30 = vcombine.low %v1043_v8, %v1047_v21 }
 0x56d   : > { %11319 = vmatpush1.bf16.msra.mxu0 %v12439_v62  ;;  %v911_v46 = vld [vmem:[%s13895_s3 + $0x13b8] sm:$0xff] }
 0x56e   : > { %11320 = vmatprep.subr.bf16.mxu0 %v12432_v47  ;;  %v1035_v19 = vld [vmem:[%s13895_s3 + $0x1798] sm:$0xff]  ;;  %v12528_v34 = vcombine.high %v907_v15, %v911_v46  ;;  %v12527_v38 = vcombine.low %v907_v15, %v911_v46 }
 0x56f   : > { %11360 = vmatpush1.bf16.msra.mxu1 %v12567_v43  ;;  %v1039_v52 = vld [vmem:[%s13895_s3 + $0x17b8] sm:$0xff] }
 0x570   : > { %11361 = vmatprep.subr.bf16.mxu1 %v12560_v49  ;;  %v12656_v4 = vcombine.high %v1035_v19, %v1039_v52  ;;  %v899_v54 = vld [vmem:[%s13895_s3 + $0x1358] sm:$0xff]  ;;  %v12655_v60 = vcombine.low %v1035_v19, %v1039_v52 }
 0x571   : > { %11321 = vmatpush1.bf16.msra.mxu0 %v12431_v56  ;;  %v903_v24 = vld [vmem:[%s13895_s3 + $0x1378] sm:$0xff] }
 0x572   : > { %11322 = vmatprep.subr.bf16.mxu0 %v12424_v58  ;;  %v1027_v32 = vld [vmem:[%s13895_s3 + $0x1758] sm:$0xff]  ;;  %v12520_v10 = vcombine.high %v899_v54, %v903_v24  ;;  %v12519_v47 = vcombine.low %v899_v54, %v903_v24 }
 0x573   : > { %11362 = vmatpush1.bf16.msra.mxu1 %v12559_v16  ;;  %v1031_v9 = vld [vmem:[%s13895_s3 + $0x1778] sm:$0xff] }
 0x574   : > { %11363 = vmatprep.subr.bf16.mxu1 %v12552_v63  ;;  %v12648_v25 = vcombine.high %v1027_v32, %v1031_v9  ;;  %v891_v5 = vld [vmem:[%s13895_s3 + $0x1318] sm:$0xff]  ;;  %v12647_v49 = vcombine.low %v1027_v32, %v1031_v9 }
 0x575   : > { %11323 = vmatpush1.bf16.msra.mxu0 %v12423_v27  ;;  %v895_v14 = vld [vmem:[%s13895_s3 + $0x1338] sm:$0xff] }
 0x576   : > { %11324 = vmatprep.subr.bf16.mxu0 %v12416_v17  ;;  %v1019_v62 = vld [vmem:[%s13895_s3 + $0x1718] sm:$0xff]  ;;  %v12512_v1 = vcombine.high %v891_v5, %v895_v14  ;;  %v12511_v58 = vcombine.low %v891_v5, %v895_v14 }
 0x577   : > { %11364 = vmatpush1.bf16.msra.mxu1 %v12551_v59  ;;  %v1023_v43 = vld [vmem:[%s13895_s3 + $0x1738] sm:$0xff] }
 0x578   : > { %11365 = vmatprep.subr.bf16.mxu1 %v12544_v48  ;;  %v12640_v51 = vcombine.high %v1019_v62, %v1023_v43  ;;  %v883_v53 = vld [vmem:[%s13895_s3 + $0x12d8] sm:$0xff]  ;;  %v12639_v63 = vcombine.low %v1019_v62, %v1023_v43 }
 0x579   : > { %11325 = vmatpush1.bf16.msra.mxu0 %v12415_v12  ;;  %v887_v23 = vld [vmem:[%s13895_s3 + $0x12f8] sm:$0xff] }
 0x57a   : > { %11326 = vmatprep.subr.bf16.mxu0 %v12536_v18  ;;  %v1011_v56 = vld [vmem:[%s13895_s3 + $0x16d8] sm:$0xff]  ;;  %v12504_v0 = vcombine.high %v883_v53, %v887_v23  ;;  %v12503_v17 = vcombine.low %v883_v53, %v887_v23 }
 0x57b   : > { %11366 = vmatpush1.bf16.msra.mxu1 %v12543_v40  ;;  %v1015_v16 = vld [vmem:[%s13895_s3 + $0x16f8] sm:$0xff] }
 0x57c   : > { %11367 = vmatprep.subr.bf16.mxu1 %v12664_v42  ;;  %v12632_v3 = vcombine.high %v1011_v56, %v1015_v16  ;;  %v875_v7 = vld [vmem:[%s13895_s3 + $0x1298] sm:$0xff]  ;;  %v12631_v48 = vcombine.low %v1011_v56, %v1015_v16 }
 0x57d   : > { %11327 = vmatpush2.bf16.msra.mxu0 %v12535_v57  ;;  %v879_v28 = vld [vmem:[%s13895_s3 + $0x12b8] sm:$0xff] }
 0x57e   : > { %11328 = vmatprep.subr.bf16.mxu0 %v12528_v34  ;;  %v1003_v27 = vld [vmem:[%s13895_s3 + $0x1698] sm:$0xff]  ;;  %v12496_v31 = vcombine.high %v875_v7, %v879_v28  ;;  %v12495_v18 = vcombine.low %v875_v7, %v879_v28 }
 0x57f   : > { %11368 = vmatpush2.bf16.msra.mxu1 %v12663_v30  ;;  %v1007_v59 = vld [vmem:[%s13895_s3 + $0x16b8] sm:$0xff] }
 0x580   : > { %11369 = vmatprep.subr.bf16.mxu1 %v12656_v4  ;;  %v12624_v29 = vcombine.high %v1003_v27, %v1007_v59  ;;  %v867_v8 = vld [vmem:[%s13895_s3 + $0x1258] sm:$0xff]  ;;  %v12623_v42 = vcombine.low %v1003_v27, %v1007_v59 }
 0x581   : > { %11329 = vmatpush2.bf16.msra.mxu0 %v12527_v38  ;;  %v871_v21 = vld [vmem:[%s13895_s3 + $0x1278] sm:$0xff] }
 0x582   : > { %11330 = vmatprep.subr.bf16.mxu0 %v12520_v10  ;;  %v995_v12 = vld [vmem:[%s13895_s3 + $0x1658] sm:$0xff]  ;;  %v12488_v15 = vcombine.high %v867_v8, %v871_v21  ;;  %v12487_v34 = vcombine.low %v867_v8, %v871_v21 }
 0x583   : > { %11370 = vmatpush2.bf16.msra.mxu1 %v12655_v60  ;;  %v999_v40 = vld [vmem:[%s13895_s3 + $0x1678] sm:$0xff] }
 0x584   : > { %11371 = vmatprep.subr.bf16.mxu1 %v12648_v25  ;;  %v12616_v46 = vcombine.high %v995_v12, %v999_v40  ;;  %v859_v19 = vld [vmem:[%s13895_s3 + $0x1218] sm:$0xff]  ;;  %v12615_v4 = vcombine.low %v995_v12, %v999_v40 }
 0x585   : > { %11331 = vmatpush2.bf16.msra.mxu0 %v12519_v47  ;;  %v863_v52 = vld [vmem:[%s13895_s3 + $0x1238] sm:$0xff] }
 0x586   : > { %11332 = vmatprep.subr.bf16.mxu0 %v12512_v1  ;;  %v987_v57 = vld [vmem:[%s13895_s3 + $0x1618] sm:$0xff]  ;;  %v12480_v54 = vcombine.high %v859_v19, %v863_v52  ;;  %v12479_v10 = vcombine.low %v859_v19, %v863_v52 }
 0x587   : > { %11372 = vmatpush2.bf16.msra.mxu1 %v12647_v49  ;;  %v991_v30 = vld [vmem:[%s13895_s3 + $0x1638] sm:$0xff] }
 0x588   : > { %11373 = vmatprep.subr.bf16.mxu1 %v12640_v51  ;;  %v12608_v24 = vcombine.high %v987_v57, %v991_v30  ;;  %v1107_v32 = vld [vmem:[%s13895_s3 + $0x19d8] sm:$0xff]  ;;  %v12607_v25 = vcombine.low %v987_v57, %v991_v30 }
 0x589   : > { %11333 = vmatpush2.bf16.msra.mxu0 %v12511_v58  ;;  %v1111_v9 = vld [vmem:[%s13895_s3 + $0x19f8] sm:$0xff] }
 0x58a   : > { %11334 = vmatprep.subr.bf16.mxu0 %v12504_v0  ;;  %v1235_v38 = vld [vmem:[%s13895_s3 + $0x1dd8] sm:$0xff]  ;;  %v12728_v5 = vcombine.high %v1107_v32, %v1111_v9  ;;  %v12727_v1 = vcombine.low %v1107_v32, %v1111_v9 }
 0x58b   : > { %11374 = vmatpush2.bf16.msra.mxu1 %v12639_v63  ;;  %v1239_v60 = vld [vmem:[%s13895_s3 + $0x1df8] sm:$0xff] }
 0x58c   : > { %11375 = vmatprep.subr.bf16.mxu1 %v12632_v3  ;;  %v12856_v14 = vcombine.high %v1235_v38, %v1239_v60  ;;  %v1099_v62 = vld [vmem:[%s13895_s3 + $0x1998] sm:$0xff]  ;;  %v12855_v51 = vcombine.low %v1235_v38, %v1239_v60 }
 0x58d   : > { %11335 = vmatpush2.bf16.msra.mxu0 %v12503_v17  ;;  %v1103_v43 = vld [vmem:[%s13895_s3 + $0x19b8] sm:$0xff] }
 0x58e   : > { %11336 = vmatprep.subr.bf16.mxu0 %v12496_v31  ;;  %v1227_v47 = vld [vmem:[%s13895_s3 + $0x1d98] sm:$0xff]  ;;  %v12720_v53 = vcombine.high %v1099_v62, %v1103_v43  ;;  %v12719_v28 = vcombine.low %v1099_v62, %v1103_v43 }
 0x58f   : > { %11376 = vmatpush2.bf16.msra.mxu1 %v12631_v48  ;;  %v1231_v49 = vld [vmem:[%s13895_s3 + $0x1db8] sm:$0xff] }
 0x590   : > { %11377 = vmatprep.subr.bf16.mxu1 %v12624_v29  ;;  %v12848_v23 = vcombine.high %v1227_v47, %v1231_v49  ;;  %v1091_v56 = vld [vmem:[%s13895_s3 + $0x1958] sm:$0xff]  ;;  %v12847_v59 = vcombine.low %v1227_v47, %v1231_v49 }
 0x591   : > { %11337 = vmatpush2.bf16.msra.mxu0 %v12495_v18  ;;  %v1095_v16 = vld [vmem:[%s13895_s3 + $0x1978] sm:$0xff] }
 0x592   : > { %11338 = vmatprep.subr.bf16.mxu0 %v12488_v15  ;;  %v1219_v63 = vld [vmem:[%s13895_s3 + $0x1d58] sm:$0xff]  ;;  %v12712_v17 = vcombine.high %v1091_v56, %v1095_v16 }
 0x593   : > { %11378 = vmatpush2.bf16.msra.mxu1 %v12623_v42  ;;  %v1223_v0 = vld [vmem:[%s13895_s3 + $0x1d78] sm:$0xff] }
 0x594   : > { %11379 = vmatprep.subr.bf16.mxu1 %v12616_v46  ;;  %v1083_v29 = vld [vmem:[%s13895_s3 + $0x1918] sm:$0xff]  ;;  %v12839_v15 = vcombine.low %v1219_v63, %v1223_v0 }
 0x595   : > { %11339 = vmatpush2.bf16.msra.mxu0 %v12487_v34  ;;  %v1087_v8 = vld [vmem:[%s13895_s3 + $0x1938] sm:$0xff] }
 0x596   : > { %11340 = vmatprep.subr.bf16.mxu0 %v12480_v54  ;;  %v1211_v21 = vld [vmem:[%s13895_s3 + $0x1d18] sm:$0xff]  ;;  %v12704_v46 = vcombine.high %v1083_v29, %v1087_v8 }
 0x597   : > { %11380 = vmatpush2.bf16.msra.mxu1 %v12615_v4  ;;  %v1215_v12 = vld [vmem:[%s13895_s3 + $0x1d38] sm:$0xff]  ;;  %v12703_v4 = vcombine.low %v1083_v29, %v1087_v8 }
 0x598   : > { %11381 = vmatprep.subr.bf16.mxu1 %v12608_v24  ;;  %v1075_v52 = vld [vmem:[%s13895_s3 + $0x18d8] sm:$0xff]  ;;  %v12831_v54 = vcombine.low %v1211_v21, %v1215_v12 }
 0x599   : > { %11341 = vmatpush2.bf16.msra.mxu0 %v12479_v10  ;;  %v1079_v57 = vld [vmem:[%s13895_s3 + $0x18f8] sm:$0xff] }
 0x59a   : > { %11392 = vmatprep.subr.bf16.mxu0 %v12728_v5  ;;  %v1203_v30 = vld [vmem:[%s13895_s3 + $0x1cd8] sm:$0xff]  ;;  %v12696_v24 = vcombine.high %v1075_v52, %v1079_v57 }
 0x59b   : > { %11382 = vmatpush2.bf16.msra.mxu1 %v12607_v25  ;;  %v1207_v34 = vld [vmem:[%s13895_s3 + $0x1cf8] sm:$0xff]  ;;  %v12695_v25 = vcombine.low %v1075_v52, %v1079_v57 }
 0x59c   : > { %11433 = vmatprep.subr.bf16.mxu1 %v12856_v14  ;;  %v11098_v58 = vpop.f32.mrf.mxu0  ;;  %11343 = vmatmul.mubr.bf16.vlgmr.msra.gmra.mxu0 %v14206_v22  ;;  %v12824_v32 = vcombine.high %v1203_v30, %v1207_v34  ;;  %v1067_v9 = vld [vmem:[%s13895_s3 + $0x1898] sm:$0xff]  ;;  %v12823_v5 = vcombine.low %v1203_v30, %v1207_v34 }
 0x59d   : > { %v11099_v3 = vadd.f32 %v11098_v58, %v15544_v39  ;;  %11393 = vmatpush1.bf16.msra.mxu0 %v12727_v1  ;;  %v12840_v39 = vcombine.high %v1219_v63, %v1223_v0  ;;  %11424 = vmatprep.mubr.bf16.mxu0 %v14213_v33  ;;  %v1071_v38 = vld [vmem:[%s13895_s3 + $0x18b8] sm:$0xff] }
 0x59e   : > { %v11139_v7 = vpop.f32.mrf.mxu1  ;;  %11384 = vmatmul.mubr.bf16.vlgmr.msra.gmra.mxu1 %v14217_v35  ;;  %v11100_v27 = vpop.f32.mrf.mxu0  ;;  %11394 = vmatprep.subr.bf16.mxu0 %v12720_v53  ;;  %v1195_v60 = vld [vmem:[%s13895_s3 + $0x1c98] sm:$0xff]  ;;  %v12688_v14 = vcombine.high %v1067_v9, %v1071_v38 }
 0x59f   : > { %11434 = vmatpush1.bf16.msra.mxu1 %v12855_v51  ;;  %v15618_v48 = vadd.f32 %v11139_v7, %v11099_v3  ;;  %v11101_v22 = vadd.f32 %v11100_v27, %v15553_v13  ;;  %11465 = vmatprep.mubr.bf16.mxu1 %v14226_v44  ;;  %v12711_v13 = vcombine.low %v1091_v56, %v1095_v16  ;;  %v1199_v10 = vld [vmem:[%s13895_s3 + $0x1cb8] sm:$0xff] }
 0x5a0   : > { %v11141_v31 = vpop.f32.mrf.mxu1  ;;  %11435 = vmatprep.subr.bf16.mxu1 %v12848_v23  ;;  %v11102_v35 = vpop.f32.mrf.mxu0  ;;  %v12832_v44 = vcombine.high %v1211_v21, %v1215_v12  ;;  %v12816_v62 = vcombine.high %v1195_v60, %v1199_v10  ;;  %v1059_v43 = vld [vmem:[%s13895_s3 + $0x1858] sm:$0xff]  ;;  %v12687_v51 = vcombine.low %v1067_v9, %v1071_v38  ;;  %v12815_v53 = vcombine.low %v1195_v60, %v1199_v10 }
 0x5a1   : > { %v15627_v40 = vadd.f32 %v11141_v31, %v11101_v22  ;;  %11395 = vmatpush1.bf16.msra.mxu0 %v12719_v28  ;;  %v1063_v47 = vld [vmem:[%s13895_s3 + $0x1878] sm:$0xff] }
 0x5a2   : > { %v11143_v18 = vpop.f32.mrf.mxu1  ;;  %v11103_v42 = vpop.f32.mrf.mxu0  ;;  %11396 = vmatprep.subr.bf16.mxu0 %v12712_v17  ;;  %v1187_v49 = vld [vmem:[%s13895_s3 + $0x1c58] sm:$0xff]  ;;  %v12680_v23 = vcombine.high %v1059_v43, %v1063_v47  ;;  %v12679_v3 = vcombine.low %v1059_v43, %v1063_v47 }
 0x5a3   : > { %11436 = vmatpush1.bf16.msra.mxu1 %v12847_v59  ;;  %v11663_v33 = vcombine.low %v15618_v48, %v15627_v40  ;;  %v1191_v1 = vld [vmem:[%s13895_s3 + $0x1c78] sm:$0xff] }
 0x5a4   : > { %v11144_v19 = vpop.f32.mrf.mxu1  ;;  %11437 = vmatprep.subr.bf16.mxu1 %v12840_v39  ;;  %v12808_v56 = vcombine.high %v1187_v49, %v1191_v1  ;;  %v1051_v16 = vld [vmem:[%s13895_s3 + $0x1818] sm:$0xff]  ;;  %v12807_v7 = vcombine.low %v1187_v49, %v1191_v1 }
 0x5a5   : > { %11397 = vmatpush1.bf16.msra.mxu0 %v12711_v13  ;;  %v1055_v58 = vld [vmem:[%s13895_s3 + $0x1838] sm:$0xff] }
 0x5a6   : > { %11398 = vmatprep.subr.bf16.mxu0 %v12704_v46  ;;  %v1179_v63 = vld [vmem:[%s13895_s3 + $0x1c18] sm:$0xff]  ;;  %v12672_v28 = vcombine.high %v1051_v16, %v1055_v58  ;;  %v12671_v39 = vcombine.low %v1051_v16, %v1055_v58 }
 0x5a7   : > { %11438 = vmatpush1.bf16.msra.mxu1 %v12839_v15  ;;  %v1183_v0 = vld [vmem:[%s13895_s3 + $0x1c38] sm:$0xff] }
 0x5a8   : > { %11439 = vmatprep.subr.bf16.mxu1 %v12832_v44  ;;  %v12800_v27 = vcombine.high %v1179_v63, %v1183_v0  ;;  %v1171_v59 = vld [vmem:[%s13895_s3 + $0x1bd8] sm:$0xff]  ;;  %v12799_v29 = vcombine.low %v1179_v63, %v1183_v0 }
 0x5a9   : > { %11399 = vmatpush1.bf16.msra.mxu0 %v12703_v4  ;;  %v1175_v17 = vld [vmem:[%s13895_s3 + $0x1bf8] sm:$0xff] }
 0x5aa   : > { %11400 = vmatprep.subr.bf16.mxu0 %v12696_v24  ;;  %v1299_v22 = vld [vmem:[%s13895_s3 + $0x1fd8] sm:$0xff]  ;;  %v12792_v8 = vcombine.high %v1171_v59, %v1175_v17  ;;  %v12791_v42 = vcombine.low %v1171_v59, %v1175_v17 }
 0x5ab   : > { %11440 = vmatpush1.bf16.msra.mxu1 %v12831_v54  ;;  %v1303_v31 = vld [vmem:[%s13895_s3 + $0x1ff8] sm:$0xff] }
 0x5ac   : > { %11441 = vmatprep.subr.bf16.mxu1 %v12824_v32  ;;  %v12920_v35 = vcombine.high %v1299_v22, %v1303_v31  ;;  %v1163_v21 = vld [vmem:[%s13895_s3 + $0x1b98] sm:$0xff]  ;;  %v12919_v15 = vcombine.low %v1299_v22, %v1303_v31 }
 0x5ad   : > { %11401 = vmatpush1.bf16.msra.mxu0 %v12695_v25  ;;  %v1167_v12 = vld [vmem:[%s13895_s3 + $0x1bb8] sm:$0xff] }
 0x5ae   : > { %11402 = vmatprep.subr.bf16.mxu0 %v12688_v14  ;;  %v1291_v18 = vld [vmem:[%s13895_s3 + $0x1f98] sm:$0xff]  ;;  %v12784_v46 = vcombine.high %v1163_v21, %v1167_v12  ;;  %v12783_v34 = vcombine.low %v1163_v21, %v1167_v12 }
 0x5af   : > { %11442 = vmatpush1.bf16.msra.mxu1 %v12823_v5  ;;  %v1295_v13 = vld [vmem:[%s13895_s3 + $0x1fb8] sm:$0xff] }
 0x5b0   : > { %11443 = vmatprep.subr.bf16.mxu1 %v12816_v62  ;;  %v12912_v19 = vcombine.high %v1291_v18, %v1295_v13  ;;  %v1155_v44 = vld [vmem:[%s13895_s3 + $0x1b58] sm:$0xff]  ;;  %v12911_v4 = vcombine.low %v1291_v18, %v1295_v13 }
 0x5b1   : > { %11403 = vmatpush1.bf16.msra.mxu0 %v12687_v51  ;;  %v1159_v52 = vld [vmem:[%s13895_s3 + $0x1b78] sm:$0xff] }
 0x5b2   : > { %11404 = vmatprep.subr.bf16.mxu0 %v12680_v23  ;;  %v1283_v57 = vld [vmem:[%s13895_s3 + $0x1f58] sm:$0xff]  ;;  %v12776_v54 = vcombine.high %v1155_v44, %v1159_v52  ;;  %v12775_v10 = vcombine.low %v1155_v44, %v1159_v52 }
 0x5b3   : > { %11444 = vmatpush1.bf16.msra.mxu1 %v12815_v53  ;;  %v1287_v30 = vld [vmem:[%s13895_s3 + $0x1f78] sm:$0xff] }
 0x5b4   : > { %11445 = vmatprep.subr.bf16.mxu1 %v12808_v56  ;;  %v12904_v24 = vcombine.high %v1283_v57, %v1287_v30  ;;  %v1147_v32 = vld [vmem:[%s13895_s3 + $0x1b18] sm:$0xff]  ;;  %v12903_v25 = vcombine.low %v1283_v57, %v1287_v30 }
 0x5b5   : > { %11405 = vmatpush1.bf16.msra.mxu0 %v12679_v3  ;;  %v1151_v9 = vld [vmem:[%s13895_s3 + $0x1b38] sm:$0xff] }
 0x5b6   : > { %11406 = vmatprep.subr.bf16.mxu0 %v12672_v28  ;;  %v1275_v38 = vld [vmem:[%s13895_s3 + $0x1f18] sm:$0xff]  ;;  %v12768_v5 = vcombine.high %v1147_v32, %v1151_v9  ;;  %v12767_v1 = vcombine.low %v1147_v32, %v1151_v9 }
 0x5b7   : > { %11446 = vmatpush1.bf16.msra.mxu1 %v12807_v7  ;;  %v1279_v60 = vld [vmem:[%s13895_s3 + $0x1f38] sm:$0xff] }
 0x5b8   : > { %11447 = vmatprep.subr.bf16.mxu1 %v12800_v27  ;;  %v12896_v14 = vcombine.high %v1275_v38, %v1279_v60  ;;  %v1139_v62 = vld [vmem:[%s13895_s3 + $0x1ad8] sm:$0xff]  ;;  %v12895_v51 = vcombine.low %v1275_v38, %v1279_v60 }
 0x5b9   : > { %11407 = vmatpush1.bf16.msra.mxu0 %v12671_v39  ;;  %v1143_v43 = vld [vmem:[%s13895_s3 + $0x1af8] sm:$0xff] }
 0x5ba   : > { %11408 = vmatprep.subr.bf16.mxu0 %v12792_v8  ;;  %v1267_v47 = vld [vmem:[%s13895_s3 + $0x1ed8] sm:$0xff]  ;;  %v12760_v53 = vcombine.high %v1139_v62, %v1143_v43  ;;  %v12759_v0 = vcombine.low %v1139_v62, %v1143_v43 }
 0x5bb   : > { %11448 = vmatpush1.bf16.msra.mxu1 %v12799_v29  ;;  %v1271_v49 = vld [vmem:[%s13895_s3 + $0x1ef8] sm:$0xff] }
 0x5bc   : > { %11449 = vmatprep.subr.bf16.mxu1 %v12920_v35  ;;  %v12888_v23 = vcombine.high %v1267_v47, %v1271_v49  ;;  %v1131_v56 = vld [vmem:[%s13895_s3 + $0x1a98] sm:$0xff]  ;;  %v12887_v3 = vcombine.low %v1267_v47, %v1271_v49 }
 0x5bd   : > { %11409 = vmatpush2.bf16.msra.mxu0 %v12791_v42  ;;  %v1135_v16 = vld [vmem:[%s13895_s3 + $0x1ab8] sm:$0xff] }
 0x5be   : > { %11410 = vmatprep.subr.bf16.mxu0 %v12784_v46  ;;  %v1259_v58 = vld [vmem:[%s13895_s3 + $0x1e98] sm:$0xff]  ;;  %v12752_v7 = vcombine.high %v1131_v56, %v1135_v16  ;;  %v12751_v31 = vcombine.low %v1131_v56, %v1135_v16 }
 0x5bf   : > { %11450 = vmatpush2.bf16.msra.mxu1 %v12919_v15  ;;  %v1263_v63 = vld [vmem:[%s13895_s3 + $0x1eb8] sm:$0xff] }
 0x5c0   : > { %11451 = vmatprep.subr.bf16.mxu1 %v12912_v19  ;;  %v12880_v28 = vcombine.high %v1259_v58, %v1263_v63  ;;  %v1123_v27 = vld [vmem:[%s13895_s3 + $0x1a58] sm:$0xff]  ;;  %v12879_v39 = vcombine.low %v1259_v58, %v1263_v63 }
 0x5c1   : > { %11411 = vmatpush2.bf16.msra.mxu0 %v12783_v34  ;;  %v1127_v59 = vld [vmem:[%s13895_s3 + $0x1a78] sm:$0xff] }
 0x5c2   : > { %11412 = vmatprep.subr.bf16.mxu0 %v12776_v54  ;;  %v1251_v17 = vld [vmem:[%s13895_s3 + $0x1e58] sm:$0xff]  ;;  %v12744_v29 = vcombine.high %v1123_v27, %v1127_v59  ;;  %v12743_v13 = vcombine.low %v1123_v27, %v1127_v59 }
 0x5c3   : > { %11452 = vmatpush2.bf16.msra.mxu1 %v12911_v4  ;;  %v1255_v22 = vld [vmem:[%s13895_s3 + $0x1e78] sm:$0xff] }
 0x5c4   : > { %11453 = vmatprep.subr.bf16.mxu1 %v12904_v24  ;;  %v12872_v8 = vcombine.high %v1251_v17, %v1255_v22  ;;  %v1115_v35 = vld [vmem:[%s13895_s3 + $0x1a18] sm:$0xff]  ;;  %v12871_v42 = vcombine.low %v1251_v17, %v1255_v22 }
 0x5c5   : > { %11413 = vmatpush2.bf16.msra.mxu0 %v12775_v10  ;;  %v1119_v21 = vld [vmem:[%s13895_s3 + $0x1a38] sm:$0xff] }
 0x5c6   : > { %11414 = vmatprep.subr.bf16.mxu0 %v12768_v5  ;;  %v1243_v12 = vld [vmem:[%s13895_s3 + $0x1e18] sm:$0xff]  ;;  %v12736_v15 = vcombine.high %v1115_v35, %v1119_v21  ;;  %v12735_v30 = vcombine.low %v1115_v35, %v1119_v21 }
 0x5c7   : > { %11454 = vmatpush2.bf16.msra.mxu1 %v12903_v25  ;;  %v1247_v18 = vld [vmem:[%s13895_s3 + $0x1e38] sm:$0xff] }
 0x5c8   : > { %11455 = vmatprep.subr.bf16.mxu1 %v12896_v14  ;;  %v12864_v46 = vcombine.high %v1243_v12, %v1247_v18  ;;  %v1363_v19 = vld [vmem:[%s13895_s3 + $0x21d8] sm:$0xff]  ;;  %v12863_v34 = vcombine.low %v1243_v12, %v1247_v18 }
 0x5c9   : > { %11415 = vmatpush2.bf16.msra.mxu0 %v12767_v1  ;;  %v1367_v44 = vld [vmem:[%s13895_s3 + $0x21f8] sm:$0xff] }
 0x5ca   : > { %11416 = vmatprep.subr.bf16.mxu0 %v12760_v53  ;;  %v1491_v52 = vld [vmem:[%s13895_s3 + $0x25d8] sm:$0xff]  ;;  %v12984_v4 = vcombine.high %v1363_v19, %v1367_v44  ;;  %v12983_v60 = vcombine.low %v1363_v19, %v1367_v44 }
 0x5cb   : > { %11456 = vmatpush2.bf16.msra.mxu1 %v12895_v51  ;;  %v1495_v57 = vld [vmem:[%s13895_s3 + $0x25f8] sm:$0xff] }
 0x5cc   : > { %11457 = vmatprep.subr.bf16.mxu1 %v12888_v23  ;;  %v13112_v54 = vcombine.high %v1491_v52, %v1495_v57  ;;  %v1355_v24 = vld [vmem:[%s13895_s3 + $0x2198] sm:$0xff]  ;;  %v13111_v10 = vcombine.low %v1491_v52, %v1495_v57 }
 0x5cd   : > { %11417 = vmatpush2.bf16.msra.mxu0 %v12759_v0  ;;  %v1359_v32 = vld [vmem:[%s13895_s3 + $0x21b8] sm:$0xff] }
 0x5ce   : > { %11418 = vmatprep.subr.bf16.mxu0 %v12752_v7  ;;  %v1483_v9 = vld [vmem:[%s13895_s3 + $0x2598] sm:$0xff]  ;;  %v12976_v25 = vcombine.high %v1355_v24, %v1359_v32  ;;  %v12975_v51 = vcombine.low %v1355_v24, %v1359_v32 }
 0x5cf   : > { %11458 = vmatpush2.bf16.msra.mxu1 %v12887_v3  ;;  %v1487_v38 = vld [vmem:[%s13895_s3 + $0x25b8] sm:$0xff] }
 0x5d0   : > { %11459 = vmatprep.subr.bf16.mxu1 %v12880_v28  ;;  %v13104_v5 = vcombine.high %v1483_v9, %v1487_v38  ;;  %v1347_v14 = vld [vmem:[%s13895_s3 + $0x2158] sm:$0xff]  ;;  %v13103_v56 = vcombine.low %v1483_v9, %v1487_v38 }
 0x5d1   : > { %11419 = vmatpush2.bf16.msra.mxu0 %v12751_v31  ;;  %v1351_v62 = vld [vmem:[%s13895_s3 + $0x2178] sm:$0xff] }
 0x5d2   : > { %11420 = vmatprep.subr.bf16.mxu0 %v12744_v29  ;;  %v1475_v47 = vld [vmem:[%s13895_s3 + $0x2558] sm:$0xff]  ;;  %v12968_v16 = vcombine.high %v1347_v14, %v1351_v62  ;;  %v12967_v59 = vcombine.low %v1347_v14, %v1351_v62 }
 0x5d3   : > { %11460 = vmatpush2.bf16.msra.mxu1 %v12879_v39  ;;  %v1479_v49 = vld [vmem:[%s13895_s3 + $0x2578] sm:$0xff] }
 0x5d4   : > { %11461 = vmatprep.subr.bf16.mxu1 %v12872_v8  ;;  %v1339_v63 = vld [vmem:[%s13895_s3 + $0x2118] sm:$0xff]  ;;  %v13095_v22 = vcombine.low %v1475_v47, %v1479_v49 }
 0x5d5   : > { %11421 = vmatpush2.bf16.msra.mxu0 %v12743_v13  ;;  %v1343_v0 = vld [vmem:[%s13895_s3 + $0x2138] sm:$0xff] }
 0x5d6   : > { %11422 = vmatprep.subr.bf16.mxu0 %v12736_v15  ;;  %v1467_v7 = vld [vmem:[%s13895_s3 + $0x2518] sm:$0xff]  ;;  %v12960_v31 = vcombine.high %v1339_v63, %v1343_v0 }
 0x5d7   : > { %11462 = vmatpush2.bf16.msra.mxu1 %v12871_v42  ;;  %v1471_v28 = vld [vmem:[%s13895_s3 + $0x2538] sm:$0xff] }
 0x5d8   : > { %11463 = vmatprep.subr.bf16.mxu1 %v12864_v46  ;;  %v13088_v39 = vcombine.high %v1467_v7, %v1471_v28  ;;  %v1331_v29 = vld [vmem:[%s13895_s3 + $0x20d8] sm:$0xff]  ;;  %v13087_v12 = vcombine.low %v1467_v7, %v1471_v28 }
 0x5d9   : > { %11423 = vmatpush2.bf16.msra.mxu0 %v12735_v30  ;;  %v1335_v8 = vld [vmem:[%s13895_s3 + $0x20f8] sm:$0xff] }
 0x5da   : > { %11474 = vmatprep.subr.bf16.mxu0 %v12984_v4  ;;  %v1459_v35 = vld [vmem:[%s13895_s3 + $0x24d8] sm:$0xff]  ;;  %v12952_v18 = vcombine.high %v1331_v29, %v1335_v8  ;;  %v12951_v44 = vcombine.low %v1331_v29, %v1335_v8 }
 0x5db   : > { %11464 = vmatpush2.bf16.msra.mxu1 %v12863_v34  ;;  %v1463_v21 = vld [vmem:[%s13895_s3 + $0x24f8] sm:$0xff] }
 0x5dc   : > { %11515 = vmatprep.subr.bf16.mxu1 %v13112_v54  ;;  %v11180_v43 = vpop.f32.mrf.mxu0  ;;  %11425 = vmatmul.mubr.bf16.vlgmr.msra.gmra.mxu0 %v14298_v26  ;;  %v13096_v26 = vcombine.high %v1475_v47, %v1479_v49  ;;  %v13080_v13 = vcombine.high %v1459_v35, %v1463_v21  ;;  %v1323_v42 = vld [vmem:[%s13895_s3 + $0x2098] sm:$0xff]  ;;  %v13079_v52 = vcombine.low %v1459_v35, %v1463_v21 }
 0x5dd   : > { %11475 = vmatpush1.bf16.msra.mxu0 %v12983_v60  ;;  %11506 = vmatprep.mubr.bf16.mxu0 %v14305_v20  ;;  %v1327_v15 = vld [vmem:[%s13895_s3 + $0x20b8] sm:$0xff] }
 0x5de   : > { %v11221_v1 = vpop.f32.mrf.mxu1  ;;  %11466 = vmatmul.mubr.bf16.vlgmr.msra.gmra.mxu1 %v14309_v11  ;;  %v11182_v23 = vpop.f32.mrf.mxu0  ;;  %11476 = vmatprep.subr.bf16.mxu0 %v12976_v25  ;;  %v1451_v46 = vld [vmem:[%s13895_s3 + $0x2498] sm:$0xff]  ;;  %v12944_v57 = vcombine.high %v1323_v42, %v1327_v15  ;;  %v12943_v32 = vcombine.low %v1323_v42, %v1327_v15 }
 0x5df   : > { %v15693_v53 = vadd.f32 %v11221_v1, %v11180_v43  ;;  %11516 = vmatpush1.bf16.msra.mxu1 %v13111_v10  ;;  %11547 = vmatprep.mubr.bf16.mxu1 %v14318_v36  ;;  %v12959_v36 = vcombine.low %v1339_v63, %v1343_v0  ;;  %v1455_v19 = vld [vmem:[%s13895_s3 + $0x24b8] sm:$0xff] }
 0x5e0   : > { %v11223_v58 = vpop.f32.mrf.mxu1  ;;  %11517 = vmatprep.subr.bf16.mxu1 %v13104_v5  ;;  %v11184_v11 = vpop.f32.mrf.mxu0  ;;  %v13072_v30 = vcombine.high %v1451_v46, %v1455_v19  ;;  %v1315_v34 = vld [vmem:[%s13895_s3 + $0x2058] sm:$0xff]  ;;  %v13071_v9 = vcombine.low %v1451_v46, %v1455_v19 }
 0x5e1   : > { %v15698_v3 = vadd.f32 %v11223_v58, %v11182_v23  ;;  %11477 = vmatpush1.bf16.msra.mxu0 %v12975_v51  ;;  %v1319_v4 = vld [vmem:[%s13895_s3 + $0x2078] sm:$0xff] }
 0x5e2   : > { %v11225_v27 = vpop.f32.mrf.mxu1  ;;  %v11185_v17 = vpop.f32.mrf.mxu0  ;;  %11478 = vmatprep.subr.bf16.mxu0 %v12968_v16  ;;  %v1443_v54 = vld [vmem:[%s13895_s3 + $0x2458] sm:$0xff]  ;;  %v12936_v38 = vcombine.high %v1315_v34, %v1319_v4  ;;  %v12935_v62 = vcombine.low %v1315_v34, %v1319_v4 }
 0x5e3   : > { %11518 = vmatpush1.bf16.msra.mxu1 %v13103_v56  ;;  %v1447_v24 = vld [vmem:[%s13895_s3 + $0x2478] sm:$0xff] }
 0x5e4   : > { %v11226_v20 = vpop.f32.mrf.mxu1  ;;  %11519 = vmatprep.subr.bf16.mxu1 %v13096_v26  ;;  %v13064_v60 = vcombine.high %v1443_v54, %v1447_v24  ;;  %v1307_v10 = vld [vmem:[%s13895_s3 + $0x2018] sm:$0xff]  ;;  %v13063_v43 = vcombine.low %v1443_v54, %v1447_v24 }
 0x5e5   : > { %11479 = vmatpush1.bf16.msra.mxu0 %v12967_v59  ;;  %v1311_v25 = vld [vmem:[%s13895_s3 + $0x2038] sm:$0xff] }
 0x5e6   : > { %11480 = vmatprep.subr.bf16.mxu0 %v12960_v31  ;;  %v1435_v5 = vld [vmem:[%s13895_s3 + $0x2418] sm:$0xff]  ;;  %v12928_v47 = vcombine.high %v1307_v10, %v1311_v25  ;;  %v12927_v16 = vcombine.low %v1307_v10, %v1311_v25 }
 0x5e7   : > { %11520 = vmatpush1.bf16.msra.mxu1 %v13095_v22  ;;  %v1439_v14 = vld [vmem:[%s13895_s3 + $0x2438] sm:$0xff] }
 0x5e8   : > { %11521 = vmatprep.subr.bf16.mxu1 %v13088_v39  ;;  %v13056_v49 = vcombine.high %v1435_v5, %v1439_v14  ;;  %v1427_v1 = vld [vmem:[%s13895_s3 + $0x23d8] sm:$0xff]  ;;  %v13055_v58 = vcombine.low %v1435_v5, %v1439_v14 }
 0x5e9   : > { %11481 = vmatpush1.bf16.msra.mxu0 %v12959_v36  ;;  %v1431_v51 = vld [vmem:[%s13895_s3 + $0x23f8] sm:$0xff] }
 0x5ea   : > { %11482 = vmatprep.subr.bf16.mxu0 %v12952_v18  ;;  %v1555_v23 = vld [vmem:[%s13895_s3 + $0x27d8] sm:$0xff]  ;;  %v13048_v26 = vcombine.high %v1427_v1, %v1431_v51  ;;  %v13047_v27 = vcombine.low %v1427_v1, %v1431_v51 }
 0x5eb   : > { %11522 = vmatpush1.bf16.msra.mxu1 %v13087_v12  ;;  %v1559_v56 = vld [vmem:[%s13895_s3 + $0x27f8] sm:$0xff] }
 0x5ec   : > { %11523 = vmatprep.subr.bf16.mxu1 %v13080_v13  ;;  %v13176_v63 = vcombine.high %v1555_v23, %v1559_v56  ;;  %v1419_v0 = vld [vmem:[%s13895_s3 + $0x2398] sm:$0xff]  ;;  %v13175_v59 = vcombine.low %v1555_v23, %v1559_v56 }
 0x5ed   : > { %11483 = vmatpush1.bf16.msra.mxu0 %v12951_v44  ;;  %v1423_v11 = vld [vmem:[%s13895_s3 + $0x23b8] sm:$0xff] }
 0x5ee   : > { %11484 = vmatprep.subr.bf16.mxu0 %v12944_v57  ;;  %v1547_v7 = vld [vmem:[%s13895_s3 + $0x2798] sm:$0xff]  ;;  %v13040_v17 = vcombine.high %v1419_v0, %v1423_v11  ;;  %v13039_v8 = vcombine.low %v1419_v0, %v1423_v11 }
 0x5ef   : > { %11524 = vmatpush1.bf16.msra.mxu1 %v13079_v52  ;;  %v1551_v28 = vld [vmem:[%s13895_s3 + $0x27b8] sm:$0xff] }
 0x5f0   : > { %11525 = vmatprep.subr.bf16.mxu1 %v13072_v30  ;;  %v13168_v22 = vcombine.high %v1547_v7, %v1551_v28  ;;  %v1411_v31 = vld [vmem:[%s13895_s3 + $0x2358] sm:$0xff]  ;;  %v13167_v35 = vcombine.low %v1547_v7, %v1551_v28 }
 0x5f1   : > { %11485 = vmatpush1.bf16.msra.mxu0 %v12943_v32  ;;  %v1415_v20 = vld [vmem:[%s13895_s3 + $0x2378] sm:$0xff] }
 0x5f2   : > { %11486 = vmatprep.subr.bf16.mxu0 %v12936_v38  ;;  %v1539_v39 = vld [vmem:[%s13895_s3 + $0x2758] sm:$0xff]  ;;  %v13032_v21 = vcombine.high %v1411_v31, %v1415_v20  ;;  %v13031_v15 = vcombine.low %v1411_v31, %v1415_v20 }
 0x5f3   : > { %11526 = vmatpush1.bf16.msra.mxu1 %v13071_v9  ;;  %v1543_v29 = vld [vmem:[%s13895_s3 + $0x2778] sm:$0xff] }
 0x5f4   : > { %11527 = vmatprep.subr.bf16.mxu1 %v13064_v60  ;;  %v13160_v36 = vcombine.high %v1539_v39, %v1543_v29  ;;  %v1403_v12 = vld [vmem:[%s13895_s3 + $0x2318] sm:$0xff]  ;;  %v13159_v46 = vcombine.low %v1539_v39, %v1543_v29 }
 0x5f5   : > { %11487 = vmatpush1.bf16.msra.mxu0 %v12935_v62  ;;  %v1407_v18 = vld [vmem:[%s13895_s3 + $0x2338] sm:$0xff] }
 0x5f6   : > { %11488 = vmatprep.subr.bf16.mxu0 %v12928_v47  ;;  %v1531_v13 = vld [vmem:[%s13895_s3 + $0x2718] sm:$0xff]  ;;  %v13024_v19 = vcombine.high %v1403_v12, %v1407_v18  ;;  %v13023_v4 = vcombine.low %v1403_v12, %v1407_v18 }
 0x5f7   : > { %11528 = vmatpush1.bf16.msra.mxu1 %v13063_v43  ;;  %v1535_v42 = vld [vmem:[%s13895_s3 + $0x2738] sm:$0xff] }
 0x5f8   : > { %11529 = vmatprep.subr.bf16.mxu1 %v13056_v49  ;;  %v13152_v44 = vcombine.high %v1531_v13, %v1535_v42  ;;  %v1395_v52 = vld [vmem:[%s13895_s3 + $0x22d8] sm:$0xff]  ;;  %v13151_v54 = vcombine.low %v1531_v13, %v1535_v42 }
 0x5f9   : > { %11489 = vmatpush1.bf16.msra.mxu0 %v12927_v16  ;;  %v1399_v57 = vld [vmem:[%s13895_s3 + $0x22f8] sm:$0xff] }
 0x5fa   : > { %11490 = vmatprep.subr.bf16.mxu0 %v13048_v26  ;;  %v1523_v30 = vld [vmem:[%s13895_s3 + $0x26d8] sm:$0xff]  ;;  %v13016_v24 = vcombine.high %v1395_v52, %v1399_v57  ;;  %v13015_v25 = vcombine.low %v1395_v52, %v1399_v57 }
 0x5fb   : > { %11530 = vmatpush1.bf16.msra.mxu1 %v13055_v58  ;;  %v1527_v34 = vld [vmem:[%s13895_s3 + $0x26f8] sm:$0xff] }
 0x5fc   : > { %11531 = vmatprep.subr.bf16.mxu1 %v13176_v63  ;;  %v13144_v32 = vcombine.high %v1523_v30, %v1527_v34  ;;  %v1387_v9 = vld [vmem:[%s13895_s3 + $0x2298] sm:$0xff]  ;;  %v13143_v5 = vcombine.low %v1523_v30, %v1527_v34 }
 0x5fd   : > { %11491 = vmatpush2.bf16.msra.mxu0 %v13047_v27  ;;  %v1391_v38 = vld [vmem:[%s13895_s3 + $0x22b8] sm:$0xff] }
 0x5fe   : > { %11492 = vmatprep.subr.bf16.mxu0 %v13040_v17  ;;  %v1515_v60 = vld [vmem:[%s13895_s3 + $0x2698] sm:$0xff]  ;;  %v13008_v14 = vcombine.high %v1387_v9, %v1391_v38  ;;  %v13007_v51 = vcombine.low %v1387_v9, %v1391_v38 }
 0x5ff   : > { %11532 = vmatpush2.bf16.msra.mxu1 %v13175_v59  ;;  %v1519_v10 = vld [vmem:[%s13895_s3 + $0x26b8] sm:$0xff] }
 0x600   : > { %11533 = vmatprep.subr.bf16.mxu1 %v13168_v22  ;;  %v13136_v62 = vcombine.high %v1515_v60, %v1519_v10  ;;  %v1379_v43 = vld [vmem:[%s13895_s3 + $0x2258] sm:$0xff]  ;;  %v13135_v23 = vcombine.low %v1515_v60, %v1519_v10 }
 0x601   : > { %11493 = vmatpush2.bf16.msra.mxu0 %v13039_v8  ;;  %v1383_v47 = vld [vmem:[%s13895_s3 + $0x2278] sm:$0xff] }
 0x602   : > { %11494 = vmatprep.subr.bf16.mxu0 %v13032_v21  ;;  %v1507_v49 = vld [vmem:[%s13895_s3 + $0x2658] sm:$0xff]  ;;  %v13000_v56 = vcombine.high %v1379_v43, %v1383_v47  ;;  %v12999_v11 = vcombine.low %v1379_v43, %v1383_v47 }
 0x603   : > { %11534 = vmatpush2.bf16.msra.mxu1 %v13167_v35  ;;  %v1511_v1 = vld [vmem:[%s13895_s3 + $0x2678] sm:$0xff] }
 0x604   : > { %11535 = vmatprep.subr.bf16.mxu1 %v13160_v36  ;;  %v13128_v16 = vcombine.high %v1507_v49, %v1511_v1  ;;  %v1371_v58 = vld [vmem:[%s13895_s3 + $0x2218] sm:$0xff]  ;;  %v13127_v7 = vcombine.low %v1507_v49, %v1511_v1 }
 0x605   : > { %11495 = vmatpush2.bf16.msra.mxu0 %v13031_v15  ;;  %v1375_v26 = vld [vmem:[%s13895_s3 + $0x2238] sm:$0xff] }
 0x606   : > { %11496 = vmatprep.subr.bf16.mxu0 %v13024_v19  ;;  %v1499_v63 = vld [vmem:[%s13895_s3 + $0x2618] sm:$0xff]  ;;  %v12992_v28 = vcombine.high %v1371_v58, %v1375_v26  ;;  %v12991_v20 = vcombine.low %v1371_v58, %v1375_v26 }
 0x607   : > { %11536 = vmatpush2.bf16.msra.mxu1 %v13159_v46  ;;  %v1503_v0 = vld [vmem:[%s13895_s3 + $0x2638] sm:$0xff] }
 0x608   : > { %11537 = vmatprep.subr.bf16.mxu1 %v13152_v44  ;;  %v13120_v27 = vcombine.high %v1499_v63, %v1503_v0  ;;  %v1619_v59 = vld [vmem:[%s13895_s3 + $0x29d8] sm:$0xff]  ;;  %v13119_v39 = vcombine.low %v1499_v63, %v1503_v0 }
 0x609   : > { %11497 = vmatpush2.bf16.msra.mxu0 %v13023_v4  ;;  %v1623_v17 = vld [vmem:[%s13895_s3 + $0x29f8] sm:$0xff] }
 0x60a   : > { %11498 = vmatprep.subr.bf16.mxu0 %v13016_v24  ;;  %v1747_v22 = vld [vmem:[%s13895_s3 + $0x2dd8] sm:$0xff]  ;;  %v13240_v29 = vcombine.high %v1619_v59, %v1623_v17  ;;  %v13239_v18 = vcombine.low %v1619_v59, %v1623_v17 }
 0x60b   : > { %11538 = vmatpush2.bf16.msra.mxu1 %v13151_v54  ;;  %v1751_v31 = vld [vmem:[%s13895_s3 + $0x2df8] sm:$0xff] }
 0x60c   : > { %11539 = vmatprep.subr.bf16.mxu1 %v13144_v32  ;;  %v13368_v8 = vcombine.high %v1747_v22, %v1751_v31  ;;  %v1611_v35 = vld [vmem:[%s13895_s3 + $0x2998] sm:$0xff]  ;;  %v13367_v13 = vcombine.low %v1747_v22, %v1751_v31 }
 0x60d   : > { %11499 = vmatpush2.bf16.msra.mxu0 %v13015_v25  ;;  %v1615_v21 = vld [vmem:[%s13895_s3 + $0x29b8] sm:$0xff] }
 0x60e   : > { %11500 = vmatprep.subr.bf16.mxu0 %v13008_v14  ;;  %v1739_v36 = vld [vmem:[%s13895_s3 + $0x2d98] sm:$0xff]  ;;  %v13232_v42 = vcombine.high %v1611_v35, %v1615_v21  ;;  %v13231_v4 = vcombine.low %v1611_v35, %v1615_v21 }
 0x60f   : > { %11540 = vmatpush2.bf16.msra.mxu1 %v13143_v5  ;;  %v1743_v12 = vld [vmem:[%s13895_s3 + $0x2db8] sm:$0xff] }
 0x610   : > { %11541 = vmatprep.subr.bf16.mxu1 %v13136_v62  ;;  %v13360_v15 = vcombine.high %v1739_v36, %v1743_v12  ;;  %v1603_v46 = vld [vmem:[%s13895_s3 + $0x2958] sm:$0xff]  ;;  %v13359_v24 = vcombine.low %v1739_v36, %v1743_v12 }
 0x611   : > { %11501 = vmatpush2.bf16.msra.mxu0 %v13007_v51  ;;  %v1607_v19 = vld [vmem:[%s13895_s3 + $0x2978] sm:$0xff] }
 0x612   : > { %11502 = vmatprep.subr.bf16.mxu0 %v13000_v56  ;;  %v1731_v52 = vld [vmem:[%s13895_s3 + $0x2d58] sm:$0xff]  ;;  %v13224_v32 = vcombine.high %v1603_v46, %v1607_v19 }
 0x613   : > { %11542 = vmatpush2.bf16.msra.mxu1 %v13135_v23  ;;  %v1735_v57 = vld [vmem:[%s13895_s3 + $0x2d78] sm:$0xff] }
 0x614   : > { %11543 = vmatprep.subr.bf16.mxu1 %v13128_v16  ;;  %v1595_v60 = vld [vmem:[%s13895_s3 + $0x2918] sm:$0xff]  ;;  %v13351_v47 = vcombine.low %v1731_v52, %v1735_v57 }
 0x615   : > { %11503 = vmatpush2.bf16.msra.mxu0 %v12999_v11  ;;  %v1599_v10 = vld [vmem:[%s13895_s3 + $0x2938] sm:$0xff] }
 0x616   : > { %11504 = vmatprep.subr.bf16.mxu0 %v12992_v28  ;;  %v1723_v25 = vld [vmem:[%s13895_s3 + $0x2d18] sm:$0xff]  ;;  %v13216_v49 = vcombine.high %v1595_v60, %v1599_v10  ;;  %v13215_v16 = vcombine.low %v1595_v60, %v1599_v10 }
 0x617   : > { %11544 = vmatpush2.bf16.msra.mxu1 %v13127_v7  ;;  %v1727_v5 = vld [vmem:[%s13895_s3 + $0x2d38] sm:$0xff] }
 0x618   : > { %11545 = vmatprep.subr.bf16.mxu1 %v13120_v27  ;;  %v13344_v1 = vcombine.high %v1723_v25, %v1727_v5  ;;  %v1587_v51 = vld [vmem:[%s13895_s3 + $0x28d8] sm:$0xff]  ;;  %v13343_v58 = vcombine.low %v1723_v25, %v1727_v5 }
 0x619   : > { %11505 = vmatpush2.bf16.msra.mxu0 %v12991_v20  ;;  %v1715_v23 = vld [vmem:[%s13895_s3 + $0x2cd8] sm:$0xff] }
 0x61a   : > { %11556 = vmatprep.subr.bf16.mxu0 %v13240_v29  ;;  %v1719_v56 = vld [vmem:[%s13895_s3 + $0x2cf8] sm:$0xff] }
 0x61b   : > { %11546 = vmatpush2.bf16.msra.mxu1 %v13119_v39  ;;  %v13336_v63 = vcombine.high %v1715_v23, %v1719_v56  ;;  %v1579_v0 = vld [vmem:[%s13895_s3 + $0x2898] sm:$0xff]  ;;  %v13335_v59 = vcombine.low %v1715_v23, %v1719_v56 }
 0x61c   : > { %11597 = vmatprep.subr.bf16.mxu1 %v13368_v8  ;;  %v11262_v44 = vpop.f32.mrf.mxu0  ;;  %11507 = vmatmul.mubr.bf16.vlgmr.msra.gmra.mxu0 %v14392_v41  ;;  %v1583_v11 = vld [vmem:[%s13895_s3 + $0x28b8] sm:$0xff] }
 0x61d   : > { %v11263_v30 = vadd.f32 %v11262_v44, %v15693_v53  ;;  %11557 = vmatpush1.bf16.msra.mxu0 %v13239_v18  ;;  %v13352_v53 = vcombine.high %v1731_v52, %v1735_v57  ;;  %11588 = vmatprep.mubr.bf16.mxu0 %v14399_v55  ;;  %v1707_v7 = vld [vmem:[%s13895_s3 + $0x2c98] sm:$0xff]  ;;  %v13200_v17 = vcombine.high %v1579_v0, %v1583_v11 }
 0x61e   : > { %v11303_v34 = vpop.f32.mrf.mxu1  ;;  %11548 = vmatmul.mubr.bf16.vlgmr.msra.gmra.mxu1 %v14403_v61  ;;  %v11264_v54 = vpop.f32.mrf.mxu0  ;;  %11558 = vmatprep.subr.bf16.mxu0 %v13232_v42  ;;  %v1711_v28 = vld [vmem:[%s13895_s3 + $0x2cb8] sm:$0xff]  ;;  %v13199_v8 = vcombine.low %v1579_v0, %v1583_v11 }
 0x61f   : > { %11598 = vmatpush1.bf16.msra.mxu1 %v13367_v13  ;;  %v15766_v9 = vadd.f32 %v11303_v34, %v11263_v30  ;;  %v11265_v41 = vadd.f32 %v11264_v54, %v15698_v3  ;;  %11629 = vmatprep.mubr.bf16.mxu1 %v14412_v6  ;;  %v13223_v3 = vcombine.low %v1603_v46, %v1607_v19  ;;  %v1591_v6 = vld [vmem:[%s13895_s3 + $0x28f8] sm:$0xff] }
 0x620   : > { %v11305_v38 = vpop.f32.mrf.mxu1  ;;  %11599 = vmatprep.subr.bf16.mxu1 %v13360_v15  ;;  %v11266_v61 = vpop.f32.mrf.mxu0  ;;  %v13208_v26 = vcombine.high %v1587_v51, %v1591_v6  ;;  %v13207_v27 = vcombine.low %v1587_v51, %v1591_v6  ;;  %v13328_v22 = vcombine.high %v1707_v7, %v1711_v28  ;;  %v1571_v31 = vld [vmem:[%s13895_s3 + $0x2858] sm:$0xff]  ;;  %v13327_v35 = vcombine.low %v1707_v7, %v1711_v28 }
 0x621   : > { %v15775_v14 = vadd.f32 %v11305_v38, %v11265_v41  ;;  %11559 = vmatpush1.bf16.msra.mxu0 %v13231_v4  ;;  %v1575_v20 = vld [vmem:[%s13895_s3 + $0x2878] sm:$0xff] }
 0x622   : > { %v11307_v62 = vpop.f32.mrf.mxu1  ;;  %v11267_v43 = vpop.f32.mrf.mxu0  ;;  %11560 = vmatprep.subr.bf16.mxu0 %v13224_v32  ;;  %v1699_v39 = vld [vmem:[%s13895_s3 + $0x2c58] sm:$0xff]  ;;  %v13192_v21 = vcombine.high %v1571_v31, %v1575_v20  ;;  %v13191_v15 = vcombine.low %v1571_v31, %v1575_v20 }
 0x623   : > { %11600 = vmatpush1.bf16.msra.mxu1 %v13359_v24  ;;  %v1703_v29 = vld [vmem:[%s13895_s3 + $0x2c78] sm:$0xff] }
 0x624   : > { %v11308_v55 = vpop.f32.mrf.mxu1  ;;  %11601 = vmatprep.subr.bf16.mxu1 %v13352_v53  ;;  %v13320_v36 = vcombine.high %v1699_v39, %v1703_v29  ;;  %v1563_v12 = vld [vmem:[%s13895_s3 + $0x2818] sm:$0xff]  ;;  %v13319_v46 = vcombine.low %v1699_v39, %v1703_v29 }
 0x625   : > { %11561 = vmatpush1.bf16.msra.mxu0 %v13223_v3  ;;  %v1567_v18 = vld [vmem:[%s13895_s3 + $0x2838] sm:$0xff] }
 0x626   : > { %11562 = vmatprep.subr.bf16.mxu0 %v13216_v49  ;;  %v1691_v13 = vld [vmem:[%s13895_s3 + $0x2c18] sm:$0xff]  ;;  %v13184_v19 = vcombine.high %v1563_v12, %v1567_v18  ;;  %v13183_v4 = vcombine.low %v1563_v12, %v1567_v18 }
 0x627   : > { %11602 = vmatpush1.bf16.msra.mxu1 %v13351_v47  ;;  %v1695_v42 = vld [vmem:[%s13895_s3 + $0x2c38] sm:$0xff] }
 0x628   : > { %11603 = vmatprep.subr.bf16.mxu1 %v13344_v1  ;;  %v13312_v44 = vcombine.high %v1691_v13, %v1695_v42  ;;  %v1683_v52 = vld [vmem:[%s13895_s3 + $0x2bd8] sm:$0xff]  ;;  %v13311_v54 = vcombine.low %v1691_v13, %v1695_v42 }
 0x629   : > { %11563 = vmatpush1.bf16.msra.mxu0 %v13215_v16  ;;  %v1687_v57 = vld [vmem:[%s13895_s3 + $0x2bf8] sm:$0xff] }
 0x62a   : > { %11564 = vmatprep.subr.bf16.mxu0 %v13208_v26  ;;  %v1811_v30 = vld [vmem:[%s13895_s3 + $0x2fd8] sm:$0xff]  ;;  %v13304_v24 = vcombine.high %v1683_v52, %v1687_v57  ;;  %v13303_v10 = vcombine.low %v1683_v52, %v1687_v57 }
 0x62b   : > { %11604 = vmatpush1.bf16.msra.mxu1 %v13343_v58  ;;  %v1815_v34 = vld [vmem:[%s13895_s3 + $0x2ff8] sm:$0xff] }
 0x62c   : > { %11605 = vmatprep.subr.bf16.mxu1 %v13336_v63  ;;  %v13432_v32 = vcombine.high %v1811_v30, %v1815_v34  ;;  %v1675_v41 = vld [vmem:[%s13895_s3 + $0x2b98] sm:$0xff]  ;;  %v13431_v61 = vcombine.low %v1811_v30, %v1815_v34 }
 0x62d   : > { %11565 = vmatpush1.bf16.msra.mxu0 %v13207_v27  ;;  %v1679_v38 = vld [vmem:[%s13895_s3 + $0x2bb8] sm:$0xff] }
 0x62e   : > { %11566 = vmatprep.subr.bf16.mxu0 %v13200_v17  ;;  %v1803_v53 = vld [vmem:[%s13895_s3 + $0x2f98] sm:$0xff]  ;;  %v13296_v25 = vcombine.high %v1675_v41, %v1679_v38  ;;  %v13295_v49 = vcombine.low %v1675_v41, %v1679_v38 }
 0x62f   : > { %11606 = vmatpush1.bf16.msra.mxu1 %v13335_v59  ;;  %v1807_v60 = vld [vmem:[%s13895_s3 + $0x2fb8] sm:$0xff] }
 0x630   : > { %11607 = vmatprep.subr.bf16.mxu1 %v13328_v22  ;;  %v13424_v5 = vcombine.high %v1803_v53, %v1807_v60  ;;  %v1667_v62 = vld [vmem:[%s13895_s3 + $0x2b58] sm:$0xff]  ;;  %v13423_v55 = vcombine.low %v1803_v53, %v1807_v60 }
 0x631   : > { %11567 = vmatpush1.bf16.msra.mxu0 %v13199_v8  ;;  %v1671_v3 = vld [vmem:[%s13895_s3 + $0x2b78] sm:$0xff] }
 0x632   : > { %11568 = vmatprep.subr.bf16.mxu0 %v13192_v21  ;;  %v1795_v43 = vld [vmem:[%s13895_s3 + $0x2f58] sm:$0xff]  ;;  %v13288_v1 = vcombine.high %v1667_v62, %v1671_v3  ;;  %v13287_v58 = vcombine.low %v1667_v62, %v1671_v3 }
 0x633   : > { %11608 = vmatpush1.bf16.msra.mxu1 %v13327_v35  ;;  %v1799_v47 = vld [vmem:[%s13895_s3 + $0x2f78] sm:$0xff] }
 0x634   : > { %11609 = vmatprep.subr.bf16.mxu1 %v13320_v36  ;;  %v13416_v51 = vcombine.high %v1795_v43, %v1799_v47  ;;  %v1659_v6 = vld [vmem:[%s13895_s3 + $0x2b18] sm:$0xff]  ;;  %v13415_v26 = vcombine.low %v1795_v43, %v1799_v47 }
 0x635   : > { %11569 = vmatpush1.bf16.msra.mxu0 %v13191_v15  ;;  %v1663_v23 = vld [vmem:[%s13895_s3 + $0x2b38] sm:$0xff] }
 0x636   : > { %11570 = vmatprep.subr.bf16.mxu0 %v13184_v19  ;;  %v1787_v56 = vld [vmem:[%s13895_s3 + $0x2f18] sm:$0xff]  ;;  %v13280_v63 = vcombine.high %v1659_v6, %v1663_v23  ;;  %v13279_v59 = vcombine.low %v1659_v6, %v1663_v23 }
 0x637   : > { %11610 = vmatpush1.bf16.msra.mxu1 %v13319_v46  ;;  %v1791_v16 = vld [vmem:[%s13895_s3 + $0x2f38] sm:$0xff] }
 0x638   : > { %11611 = vmatprep.subr.bf16.mxu1 %v13312_v44  ;;  %v13408_v0 = vcombine.high %v1787_v56, %v1791_v16  ;;  %v1651_v11 = vld [vmem:[%s13895_s3 + $0x2ad8] sm:$0xff]  ;;  %v13407_v17 = vcombine.low %v1787_v56, %v1791_v16 }
 0x639   : > { %11571 = vmatpush1.bf16.msra.mxu0 %v13183_v4  ;;  %v1655_v7 = vld [vmem:[%s13895_s3 + $0x2af8] sm:$0xff] }
 0x63a   : > { %11572 = vmatprep.subr.bf16.mxu0 %v13304_v24  ;;  %v1779_v28 = vld [vmem:[%s13895_s3 + $0x2ed8] sm:$0xff]  ;;  %v13272_v22 = vcombine.high %v1651_v11, %v1655_v7  ;;  %v13271_v35 = vcombine.low %v1651_v11, %v1655_v7 }
 0x63b   : > { %11612 = vmatpush1.bf16.msra.mxu1 %v13311_v54  ;;  %v1783_v27 = vld [vmem:[%s13895_s3 + $0x2ef8] sm:$0xff] }
 0x63c   : > { %11613 = vmatprep.subr.bf16.mxu1 %v13432_v32  ;;  %v13400_v31 = vcombine.high %v1779_v28, %v1783_v27  ;;  %v1643_v20 = vld [vmem:[%s13895_s3 + $0x2a98] sm:$0xff]  ;;  %v13399_v21 = vcombine.low %v1779_v28, %v1783_v27 }
 0x63d   : > { %11573 = vmatpush2.bf16.msra.mxu0 %v13303_v10  ;;  %v1647_v39 = vld [vmem:[%s13895_s3 + $0x2ab8] sm:$0xff] }
 0x63e   : > { %11574 = vmatprep.subr.bf16.mxu0 %v13296_v25  ;;  %v1771_v29 = vld [vmem:[%s13895_s3 + $0x2e98] sm:$0xff]  ;;  %v13264_v36 = vcombine.high %v1643_v20, %v1647_v39  ;;  %v13263_v46 = vcombine.low %v1643_v20, %v1647_v39 }
 0x63f   : > { %11614 = vmatpush2.bf16.msra.mxu1 %v13431_v61  ;;  %v1775_v8 = vld [vmem:[%s13895_s3 + $0x2eb8] sm:$0xff] }
 0x640   : > { %11615 = vmatprep.subr.bf16.mxu1 %v13424_v5  ;;  %v13392_v12 = vcombine.high %v1771_v29, %v1775_v8  ;;  %v1635_v18 = vld [vmem:[%s13895_s3 + $0x2a58] sm:$0xff]  ;;  %v13391_v19 = vcombine.low %v1771_v29, %v1775_v8 }
 0x641   : > { %11575 = vmatpush2.bf16.msra.mxu0 %v13295_v49  ;;  %v1639_v13 = vld [vmem:[%s13895_s3 + $0x2a78] sm:$0xff] }
 0x642   : > { %11576 = vmatprep.subr.bf16.mxu0 %v13288_v1  ;;  %v1763_v42 = vld [vmem:[%s13895_s3 + $0x2e58] sm:$0xff]  ;;  %v13256_v44 = vcombine.high %v1635_v18, %v1639_v13  ;;  %v13255_v54 = vcombine.low %v1635_v18, %v1639_v13 }
 0x643   : > { %11616 = vmatpush2.bf16.msra.mxu1 %v13423_v55  ;;  %v1767_v15 = vld [vmem:[%s13895_s3 + $0x2e78] sm:$0xff] }
 0x644   : > { %11617 = vmatprep.subr.bf16.mxu1 %v13416_v51  ;;  %v13384_v52 = vcombine.high %v1763_v42, %v1767_v15  ;;  %v1627_v57 = vld [vmem:[%s13895_s3 + $0x2a18] sm:$0xff]  ;;  %v13383_v24 = vcombine.low %v1763_v42, %v1767_v15 }
 0x645   : > { %11577 = vmatpush2.bf16.msra.mxu0 %v13287_v58  ;;  %v1631_v30 = vld [vmem:[%s13895_s3 + $0x2a38] sm:$0xff] }
 0x646   : > { %11578 = vmatprep.subr.bf16.mxu0 %v13280_v63  ;;  %v1755_v34 = vld [vmem:[%s13895_s3 + $0x2e18] sm:$0xff]  ;;  %v13248_v32 = vcombine.high %v1627_v57, %v1631_v30  ;;  %v13247_v38 = vcombine.low %v1627_v57, %v1631_v30  ;;  %v11671_v57 = vrot.slane %v11663_v33, %v15178_v2 }
 0x647   : > { %11618 = vmatpush2.bf16.msra.mxu1 %v13415_v26  ;;  %v1759_v4 = vld [vmem:[%s13895_s3 + $0x2e38] sm:$0xff] }
 0x648   : > { %11619 = vmatprep.subr.bf16.mxu1 %v13408_v0  ;;  %v13376_v41 = vcombine.high %v1755_v34, %v1759_v4  ;;  %v13375_v53 = vcombine.low %v1755_v34, %v1759_v4  ;;  %v276_v34 = vld [vmem:[%s13919_s6 + $0x8] sm:$0xff] }
 0x649   : > { %11579 = vmatpush2.bf16.msra.mxu0 %v13279_v59 }
 0x64a   : > { %11580 = vmatprep.subr.bf16.mxu0 %v13272_v22 }
 0x64b   : > { %11620 = vmatpush2.bf16.msra.mxu1 %v13407_v17 }
 0x64c   : > { %11621 = vmatprep.subr.bf16.mxu1 %v13400_v31 }
 0x64d   : > { %11581 = vmatpush2.bf16.msra.mxu0 %v13271_v35 }
 0x64e   : > { %11582 = vmatprep.subr.bf16.mxu0 %v13264_v36 }
 0x64f   : > { %11622 = vmatpush2.bf16.msra.mxu1 %v13399_v21 }
 0x650   : > { %11623 = vmatprep.subr.bf16.mxu1 %v13392_v12 }
 0x651   : > { %11583 = vmatpush2.bf16.msra.mxu0 %v13263_v46 }
 0x652   : > { %11584 = vmatprep.subr.bf16.mxu0 %v13256_v44 }
 0x653   : > { %11624 = vmatpush2.bf16.msra.mxu1 %v13391_v19 }
 0x654   : > { %11625 = vmatprep.subr.bf16.mxu1 %v13384_v52 }
 0x655   : > { %11585 = vmatpush2.bf16.msra.mxu0 %v13255_v54 }
 0x656   : > { %11586 = vmatprep.subr.bf16.mxu0 %v13248_v32 }
 0x657   : > { %11626 = vmatpush2.bf16.msra.mxu1 %v13383_v24 }
 0x658   : > { %11627 = vmatprep.subr.bf16.mxu1 %v13376_v41 }
 0x659   : > { %11587 = vmatpush2.bf16.msra.mxu0 %v13247_v38 }
 0x65b   : > { %11628 = vmatpush2.bf16.msra.mxu1 %v13375_v53 }
 0x65c   : > { %v11344_v60 = vpop.f32.mrf.mxu0  ;;  %11589 = vmatmul.mubr.bf16.vlgmr.msra.gmra.mxu0 %v14481_v50 }
 0x65d   : > { %v11345_v10 = vadd.f32 %v11344_v60, %v15766_v9 }
 0x65e   : > { %v11385_v61 = vpop.f32.mrf.mxu1  ;;  %11630 = vmatmul.mubr.bf16.vlgmr.msra.gmra.mxu1 %v14489_v37  ;;  %v11346_v25 = vpop.f32.mrf.mxu0 }
 0x65f   : > { %v11386_v5 = vadd.f32 %v11385_v61, %v11345_v10  ;;  %v11347_v62 = vadd.f32 %v11346_v25, %v15775_v14 }
 0x660   : > { %v11387_v3 = vpop.f32.mrf.mxu1  ;;  %v11348_v43 = vpop.f32.mrf.mxu0 }
 0x661   : > { %v11388_v47 = vadd.f32 %v11387_v3, %v11347_v62 }
 0x662   : > { %v11389_v49 = vpop.f32.mrf.mxu1  ;;  %v11349_v55 = vpop.f32.mrf.mxu0 }
 0x664   : > { %v11390_v1 = vpop.f32.mrf.mxu1 }
 0x69c   : > { %v11426_v51 = vpop.f32.mrf.mxu0 }
 0x69d   : > { %v11427_v6 = vadd.f32 %v11426_v51, %v11386_v5 }
 0x69e   : > { %v11467_v23 = vpop.f32.mrf.mxu1  ;;  %v11428_v56 = vpop.f32.mrf.mxu0 }
 0x69f   : > { %v11468_v50 = vadd.f32 %v11467_v23, %v11427_v6  ;;  %v11429_v16 = vadd.f32 %v11428_v56, %v11388_v47 }
 0x6a0   : > { %v11469_v9 = vpop.f32.mrf.mxu1  ;;  %v11430_v58 = vpop.f32.mrf.mxu0 }
 0x6a1   : > { %v11470_v26 = vadd.f32 %v11469_v9, %v11429_v16 }
 0x6a2   : > { %v11471_v37 = vpop.f32.mrf.mxu1  ;;  %v11431_v63 = vpop.f32.mrf.mxu0 }
 0x6a4   : > { %v11472_v0 = vpop.f32.mrf.mxu1 }
 0x6dc   : > { %v11508_v11 = vpop.f32.mrf.mxu0 }
 0x6dd   : > { %v11509_v31 = vadd.f32 %v11508_v11, %v11468_v50 }
 0x6de   : > { %v11549_v14 = vpop.f32.mrf.mxu1  ;;  %v11510_v7 = vpop.f32.mrf.mxu0 }
 0x6df   : > { %v11511_v20 = vadd.f32 %v11510_v7, %v11470_v26  ;;  %v11550_v39 = vadd.f32 %v11549_v14, %v11509_v31 }
 0x6e0   : > { %v11551_v28 = vpop.f32.mrf.mxu1  ;;  %v11512_v27 = vpop.f32.mrf.mxu0 }
 0x6e1   : > { %v11552_v8 = vadd.f32 %v11551_v28, %v11511_v20 }
 0x6e2   : > { %v11553_v59 = vpop.f32.mrf.mxu1  ;;  %v11513_v17 = vpop.f32.mrf.mxu0 }
 0x6e4   : > { %v11554_v22 = vpop.f32.mrf.mxu1 }
 0x71c   : > { %v11590_v29 = vpop.f32.mrf.mxu0 }
 0x71d   : > { %v11591_v35 = vadd.f32 %v11590_v29, %v11550_v39 }
 0x71e   : > { %v11631_v21 = vpop.f32.mrf.mxu1  ;;  %v11592_v36 = vpop.f32.mrf.mxu0 }
 0x71f   : > { %v11593_v12 = vadd.f32 %v11592_v36, %v11552_v8  ;;  %v11632_v42 = vadd.f32 %v11631_v21, %v11591_v35 }
 0x720   : > { %v11633_v18 = vpop.f32.mrf.mxu1  ;;  %v11594_v13 = vpop.f32.mrf.mxu0 }
 0x721   : > { %v11634_v15 = vadd.f32 %v11633_v18, %v11593_v12 }
 0x722   : > { %v11635_v46 = vpop.f32.mrf.mxu1  ;;  %v11595_v19 = vpop.f32.mrf.mxu0 }
 0x723   : > { %v11664_v44 = vcombine.low %v11632_v42, %v11634_v15 }
 0x724   : > { %v11636_v52 = vpop.f32.mrf.mxu1 }
 0x725   : > { %v11678_v30 = vrot.slane %v11664_v44, %v15178_v2 }
 0x727   : > { %v11679_v4 = vcombine.low %v11671_v57, %v11678_v30  ;;  %11689 = sbr.rel (%p13433_p0) target bundleno = 1852 (0x73c), region = 48 }
 0x729   : > { %v11683_v54 = vadd.f32 %v11679_v4, %v276_v34 }
 0x72b   : > { %11685 = vst [vmem:[%s13919_s6 + $0x8] sm:$0xff] %v11683_v54 }
 0x72c   : > { %v11692_v24 = vld [vmem:[%s223_s27] sm:$0xff]  ;;  %v11696_v32 = vsub.s32 0, %v13946_v45  ;;  %v11700_v41 = vsub.s32 1, %v13946_v45  ;;  %v11704_v38 = vsub.s32 2, %v13946_v45  ;;  %v11708_v48 = vsub.s32 3, %v13946_v45 }
 0x72d   : > { %v11712_v40 = vsub.s32 4, %v13946_v45  ;;  %v11716_v33 = vsub.s32 5, %v13946_v45  ;;  %v11720_v53 = vsub.s32 6, %v13946_v45  ;;  %v11724_v60 = vsub.s32 7, %v13946_v45  ;;  %v11690_v45 = vld [vmem:[%s13919_s6] sm:$0xff] }
 0x72e   : > { %v11697_v10 = vrot.slane %v11692_v24, %v11696_v32  ;;  %v11701_v61 = vrot.slane %v11692_v24, %v11700_v41  ;;  %v11705_v25 = vrot.slane %v11692_v24, %v11704_v38  ;;  %v11709_v5 = vrot.slane %v11692_v24, %v11708_v48 }
 0x72f   : > { %v11713_v62 = vrot.slane %v11692_v24, %v11712_v40  ;;  %v11717_v3 = vrot.slane %v11692_v24, %v11716_v33  ;;  %v11721_v43 = vrot.slane %v11692_v24, %v11720_v53  ;;  %v11725_v47 = vrot.slane %v11692_v24, %v11724_v60 }
 0x730   : > { %v11726_v49 = vcombine.low %v11697_v10, %v11701_v61  ;;  %v11727_v55 = vcombine.low %v11705_v25, %v11709_v5 }
 0x731   : > { %v11743_v1 = vcombine.low %v11713_v62, %v11717_v3  ;;  %v11744_v51 = vcombine.low %v11721_v43, %v11725_v47 }
 0x732   : > { %v11734_v6 = vrot.slane %v11726_v49, %v15178_v2  ;;  %v11741_v23 = vrot.slane %v11727_v55, %v15178_v2  ;;  %v11691_v9 = vld [vmem:[%s13919_s6 + $0x8] sm:$0xff] }
 0x733   : > { %v11751_v56 = vrot.slane %v11743_v1, %v15178_v2  ;;  %v11758_v50 = vrot.slane %v11744_v51, %v15178_v2 }
 0x734   : > { %v11742_v16 = vcombine.low %v11734_v6, %v11741_v23 }
 0x735   : > { %v11759_v58 = vcombine.low %v11751_v56, %v11758_v50 }
 0x736   : > { %v11762_v26 = vadd.f32 %v11742_v16, %v11690_v45 }
 0x737   : > { %v11763_v37 = vadd.f32 %v11759_v58, %v11691_v9 }
 0x738   : > { %v11764_v63 = vmax.f32 %v11762_v26, 0.0 }
 0x739   : > { %v11765_v0 = vmax.f32 %v11763_v37, 0.0 }
 0x73a   : > { %11766 = vst [vmem:[%s13919_s6] sm:$0xff] %v11764_v63 }
 0x73b   : > { %11767 = vst [vmem:[%s13919_s6 + $0x8] sm:$0xff] %v11765_v0 }
 0x73c PF: > { %s19_s22 = sadd.s32 1, %s13699_s22   ;;  %s15908_s12 = smov %s13663_s13 }
 0x73d   : > { %p16_p1 = scmp.ge.s32.totalorder %s19_s22, 18   ;;  %s15909_s13 = smov %s13667_s14 }
 0x73e   : > { %s15910_s14 = smov %s13869_s10  ;;  %s15911_s15 = smov %s13675_s16 }
 0x73f   : > { %s15912_s16 = smov %s13679_s17  ;;  %s15913_s17 = smov %s13874_s29 }
 0x740   : > { %s15914_s18 = smov %s13691_s20  ;;  %s15915_s19 = smov %s13695_s21 }
 0x741   : > { %s15916_s20 = smov %s15919_s23  ;;  %s15917_s21 = smov %s15923_s30 }
 0x742   :  { %18 = sbr.rel (!%p16_p1) target bundleno = 13 (0xd), region = 96 }
 0x747   :  { %11790 = vsyncpa [#allocation3], 1 }
 0x748   :  { %11792 = vsyncpa [#allocation3 + $0x1], 1 }
 0x749   :  { %11793 = vsyncpa [#allocation5], 1 }
 0x74a   :  { %11795 = vsyncpa [#allocation5 + $0x1], 1 }

</bundles_post_ra>
